<compile_context>
chip_gen: v7x
topology: tpu7x:2x2x1
jax: 0.10.0
libtpu: 0.0.40
codegen_flags: <defaults>
</compile_context>

<pallas_src>
import jax
import jax.numpy as jnp
from jax import lax
from jax.experimental import pallas as pl
from jax.experimental.pallas import tpu as pltpu
from jax.scipy.special import logsumexp


def ner_crf_kernel(w_ref, b_ref, start_ref, end_ref, trans_ref,
                   seq_ref, oh_ref, gtr_ref, mask_ref, bvalid_ref,
                   out_ref):
    T = seq_ref.shape[0]
    C = oh_ref.shape[1]
    Bt = oh_ref.shape[2]

    w = w_ref[...]                       # (C, H)  bf16
    bias = b_ref[...]                    # (C, 1)  f32
    start = start_ref[...]               # (C, 1)
    end = end_ref[...]                   # (C, 1)
    trans = trans_ref[...]               # (C, C)

    def emit(t):
        # classifier Linear(768 -> C) on the MXU, one timestep slab, f32 accumulate.
        return jnp.dot(w, seq_ref[t], preferred_element_type=jnp.float32) + bias  # (C, Bt)

    e0 = emit(0)
    oh0 = oh_ref[0]                                                  # (C, Bt)
    score0 = jnp.sum((start + e0) * oh0, axis=0, keepdims=True)      # (1, Bt)
    alpha0 = start + e0                                              # (C, Bt)
    last_oh0 = oh0

    def body(t, carry):
        alpha, score, last_oh = carry
        e_t = emit(t)                    # (C, Bt)
        oh_t = oh_ref[t]                 # (C, Bt)
        m_t = mask_ref[t]                # (1, Bt)
        g_t = gtr_ref[t]                 # (1, Bt)  trans[tag[t-1], tag[t]] (precomputed in XLA)

        # ---- numerator: gold path score ----
        e_sel = jnp.sum(e_t * oh_t, axis=0, keepdims=True)           # emission at gold tag
        score = score + (g_t + e_sel) * m_t

        # ---- denominator: forward log-sum-exp recursion over previous tag (sublane axis) ----
        brd = alpha[:, None, :] + trans[:, :, None]                  # (C_prev, C_next, Bt)
        mmax = jnp.max(brd, axis=0)                                  # (C, Bt)
        nxt = jnp.log(jnp.sum(jnp.exp(brd - mmax[None, :, :]), axis=0)) + mmax + e_t
        alpha = jnp.where(m_t > 0.0, nxt, alpha)

        # track one-hot of the last valid tag for the end transition (loop carry, no final scan)
        last_oh = jnp.where(m_t > 0.0, oh_t, last_oh)
        return alpha, score, last_oh

    unroll = min(8, max(T - 1, 1))
    alpha, score, last_oh = lax.fori_loop(
        1, T, body, (alpha0, score0, last_oh0), unroll=unroll)

    score = score + jnp.sum(end * last_oh, axis=0, keepdims=True)    # end transition at last valid step

    alpha = alpha + end
    amax = jnp.max(alpha, axis=0, keepdims=True)
    denom = jnp.log(jnp.sum(jnp.exp(alpha - amax), axis=0, keepdims=True)) + amax  # (1, Bt)

    llh = score - denom                                              # (1, Bt)
    # lane-dense store; padded batch lanes are zeroed by the validity mask
    out_ref[...] = (-(llh * bvalid_ref[...])).reshape(1, 1, Bt)


def bert_stub(params, input_ids, token_type_ids, attention_mask):
    # TODO(synk): the pretrained bert-base-chinese 12-layer transformer encoder has no clean
    # in-script equivalent; stand in with deterministic embeddings + LayerNorm producing the
    # same (B, T, 768) last_hidden_state contract.
    del attention_mask  # only consumed inside the (omitted) attention layers
    T = input_ids.shape[1]
    h = (params["word_emb"][input_ids]
         + params["type_emb"][token_type_ids]
         + params["pos_emb"][None, :T, :])
    mu = jnp.mean(h, axis=-1, keepdims=True)
    var = jnp.var(h, axis=-1, keepdims=True)
    return (h - mu) * lax.rsqrt(var + 1e-12) * params["ln_g"] + params["ln_b"]


def combined_ner_forward(params, inputs, targets, b_tile=128):
    C = params["cls_w"].shape[1]
    seq = bert_stub(params, inputs["input_ids"], inputs["token_type_ids"],
                    inputs["attention_mask"])                        # (B, T, 768) f32
    # need_rnn=False -> no BiLSTM; dropout is identity (eval / deterministic semantics).
    B, T, H = seq.shape

    # targets_mask = (targets != -100); targets = where(targets == -100, 0, targets); mask[:, 0] = 1
    tags = jnp.where(targets == -100, 0, targets)                    # (B, T)
    mask = (targets != -100).astype(jnp.float32).at[:, 0].set(1.0)   # (B, T)

    # gold-path transition scores precomputed with a trivial XLA gather (t=0 column is 0)
    gtr = params["crf_trans"][tags[:, :-1], tags[:, 1:]]             # (B, T-1)
    gtr = jnp.pad(gtr, ((0, 0), (1, 0)))                             # (B, T)

    oh = jax.nn.one_hot(tags, C, dtype=jnp.float32)                  # (B, T, C)

    # ---- pad batch to a multiple of the lane-width tile and build per-lane validity ----
    num_tiles = pl.cdiv(B, b_tile)
    b_pad = num_tiles * b_tile
    pad = b_pad - B

    def pad_b(x):
        return jnp.pad(x, ((0, pad),) + ((0, 0),) * (x.ndim - 1))

    seq_p, oh_p, mask_p, gtr_p = pad_b(seq), pad_b(oh), pad_b(mask), pad_b(gtr)
    bvalid = (jnp.arange(b_pad) < B).astype(jnp.float32).reshape(1, b_pad)

    # ---- lane-dense layouts: batch on the last (lane) axis, tags on sublanes ----
    seq_thb = jnp.transpose(seq_p, (1, 2, 0)).astype(jnp.bfloat16)   # (T, H, B_pad) bf16
    oh_tcb = jnp.transpose(oh_p, (1, 2, 0))                          # (T, C, B_pad)
    mask_t1b = jnp.transpose(mask_p, (1, 0)).reshape(T, 1, b_pad)
    gtr_t1b = jnp.transpose(gtr_p, (1, 0)).reshape(T, 1, b_pad)

    w_t = params["cls_w"].T.astype(jnp.bfloat16)                     # (C, H) bf16
    bias = params["cls_b"].reshape(C, 1)
    start = params["crf_start"].reshape(C, 1)
    end = params["crf_end"].reshape(C, 1)
    trans = params["crf_trans"]

    # NOTE: for long production sequences (e.g. T=512) also tile T (carry alpha across an
    # "arbitrary" time axis) so the per-tile seq slab stays within the VMEM budget on v7x.
    out = pl.pallas_call(
        ner_crf_kernel,
        out_shape=jax.ShapeDtypeStruct((num_tiles, 1, b_tile), jnp.float32),
        grid_spec=pltpu.PrefetchScalarGridSpec(
            num_scalar_prefetch=0,
            grid=(num_tiles,),
            in_specs=[
                pl.BlockSpec((C, H), lambda b: (0, 0)),              # classifier weight (resident)
                pl.BlockSpec((C, 1), lambda b: (0, 0)),              # classifier bias
                pl.BlockSpec((C, 1), lambda b: (0, 0)),              # crf start
                pl.BlockSpec((C, 1), lambda b: (0, 0)),              # crf end
                pl.BlockSpec((C, C), lambda b: (0, 0)),              # crf transitions
                pl.BlockSpec((T, H, b_tile), lambda b: (0, 0, b)),   # seq (bf16)
                pl.BlockSpec((T, C, b_tile), lambda b: (0, 0, b)),   # gold one-hots
                pl.BlockSpec((T, 1, b_tile), lambda b: (0, 0, b)),   # gold transition scores
                pl.BlockSpec((T, 1, b_tile), lambda b: (0, 0, b)),   # mask
                pl.BlockSpec((1, b_tile), lambda b: (0, b)),         # batch-valid lanes
            ],
            out_specs=pl.BlockSpec((1, 1, b_tile), lambda b: (b, 0, 0)),
        ),
        compiler_params=pltpu.CompilerParams(
            dimension_semantics=("parallel",),        # megacore: batch tiles split across TCs (v7x)
            vmem_limit_bytes=48 * 1024 * 1024,        # headroom under v7x's 64 MiB physical VMEM
        ),
    )(w_t, bias, start, end, trans, seq_thb, oh_tcb, gtr_t1b, mask_t1b, bvalid)

    return jnp.sum(out)                                              # torchcrf reduction='sum', * (-1)


def reference_forward(params, inputs, targets):
    """Pure-JAX replica of the PyTorch forward (classifier + torchcrf) for validation.
    The matmul inputs are quantized to bf16 exactly as the kernel consumes them."""
    seq = bert_stub(params, inputs["input_ids"], inputs["token_type_ids"],
                    inputs["attention_mask"])
    seq_q = seq.astype(jnp.bfloat16).astype(jnp.float32)
    w_q = params["cls_w"].astype(jnp.bfloat16).astype(jnp.float32)
    emis = seq_q @ w_q + params["cls_b"]                             # (B, T, C)
    tags = jnp.where(targets == -100, 0, targets)
    mask = (targets != -100).astype(jnp.float32).at[:, 0].set(1.0)
    B, T, C = emis.shape
    ar = jnp.arange(B)
    score = params["crf_start"][tags[:, 0]] + emis[ar, 0, tags[:, 0]]
    for t in range(1, T):
        score = score + (params["crf_trans"][tags[:, t - 1], tags[:, t]]
                         + emis[ar, t, tags[:, t]]) * mask[:, t]
    seq_ends = mask.sum(1).astype(jnp.int32) - 1
    score = score + params["crf_end"][tags[ar, seq_ends]]
    alpha = params["crf_start"][None, :] + emis[:, 0, :]
    for t in range(1, T):
        nxt = logsumexp(alpha[:, :, None] + params["crf_trans"][None]
                        + emis[:, t, :][:, None, :], axis=1)
        alpha = jnp.where(mask[:, t][:, None] > 0, nxt, alpha)
    denom = logsumexp(alpha + params["crf_end"][None, :], axis=1)
    return -(score - denom).sum()


if __name__ == "__main__":
    # B=160 with b_tile=128 -> 2 batch tiles, exercising the multi-tile "parallel" grid path.
    B, T, H, C, VOCAB = 160, 8, 768, 8, 64
    key = jax.random.PRNGKey(0)
    ks = jax.random.split(key, 10)
    params = {
        "word_emb": 0.02 * jax.random.normal(ks[0], (VOCAB, H), jnp.float32),
        "type_emb": 0.02 * jax.random.normal(ks[1], (2, H), jnp.float32),
        "pos_emb": 0.02 * jax.random.normal(ks[2], (T, H), jnp.float32),
        "ln_g": jnp.ones((H,), jnp.float32),
        "ln_b": jnp.zeros((H,), jnp.float32),
        "cls_w": 0.02 * jax.random.normal(ks[3], (H, C), jnp.float32),
        "cls_b": jnp.zeros((C,), jnp.float32),
        "crf_start": 0.1 * jax.random.normal(ks[4], (C,), jnp.float32),
        "crf_end": 0.1 * jax.random.normal(ks[5], (C,), jnp.float32),
        "crf_trans": 0.1 * jax.random.normal(ks[6], (C, C), jnp.float32),
    }

    input_ids = jax.random.randint(ks[7], (B, T), 0, VOCAB, dtype=jnp.int32)
    token_type_ids = jnp.zeros((B, T), jnp.int32)
    lengths = jax.random.randint(ks[9], (B,), 1, T + 1, dtype=jnp.int32)
    attention_mask = (jnp.arange(T)[None, :] < lengths[:, None]).astype(jnp.int32)
    raw_tags = jax.random.randint(ks[8], (B, T), 0, C, dtype=jnp.int32)
    targets = jnp.where(attention_mask == 1, raw_tags, -100)
    inputs = {"input_ids": input_ids, "token_type_ids": token_type_ids,
              "attention_mask": attention_mask}

    loss = jax.jit(combined_ner_forward)(params, inputs, targets)
    loss = jax.block_until_ready(loss)

    ref = reference_forward(params, inputs, targets)
    assert jnp.allclose(loss, ref, rtol=1e-3, atol=1e-1), (loss, ref)
    print("KERNEL_OK")
</pallas_src>

<mosaic_0001>
module attributes {stable_mosaic.version = 11 : i64} {
  func.func @ner_crf_kernel(%arg0: i32, %arg1: memref<8x768xbf16, #tpu.memory_space<vmem>>, %arg2: memref<8x1xf32, #tpu.memory_space<vmem>>, %arg3: memref<8x1xf32, #tpu.memory_space<vmem>>, %arg4: memref<8x1xf32, #tpu.memory_space<vmem>>, %arg5: memref<8x8xf32, #tpu.memory_space<vmem>>, %arg6: memref<8x768x128xbf16, #tpu.memory_space<vmem>>, %arg7: memref<8x8x128xf32, #tpu.memory_space<vmem>>, %arg8: memref<8x1x128xf32, #tpu.memory_space<vmem>>, %arg9: memref<8x1x128xf32, #tpu.memory_space<vmem>>, %arg10: memref<1x128xf32, #tpu.memory_space<vmem>>, %arg11: memref<1x1x128xf32, #tpu.memory_space<vmem>>) attributes {dimension_semantics = [#tpu.dimension_semantics<parallel>], iteration_bounds = array<i64: 2>, scalar_prefetch = 0 : i64, scratch_operands = 0 : i64, tpu.core_type = #tpu.core_type<tc>, window_params = [{pipeline_mode = #tpu.pipeline_mode<synchronous>, transform_indices = @transform_0, window_bounds = array<i64: 8, 768>}, {pipeline_mode = #tpu.pipeline_mode<synchronous>, transform_indices = @transform_1, window_bounds = array<i64: 8, 1>}, {pipeline_mode = #tpu.pipeline_mode<synchronous>, transform_indices = @transform_2, window_bounds = array<i64: 8, 1>}, {pipeline_mode = #tpu.pipeline_mode<synchronous>, transform_indices = @transform_3, window_bounds = array<i64: 8, 1>}, {pipeline_mode = #tpu.pipeline_mode<synchronous>, transform_indices = @transform_4, window_bounds = array<i64: 8, 8>}, {transform_indices = @transform_5, window_bounds = array<i64: 8, 768, 128>}, {transform_indices = @transform_6, window_bounds = array<i64: 8, 8, 128>}, {transform_indices = @transform_7, window_bounds = array<i64: 8, 1, 128>}, {transform_indices = @transform_8, window_bounds = array<i64: 8, 1, 128>}, {transform_indices = @transform_9, window_bounds = array<i64: 1, 128>}, {transform_indices = @transform_10, window_bounds = array<i64: 1, 1, 128>}]} {
    %c0 = arith.constant 0 : index
    %c0_0 = arith.constant 0 : index
    %0 = vector.load %arg1[%c0, %c0_0] : memref<8x768xbf16, #tpu.memory_space<vmem>>, vector<8x768xbf16>
    %c0_1 = arith.constant 0 : index
    %c0_2 = arith.constant 0 : index
    %1 = vector.load %arg2[%c0_1, %c0_2] : memref<8x1xf32, #tpu.memory_space<vmem>>, vector<8x1xf32>
    %c0_3 = arith.constant 0 : index
    %c0_4 = arith.constant 0 : index
    %2 = vector.load %arg3[%c0_3, %c0_4] : memref<8x1xf32, #tpu.memory_space<vmem>>, vector<8x1xf32>
    %c0_5 = arith.constant 0 : index
    %c0_6 = arith.constant 0 : index
    %3 = vector.load %arg4[%c0_5, %c0_6] : memref<8x1xf32, #tpu.memory_space<vmem>>, vector<8x1xf32>
    %c0_7 = arith.constant 0 : index
    %c0_8 = arith.constant 0 : index
    %4 = vector.load %arg5[%c0_7, %c0_8] : memref<8x8xf32, #tpu.memory_space<vmem>>, vector<8x8xf32>
    %c0_9 = arith.constant 0 : index
    %c0_10 = arith.constant 0 : index
    %c0_11 = arith.constant 0 : index
    %5 = vector.load %arg6[%c0_9, %c0_10, %c0_11] : memref<8x768x128xbf16, #tpu.memory_space<vmem>>, vector<1x768x128xbf16>
    %6 = vector.shape_cast %5 : vector<1x768x128xbf16> to vector<768x128xbf16>
    %cst = arith.constant dense<0.000000e+00> : vector<8x128xf32>
    %7 = tpu.matmul %0, %6, %cst {dimension_numbers = #tpu.dot_dimension_numbers<[1], [0], [0], [1], [0, 0, 1, 1], [], []>} : vector<8x768xbf16>, vector<768x128xbf16>, vector<8x128xf32> -> vector<8x128xf32>
    %8 = vector.broadcast %1 : vector<8x1xf32> to vector<8x128xf32>
    %9 = arith.addf %7, %8 : vector<8x128xf32>
    %c0_12 = arith.constant 0 : index
    %c0_13 = arith.constant 0 : index
    %c0_14 = arith.constant 0 : index
    %10 = vector.load %arg7[%c0_12, %c0_13, %c0_14] : memref<8x8x128xf32, #tpu.memory_space<vmem>>, vector<1x8x128xf32>
    %11 = vector.shape_cast %10 : vector<1x8x128xf32> to vector<8x128xf32>
    %12 = vector.broadcast %2 : vector<8x1xf32> to vector<8x128xf32>
    %13 = arith.addf %12, %9 : vector<8x128xf32>
    %14 = arith.mulf %13, %11 : vector<8x128xf32>
    %cst_15 = arith.constant dense<0.000000e+00> : vector<128xf32>
    %15 = vector.multi_reduction <add>, %14, %cst_15 [0] : vector<8x128xf32> to vector<128xf32>
    %16 = vector.shape_cast %15 : vector<128xf32> to vector<1x128xf32>
    %17 = vector.broadcast %2 : vector<8x1xf32> to vector<8x128xf32>
    %18 = arith.addf %17, %9 : vector<8x128xf32>
    %c1_i32 = arith.constant 1 : i32
    %19 = arith.index_cast %c1_i32 : i32 to index
    %c0_16 = arith.constant 0 : index
    %c0_17 = arith.constant 0 : index
    %20 = vector.load %arg6[%19, %c0_16, %c0_17] : memref<8x768x128xbf16, #tpu.memory_space<vmem>>, vector<1x768x128xbf16>
    %21 = vector.shape_cast %20 : vector<1x768x128xbf16> to vector<768x128xbf16>
    %cst_18 = arith.constant dense<0.000000e+00> : vector<8x128xf32>
    %22 = tpu.matmul %0, %21, %cst_18 {dimension_numbers = #tpu.dot_dimension_numbers<[1], [0], [0], [1], [0, 0, 1, 1], [], []>} : vector<8x768xbf16>, vector<768x128xbf16>, vector<8x128xf32> -> vector<8x128xf32>
    %23 = vector.broadcast %1 : vector<8x1xf32> to vector<8x128xf32>
    %24 = arith.addf %22, %23 : vector<8x128xf32>
    %25 = arith.index_cast %c1_i32 : i32 to index
    %c0_19 = arith.constant 0 : index
    %c0_20 = arith.constant 0 : index
    %26 = vector.load %arg7[%25, %c0_19, %c0_20] : memref<8x8x128xf32, #tpu.memory_space<vmem>>, vector<1x8x128xf32>
    %27 = vector.shape_cast %26 : vector<1x8x128xf32> to vector<8x128xf32>
    %28 = arith.index_cast %c1_i32 : i32 to index
    %c0_21 = arith.constant 0 : index
    %c0_22 = arith.constant 0 : index
    %29 = vector.load %arg9[%28, %c0_21, %c0_22] : memref<8x1x128xf32, #tpu.memory_space<vmem>>, vector<1x1x128xf32>
    %30 = vector.shape_cast %29 : vector<1x1x128xf32> to vector<1x128xf32>
    %31 = arith.index_cast %c1_i32 : i32 to index
    %c0_23 = arith.constant 0 : index
    %c0_24 = arith.constant 0 : index
    %32 = vector.load %arg8[%31, %c0_23, %c0_24] : memref<8x1x128xf32, #tpu.memory_space<vmem>>, vector<1x1x128xf32>
    %33 = vector.shape_cast %32 : vector<1x1x128xf32> to vector<1x128xf32>
    %34 = arith.mulf %24, %27 : vector<8x128xf32>
    %cst_25 = arith.constant dense<0.000000e+00> : vector<128xf32>
    %35 = vector.multi_reduction <add>, %34, %cst_25 [0] : vector<8x128xf32> to vector<128xf32>
    %36 = vector.shape_cast %35 : vector<128xf32> to vector<1x128xf32>
    %37 = arith.addf %33, %36 : vector<1x128xf32>
    %38 = arith.mulf %37, %30 : vector<1x128xf32>
    %39 = arith.addf %16, %38 : vector<1x128xf32>
    %40 = vector.shape_cast %18 : vector<8x128xf32> to vector<8x1x128xf32>
    %41 = vector.shape_cast %4 : vector<8x8xf32> to vector<8x8x1xf32>
    %42 = vector.broadcast %40 : vector<8x1x128xf32> to vector<8x8x128xf32>
    %43 = vector.broadcast %41 : vector<8x8x1xf32> to vector<8x8x128xf32>
    %44 = arith.addf %42, %43 : vector<8x8x128xf32>
    %cst_26 = arith.constant dense<0xFF800000> : vector<8x128xf32>
    %45 = vector.multi_reduction <maximumf>, %44, %cst_26 [0] : vector<8x8x128xf32> to vector<8x128xf32>
    %46 = vector.shape_cast %45 : vector<8x128xf32> to vector<1x8x128xf32>
    %47 = vector.broadcast %46 : vector<1x8x128xf32> to vector<8x8x128xf32>
    %48 = arith.subf %44, %47 : vector<8x8x128xf32>
    %49 = math.exp %48 : vector<8x8x128xf32>
    %cst_27 = arith.constant dense<0.000000e+00> : vector<8x128xf32>
    %50 = vector.multi_reduction <add>, %49, %cst_27 [0] : vector<8x8x128xf32> to vector<8x128xf32>
    %51 = math.log %50 : vector<8x128xf32>
    %52 = arith.addf %51, %45 : vector<8x128xf32>
    %53 = arith.addf %52, %24 : vector<8x128xf32>
    %cst_28 = arith.constant 0.000000e+00 : f32
    %54 = vector.broadcast %cst_28 : f32 to vector<1x128xf32>
    %55 = arith.cmpf ogt, %30, %54 : vector<1x128xf32>
    %56 = vector.shape_cast %55 : vector<1x128xi1> to vector<1x128xi1>
    %57 = vector.broadcast %56 : vector<1x128xi1> to vector<8x128xi1>
    %58 = arith.select %57, %53, %18 : vector<8x128xi1>, vector<8x128xf32>
    %cst_29 = arith.constant 0.000000e+00 : f32
    %59 = vector.broadcast %cst_29 : f32 to vector<1x128xf32>
    %60 = arith.cmpf ogt, %30, %59 : vector<1x128xf32>
    %61 = vector.shape_cast %60 : vector<1x128xi1> to vector<1x128xi1>
    %62 = vector.broadcast %61 : vector<1x128xi1> to vector<8x128xi1>
    %63 = arith.select %62, %27, %11 : vector<8x128xi1>, vector<8x128xf32>
    %c2_i32 = arith.constant 2 : i32
    %64 = arith.index_cast %c2_i32 : i32 to index
    %c0_30 = arith.constant 0 : index
    %c0_31 = arith.constant 0 : index
    %65 = vector.load %arg6[%64, %c0_30, %c0_31] : memref<8x768x128xbf16, #tpu.memory_space<vmem>>, vector<1x768x128xbf16>
    %66 = vector.shape_cast %65 : vector<1x768x128xbf16> to vector<768x128xbf16>
    %cst_32 = arith.constant dense<0.000000e+00> : vector<8x128xf32>
    %67 = tpu.matmul %0, %66, %cst_32 {dimension_numbers = #tpu.dot_dimension_numbers<[1], [0], [0], [1], [0, 0, 1, 1], [], []>} : vector<8x768xbf16>, vector<768x128xbf16>, vector<8x128xf32> -> vector<8x128xf32>
    %68 = vector.broadcast %1 : vector<8x1xf32> to vector<8x128xf32>
    %69 = arith.addf %67, %68 : vector<8x128xf32>
    %70 = arith.index_cast %c2_i32 : i32 to index
    %c0_33 = arith.constant 0 : index
    %c0_34 = arith.constant 0 : index
    %71 = vector.load %arg7[%70, %c0_33, %c0_34] : memref<8x8x128xf32, #tpu.memory_space<vmem>>, vector<1x8x128xf32>
    %72 = vector.shape_cast %71 : vector<1x8x128xf32> to vector<8x128xf32>
    %73 = arith.index_cast %c2_i32 : i32 to index
    %c0_35 = arith.constant 0 : index
    %c0_36 = arith.constant 0 : index
    %74 = vector.load %arg9[%73, %c0_35, %c0_36] : memref<8x1x128xf32, #tpu.memory_space<vmem>>, vector<1x1x128xf32>
    %75 = vector.shape_cast %74 : vector<1x1x128xf32> to vector<1x128xf32>
    %76 = arith.index_cast %c2_i32 : i32 to index
    %c0_37 = arith.constant 0 : index
    %c0_38 = arith.constant 0 : index
    %77 = vector.load %arg8[%76, %c0_37, %c0_38] : memref<8x1x128xf32, #tpu.memory_space<vmem>>, vector<1x1x128xf32>
    %78 = vector.shape_cast %77 : vector<1x1x128xf32> to vector<1x128xf32>
    %79 = arith.mulf %69, %72 : vector<8x128xf32>
    %cst_39 = arith.constant dense<0.000000e+00> : vector<128xf32>
    %80 = vector.multi_reduction <add>, %79, %cst_39 [0] : vector<8x128xf32> to vector<128xf32>
    %81 = vector.shape_cast %80 : vector<128xf32> to vector<1x128xf32>
    %82 = arith.addf %78, %81 : vector<1x128xf32>
    %83 = arith.mulf %82, %75 : vector<1x128xf32>
    %84 = arith.addf %39, %83 : vector<1x128xf32>
    %85 = vector.shape_cast %58 : vector<8x128xf32> to vector<8x1x128xf32>
    %86 = vector.shape_cast %4 : vector<8x8xf32> to vector<8x8x1xf32>
    %87 = vector.broadcast %85 : vector<8x1x128xf32> to vector<8x8x128xf32>
    %88 = vector.broadcast %86 : vector<8x8x1xf32> to vector<8x8x128xf32>
    %89 = arith.addf %87, %88 : vector<8x8x128xf32>
    %cst_40 = arith.constant dense<0xFF800000> : vector<8x128xf32>
    %90 = vector.multi_reduction <maximumf>, %89, %cst_40 [0] : vector<8x8x128xf32> to vector<8x128xf32>
    %91 = vector.shape_cast %90 : vector<8x128xf32> to vector<1x8x128xf32>
    %92 = vector.broadcast %91 : vector<1x8x128xf32> to vector<8x8x128xf32>
    %93 = arith.subf %89, %92 : vector<8x8x128xf32>
    %94 = math.exp %93 : vector<8x8x128xf32>
    %cst_41 = arith.constant dense<0.000000e+00> : vector<8x128xf32>
    %95 = vector.multi_reduction <add>, %94, %cst_41 [0] : vector<8x8x128xf32> to vector<8x128xf32>
    %96 = math.log %95 : vector<8x128xf32>
    %97 = arith.addf %96, %90 : vector<8x128xf32>
    %98 = arith.addf %97, %69 : vector<8x128xf32>
    %cst_42 = arith.constant 0.000000e+00 : f32
    %99 = vector.broadcast %cst_42 : f32 to vector<1x128xf32>
    %100 = arith.cmpf ogt, %75, %99 : vector<1x128xf32>
    %101 = vector.shape_cast %100 : vector<1x128xi1> to vector<1x128xi1>
    %102 = vector.broadcast %101 : vector<1x128xi1> to vector<8x128xi1>
    %103 = arith.select %102, %98, %58 : vector<8x128xi1>, vector<8x128xf32>
    %cst_43 = arith.constant 0.000000e+00 : f32
    %104 = vector.broadcast %cst_43 : f32 to vector<1x128xf32>
    %105 = arith.cmpf ogt, %75, %104 : vector<1x128xf32>
    %106 = vector.shape_cast %105 : vector<1x128xi1> to vector<1x128xi1>
    %107 = vector.broadcast %106 : vector<1x128xi1> to vector<8x128xi1>
    %108 = arith.select %107, %72, %63 : vector<8x128xi1>, vector<8x128xf32>
    %c3_i32 = arith.constant 3 : i32
    %109 = arith.index_cast %c3_i32 : i32 to index
    %c0_44 = arith.constant 0 : index
    %c0_45 = arith.constant 0 : index
    %110 = vector.load %arg6[%109, %c0_44, %c0_45] : memref<8x768x128xbf16, #tpu.memory_space<vmem>>, vector<1x768x128xbf16>
    %111 = vector.shape_cast %110 : vector<1x768x128xbf16> to vector<768x128xbf16>
    %cst_46 = arith.constant dense<0.000000e+00> : vector<8x128xf32>
    %112 = tpu.matmul %0, %111, %cst_46 {dimension_numbers = #tpu.dot_dimension_numbers<[1], [0], [0], [1], [0, 0, 1, 1], [], []>} : vector<8x768xbf16>, vector<768x128xbf16>, vector<8x128xf32> -> vector<8x128xf32>
    %113 = vector.broadcast %1 : vector<8x1xf32> to vector<8x128xf32>
    %114 = arith.addf %112, %113 : vector<8x128xf32>
    %115 = arith.index_cast %c3_i32 : i32 to index
    %c0_47 = arith.constant 0 : index
    %c0_48 = arith.constant 0 : index
    %116 = vector.load %arg7[%115, %c0_47, %c0_48] : memref<8x8x128xf32, #tpu.memory_space<vmem>>, vector<1x8x128xf32>
    %117 = vector.shape_cast %116 : vector<1x8x128xf32> to vector<8x128xf32>
    %118 = arith.index_cast %c3_i32 : i32 to index
    %c0_49 = arith.constant 0 : index
    %c0_50 = arith.constant 0 : index
    %119 = vector.load %arg9[%118, %c0_49, %c0_50] : memref<8x1x128xf32, #tpu.memory_space<vmem>>, vector<1x1x128xf32>
    %120 = vector.shape_cast %119 : vector<1x1x128xf32> to vector<1x128xf32>
    %121 = arith.index_cast %c3_i32 : i32 to index
    %c0_51 = arith.constant 0 : index
    %c0_52 = arith.constant 0 : index
    %122 = vector.load %arg8[%121, %c0_51, %c0_52] : memref<8x1x128xf32, #tpu.memory_space<vmem>>, vector<1x1x128xf32>
    %123 = vector.shape_cast %122 : vector<1x1x128xf32> to vector<1x128xf32>
    %124 = arith.mulf %114, %117 : vector<8x128xf32>
    %cst_53 = arith.constant dense<0.000000e+00> : vector<128xf32>
    %125 = vector.multi_reduction <add>, %124, %cst_53 [0] : vector<8x128xf32> to vector<128xf32>
    %126 = vector.shape_cast %125 : vector<128xf32> to vector<1x128xf32>
    %127 = arith.addf %123, %126 : vector<1x128xf32>
    %128 = arith.mulf %127, %120 : vector<1x128xf32>
    %129 = arith.addf %84, %128 : vector<1x128xf32>
    %130 = vector.shape_cast %103 : vector<8x128xf32> to vector<8x1x128xf32>
    %131 = vector.shape_cast %4 : vector<8x8xf32> to vector<8x8x1xf32>
    %132 = vector.broadcast %130 : vector<8x1x128xf32> to vector<8x8x128xf32>
    %133 = vector.broadcast %131 : vector<8x8x1xf32> to vector<8x8x128xf32>
    %134 = arith.addf %132, %133 : vector<8x8x128xf32>
    %cst_54 = arith.constant dense<0xFF800000> : vector<8x128xf32>
    %135 = vector.multi_reduction <maximumf>, %134, %cst_54 [0] : vector<8x8x128xf32> to vector<8x128xf32>
    %136 = vector.shape_cast %135 : vector<8x128xf32> to vector<1x8x128xf32>
    %137 = vector.broadcast %136 : vector<1x8x128xf32> to vector<8x8x128xf32>
    %138 = arith.subf %134, %137 : vector<8x8x128xf32>
    %139 = math.exp %138 : vector<8x8x128xf32>
    %cst_55 = arith.constant dense<0.000000e+00> : vector<8x128xf32>
    %140 = vector.multi_reduction <add>, %139, %cst_55 [0] : vector<8x8x128xf32> to vector<8x128xf32>
    %141 = math.log %140 : vector<8x128xf32>
    %142 = arith.addf %141, %135 : vector<8x128xf32>
    %143 = arith.addf %142, %114 : vector<8x128xf32>
    %cst_56 = arith.constant 0.000000e+00 : f32
    %144 = vector.broadcast %cst_56 : f32 to vector<1x128xf32>
    %145 = arith.cmpf ogt, %120, %144 : vector<1x128xf32>
    %146 = vector.shape_cast %145 : vector<1x128xi1> to vector<1x128xi1>
    %147 = vector.broadcast %146 : vector<1x128xi1> to vector<8x128xi1>
    %148 = arith.select %147, %143, %103 : vector<8x128xi1>, vector<8x128xf32>
    %cst_57 = arith.constant 0.000000e+00 : f32
    %149 = vector.broadcast %cst_57 : f32 to vector<1x128xf32>
    %150 = arith.cmpf ogt, %120, %149 : vector<1x128xf32>
    %151 = vector.shape_cast %150 : vector<1x128xi1> to vector<1x128xi1>
    %152 = vector.broadcast %151 : vector<1x128xi1> to vector<8x128xi1>
    %153 = arith.select %152, %117, %108 : vector<8x128xi1>, vector<8x128xf32>
    %c4_i32 = arith.constant 4 : i32
    %154 = arith.index_cast %c4_i32 : i32 to index
    %c0_58 = arith.constant 0 : index
    %c0_59 = arith.constant 0 : index
    %155 = vector.load %arg6[%154, %c0_58, %c0_59] : memref<8x768x128xbf16, #tpu.memory_space<vmem>>, vector<1x768x128xbf16>
    %156 = vector.shape_cast %155 : vector<1x768x128xbf16> to vector<768x128xbf16>
    %cst_60 = arith.constant dense<0.000000e+00> : vector<8x128xf32>
    %157 = tpu.matmul %0, %156, %cst_60 {dimension_numbers = #tpu.dot_dimension_numbers<[1], [0], [0], [1], [0, 0, 1, 1], [], []>} : vector<8x768xbf16>, vector<768x128xbf16>, vector<8x128xf32> -> vector<8x128xf32>
    %158 = vector.broadcast %1 : vector<8x1xf32> to vector<8x128xf32>
    %159 = arith.addf %157, %158 : vector<8x128xf32>
    %160 = arith.index_cast %c4_i32 : i32 to index
    %c0_61 = arith.constant 0 : index
    %c0_62 = arith.constant 0 : index
    %161 = vector.load %arg7[%160, %c0_61, %c0_62] : memref<8x8x128xf32, #tpu.memory_space<vmem>>, vector<1x8x128xf32>
    %162 = vector.shape_cast %161 : vector<1x8x128xf32> to vector<8x128xf32>
    %163 = arith.index_cast %c4_i32 : i32 to index
    %c0_63 = arith.constant 0 : index
    %c0_64 = arith.constant 0 : index
    %164 = vector.load %arg9[%163, %c0_63, %c0_64] : memref<8x1x128xf32, #tpu.memory_space<vmem>>, vector<1x1x128xf32>
    %165 = vector.shape_cast %164 : vector<1x1x128xf32> to vector<1x128xf32>
    %166 = arith.index_cast %c4_i32 : i32 to index
    %c0_65 = arith.constant 0 : index
    %c0_66 = arith.constant 0 : index
    %167 = vector.load %arg8[%166, %c0_65, %c0_66] : memref<8x1x128xf32, #tpu.memory_space<vmem>>, vector<1x1x128xf32>
    %168 = vector.shape_cast %167 : vector<1x1x128xf32> to vector<1x128xf32>
    %169 = arith.mulf %159, %162 : vector<8x128xf32>
    %cst_67 = arith.constant dense<0.000000e+00> : vector<128xf32>
    %170 = vector.multi_reduction <add>, %169, %cst_67 [0] : vector<8x128xf32> to vector<128xf32>
    %171 = vector.shape_cast %170 : vector<128xf32> to vector<1x128xf32>
    %172 = arith.addf %168, %171 : vector<1x128xf32>
    %173 = arith.mulf %172, %165 : vector<1x128xf32>
    %174 = arith.addf %129, %173 : vector<1x128xf32>
    %175 = vector.shape_cast %148 : vector<8x128xf32> to vector<8x1x128xf32>
    %176 = vector.shape_cast %4 : vector<8x8xf32> to vector<8x8x1xf32>
    %177 = vector.broadcast %175 : vector<8x1x128xf32> to vector<8x8x128xf32>
    %178 = vector.broadcast %176 : vector<8x8x1xf32> to vector<8x8x128xf32>
    %179 = arith.addf %177, %178 : vector<8x8x128xf32>
    %cst_68 = arith.constant dense<0xFF800000> : vector<8x128xf32>
    %180 = vector.multi_reduction <maximumf>, %179, %cst_68 [0] : vector<8x8x128xf32> to vector<8x128xf32>
    %181 = vector.shape_cast %180 : vector<8x128xf32> to vector<1x8x128xf32>
    %182 = vector.broadcast %181 : vector<1x8x128xf32> to vector<8x8x128xf32>
    %183 = arith.subf %179, %182 : vector<8x8x128xf32>
    %184 = math.exp %183 : vector<8x8x128xf32>
    %cst_69 = arith.constant dense<0.000000e+00> : vector<8x128xf32>
    %185 = vector.multi_reduction <add>, %184, %cst_69 [0] : vector<8x8x128xf32> to vector<8x128xf32>
    %186 = math.log %185 : vector<8x128xf32>
    %187 = arith.addf %186, %180 : vector<8x128xf32>
    %188 = arith.addf %187, %159 : vector<8x128xf32>
    %cst_70 = arith.constant 0.000000e+00 : f32
    %189 = vector.broadcast %cst_70 : f32 to vector<1x128xf32>
    %190 = arith.cmpf ogt, %165, %189 : vector<1x128xf32>
    %191 = vector.shape_cast %190 : vector<1x128xi1> to vector<1x128xi1>
    %192 = vector.broadcast %191 : vector<1x128xi1> to vector<8x128xi1>
    %193 = arith.select %192, %188, %148 : vector<8x128xi1>, vector<8x128xf32>
    %cst_71 = arith.constant 0.000000e+00 : f32
    %194 = vector.broadcast %cst_71 : f32 to vector<1x128xf32>
    %195 = arith.cmpf ogt, %165, %194 : vector<1x128xf32>
    %196 = vector.shape_cast %195 : vector<1x128xi1> to vector<1x128xi1>
    %197 = vector.broadcast %196 : vector<1x128xi1> to vector<8x128xi1>
    %198 = arith.select %197, %162, %153 : vector<8x128xi1>, vector<8x128xf32>
    %c5_i32 = arith.constant 5 : i32
    %199 = arith.index_cast %c5_i32 : i32 to index
    %c0_72 = arith.constant 0 : index
    %c0_73 = arith.constant 0 : index
    %200 = vector.load %arg6[%199, %c0_72, %c0_73] : memref<8x768x128xbf16, #tpu.memory_space<vmem>>, vector<1x768x128xbf16>
    %201 = vector.shape_cast %200 : vector<1x768x128xbf16> to vector<768x128xbf16>
    %cst_74 = arith.constant dense<0.000000e+00> : vector<8x128xf32>
    %202 = tpu.matmul %0, %201, %cst_74 {dimension_numbers = #tpu.dot_dimension_numbers<[1], [0], [0], [1], [0, 0, 1, 1], [], []>} : vector<8x768xbf16>, vector<768x128xbf16>, vector<8x128xf32> -> vector<8x128xf32>
    %203 = vector.broadcast %1 : vector<8x1xf32> to vector<8x128xf32>
    %204 = arith.addf %202, %203 : vector<8x128xf32>
    %205 = arith.index_cast %c5_i32 : i32 to index
    %c0_75 = arith.constant 0 : index
    %c0_76 = arith.constant 0 : index
    %206 = vector.load %arg7[%205, %c0_75, %c0_76] : memref<8x8x128xf32, #tpu.memory_space<vmem>>, vector<1x8x128xf32>
    %207 = vector.shape_cast %206 : vector<1x8x128xf32> to vector<8x128xf32>
    %208 = arith.index_cast %c5_i32 : i32 to index
    %c0_77 = arith.constant 0 : index
    %c0_78 = arith.constant 0 : index
    %209 = vector.load %arg9[%208, %c0_77, %c0_78] : memref<8x1x128xf32, #tpu.memory_space<vmem>>, vector<1x1x128xf32>
    %210 = vector.shape_cast %209 : vector<1x1x128xf32> to vector<1x128xf32>
    %211 = arith.index_cast %c5_i32 : i32 to index
    %c0_79 = arith.constant 0 : index
    %c0_80 = arith.constant 0 : index
    %212 = vector.load %arg8[%211, %c0_79, %c0_80] : memref<8x1x128xf32, #tpu.memory_space<vmem>>, vector<1x1x128xf32>
    %213 = vector.shape_cast %212 : vector<1x1x128xf32> to vector<1x128xf32>
    %214 = arith.mulf %204, %207 : vector<8x128xf32>
    %cst_81 = arith.constant dense<0.000000e+00> : vector<128xf32>
    %215 = vector.multi_reduction <add>, %214, %cst_81 [0] : vector<8x128xf32> to vector<128xf32>
    %216 = vector.shape_cast %215 : vector<128xf32> to vector<1x128xf32>
    %217 = arith.addf %213, %216 : vector<1x128xf32>
    %218 = arith.mulf %217, %210 : vector<1x128xf32>
    %219 = arith.addf %174, %218 : vector<1x128xf32>
    %220 = vector.shape_cast %193 : vector<8x128xf32> to vector<8x1x128xf32>
    %221 = vector.shape_cast %4 : vector<8x8xf32> to vector<8x8x1xf32>
    %222 = vector.broadcast %220 : vector<8x1x128xf32> to vector<8x8x128xf32>
    %223 = vector.broadcast %221 : vector<8x8x1xf32> to vector<8x8x128xf32>
    %224 = arith.addf %222, %223 : vector<8x8x128xf32>
    %cst_82 = arith.constant dense<0xFF800000> : vector<8x128xf32>
    %225 = vector.multi_reduction <maximumf>, %224, %cst_82 [0] : vector<8x8x128xf32> to vector<8x128xf32>
    %226 = vector.shape_cast %225 : vector<8x128xf32> to vector<1x8x128xf32>
    %227 = vector.broadcast %226 : vector<1x8x128xf32> to vector<8x8x128xf32>
    %228 = arith.subf %224, %227 : vector<8x8x128xf32>
    %229 = math.exp %228 : vector<8x8x128xf32>
    %cst_83 = arith.constant dense<0.000000e+00> : vector<8x128xf32>
    %230 = vector.multi_reduction <add>, %229, %cst_83 [0] : vector<8x8x128xf32> to vector<8x128xf32>
    %231 = math.log %230 : vector<8x128xf32>
    %232 = arith.addf %231, %225 : vector<8x128xf32>
    %233 = arith.addf %232, %204 : vector<8x128xf32>
    %cst_84 = arith.constant 0.000000e+00 : f32
    %234 = vector.broadcast %cst_84 : f32 to vector<1x128xf32>
    %235 = arith.cmpf ogt, %210, %234 : vector<1x128xf32>
    %236 = vector.shape_cast %235 : vector<1x128xi1> to vector<1x128xi1>
    %237 = vector.broadcast %236 : vector<1x128xi1> to vector<8x128xi1>
    %238 = arith.select %237, %233, %193 : vector<8x128xi1>, vector<8x128xf32>
    %cst_85 = arith.constant 0.000000e+00 : f32
    %239 = vector.broadcast %cst_85 : f32 to vector<1x128xf32>
    %240 = arith.cmpf ogt, %210, %239 : vector<1x128xf32>
    %241 = vector.shape_cast %240 : vector<1x128xi1> to vector<1x128xi1>
    %242 = vector.broadcast %241 : vector<1x128xi1> to vector<8x128xi1>
    %243 = arith.select %242, %207, %198 : vector<8x128xi1>, vector<8x128xf32>
    %c6_i32 = arith.constant 6 : i32
    %244 = arith.index_cast %c6_i32 : i32 to index
    %c0_86 = arith.constant 0 : index
    %c0_87 = arith.constant 0 : index
    %245 = vector.load %arg6[%244, %c0_86, %c0_87] : memref<8x768x128xbf16, #tpu.memory_space<vmem>>, vector<1x768x128xbf16>
    %246 = vector.shape_cast %245 : vector<1x768x128xbf16> to vector<768x128xbf16>
    %cst_88 = arith.constant dense<0.000000e+00> : vector<8x128xf32>
    %247 = tpu.matmul %0, %246, %cst_88 {dimension_numbers = #tpu.dot_dimension_numbers<[1], [0], [0], [1], [0, 0, 1, 1], [], []>} : vector<8x768xbf16>, vector<768x128xbf16>, vector<8x128xf32> -> vector<8x128xf32>
    %248 = vector.broadcast %1 : vector<8x1xf32> to vector<8x128xf32>
    %249 = arith.addf %247, %248 : vector<8x128xf32>
    %250 = arith.index_cast %c6_i32 : i32 to index
    %c0_89 = arith.constant 0 : index
    %c0_90 = arith.constant 0 : index
    %251 = vector.load %arg7[%250, %c0_89, %c0_90] : memref<8x8x128xf32, #tpu.memory_space<vmem>>, vector<1x8x128xf32>
    %252 = vector.shape_cast %251 : vector<1x8x128xf32> to vector<8x128xf32>
    %253 = arith.index_cast %c6_i32 : i32 to index
    %c0_91 = arith.constant 0 : index
    %c0_92 = arith.constant 0 : index
    %254 = vector.load %arg9[%253, %c0_91, %c0_92] : memref<8x1x128xf32, #tpu.memory_space<vmem>>, vector<1x1x128xf32>
    %255 = vector.shape_cast %254 : vector<1x1x128xf32> to vector<1x128xf32>
    %256 = arith.index_cast %c6_i32 : i32 to index
    %c0_93 = arith.constant 0 : index
    %c0_94 = arith.constant 0 : index
    %257 = vector.load %arg8[%256, %c0_93, %c0_94] : memref<8x1x128xf32, #tpu.memory_space<vmem>>, vector<1x1x128xf32>
    %258 = vector.shape_cast %257 : vector<1x1x128xf32> to vector<1x128xf32>
    %259 = arith.mulf %249, %252 : vector<8x128xf32>
    %cst_95 = arith.constant dense<0.000000e+00> : vector<128xf32>
    %260 = vector.multi_reduction <add>, %259, %cst_95 [0] : vector<8x128xf32> to vector<128xf32>
    %261 = vector.shape_cast %260 : vector<128xf32> to vector<1x128xf32>
    %262 = arith.addf %258, %261 : vector<1x128xf32>
    %263 = arith.mulf %262, %255 : vector<1x128xf32>
    %264 = arith.addf %219, %263 : vector<1x128xf32>
    %265 = vector.shape_cast %238 : vector<8x128xf32> to vector<8x1x128xf32>
    %266 = vector.shape_cast %4 : vector<8x8xf32> to vector<8x8x1xf32>
    %267 = vector.broadcast %265 : vector<8x1x128xf32> to vector<8x8x128xf32>
    %268 = vector.broadcast %266 : vector<8x8x1xf32> to vector<8x8x128xf32>
    %269 = arith.addf %267, %268 : vector<8x8x128xf32>
    %cst_96 = arith.constant dense<0xFF800000> : vector<8x128xf32>
    %270 = vector.multi_reduction <maximumf>, %269, %cst_96 [0] : vector<8x8x128xf32> to vector<8x128xf32>
    %271 = vector.shape_cast %270 : vector<8x128xf32> to vector<1x8x128xf32>
    %272 = vector.broadcast %271 : vector<1x8x128xf32> to vector<8x8x128xf32>
    %273 = arith.subf %269, %272 : vector<8x8x128xf32>
    %274 = math.exp %273 : vector<8x8x128xf32>
    %cst_97 = arith.constant dense<0.000000e+00> : vector<8x128xf32>
    %275 = vector.multi_reduction <add>, %274, %cst_97 [0] : vector<8x8x128xf32> to vector<8x128xf32>
    %276 = math.log %275 : vector<8x128xf32>
    %277 = arith.addf %276, %270 : vector<8x128xf32>
    %278 = arith.addf %277, %249 : vector<8x128xf32>
    %cst_98 = arith.constant 0.000000e+00 : f32
    %279 = vector.broadcast %cst_98 : f32 to vector<1x128xf32>
    %280 = arith.cmpf ogt, %255, %279 : vector<1x128xf32>
    %281 = vector.shape_cast %280 : vector<1x128xi1> to vector<1x128xi1>
    %282 = vector.broadcast %281 : vector<1x128xi1> to vector<8x128xi1>
    %283 = arith.select %282, %278, %238 : vector<8x128xi1>, vector<8x128xf32>
    %cst_99 = arith.constant 0.000000e+00 : f32
    %284 = vector.broadcast %cst_99 : f32 to vector<1x128xf32>
    %285 = arith.cmpf ogt, %255, %284 : vector<1x128xf32>
    %286 = vector.shape_cast %285 : vector<1x128xi1> to vector<1x128xi1>
    %287 = vector.broadcast %286 : vector<1x128xi1> to vector<8x128xi1>
    %288 = arith.select %287, %252, %243 : vector<8x128xi1>, vector<8x128xf32>
    %c7_i32 = arith.constant 7 : i32
    %289 = arith.index_cast %c7_i32 : i32 to index
    %c0_100 = arith.constant 0 : index
    %c0_101 = arith.constant 0 : index
    %290 = vector.load %arg6[%289, %c0_100, %c0_101] : memref<8x768x128xbf16, #tpu.memory_space<vmem>>, vector<1x768x128xbf16>
    %291 = vector.shape_cast %290 : vector<1x768x128xbf16> to vector<768x128xbf16>
    %cst_102 = arith.constant dense<0.000000e+00> : vector<8x128xf32>
    %292 = tpu.matmul %0, %291, %cst_102 {dimension_numbers = #tpu.dot_dimension_numbers<[1], [0], [0], [1], [0, 0, 1, 1], [], []>} : vector<8x768xbf16>, vector<768x128xbf16>, vector<8x128xf32> -> vector<8x128xf32>
    %293 = vector.broadcast %1 : vector<8x1xf32> to vector<8x128xf32>
    %294 = arith.addf %292, %293 : vector<8x128xf32>
    %295 = arith.index_cast %c7_i32 : i32 to index
    %c0_103 = arith.constant 0 : index
    %c0_104 = arith.constant 0 : index
    %296 = vector.load %arg7[%295, %c0_103, %c0_104] : memref<8x8x128xf32, #tpu.memory_space<vmem>>, vector<1x8x128xf32>
    %297 = vector.shape_cast %296 : vector<1x8x128xf32> to vector<8x128xf32>
    %298 = arith.index_cast %c7_i32 : i32 to index
    %c0_105 = arith.constant 0 : index
    %c0_106 = arith.constant 0 : index
    %299 = vector.load %arg9[%298, %c0_105, %c0_106] : memref<8x1x128xf32, #tpu.memory_space<vmem>>, vector<1x1x128xf32>
    %300 = vector.shape_cast %299 : vector<1x1x128xf32> to vector<1x128xf32>
    %301 = arith.index_cast %c7_i32 : i32 to index
    %c0_107 = arith.constant 0 : index
    %c0_108 = arith.constant 0 : index
    %302 = vector.load %arg8[%301, %c0_107, %c0_108] : memref<8x1x128xf32, #tpu.memory_space<vmem>>, vector<1x1x128xf32>
    %303 = vector.shape_cast %302 : vector<1x1x128xf32> to vector<1x128xf32>
    %304 = arith.mulf %294, %297 : vector<8x128xf32>
    %cst_109 = arith.constant dense<0.000000e+00> : vector<128xf32>
    %305 = vector.multi_reduction <add>, %304, %cst_109 [0] : vector<8x128xf32> to vector<128xf32>
    %306 = vector.shape_cast %305 : vector<128xf32> to vector<1x128xf32>
    %307 = arith.addf %303, %306 : vector<1x128xf32>
    %308 = arith.mulf %307, %300 : vector<1x128xf32>
    %309 = arith.addf %264, %308 : vector<1x128xf32>
    %310 = vector.shape_cast %283 : vector<8x128xf32> to vector<8x1x128xf32>
    %311 = vector.shape_cast %4 : vector<8x8xf32> to vector<8x8x1xf32>
    %312 = vector.broadcast %310 : vector<8x1x128xf32> to vector<8x8x128xf32>
    %313 = vector.broadcast %311 : vector<8x8x1xf32> to vector<8x8x128xf32>
    %314 = arith.addf %312, %313 : vector<8x8x128xf32>
    %cst_110 = arith.constant dense<0xFF800000> : vector<8x128xf32>
    %315 = vector.multi_reduction <maximumf>, %314, %cst_110 [0] : vector<8x8x128xf32> to vector<8x128xf32>
    %316 = vector.shape_cast %315 : vector<8x128xf32> to vector<1x8x128xf32>
    %317 = vector.broadcast %316 : vector<1x8x128xf32> to vector<8x8x128xf32>
    %318 = arith.subf %314, %317 : vector<8x8x128xf32>
    %319 = math.exp %318 : vector<8x8x128xf32>
    %cst_111 = arith.constant dense<0.000000e+00> : vector<8x128xf32>
    %320 = vector.multi_reduction <add>, %319, %cst_111 [0] : vector<8x8x128xf32> to vector<8x128xf32>
    %321 = math.log %320 : vector<8x128xf32>
    %322 = arith.addf %321, %315 : vector<8x128xf32>
    %323 = arith.addf %322, %294 : vector<8x128xf32>
    %cst_112 = arith.constant 0.000000e+00 : f32
    %324 = vector.broadcast %cst_112 : f32 to vector<1x128xf32>
    %325 = arith.cmpf ogt, %300, %324 : vector<1x128xf32>
    %326 = vector.shape_cast %325 : vector<1x128xi1> to vector<1x128xi1>
    %327 = vector.broadcast %326 : vector<1x128xi1> to vector<8x128xi1>
    %328 = arith.select %327, %323, %283 : vector<8x128xi1>, vector<8x128xf32>
    %cst_113 = arith.constant 0.000000e+00 : f32
    %329 = vector.broadcast %cst_113 : f32 to vector<1x128xf32>
    %330 = arith.cmpf ogt, %300, %329 : vector<1x128xf32>
    %331 = vector.shape_cast %330 : vector<1x128xi1> to vector<1x128xi1>
    %332 = vector.broadcast %331 : vector<1x128xi1> to vector<8x128xi1>
    %333 = arith.select %332, %297, %288 : vector<8x128xi1>, vector<8x128xf32>
    %c7_i32_114 = arith.constant 7 : i32
    %334 = vector.broadcast %3 : vector<8x1xf32> to vector<8x128xf32>
    %335 = arith.mulf %334, %333 : vector<8x128xf32>
    %cst_115 = arith.constant dense<0.000000e+00> : vector<128xf32>
    %336 = vector.multi_reduction <add>, %335, %cst_115 [0] : vector<8x128xf32> to vector<128xf32>
    %337 = vector.shape_cast %336 : vector<128xf32> to vector<1x128xf32>
    %338 = arith.addf %309, %337 : vector<1x128xf32>
    %339 = vector.broadcast %3 : vector<8x1xf32> to vector<8x128xf32>
    %340 = arith.addf %328, %339 : vector<8x128xf32>
    %cst_116 = arith.constant dense<0xFF800000> : vector<128xf32>
    %341 = vector.multi_reduction <maximumf>, %340, %cst_116 [0] : vector<8x128xf32> to vector<128xf32>
    %342 = vector.shape_cast %341 : vector<128xf32> to vector<1x128xf32>
    %343 = vector.broadcast %342 : vector<1x128xf32> to vector<8x128xf32>
    %344 = arith.subf %340, %343 : vector<8x128xf32>
    %345 = math.exp %344 : vector<8x128xf32>
    %cst_117 = arith.constant dense<0.000000e+00> : vector<128xf32>
    %346 = vector.multi_reduction <add>, %345, %cst_117 [0] : vector<8x128xf32> to vector<128xf32>
    %347 = vector.shape_cast %346 : vector<128xf32> to vector<1x128xf32>
    %348 = math.log %347 : vector<1x128xf32>
    %349 = arith.addf %348, %342 : vector<1x128xf32>
    %350 = arith.subf %338, %349 : vector<1x128xf32>
    %c0_118 = arith.constant 0 : index
    %c0_119 = arith.constant 0 : index
    %351 = vector.load %arg10[%c0_118, %c0_119] : memref<1x128xf32, #tpu.memory_space<vmem>>, vector<1x128xf32>
    %352 = arith.mulf %350, %351 : vector<1x128xf32>
    %cst_120 = arith.constant 0.000000e+00 : f32
    %353 = vector.broadcast %cst_120 : f32 to vector<1x128xf32>
    %354 = arith.subf %353, %352 : vector<1x128xf32>
    %355 = vector.shape_cast %354 : vector<1x128xf32> to vector<1x1x128xf32>
    %c0_121 = arith.constant 0 : index
    %c0_122 = arith.constant 0 : index
    %c0_123 = arith.constant 0 : index
    %356 = vector.load %arg11[%c0_121, %c0_122, %c0_123] : memref<1x1x128xf32, #tpu.memory_space<vmem>>, vector<1x1x128xf32>
    tpu.vector_store %arg11[%c0_121, %c0_122, %c0_123], %355 {strides = array<i32>} : memref<1x1x128xf32, #tpu.memory_space<vmem>>, vector<1x1x128xf32>,
    return
  }
  func.func @transform_0(%arg0: i32) -> (i32, i32) {
    %c0_i32 = arith.constant 0 : i32
    %c0_i32_0 = arith.constant 0 : i32
    %c0_i32_1 = arith.constant 0 : i32
    return %c0_i32, %c0_i32_0 : i32, i32
  }
  func.func @transform_1(%arg0: i32) -> (i32, i32) {
    %c0_i32 = arith.constant 0 : i32
    %c0_i32_0 = arith.constant 0 : i32
    %c0_i32_1 = arith.constant 0 : i32
    return %c0_i32, %c0_i32_0 : i32, i32
  }
  func.func @transform_2(%arg0: i32) -> (i32, i32) {
    %c0_i32 = arith.constant 0 : i32
    %c0_i32_0 = arith.constant 0 : i32
    %c0_i32_1 = arith.constant 0 : i32
    return %c0_i32, %c0_i32_0 : i32, i32
  }
  func.func @transform_3(%arg0: i32) -> (i32, i32) {
    %c0_i32 = arith.constant 0 : i32
    %c0_i32_0 = arith.constant 0 : i32
    %c0_i32_1 = arith.constant 0 : i32
    return %c0_i32, %c0_i32_0 : i32, i32
  }
  func.func @transform_4(%arg0: i32) -> (i32, i32) {
    %c0_i32 = arith.constant 0 : i32
    %c0_i32_0 = arith.constant 0 : i32
    %c0_i32_1 = arith.constant 0 : i32
    return %c0_i32, %c0_i32_0 : i32, i32
  }
  func.func @transform_5(%arg0: i32) -> (i32, i32, i32) {
    %c0_i32 = arith.constant 0 : i32
    %c0_i32_0 = arith.constant 0 : i32
    %c0_i32_1 = arith.constant 0 : i32
    return %c0_i32, %c0_i32_0, %arg0 : i32, i32, i32
  }
  func.func @transform_6(%arg0: i32) -> (i32, i32, i32) {
    %c0_i32 = arith.constant 0 : i32
    %c0_i32_0 = arith.constant 0 : i32
    %c0_i32_1 = arith.constant 0 : i32
    return %c0_i32, %c0_i32_0, %arg0 : i32, i32, i32
  }
  func.func @transform_7(%arg0: i32) -> (i32, i32, i32) {
    %c0_i32 = arith.constant 0 : i32
    %c0_i32_0 = arith.constant 0 : i32
    %c0_i32_1 = arith.constant 0 : i32
    return %c0_i32, %c0_i32_0, %arg0 : i32, i32, i32
  }
  func.func @transform_8(%arg0: i32) -> (i32, i32, i32) {
    %c0_i32 = arith.constant 0 : i32
    %c0_i32_0 = arith.constant 0 : i32
    %c0_i32_1 = arith.constant 0 : i32
    return %c0_i32, %c0_i32_0, %arg0 : i32, i32, i32
  }
  func.func @transform_9(%arg0: i32) -> (i32, i32) {
    %c0_i32 = arith.constant 0 : i32
    %c0_i32_0 = arith.constant 0 : i32
    return %c0_i32, %arg0 : i32, i32
  }
  func.func @transform_10(%arg0: i32) -> (i32, i32, i32) {
    %c0_i32 = arith.constant 0 : i32
    %c0_i32_0 = arith.constant 0 : i32
    %c0_i32_1 = arith.constant 0 : i32
    return %arg0, %c0_i32, %c0_i32_0 : i32, i32, i32
  }
}

</mosaic_0001>

<bundles_post_ra>
// kernel: combined_ner_forward.1
= control target key start
LH: loop header
LB: loop body
LE: loop exit
PB: predicated region body
PF: predicated region fallthrough
CT: control target
= control target key end

     0   :  { %s14554_s13 = smov 0   ;;  %s14556_s14 = smov 0   ;;  %s17231_s0 = inlined_call_operand.vmem [shape: bf16[8,768], index: 0, kind: input, shape index: {}]   ;;  %s17232_s1 = inlined_call_operand.vmem [shape: f32[8,1], index: 1, kind: input, shape index: {}]   ;;  %s17233_s2 = inlined_call_operand.vmem [shape: f32[8,1], index: 2, kind: input, shape index: {}]   ;;  %s17234_s3 = inlined_call_operand.vmem [shape: f32[8,1], index: 3, kind: input, shape index: {}]   ;;  %s17235_s4 = inlined_call_operand.vmem [shape: f32[8,8], index: 4, kind: input, shape index: {}]   ;;  %s17236_s5 = inlined_call_operand.vmem [shape: bf16[8,768,256], index: 5, kind: input, shape index: {}]   ;;  %s17237_s6 = inlined_call_operand.vmem [shape: f32[8,8,256], index: 6, kind: input, shape index: {}]   ;;  %s17238_s7 = inlined_call_operand.vmem [shape: f32[8,1,256], index: 7, kind: input, shape index: {}]   ;;  %s17239_s8 = inlined_call_operand.vmem [shape: f32[8,1,256], index: 8, kind: input, shape index: {}]   ;;  %s17240_s9 = inlined_call_operand.vmem [shape: f32[1,256], index: 9, kind: input, shape index: {}]   ;;  %s17241_s10 = inlined_call_operand.vmem [shape: f32[2,1,128], index: 10, kind: output, shape index: {}]  }
   0x1   :  { %s14558_s15 = smov 0  }
   0x2 LB: > { %s12296_s16 = sadd.s32 4294967295, %s14495_s15   ;;  %s14571_s17 = sadd.s32 1, %s14495_s15   ;;  %s14495_s15 = sphi %s14558_s15, %s17259_s15   ;;  %s14491_s14 = sphi %s14556_s14, %s17258_s14   ;;  %s14487_s13 = sphi %s14554_s13, %s17257_s13  }
   0x3   : > { %s129_s18 = ssub.s32 %s14495_s15, %s14571_s17  ;;  %s132_s19 = sadd.s32 1, %s14491_s14 }
   0x4   : > { %p130_p0 = scmp.eq.s32.totalorder %s129_s18, 0  ;;  %p139_p1 = scmp.ne.s32.totalorder %s14491_s14, %s14487_s13 }
   0x5   : > { %p140_p2 = scmp.eq.s32.totalorder %s14495_s15, 0  ;;  %p12299_p4 = scmp.ge.s32.totalorder %s14495_s15, 2 }
   0x6   : > { %s14580_s20 = scalar_select %p130_p0, %s14491_s14, %s132_s19  }
   0x7   : > { %p14582_p3 = por %p140_p2, %p139_p1  ;;  %310 = sbr.rel (%p12299_p4) target bundleno = 554 (0x22a), region = 36 }
   0xe   : > { %313 = sbr.rel (!%p14582_p3) target bundleno = 530 (0x212), region = 40  ;;  %s315_s22 = sand.u32 (%p14582_p3), 1, %s14491_s14  }
   0xf   : > { %s12300_s23 = sshll.u32 (%p14582_p3), %s14495_s15, 2  ;;  %s13922_s24 = smul.u32 (%p14582_p3), 3072, %s315_s22 }
  0x10   : > { %s14594_s27 = scalar_lea.vmem (%p14582_p3), %s17236_s5, %s12300_s23 }
  0x11   : > { %v335_v0 = vld [vmem:[%s14594_s27] sm:$0xf] (%p14582_p3)  ;;  %v337_v1 = vld [vmem:[%s14594_s27 + $0x8] sm:$0xf] (%p14582_p3)  ;;  %v339_v2 = vld [vmem:[%s14594_s27 + $0x10] sm:$0xf] (%p14582_p3) }
  0x12   : > { %v341_v3 = vld [vmem:[%s14594_s27 + $0x18] sm:$0xf] (%p14582_p3)  ;;  %v343_v4 = vld [vmem:[%s14594_s27 + $0x20] sm:$0xf] (%p14582_p3)  ;;  %s14601_s28 = scalar_lea.vmem (%p14582_p3), [#allocation2], %s13922_s24 }
  0x13   : > { %336 = vst [vmem:[%s14601_s28] sm:$0xf] (%p14582_p3), %v335_v0  ;;  %338 = vst [vmem:[%s14601_s28 + $0x4] sm:$0xf] (%p14582_p3), %v337_v1  ;;  %v345_v5 = vld [vmem:[%s14594_s27 + $0x28] sm:$0xf] (%p14582_p3) }
  0x14   : > { %340 = vst [vmem:[%s14601_s28 + $0x8] sm:$0xf] (%p14582_p3), %v339_v2  ;;  %342 = vst [vmem:[%s14601_s28 + $0xc] sm:$0xf] (%p14582_p3), %v341_v3  ;;  %v347_v6 = vld [vmem:[%s14594_s27 + $0x30] sm:$0xf] (%p14582_p3) }
  0x15   : > { %344 = vst [vmem:[%s14601_s28 + $0x10] sm:$0xf] %v343_v4  ;;  %v349_v7 = vld [vmem:[%s14594_s27 + $0x38] sm:$0xf]  ;;  %346 = vst [vmem:[%s14601_s28 + $0x14] sm:$0xf] %v345_v5 }
  0x16   : > { %348 = vst [vmem:[%s14601_s28 + $0x18] sm:$0xf] %v347_v6  ;;  %350 = vst [vmem:[%s14601_s28 + $0x1c] sm:$0xf] %v349_v7  ;;  %v351_v8 = vld [vmem:[%s14594_s27 + $0x40] sm:$0xf] }
  0x17   : > { %v353_v9 = vld [vmem:[%s14594_s27 + $0x48] sm:$0xf]  ;;  %v355_v10 = vld [vmem:[%s14594_s27 + $0x50] sm:$0xf]  ;;  %352 = vst [vmem:[%s14601_s28 + $0x20] sm:$0xf] %v351_v8 }
  0x18   : > { %354 = vst [vmem:[%s14601_s28 + $0x24] sm:$0xf] %v353_v9  ;;  %356 = vst [vmem:[%s14601_s28 + $0x28] sm:$0xf] %v355_v10  ;;  %v357_v11 = vld [vmem:[%s14594_s27 + $0x58] sm:$0xf] }
  0x19   : > { %v359_v12 = vld [vmem:[%s14594_s27 + $0x60] sm:$0xf]  ;;  %v361_v13 = vld [vmem:[%s14594_s27 + $0x68] sm:$0xf]  ;;  %358 = vst [vmem:[%s14601_s28 + $0x2c] sm:$0xf] %v357_v11 }
  0x1a   : > { %360 = vst [vmem:[%s14601_s28 + $0x30] sm:$0xf] %v359_v12  ;;  %362 = vst [vmem:[%s14601_s28 + $0x34] sm:$0xf] %v361_v13  ;;  %v363_v14 = vld [vmem:[%s14594_s27 + $0x70] sm:$0xf] }
  0x1b   : > { %v365_v15 = vld [vmem:[%s14594_s27 + $0x78] sm:$0xf]  ;;  %v367_v16 = vld [vmem:[%s14594_s27 + $0x80] sm:$0xf]  ;;  %364 = vst [vmem:[%s14601_s28 + $0x38] sm:$0xf] %v363_v14 }
  0x1c   : > { %366 = vst [vmem:[%s14601_s28 + $0x3c] sm:$0xf] %v365_v15  ;;  %368 = vst [vmem:[%s14601_s28 + $0x40] sm:$0xf] %v367_v16  ;;  %v369_v17 = vld [vmem:[%s14594_s27 + $0x88] sm:$0xf] }
  0x1d   : > { %v371_v18 = vld [vmem:[%s14594_s27 + $0x90] sm:$0xf]  ;;  %v373_v19 = vld [vmem:[%s14594_s27 + $0x98] sm:$0xf]  ;;  %370 = vst [vmem:[%s14601_s28 + $0x44] sm:$0xf] %v369_v17 }
  0x1e   : > { %372 = vst [vmem:[%s14601_s28 + $0x48] sm:$0xf] %v371_v18  ;;  %374 = vst [vmem:[%s14601_s28 + $0x4c] sm:$0xf] %v373_v19  ;;  %v375_v20 = vld [vmem:[%s14594_s27 + $0xa0] sm:$0xf] }
  0x1f   : > { %v377_v21 = vld [vmem:[%s14594_s27 + $0xa8] sm:$0xf]  ;;  %v379_v22 = vld [vmem:[%s14594_s27 + $0xb0] sm:$0xf]  ;;  %376 = vst [vmem:[%s14601_s28 + $0x50] sm:$0xf] %v375_v20 }
  0x20   : > { %378 = vst [vmem:[%s14601_s28 + $0x54] sm:$0xf] %v377_v21  ;;  %380 = vst [vmem:[%s14601_s28 + $0x58] sm:$0xf] %v379_v22  ;;  %v381_v23 = vld [vmem:[%s14594_s27 + $0xb8] sm:$0xf] }
  0x21   : > { %v383_v24 = vld [vmem:[%s14594_s27 + $0xc0] sm:$0xf]  ;;  %v385_v25 = vld [vmem:[%s14594_s27 + $0xc8] sm:$0xf]  ;;  %382 = vst [vmem:[%s14601_s28 + $0x5c] sm:$0xf] %v381_v23 }
  0x22   : > { %384 = vst [vmem:[%s14601_s28 + $0x60] sm:$0xf] %v383_v24  ;;  %386 = vst [vmem:[%s14601_s28 + $0x64] sm:$0xf] %v385_v25  ;;  %v387_v26 = vld [vmem:[%s14594_s27 + $0xd0] sm:$0xf] }
  0x23   : > { %v389_v27 = vld [vmem:[%s14594_s27 + $0xd8] sm:$0xf]  ;;  %v391_v28 = vld [vmem:[%s14594_s27 + $0xe0] sm:$0xf]  ;;  %388 = vst [vmem:[%s14601_s28 + $0x68] sm:$0xf] %v387_v26 }
  0x24   : > { %390 = vst [vmem:[%s14601_s28 + $0x6c] sm:$0xf] %v389_v27  ;;  %392 = vst [vmem:[%s14601_s28 + $0x70] sm:$0xf] %v391_v28  ;;  %v393_v29 = vld [vmem:[%s14594_s27 + $0xe8] sm:$0xf] }
  0x25   : > { %v395_v30 = vld [vmem:[%s14594_s27 + $0xf0] sm:$0xf]  ;;  %v397_v31 = vld [vmem:[%s14594_s27 + $0xf8] sm:$0xf]  ;;  %394 = vst [vmem:[%s14601_s28 + $0x74] sm:$0xf] %v393_v29 }
  0x26   : > { %396 = vst [vmem:[%s14601_s28 + $0x78] sm:$0xf] %v395_v30  ;;  %398 = vst [vmem:[%s14601_s28 + $0x7c] sm:$0xf] %v397_v31  ;;  %v399_v32 = vld [vmem:[%s14594_s27 + $0x100] sm:$0xf] }
  0x27   : > { %v401_v33 = vld [vmem:[%s14594_s27 + $0x108] sm:$0xf]  ;;  %v403_v34 = vld [vmem:[%s14594_s27 + $0x110] sm:$0xf]  ;;  %400 = vst [vmem:[%s14601_s28 + $0x80] sm:$0xf] %v399_v32 }
  0x28   : > { %402 = vst [vmem:[%s14601_s28 + $0x84] sm:$0xf] %v401_v33  ;;  %404 = vst [vmem:[%s14601_s28 + $0x88] sm:$0xf] %v403_v34  ;;  %v405_v35 = vld [vmem:[%s14594_s27 + $0x118] sm:$0xf] }
  0x29   : > { %v407_v36 = vld [vmem:[%s14594_s27 + $0x120] sm:$0xf]  ;;  %v409_v37 = vld [vmem:[%s14594_s27 + $0x128] sm:$0xf]  ;;  %406 = vst [vmem:[%s14601_s28 + $0x8c] sm:$0xf] %v405_v35 }
  0x2a   : > { %408 = vst [vmem:[%s14601_s28 + $0x90] sm:$0xf] %v407_v36  ;;  %410 = vst [vmem:[%s14601_s28 + $0x94] sm:$0xf] %v409_v37  ;;  %v411_v38 = vld [vmem:[%s14594_s27 + $0x130] sm:$0xf] }
  0x2b   : > { %v413_v39 = vld [vmem:[%s14594_s27 + $0x138] sm:$0xf]  ;;  %v415_v40 = vld [vmem:[%s14594_s27 + $0x140] sm:$0xf]  ;;  %412 = vst [vmem:[%s14601_s28 + $0x98] sm:$0xf] %v411_v38 }
  0x2c   : > { %414 = vst [vmem:[%s14601_s28 + $0x9c] sm:$0xf] %v413_v39  ;;  %416 = vst [vmem:[%s14601_s28 + $0xa0] sm:$0xf] %v415_v40  ;;  %v417_v41 = vld [vmem:[%s14594_s27 + $0x148] sm:$0xf] }
  0x2d   : > { %v419_v42 = vld [vmem:[%s14594_s27 + $0x150] sm:$0xf]  ;;  %v421_v43 = vld [vmem:[%s14594_s27 + $0x158] sm:$0xf]  ;;  %418 = vst [vmem:[%s14601_s28 + $0xa4] sm:$0xf] %v417_v41 }
  0x2e   : > { %420 = vst [vmem:[%s14601_s28 + $0xa8] sm:$0xf] %v419_v42  ;;  %422 = vst [vmem:[%s14601_s28 + $0xac] sm:$0xf] %v421_v43  ;;  %v423_v44 = vld [vmem:[%s14594_s27 + $0x160] sm:$0xf] }
  0x2f   : > { %v425_v45 = vld [vmem:[%s14594_s27 + $0x168] sm:$0xf]  ;;  %v427_v46 = vld [vmem:[%s14594_s27 + $0x170] sm:$0xf]  ;;  %424 = vst [vmem:[%s14601_s28 + $0xb0] sm:$0xf] %v423_v44 }
  0x30   : > { %426 = vst [vmem:[%s14601_s28 + $0xb4] sm:$0xf] %v425_v45  ;;  %428 = vst [vmem:[%s14601_s28 + $0xb8] sm:$0xf] %v427_v46  ;;  %v429_v47 = vld [vmem:[%s14594_s27 + $0x178] sm:$0xf] }
  0x31   : > { %v431_v48 = vld [vmem:[%s14594_s27 + $0x180] sm:$0xf]  ;;  %v433_v49 = vld [vmem:[%s14594_s27 + $0x188] sm:$0xf]  ;;  %430 = vst [vmem:[%s14601_s28 + $0xbc] sm:$0xf] %v429_v47 }
  0x32   : > { %432 = vst [vmem:[%s14601_s28 + $0xc0] sm:$0xf] %v431_v48  ;;  %434 = vst [vmem:[%s14601_s28 + $0xc4] sm:$0xf] %v433_v49  ;;  %v435_v50 = vld [vmem:[%s14594_s27 + $0x190] sm:$0xf] }
  0x33   : > { %v437_v51 = vld [vmem:[%s14594_s27 + $0x198] sm:$0xf]  ;;  %v439_v52 = vld [vmem:[%s14594_s27 + $0x1a0] sm:$0xf]  ;;  %436 = vst [vmem:[%s14601_s28 + $0xc8] sm:$0xf] %v435_v50 }
  0x34   : > { %438 = vst [vmem:[%s14601_s28 + $0xcc] sm:$0xf] %v437_v51  ;;  %440 = vst [vmem:[%s14601_s28 + $0xd0] sm:$0xf] %v439_v52  ;;  %v441_v53 = vld [vmem:[%s14594_s27 + $0x1a8] sm:$0xf] }
  0x35   : > { %v443_v54 = vld [vmem:[%s14594_s27 + $0x1b0] sm:$0xf]  ;;  %v445_v55 = vld [vmem:[%s14594_s27 + $0x1b8] sm:$0xf]  ;;  %442 = vst [vmem:[%s14601_s28 + $0xd4] sm:$0xf] %v441_v53 }
  0x36   : > { %444 = vst [vmem:[%s14601_s28 + $0xd8] sm:$0xf] %v443_v54  ;;  %446 = vst [vmem:[%s14601_s28 + $0xdc] sm:$0xf] %v445_v55  ;;  %v447_v56 = vld [vmem:[%s14594_s27 + $0x1c0] sm:$0xf] }
  0x37   : > { %v449_v57 = vld [vmem:[%s14594_s27 + $0x1c8] sm:$0xf]  ;;  %v451_v58 = vld [vmem:[%s14594_s27 + $0x1d0] sm:$0xf]  ;;  %448 = vst [vmem:[%s14601_s28 + $0xe0] sm:$0xf] %v447_v56 }
  0x38   : > { %450 = vst [vmem:[%s14601_s28 + $0xe4] sm:$0xf] %v449_v57  ;;  %452 = vst [vmem:[%s14601_s28 + $0xe8] sm:$0xf] %v451_v58  ;;  %v453_v59 = vld [vmem:[%s14594_s27 + $0x1d8] sm:$0xf] }
  0x39   : > { %v455_v60 = vld [vmem:[%s14594_s27 + $0x1e0] sm:$0xf]  ;;  %v457_v61 = vld [vmem:[%s14594_s27 + $0x1e8] sm:$0xf]  ;;  %454 = vst [vmem:[%s14601_s28 + $0xec] sm:$0xf] %v453_v59 }
  0x3a   : > { %456 = vst [vmem:[%s14601_s28 + $0xf0] sm:$0xf] %v455_v60  ;;  %458 = vst [vmem:[%s14601_s28 + $0xf4] sm:$0xf] %v457_v61  ;;  %v459_v62 = vld [vmem:[%s14594_s27 + $0x1f0] sm:$0xf] }
  0x3b   : > { %v461_v63 = vld [vmem:[%s14594_s27 + $0x1f8] sm:$0xf]  ;;  %v463_v0 = vld [vmem:[%s14594_s27 + $0x200] sm:$0xf]  ;;  %460 = vst [vmem:[%s14601_s28 + $0xf8] sm:$0xf] %v459_v62 }
  0x3c   : > { %462 = vst [vmem:[%s14601_s28 + $0xfc] sm:$0xf] %v461_v63  ;;  %464 = vst [vmem:[%s14601_s28 + $0x100] sm:$0xf] %v463_v0  ;;  %v465_v1 = vld [vmem:[%s14594_s27 + $0x208] sm:$0xf] }
  0x3d   : > { %v467_v2 = vld [vmem:[%s14594_s27 + $0x210] sm:$0xf]  ;;  %v469_v3 = vld [vmem:[%s14594_s27 + $0x218] sm:$0xf]  ;;  %466 = vst [vmem:[%s14601_s28 + $0x104] sm:$0xf] %v465_v1 }
  0x3e   : > { %468 = vst [vmem:[%s14601_s28 + $0x108] sm:$0xf] %v467_v2  ;;  %470 = vst [vmem:[%s14601_s28 + $0x10c] sm:$0xf] %v469_v3  ;;  %v471_v4 = vld [vmem:[%s14594_s27 + $0x220] sm:$0xf] }
  0x3f   : > { %v473_v5 = vld [vmem:[%s14594_s27 + $0x228] sm:$0xf]  ;;  %v475_v6 = vld [vmem:[%s14594_s27 + $0x230] sm:$0xf]  ;;  %472 = vst [vmem:[%s14601_s28 + $0x110] sm:$0xf] %v471_v4 }
  0x40   : > { %474 = vst [vmem:[%s14601_s28 + $0x114] sm:$0xf] %v473_v5  ;;  %476 = vst [vmem:[%s14601_s28 + $0x118] sm:$0xf] %v475_v6  ;;  %v477_v7 = vld [vmem:[%s14594_s27 + $0x238] sm:$0xf] }
  0x41   : > { %v479_v8 = vld [vmem:[%s14594_s27 + $0x240] sm:$0xf]  ;;  %v481_v9 = vld [vmem:[%s14594_s27 + $0x248] sm:$0xf]  ;;  %478 = vst [vmem:[%s14601_s28 + $0x11c] sm:$0xf] %v477_v7 }
  0x42   : > { %480 = vst [vmem:[%s14601_s28 + $0x120] sm:$0xf] %v479_v8  ;;  %482 = vst [vmem:[%s14601_s28 + $0x124] sm:$0xf] %v481_v9  ;;  %v483_v10 = vld [vmem:[%s14594_s27 + $0x250] sm:$0xf] }
  0x43   : > { %v485_v11 = vld [vmem:[%s14594_s27 + $0x258] sm:$0xf]  ;;  %v487_v12 = vld [vmem:[%s14594_s27 + $0x260] sm:$0xf]  ;;  %484 = vst [vmem:[%s14601_s28 + $0x128] sm:$0xf] %v483_v10 }
  0x44   : > { %486 = vst [vmem:[%s14601_s28 + $0x12c] sm:$0xf] %v485_v11  ;;  %488 = vst [vmem:[%s14601_s28 + $0x130] sm:$0xf] %v487_v12  ;;  %v489_v13 = vld [vmem:[%s14594_s27 + $0x268] sm:$0xf] }
  0x45   : > { %v491_v14 = vld [vmem:[%s14594_s27 + $0x270] sm:$0xf]  ;;  %v493_v15 = vld [vmem:[%s14594_s27 + $0x278] sm:$0xf]  ;;  %490 = vst [vmem:[%s14601_s28 + $0x134] sm:$0xf] %v489_v13 }
  0x46   : > { %492 = vst [vmem:[%s14601_s28 + $0x138] sm:$0xf] %v491_v14  ;;  %494 = vst [vmem:[%s14601_s28 + $0x13c] sm:$0xf] %v493_v15  ;;  %v495_v16 = vld [vmem:[%s14594_s27 + $0x280] sm:$0xf] }
  0x47   : > { %v497_v17 = vld [vmem:[%s14594_s27 + $0x288] sm:$0xf]  ;;  %v499_v18 = vld [vmem:[%s14594_s27 + $0x290] sm:$0xf]  ;;  %496 = vst [vmem:[%s14601_s28 + $0x140] sm:$0xf] %v495_v16 }
  0x48   : > { %498 = vst [vmem:[%s14601_s28 + $0x144] sm:$0xf] %v497_v17  ;;  %500 = vst [vmem:[%s14601_s28 + $0x148] sm:$0xf] %v499_v18  ;;  %v501_v19 = vld [vmem:[%s14594_s27 + $0x298] sm:$0xf] }
  0x49   : > { %v503_v20 = vld [vmem:[%s14594_s27 + $0x2a0] sm:$0xf]  ;;  %v505_v21 = vld [vmem:[%s14594_s27 + $0x2a8] sm:$0xf]  ;;  %502 = vst [vmem:[%s14601_s28 + $0x14c] sm:$0xf] %v501_v19 }
  0x4a   : > { %504 = vst [vmem:[%s14601_s28 + $0x150] sm:$0xf] %v503_v20  ;;  %506 = vst [vmem:[%s14601_s28 + $0x154] sm:$0xf] %v505_v21  ;;  %v507_v22 = vld [vmem:[%s14594_s27 + $0x2b0] sm:$0xf] }
  0x4b   : > { %v509_v23 = vld [vmem:[%s14594_s27 + $0x2b8] sm:$0xf]  ;;  %v511_v24 = vld [vmem:[%s14594_s27 + $0x2c0] sm:$0xf]  ;;  %508 = vst [vmem:[%s14601_s28 + $0x158] sm:$0xf] %v507_v22 }
  0x4c   : > { %510 = vst [vmem:[%s14601_s28 + $0x15c] sm:$0xf] %v509_v23  ;;  %512 = vst [vmem:[%s14601_s28 + $0x160] sm:$0xf] %v511_v24  ;;  %v513_v25 = vld [vmem:[%s14594_s27 + $0x2c8] sm:$0xf] }
  0x4d   : > { %v515_v26 = vld [vmem:[%s14594_s27 + $0x2d0] sm:$0xf]  ;;  %v517_v27 = vld [vmem:[%s14594_s27 + $0x2d8] sm:$0xf]  ;;  %514 = vst [vmem:[%s14601_s28 + $0x164] sm:$0xf] %v513_v25 }
  0x4e   : > { %516 = vst [vmem:[%s14601_s28 + $0x168] sm:$0xf] %v515_v26  ;;  %518 = vst [vmem:[%s14601_s28 + $0x16c] sm:$0xf] %v517_v27  ;;  %v519_v28 = vld [vmem:[%s14594_s27 + $0x2e0] sm:$0xf] }
  0x4f   : > { %v521_v29 = vld [vmem:[%s14594_s27 + $0x2e8] sm:$0xf]  ;;  %v523_v30 = vld [vmem:[%s14594_s27 + $0x2f0] sm:$0xf]  ;;  %520 = vst [vmem:[%s14601_s28 + $0x170] sm:$0xf] %v519_v28 }
  0x50   : > { %522 = vst [vmem:[%s14601_s28 + $0x174] sm:$0xf] %v521_v29  ;;  %524 = vst [vmem:[%s14601_s28 + $0x178] sm:$0xf] %v523_v30  ;;  %v525_v31 = vld [vmem:[%s14594_s27 + $0x2f8] sm:$0xf] }
  0x51   : > { %v527_v32 = vld [vmem:[%s14594_s27 + $0x300] sm:$0xf]  ;;  %v529_v33 = vld [vmem:[%s14594_s27 + $0x308] sm:$0xf]  ;;  %526 = vst [vmem:[%s14601_s28 + $0x17c] sm:$0xf] %v525_v31 }
  0x52   : > { %528 = vst [vmem:[%s14601_s28 + $0x180] sm:$0xf] %v527_v32  ;;  %530 = vst [vmem:[%s14601_s28 + $0x184] sm:$0xf] %v529_v33  ;;  %v531_v34 = vld [vmem:[%s14594_s27 + $0x310] sm:$0xf] }
  0x53   : > { %v533_v35 = vld [vmem:[%s14594_s27 + $0x318] sm:$0xf]  ;;  %v535_v36 = vld [vmem:[%s14594_s27 + $0x320] sm:$0xf]  ;;  %532 = vst [vmem:[%s14601_s28 + $0x188] sm:$0xf] %v531_v34 }
  0x54   : > { %534 = vst [vmem:[%s14601_s28 + $0x18c] sm:$0xf] %v533_v35  ;;  %536 = vst [vmem:[%s14601_s28 + $0x190] sm:$0xf] %v535_v36  ;;  %v537_v37 = vld [vmem:[%s14594_s27 + $0x328] sm:$0xf] }
  0x55   : > { %v539_v38 = vld [vmem:[%s14594_s27 + $0x330] sm:$0xf]  ;;  %v541_v39 = vld [vmem:[%s14594_s27 + $0x338] sm:$0xf]  ;;  %538 = vst [vmem:[%s14601_s28 + $0x194] sm:$0xf] %v537_v37 }
  0x56   : > { %540 = vst [vmem:[%s14601_s28 + $0x198] sm:$0xf] %v539_v38  ;;  %542 = vst [vmem:[%s14601_s28 + $0x19c] sm:$0xf] %v541_v39  ;;  %v543_v40 = vld [vmem:[%s14594_s27 + $0x340] sm:$0xf] }
  0x57   : > { %v545_v41 = vld [vmem:[%s14594_s27 + $0x348] sm:$0xf]  ;;  %v547_v42 = vld [vmem:[%s14594_s27 + $0x350] sm:$0xf]  ;;  %544 = vst [vmem:[%s14601_s28 + $0x1a0] sm:$0xf] %v543_v40 }
  0x58   : > { %546 = vst [vmem:[%s14601_s28 + $0x1a4] sm:$0xf] %v545_v41  ;;  %548 = vst [vmem:[%s14601_s28 + $0x1a8] sm:$0xf] %v547_v42  ;;  %v549_v43 = vld [vmem:[%s14594_s27 + $0x358] sm:$0xf] }
  0x59   : > { %v551_v44 = vld [vmem:[%s14594_s27 + $0x360] sm:$0xf]  ;;  %v553_v45 = vld [vmem:[%s14594_s27 + $0x368] sm:$0xf]  ;;  %550 = vst [vmem:[%s14601_s28 + $0x1ac] sm:$0xf] %v549_v43 }
  0x5a   : > { %552 = vst [vmem:[%s14601_s28 + $0x1b0] sm:$0xf] %v551_v44  ;;  %554 = vst [vmem:[%s14601_s28 + $0x1b4] sm:$0xf] %v553_v45  ;;  %v555_v46 = vld [vmem:[%s14594_s27 + $0x370] sm:$0xf] }
  0x5b   : > { %v557_v47 = vld [vmem:[%s14594_s27 + $0x378] sm:$0xf]  ;;  %v559_v48 = vld [vmem:[%s14594_s27 + $0x380] sm:$0xf]  ;;  %556 = vst [vmem:[%s14601_s28 + $0x1b8] sm:$0xf] %v555_v46 }
  0x5c   : > { %558 = vst [vmem:[%s14601_s28 + $0x1bc] sm:$0xf] %v557_v47  ;;  %560 = vst [vmem:[%s14601_s28 + $0x1c0] sm:$0xf] %v559_v48  ;;  %v561_v49 = vld [vmem:[%s14594_s27 + $0x388] sm:$0xf] }
  0x5d   : > { %v563_v50 = vld [vmem:[%s14594_s27 + $0x390] sm:$0xf]  ;;  %v565_v51 = vld [vmem:[%s14594_s27 + $0x398] sm:$0xf]  ;;  %562 = vst [vmem:[%s14601_s28 + $0x1c4] sm:$0xf] %v561_v49 }
  0x5e   : > { %564 = vst [vmem:[%s14601_s28 + $0x1c8] sm:$0xf] %v563_v50  ;;  %566 = vst [vmem:[%s14601_s28 + $0x1cc] sm:$0xf] %v565_v51  ;;  %v567_v52 = vld [vmem:[%s14594_s27 + $0x3a0] sm:$0xf] }
  0x5f   : > { %v569_v53 = vld [vmem:[%s14594_s27 + $0x3a8] sm:$0xf]  ;;  %v571_v54 = vld [vmem:[%s14594_s27 + $0x3b0] sm:$0xf]  ;;  %568 = vst [vmem:[%s14601_s28 + $0x1d0] sm:$0xf] %v567_v52 }
  0x60   : > { %570 = vst [vmem:[%s14601_s28 + $0x1d4] sm:$0xf] %v569_v53  ;;  %572 = vst [vmem:[%s14601_s28 + $0x1d8] sm:$0xf] %v571_v54  ;;  %v573_v55 = vld [vmem:[%s14594_s27 + $0x3b8] sm:$0xf] }
  0x61   : > { %v575_v56 = vld [vmem:[%s14594_s27 + $0x3c0] sm:$0xf]  ;;  %v577_v57 = vld [vmem:[%s14594_s27 + $0x3c8] sm:$0xf]  ;;  %574 = vst [vmem:[%s14601_s28 + $0x1dc] sm:$0xf] %v573_v55 }
  0x62   : > { %576 = vst [vmem:[%s14601_s28 + $0x1e0] sm:$0xf] %v575_v56  ;;  %578 = vst [vmem:[%s14601_s28 + $0x1e4] sm:$0xf] %v577_v57  ;;  %v579_v58 = vld [vmem:[%s14594_s27 + $0x3d0] sm:$0xf] }
  0x63   : > { %v581_v59 = vld [vmem:[%s14594_s27 + $0x3d8] sm:$0xf]  ;;  %v583_v60 = vld [vmem:[%s14594_s27 + $0x3e0] sm:$0xf]  ;;  %580 = vst [vmem:[%s14601_s28 + $0x1e8] sm:$0xf] %v579_v58 }
  0x64   : > { %582 = vst [vmem:[%s14601_s28 + $0x1ec] sm:$0xf] %v581_v59  ;;  %584 = vst [vmem:[%s14601_s28 + $0x1f0] sm:$0xf] %v583_v60  ;;  %v585_v61 = vld [vmem:[%s14594_s27 + $0x3e8] sm:$0xf] }
  0x65   : > { %v587_v62 = vld [vmem:[%s14594_s27 + $0x3f0] sm:$0xf]  ;;  %v589_v63 = vld [vmem:[%s14594_s27 + $0x3f8] sm:$0xf]  ;;  %586 = vst [vmem:[%s14601_s28 + $0x1f4] sm:$0xf] %v585_v61 }
  0x66   : > { %588 = vst [vmem:[%s14601_s28 + $0x1f8] sm:$0xf] %v587_v62  ;;  %590 = vst [vmem:[%s14601_s28 + $0x1fc] sm:$0xf] %v589_v63  ;;  %v591_v0 = vld [vmem:[%s14594_s27 + $0x400] sm:$0xf] }
  0x67   : > { %v593_v1 = vld [vmem:[%s14594_s27 + $0x408] sm:$0xf]  ;;  %v595_v2 = vld [vmem:[%s14594_s27 + $0x410] sm:$0xf]  ;;  %592 = vst [vmem:[%s14601_s28 + $0x200] sm:$0xf] %v591_v0 }
  0x68   : > { %594 = vst [vmem:[%s14601_s28 + $0x204] sm:$0xf] %v593_v1  ;;  %596 = vst [vmem:[%s14601_s28 + $0x208] sm:$0xf] %v595_v2  ;;  %v597_v3 = vld [vmem:[%s14594_s27 + $0x418] sm:$0xf] }
  0x69   : > { %v599_v4 = vld [vmem:[%s14594_s27 + $0x420] sm:$0xf]  ;;  %v601_v5 = vld [vmem:[%s14594_s27 + $0x428] sm:$0xf]  ;;  %598 = vst [vmem:[%s14601_s28 + $0x20c] sm:$0xf] %v597_v3 }
  0x6a   : > { %600 = vst [vmem:[%s14601_s28 + $0x210] sm:$0xf] %v599_v4  ;;  %602 = vst [vmem:[%s14601_s28 + $0x214] sm:$0xf] %v601_v5  ;;  %v603_v6 = vld [vmem:[%s14594_s27 + $0x430] sm:$0xf] }
  0x6b   : > { %v605_v7 = vld [vmem:[%s14594_s27 + $0x438] sm:$0xf]  ;;  %v607_v8 = vld [vmem:[%s14594_s27 + $0x440] sm:$0xf]  ;;  %604 = vst [vmem:[%s14601_s28 + $0x218] sm:$0xf] %v603_v6 }
  0x6c   : > { %606 = vst [vmem:[%s14601_s28 + $0x21c] sm:$0xf] %v605_v7  ;;  %608 = vst [vmem:[%s14601_s28 + $0x220] sm:$0xf] %v607_v8  ;;  %v609_v9 = vld [vmem:[%s14594_s27 + $0x448] sm:$0xf] }
  0x6d   : > { %v611_v10 = vld [vmem:[%s14594_s27 + $0x450] sm:$0xf]  ;;  %v613_v11 = vld [vmem:[%s14594_s27 + $0x458] sm:$0xf]  ;;  %610 = vst [vmem:[%s14601_s28 + $0x224] sm:$0xf] %v609_v9 }
  0x6e   : > { %612 = vst [vmem:[%s14601_s28 + $0x228] sm:$0xf] %v611_v10  ;;  %614 = vst [vmem:[%s14601_s28 + $0x22c] sm:$0xf] %v613_v11  ;;  %v615_v12 = vld [vmem:[%s14594_s27 + $0x460] sm:$0xf] }
  0x6f   : > { %v617_v13 = vld [vmem:[%s14594_s27 + $0x468] sm:$0xf]  ;;  %v619_v14 = vld [vmem:[%s14594_s27 + $0x470] sm:$0xf]  ;;  %616 = vst [vmem:[%s14601_s28 + $0x230] sm:$0xf] %v615_v12 }
  0x70   : > { %618 = vst [vmem:[%s14601_s28 + $0x234] sm:$0xf] %v617_v13  ;;  %620 = vst [vmem:[%s14601_s28 + $0x238] sm:$0xf] %v619_v14  ;;  %v621_v15 = vld [vmem:[%s14594_s27 + $0x478] sm:$0xf] }
  0x71   : > { %v623_v16 = vld [vmem:[%s14594_s27 + $0x480] sm:$0xf]  ;;  %v625_v17 = vld [vmem:[%s14594_s27 + $0x488] sm:$0xf]  ;;  %622 = vst [vmem:[%s14601_s28 + $0x23c] sm:$0xf] %v621_v15 }
  0x72   : > { %624 = vst [vmem:[%s14601_s28 + $0x240] sm:$0xf] %v623_v16  ;;  %626 = vst [vmem:[%s14601_s28 + $0x244] sm:$0xf] %v625_v17  ;;  %v627_v18 = vld [vmem:[%s14594_s27 + $0x490] sm:$0xf] }
  0x73   : > { %v629_v19 = vld [vmem:[%s14594_s27 + $0x498] sm:$0xf]  ;;  %v631_v20 = vld [vmem:[%s14594_s27 + $0x4a0] sm:$0xf]  ;;  %628 = vst [vmem:[%s14601_s28 + $0x248] sm:$0xf] %v627_v18 }
  0x74   : > { %630 = vst [vmem:[%s14601_s28 + $0x24c] sm:$0xf] %v629_v19  ;;  %632 = vst [vmem:[%s14601_s28 + $0x250] sm:$0xf] %v631_v20  ;;  %v633_v21 = vld [vmem:[%s14594_s27 + $0x4a8] sm:$0xf] }
  0x75   : > { %v635_v22 = vld [vmem:[%s14594_s27 + $0x4b0] sm:$0xf]  ;;  %v637_v23 = vld [vmem:[%s14594_s27 + $0x4b8] sm:$0xf]  ;;  %634 = vst [vmem:[%s14601_s28 + $0x254] sm:$0xf] %v633_v21 }
  0x76   : > { %636 = vst [vmem:[%s14601_s28 + $0x258] sm:$0xf] %v635_v22  ;;  %638 = vst [vmem:[%s14601_s28 + $0x25c] sm:$0xf] %v637_v23  ;;  %v639_v24 = vld [vmem:[%s14594_s27 + $0x4c0] sm:$0xf] }
  0x77   : > { %v641_v25 = vld [vmem:[%s14594_s27 + $0x4c8] sm:$0xf]  ;;  %v643_v26 = vld [vmem:[%s14594_s27 + $0x4d0] sm:$0xf]  ;;  %640 = vst [vmem:[%s14601_s28 + $0x260] sm:$0xf] %v639_v24 }
  0x78   : > { %642 = vst [vmem:[%s14601_s28 + $0x264] sm:$0xf] %v641_v25  ;;  %644 = vst [vmem:[%s14601_s28 + $0x268] sm:$0xf] %v643_v26  ;;  %v645_v27 = vld [vmem:[%s14594_s27 + $0x4d8] sm:$0xf] }
  0x79   : > { %v647_v28 = vld [vmem:[%s14594_s27 + $0x4e0] sm:$0xf]  ;;  %v649_v29 = vld [vmem:[%s14594_s27 + $0x4e8] sm:$0xf]  ;;  %646 = vst [vmem:[%s14601_s28 + $0x26c] sm:$0xf] %v645_v27 }
  0x7a   : > { %648 = vst [vmem:[%s14601_s28 + $0x270] sm:$0xf] %v647_v28  ;;  %650 = vst [vmem:[%s14601_s28 + $0x274] sm:$0xf] %v649_v29  ;;  %v651_v30 = vld [vmem:[%s14594_s27 + $0x4f0] sm:$0xf] }
  0x7b   : > { %v653_v31 = vld [vmem:[%s14594_s27 + $0x4f8] sm:$0xf]  ;;  %v655_v32 = vld [vmem:[%s14594_s27 + $0x500] sm:$0xf]  ;;  %652 = vst [vmem:[%s14601_s28 + $0x278] sm:$0xf] %v651_v30 }
  0x7c   : > { %654 = vst [vmem:[%s14601_s28 + $0x27c] sm:$0xf] %v653_v31  ;;  %656 = vst [vmem:[%s14601_s28 + $0x280] sm:$0xf] %v655_v32  ;;  %v657_v33 = vld [vmem:[%s14594_s27 + $0x508] sm:$0xf] }
  0x7d   : > { %v659_v34 = vld [vmem:[%s14594_s27 + $0x510] sm:$0xf]  ;;  %v661_v35 = vld [vmem:[%s14594_s27 + $0x518] sm:$0xf]  ;;  %658 = vst [vmem:[%s14601_s28 + $0x284] sm:$0xf] %v657_v33 }
  0x7e   : > { %660 = vst [vmem:[%s14601_s28 + $0x288] sm:$0xf] %v659_v34  ;;  %662 = vst [vmem:[%s14601_s28 + $0x28c] sm:$0xf] %v661_v35  ;;  %v663_v36 = vld [vmem:[%s14594_s27 + $0x520] sm:$0xf] }
  0x7f   : > { %v665_v37 = vld [vmem:[%s14594_s27 + $0x528] sm:$0xf]  ;;  %v667_v38 = vld [vmem:[%s14594_s27 + $0x530] sm:$0xf]  ;;  %664 = vst [vmem:[%s14601_s28 + $0x290] sm:$0xf] %v663_v36 }
  0x80   : > { %666 = vst [vmem:[%s14601_s28 + $0x294] sm:$0xf] %v665_v37  ;;  %668 = vst [vmem:[%s14601_s28 + $0x298] sm:$0xf] %v667_v38  ;;  %v669_v39 = vld [vmem:[%s14594_s27 + $0x538] sm:$0xf] }
  0x81   : > { %v671_v40 = vld [vmem:[%s14594_s27 + $0x540] sm:$0xf]  ;;  %v673_v41 = vld [vmem:[%s14594_s27 + $0x548] sm:$0xf]  ;;  %670 = vst [vmem:[%s14601_s28 + $0x29c] sm:$0xf] %v669_v39 }
  0x82   : > { %672 = vst [vmem:[%s14601_s28 + $0x2a0] sm:$0xf] %v671_v40  ;;  %674 = vst [vmem:[%s14601_s28 + $0x2a4] sm:$0xf] %v673_v41  ;;  %v675_v42 = vld [vmem:[%s14594_s27 + $0x550] sm:$0xf] }
  0x83   : > { %v677_v43 = vld [vmem:[%s14594_s27 + $0x558] sm:$0xf]  ;;  %v679_v44 = vld [vmem:[%s14594_s27 + $0x560] sm:$0xf]  ;;  %676 = vst [vmem:[%s14601_s28 + $0x2a8] sm:$0xf] %v675_v42 }
  0x84   : > { %678 = vst [vmem:[%s14601_s28 + $0x2ac] sm:$0xf] %v677_v43  ;;  %680 = vst [vmem:[%s14601_s28 + $0x2b0] sm:$0xf] %v679_v44  ;;  %v681_v45 = vld [vmem:[%s14594_s27 + $0x568] sm:$0xf] }
  0x85   : > { %v683_v46 = vld [vmem:[%s14594_s27 + $0x570] sm:$0xf]  ;;  %v685_v47 = vld [vmem:[%s14594_s27 + $0x578] sm:$0xf]  ;;  %682 = vst [vmem:[%s14601_s28 + $0x2b4] sm:$0xf] %v681_v45 }
  0x86   : > { %684 = vst [vmem:[%s14601_s28 + $0x2b8] sm:$0xf] %v683_v46  ;;  %686 = vst [vmem:[%s14601_s28 + $0x2bc] sm:$0xf] %v685_v47  ;;  %v687_v48 = vld [vmem:[%s14594_s27 + $0x580] sm:$0xf] }
  0x87   : > { %v689_v49 = vld [vmem:[%s14594_s27 + $0x588] sm:$0xf]  ;;  %v691_v50 = vld [vmem:[%s14594_s27 + $0x590] sm:$0xf]  ;;  %688 = vst [vmem:[%s14601_s28 + $0x2c0] sm:$0xf] %v687_v48 }
  0x88   : > { %690 = vst [vmem:[%s14601_s28 + $0x2c4] sm:$0xf] %v689_v49  ;;  %692 = vst [vmem:[%s14601_s28 + $0x2c8] sm:$0xf] %v691_v50  ;;  %v693_v51 = vld [vmem:[%s14594_s27 + $0x598] sm:$0xf] }
  0x89   : > { %v695_v52 = vld [vmem:[%s14594_s27 + $0x5a0] sm:$0xf]  ;;  %v697_v53 = vld [vmem:[%s14594_s27 + $0x5a8] sm:$0xf]  ;;  %694 = vst [vmem:[%s14601_s28 + $0x2cc] sm:$0xf] %v693_v51 }
  0x8a   : > { %696 = vst [vmem:[%s14601_s28 + $0x2d0] sm:$0xf] %v695_v52  ;;  %698 = vst [vmem:[%s14601_s28 + $0x2d4] sm:$0xf] %v697_v53  ;;  %v699_v54 = vld [vmem:[%s14594_s27 + $0x5b0] sm:$0xf] }
  0x8b   : > { %v701_v55 = vld [vmem:[%s14594_s27 + $0x5b8] sm:$0xf]  ;;  %v703_v56 = vld [vmem:[%s14594_s27 + $0x5c0] sm:$0xf]  ;;  %700 = vst [vmem:[%s14601_s28 + $0x2d8] sm:$0xf] %v699_v54 }
  0x8c   : > { %702 = vst [vmem:[%s14601_s28 + $0x2dc] sm:$0xf] %v701_v55  ;;  %704 = vst [vmem:[%s14601_s28 + $0x2e0] sm:$0xf] %v703_v56  ;;  %v705_v57 = vld [vmem:[%s14594_s27 + $0x5c8] sm:$0xf] }
  0x8d   : > { %v707_v58 = vld [vmem:[%s14594_s27 + $0x5d0] sm:$0xf]  ;;  %v709_v59 = vld [vmem:[%s14594_s27 + $0x5d8] sm:$0xf]  ;;  %706 = vst [vmem:[%s14601_s28 + $0x2e4] sm:$0xf] %v705_v57 }
  0x8e   : > { %708 = vst [vmem:[%s14601_s28 + $0x2e8] sm:$0xf] %v707_v58  ;;  %710 = vst [vmem:[%s14601_s28 + $0x2ec] sm:$0xf] %v709_v59  ;;  %v711_v60 = vld [vmem:[%s14594_s27 + $0x5e0] sm:$0xf] }
  0x8f   : > { %v713_v61 = vld [vmem:[%s14594_s27 + $0x5e8] sm:$0xf]  ;;  %v715_v62 = vld [vmem:[%s14594_s27 + $0x5f0] sm:$0xf]  ;;  %712 = vst [vmem:[%s14601_s28 + $0x2f0] sm:$0xf] %v711_v60 }
  0x90   : > { %714 = vst [vmem:[%s14601_s28 + $0x2f4] sm:$0xf] %v713_v61  ;;  %716 = vst [vmem:[%s14601_s28 + $0x2f8] sm:$0xf] %v715_v62  ;;  %v717_v63 = vld [vmem:[%s14594_s27 + $0x5f8] sm:$0xf] }
  0x91   : > { %v719_v0 = vld [vmem:[%s14594_s27 + $0x600] sm:$0xf]  ;;  %v721_v1 = vld [vmem:[%s14594_s27 + $0x608] sm:$0xf]  ;;  %718 = vst [vmem:[%s14601_s28 + $0x2fc] sm:$0xf] %v717_v63 }
  0x92   : > { %720 = vst [vmem:[%s14601_s28 + $0x300] sm:$0xf] %v719_v0  ;;  %722 = vst [vmem:[%s14601_s28 + $0x304] sm:$0xf] %v721_v1  ;;  %v723_v2 = vld [vmem:[%s14594_s27 + $0x610] sm:$0xf] }
  0x93   : > { %v725_v3 = vld [vmem:[%s14594_s27 + $0x618] sm:$0xf]  ;;  %v727_v4 = vld [vmem:[%s14594_s27 + $0x620] sm:$0xf]  ;;  %724 = vst [vmem:[%s14601_s28 + $0x308] sm:$0xf] %v723_v2 }
  0x94   : > { %726 = vst [vmem:[%s14601_s28 + $0x30c] sm:$0xf] %v725_v3  ;;  %728 = vst [vmem:[%s14601_s28 + $0x310] sm:$0xf] %v727_v4  ;;  %v729_v5 = vld [vmem:[%s14594_s27 + $0x628] sm:$0xf] }
  0x95   : > { %v731_v6 = vld [vmem:[%s14594_s27 + $0x630] sm:$0xf]  ;;  %v733_v7 = vld [vmem:[%s14594_s27 + $0x638] sm:$0xf]  ;;  %730 = vst [vmem:[%s14601_s28 + $0x314] sm:$0xf] %v729_v5 }
  0x96   : > { %732 = vst [vmem:[%s14601_s28 + $0x318] sm:$0xf] %v731_v6  ;;  %734 = vst [vmem:[%s14601_s28 + $0x31c] sm:$0xf] %v733_v7  ;;  %v735_v8 = vld [vmem:[%s14594_s27 + $0x640] sm:$0xf] }
  0x97   : > { %v737_v9 = vld [vmem:[%s14594_s27 + $0x648] sm:$0xf]  ;;  %v739_v10 = vld [vmem:[%s14594_s27 + $0x650] sm:$0xf]  ;;  %736 = vst [vmem:[%s14601_s28 + $0x320] sm:$0xf] %v735_v8 }
  0x98   : > { %738 = vst [vmem:[%s14601_s28 + $0x324] sm:$0xf] %v737_v9  ;;  %740 = vst [vmem:[%s14601_s28 + $0x328] sm:$0xf] %v739_v10  ;;  %v741_v11 = vld [vmem:[%s14594_s27 + $0x658] sm:$0xf] }
  0x99   : > { %v743_v12 = vld [vmem:[%s14594_s27 + $0x660] sm:$0xf]  ;;  %v745_v13 = vld [vmem:[%s14594_s27 + $0x668] sm:$0xf]  ;;  %742 = vst [vmem:[%s14601_s28 + $0x32c] sm:$0xf] %v741_v11 }
  0x9a   : > { %744 = vst [vmem:[%s14601_s28 + $0x330] sm:$0xf] %v743_v12  ;;  %746 = vst [vmem:[%s14601_s28 + $0x334] sm:$0xf] %v745_v13  ;;  %v747_v14 = vld [vmem:[%s14594_s27 + $0x670] sm:$0xf] }
  0x9b   : > { %v749_v15 = vld [vmem:[%s14594_s27 + $0x678] sm:$0xf]  ;;  %v751_v16 = vld [vmem:[%s14594_s27 + $0x680] sm:$0xf]  ;;  %748 = vst [vmem:[%s14601_s28 + $0x338] sm:$0xf] %v747_v14 }
  0x9c   : > { %750 = vst [vmem:[%s14601_s28 + $0x33c] sm:$0xf] %v749_v15  ;;  %752 = vst [vmem:[%s14601_s28 + $0x340] sm:$0xf] %v751_v16  ;;  %v753_v17 = vld [vmem:[%s14594_s27 + $0x688] sm:$0xf] }
  0x9d   : > { %v755_v18 = vld [vmem:[%s14594_s27 + $0x690] sm:$0xf]  ;;  %v757_v19 = vld [vmem:[%s14594_s27 + $0x698] sm:$0xf]  ;;  %754 = vst [vmem:[%s14601_s28 + $0x344] sm:$0xf] %v753_v17 }
  0x9e   : > { %756 = vst [vmem:[%s14601_s28 + $0x348] sm:$0xf] %v755_v18  ;;  %758 = vst [vmem:[%s14601_s28 + $0x34c] sm:$0xf] %v757_v19  ;;  %v759_v20 = vld [vmem:[%s14594_s27 + $0x6a0] sm:$0xf] }
  0x9f   : > { %v761_v21 = vld [vmem:[%s14594_s27 + $0x6a8] sm:$0xf]  ;;  %v763_v22 = vld [vmem:[%s14594_s27 + $0x6b0] sm:$0xf]  ;;  %760 = vst [vmem:[%s14601_s28 + $0x350] sm:$0xf] %v759_v20 }
  0xa0   : > { %762 = vst [vmem:[%s14601_s28 + $0x354] sm:$0xf] %v761_v21  ;;  %764 = vst [vmem:[%s14601_s28 + $0x358] sm:$0xf] %v763_v22  ;;  %v765_v23 = vld [vmem:[%s14594_s27 + $0x6b8] sm:$0xf] }
  0xa1   : > { %v767_v24 = vld [vmem:[%s14594_s27 + $0x6c0] sm:$0xf]  ;;  %v769_v25 = vld [vmem:[%s14594_s27 + $0x6c8] sm:$0xf]  ;;  %766 = vst [vmem:[%s14601_s28 + $0x35c] sm:$0xf] %v765_v23 }
  0xa2   : > { %768 = vst [vmem:[%s14601_s28 + $0x360] sm:$0xf] %v767_v24  ;;  %770 = vst [vmem:[%s14601_s28 + $0x364] sm:$0xf] %v769_v25  ;;  %v771_v26 = vld [vmem:[%s14594_s27 + $0x6d0] sm:$0xf] }
  0xa3   : > { %v773_v27 = vld [vmem:[%s14594_s27 + $0x6d8] sm:$0xf]  ;;  %v775_v28 = vld [vmem:[%s14594_s27 + $0x6e0] sm:$0xf]  ;;  %772 = vst [vmem:[%s14601_s28 + $0x368] sm:$0xf] %v771_v26 }
  0xa4   : > { %774 = vst [vmem:[%s14601_s28 + $0x36c] sm:$0xf] %v773_v27  ;;  %776 = vst [vmem:[%s14601_s28 + $0x370] sm:$0xf] %v775_v28  ;;  %v777_v29 = vld [vmem:[%s14594_s27 + $0x6e8] sm:$0xf] }
  0xa5   : > { %v779_v30 = vld [vmem:[%s14594_s27 + $0x6f0] sm:$0xf]  ;;  %v781_v31 = vld [vmem:[%s14594_s27 + $0x6f8] sm:$0xf]  ;;  %778 = vst [vmem:[%s14601_s28 + $0x374] sm:$0xf] %v777_v29 }
  0xa6   : > { %780 = vst [vmem:[%s14601_s28 + $0x378] sm:$0xf] %v779_v30  ;;  %782 = vst [vmem:[%s14601_s28 + $0x37c] sm:$0xf] %v781_v31  ;;  %v783_v32 = vld [vmem:[%s14594_s27 + $0x700] sm:$0xf] }
  0xa7   : > { %v785_v33 = vld [vmem:[%s14594_s27 + $0x708] sm:$0xf]  ;;  %v787_v34 = vld [vmem:[%s14594_s27 + $0x710] sm:$0xf]  ;;  %784 = vst [vmem:[%s14601_s28 + $0x380] sm:$0xf] %v783_v32 }
  0xa8   : > { %786 = vst [vmem:[%s14601_s28 + $0x384] sm:$0xf] %v785_v33  ;;  %788 = vst [vmem:[%s14601_s28 + $0x388] sm:$0xf] %v787_v34  ;;  %v789_v35 = vld [vmem:[%s14594_s27 + $0x718] sm:$0xf] }
  0xa9   : > { %v791_v36 = vld [vmem:[%s14594_s27 + $0x720] sm:$0xf]  ;;  %v793_v37 = vld [vmem:[%s14594_s27 + $0x728] sm:$0xf]  ;;  %790 = vst [vmem:[%s14601_s28 + $0x38c] sm:$0xf] %v789_v35 }
  0xaa   : > { %792 = vst [vmem:[%s14601_s28 + $0x390] sm:$0xf] %v791_v36  ;;  %794 = vst [vmem:[%s14601_s28 + $0x394] sm:$0xf] %v793_v37  ;;  %v795_v38 = vld [vmem:[%s14594_s27 + $0x730] sm:$0xf] }
  0xab   : > { %v797_v39 = vld [vmem:[%s14594_s27 + $0x738] sm:$0xf]  ;;  %v799_v40 = vld [vmem:[%s14594_s27 + $0x740] sm:$0xf]  ;;  %796 = vst [vmem:[%s14601_s28 + $0x398] sm:$0xf] %v795_v38 }
  0xac   : > { %798 = vst [vmem:[%s14601_s28 + $0x39c] sm:$0xf] %v797_v39  ;;  %800 = vst [vmem:[%s14601_s28 + $0x3a0] sm:$0xf] %v799_v40  ;;  %v801_v41 = vld [vmem:[%s14594_s27 + $0x748] sm:$0xf] }
  0xad   : > { %v803_v42 = vld [vmem:[%s14594_s27 + $0x750] sm:$0xf]  ;;  %v805_v43 = vld [vmem:[%s14594_s27 + $0x758] sm:$0xf]  ;;  %802 = vst [vmem:[%s14601_s28 + $0x3a4] sm:$0xf] %v801_v41 }
  0xae   : > { %804 = vst [vmem:[%s14601_s28 + $0x3a8] sm:$0xf] %v803_v42  ;;  %806 = vst [vmem:[%s14601_s28 + $0x3ac] sm:$0xf] %v805_v43  ;;  %v807_v44 = vld [vmem:[%s14594_s27 + $0x760] sm:$0xf] }
  0xaf   : > { %v809_v45 = vld [vmem:[%s14594_s27 + $0x768] sm:$0xf]  ;;  %v811_v46 = vld [vmem:[%s14594_s27 + $0x770] sm:$0xf]  ;;  %808 = vst [vmem:[%s14601_s28 + $0x3b0] sm:$0xf] %v807_v44 }
  0xb0   : > { %810 = vst [vmem:[%s14601_s28 + $0x3b4] sm:$0xf] %v809_v45  ;;  %812 = vst [vmem:[%s14601_s28 + $0x3b8] sm:$0xf] %v811_v46  ;;  %v813_v47 = vld [vmem:[%s14594_s27 + $0x778] sm:$0xf] }
  0xb1   : > { %v815_v48 = vld [vmem:[%s14594_s27 + $0x780] sm:$0xf]  ;;  %v817_v49 = vld [vmem:[%s14594_s27 + $0x788] sm:$0xf]  ;;  %814 = vst [vmem:[%s14601_s28 + $0x3bc] sm:$0xf] %v813_v47 }
  0xb2   : > { %816 = vst [vmem:[%s14601_s28 + $0x3c0] sm:$0xf] %v815_v48  ;;  %818 = vst [vmem:[%s14601_s28 + $0x3c4] sm:$0xf] %v817_v49  ;;  %v819_v50 = vld [vmem:[%s14594_s27 + $0x790] sm:$0xf] }
  0xb3   : > { %v821_v51 = vld [vmem:[%s14594_s27 + $0x798] sm:$0xf]  ;;  %v823_v52 = vld [vmem:[%s14594_s27 + $0x7a0] sm:$0xf]  ;;  %820 = vst [vmem:[%s14601_s28 + $0x3c8] sm:$0xf] %v819_v50 }
  0xb4   : > { %822 = vst [vmem:[%s14601_s28 + $0x3cc] sm:$0xf] %v821_v51  ;;  %824 = vst [vmem:[%s14601_s28 + $0x3d0] sm:$0xf] %v823_v52  ;;  %v825_v53 = vld [vmem:[%s14594_s27 + $0x7a8] sm:$0xf] }
  0xb5   : > { %v827_v54 = vld [vmem:[%s14594_s27 + $0x7b0] sm:$0xf]  ;;  %v829_v55 = vld [vmem:[%s14594_s27 + $0x7b8] sm:$0xf]  ;;  %826 = vst [vmem:[%s14601_s28 + $0x3d4] sm:$0xf] %v825_v53 }
  0xb6   : > { %828 = vst [vmem:[%s14601_s28 + $0x3d8] sm:$0xf] %v827_v54  ;;  %830 = vst [vmem:[%s14601_s28 + $0x3dc] sm:$0xf] %v829_v55  ;;  %v831_v56 = vld [vmem:[%s14594_s27 + $0x7c0] sm:$0xf] }
  0xb7   : > { %v833_v57 = vld [vmem:[%s14594_s27 + $0x7c8] sm:$0xf]  ;;  %v835_v58 = vld [vmem:[%s14594_s27 + $0x7d0] sm:$0xf]  ;;  %832 = vst [vmem:[%s14601_s28 + $0x3e0] sm:$0xf] %v831_v56 }
  0xb8   : > { %834 = vst [vmem:[%s14601_s28 + $0x3e4] sm:$0xf] %v833_v57  ;;  %836 = vst [vmem:[%s14601_s28 + $0x3e8] sm:$0xf] %v835_v58  ;;  %v837_v59 = vld [vmem:[%s14594_s27 + $0x7d8] sm:$0xf] }
  0xb9   : > { %v839_v60 = vld [vmem:[%s14594_s27 + $0x7e0] sm:$0xf]  ;;  %v841_v61 = vld [vmem:[%s14594_s27 + $0x7e8] sm:$0xf]  ;;  %838 = vst [vmem:[%s14601_s28 + $0x3ec] sm:$0xf] %v837_v59 }
  0xba   : > { %840 = vst [vmem:[%s14601_s28 + $0x3f0] sm:$0xf] %v839_v60  ;;  %842 = vst [vmem:[%s14601_s28 + $0x3f4] sm:$0xf] %v841_v61  ;;  %v843_v62 = vld [vmem:[%s14594_s27 + $0x7f0] sm:$0xf] }
  0xbb   : > { %v845_v63 = vld [vmem:[%s14594_s27 + $0x7f8] sm:$0xf]  ;;  %v847_v0 = vld [vmem:[%s14594_s27 + $0x800] sm:$0xf]  ;;  %844 = vst [vmem:[%s14601_s28 + $0x3f8] sm:$0xf] %v843_v62 }
  0xbc   : > { %846 = vst [vmem:[%s14601_s28 + $0x3fc] sm:$0xf] %v845_v63  ;;  %848 = vst [vmem:[%s14601_s28 + $0x400] sm:$0xf] %v847_v0  ;;  %v849_v1 = vld [vmem:[%s14594_s27 + $0x808] sm:$0xf] }
  0xbd   : > { %v851_v2 = vld [vmem:[%s14594_s27 + $0x810] sm:$0xf]  ;;  %v853_v3 = vld [vmem:[%s14594_s27 + $0x818] sm:$0xf]  ;;  %850 = vst [vmem:[%s14601_s28 + $0x404] sm:$0xf] %v849_v1 }
  0xbe   : > { %852 = vst [vmem:[%s14601_s28 + $0x408] sm:$0xf] %v851_v2  ;;  %854 = vst [vmem:[%s14601_s28 + $0x40c] sm:$0xf] %v853_v3  ;;  %v855_v4 = vld [vmem:[%s14594_s27 + $0x820] sm:$0xf] }
  0xbf   : > { %v857_v5 = vld [vmem:[%s14594_s27 + $0x828] sm:$0xf]  ;;  %v859_v6 = vld [vmem:[%s14594_s27 + $0x830] sm:$0xf]  ;;  %856 = vst [vmem:[%s14601_s28 + $0x410] sm:$0xf] %v855_v4 }
  0xc0   : > { %858 = vst [vmem:[%s14601_s28 + $0x414] sm:$0xf] %v857_v5  ;;  %860 = vst [vmem:[%s14601_s28 + $0x418] sm:$0xf] %v859_v6  ;;  %v861_v7 = vld [vmem:[%s14594_s27 + $0x838] sm:$0xf] }
  0xc1   : > { %v863_v8 = vld [vmem:[%s14594_s27 + $0x840] sm:$0xf]  ;;  %v865_v9 = vld [vmem:[%s14594_s27 + $0x848] sm:$0xf]  ;;  %862 = vst [vmem:[%s14601_s28 + $0x41c] sm:$0xf] %v861_v7 }
  0xc2   : > { %864 = vst [vmem:[%s14601_s28 + $0x420] sm:$0xf] %v863_v8  ;;  %866 = vst [vmem:[%s14601_s28 + $0x424] sm:$0xf] %v865_v9  ;;  %v867_v10 = vld [vmem:[%s14594_s27 + $0x850] sm:$0xf] }
  0xc3   : > { %v869_v11 = vld [vmem:[%s14594_s27 + $0x858] sm:$0xf]  ;;  %v871_v12 = vld [vmem:[%s14594_s27 + $0x860] sm:$0xf]  ;;  %868 = vst [vmem:[%s14601_s28 + $0x428] sm:$0xf] %v867_v10 }
  0xc4   : > { %870 = vst [vmem:[%s14601_s28 + $0x42c] sm:$0xf] %v869_v11  ;;  %872 = vst [vmem:[%s14601_s28 + $0x430] sm:$0xf] %v871_v12  ;;  %v873_v13 = vld [vmem:[%s14594_s27 + $0x868] sm:$0xf] }
  0xc5   : > { %v875_v14 = vld [vmem:[%s14594_s27 + $0x870] sm:$0xf]  ;;  %v877_v15 = vld [vmem:[%s14594_s27 + $0x878] sm:$0xf]  ;;  %874 = vst [vmem:[%s14601_s28 + $0x434] sm:$0xf] %v873_v13 }
  0xc6   : > { %876 = vst [vmem:[%s14601_s28 + $0x438] sm:$0xf] %v875_v14  ;;  %878 = vst [vmem:[%s14601_s28 + $0x43c] sm:$0xf] %v877_v15  ;;  %v879_v16 = vld [vmem:[%s14594_s27 + $0x880] sm:$0xf] }
  0xc7   : > { %v881_v17 = vld [vmem:[%s14594_s27 + $0x888] sm:$0xf]  ;;  %v883_v18 = vld [vmem:[%s14594_s27 + $0x890] sm:$0xf]  ;;  %880 = vst [vmem:[%s14601_s28 + $0x440] sm:$0xf] %v879_v16 }
  0xc8   : > { %882 = vst [vmem:[%s14601_s28 + $0x444] sm:$0xf] %v881_v17  ;;  %884 = vst [vmem:[%s14601_s28 + $0x448] sm:$0xf] %v883_v18  ;;  %v885_v19 = vld [vmem:[%s14594_s27 + $0x898] sm:$0xf] }
  0xc9   : > { %v887_v20 = vld [vmem:[%s14594_s27 + $0x8a0] sm:$0xf]  ;;  %v889_v21 = vld [vmem:[%s14594_s27 + $0x8a8] sm:$0xf]  ;;  %886 = vst [vmem:[%s14601_s28 + $0x44c] sm:$0xf] %v885_v19 }
  0xca   : > { %888 = vst [vmem:[%s14601_s28 + $0x450] sm:$0xf] %v887_v20  ;;  %890 = vst [vmem:[%s14601_s28 + $0x454] sm:$0xf] %v889_v21  ;;  %v891_v22 = vld [vmem:[%s14594_s27 + $0x8b0] sm:$0xf] }
  0xcb   : > { %v893_v23 = vld [vmem:[%s14594_s27 + $0x8b8] sm:$0xf]  ;;  %v895_v24 = vld [vmem:[%s14594_s27 + $0x8c0] sm:$0xf]  ;;  %892 = vst [vmem:[%s14601_s28 + $0x458] sm:$0xf] %v891_v22 }
  0xcc   : > { %894 = vst [vmem:[%s14601_s28 + $0x45c] sm:$0xf] %v893_v23  ;;  %896 = vst [vmem:[%s14601_s28 + $0x460] sm:$0xf] %v895_v24  ;;  %v897_v25 = vld [vmem:[%s14594_s27 + $0x8c8] sm:$0xf] }
  0xcd   : > { %v899_v26 = vld [vmem:[%s14594_s27 + $0x8d0] sm:$0xf]  ;;  %v901_v27 = vld [vmem:[%s14594_s27 + $0x8d8] sm:$0xf]  ;;  %898 = vst [vmem:[%s14601_s28 + $0x464] sm:$0xf] %v897_v25 }
  0xce   : > { %900 = vst [vmem:[%s14601_s28 + $0x468] sm:$0xf] %v899_v26  ;;  %902 = vst [vmem:[%s14601_s28 + $0x46c] sm:$0xf] %v901_v27  ;;  %v903_v28 = vld [vmem:[%s14594_s27 + $0x8e0] sm:$0xf] }
  0xcf   : > { %v905_v29 = vld [vmem:[%s14594_s27 + $0x8e8] sm:$0xf]  ;;  %v907_v30 = vld [vmem:[%s14594_s27 + $0x8f0] sm:$0xf]  ;;  %904 = vst [vmem:[%s14601_s28 + $0x470] sm:$0xf] %v903_v28 }
  0xd0   : > { %906 = vst [vmem:[%s14601_s28 + $0x474] sm:$0xf] %v905_v29  ;;  %908 = vst [vmem:[%s14601_s28 + $0x478] sm:$0xf] %v907_v30  ;;  %v909_v31 = vld [vmem:[%s14594_s27 + $0x8f8] sm:$0xf] }
  0xd1   : > { %v911_v32 = vld [vmem:[%s14594_s27 + $0x900] sm:$0xf]  ;;  %v913_v33 = vld [vmem:[%s14594_s27 + $0x908] sm:$0xf]  ;;  %910 = vst [vmem:[%s14601_s28 + $0x47c] sm:$0xf] %v909_v31 }
  0xd2   : > { %912 = vst [vmem:[%s14601_s28 + $0x480] sm:$0xf] %v911_v32  ;;  %914 = vst [vmem:[%s14601_s28 + $0x484] sm:$0xf] %v913_v33  ;;  %v915_v34 = vld [vmem:[%s14594_s27 + $0x910] sm:$0xf] }
  0xd3   : > { %v917_v35 = vld [vmem:[%s14594_s27 + $0x918] sm:$0xf]  ;;  %v919_v36 = vld [vmem:[%s14594_s27 + $0x920] sm:$0xf]  ;;  %916 = vst [vmem:[%s14601_s28 + $0x488] sm:$0xf] %v915_v34 }
  0xd4   : > { %918 = vst [vmem:[%s14601_s28 + $0x48c] sm:$0xf] %v917_v35  ;;  %920 = vst [vmem:[%s14601_s28 + $0x490] sm:$0xf] %v919_v36  ;;  %v921_v37 = vld [vmem:[%s14594_s27 + $0x928] sm:$0xf] }
  0xd5   : > { %v923_v38 = vld [vmem:[%s14594_s27 + $0x930] sm:$0xf]  ;;  %v925_v39 = vld [vmem:[%s14594_s27 + $0x938] sm:$0xf]  ;;  %922 = vst [vmem:[%s14601_s28 + $0x494] sm:$0xf] %v921_v37 }
  0xd6   : > { %924 = vst [vmem:[%s14601_s28 + $0x498] sm:$0xf] %v923_v38  ;;  %926 = vst [vmem:[%s14601_s28 + $0x49c] sm:$0xf] %v925_v39  ;;  %v927_v40 = vld [vmem:[%s14594_s27 + $0x940] sm:$0xf] }
  0xd7   : > { %v929_v41 = vld [vmem:[%s14594_s27 + $0x948] sm:$0xf]  ;;  %v931_v42 = vld [vmem:[%s14594_s27 + $0x950] sm:$0xf]  ;;  %928 = vst [vmem:[%s14601_s28 + $0x4a0] sm:$0xf] %v927_v40 }
  0xd8   : > { %930 = vst [vmem:[%s14601_s28 + $0x4a4] sm:$0xf] %v929_v41  ;;  %932 = vst [vmem:[%s14601_s28 + $0x4a8] sm:$0xf] %v931_v42  ;;  %v933_v43 = vld [vmem:[%s14594_s27 + $0x958] sm:$0xf] }
  0xd9   : > { %v935_v44 = vld [vmem:[%s14594_s27 + $0x960] sm:$0xf]  ;;  %v937_v45 = vld [vmem:[%s14594_s27 + $0x968] sm:$0xf]  ;;  %934 = vst [vmem:[%s14601_s28 + $0x4ac] sm:$0xf] %v933_v43 }
  0xda   : > { %936 = vst [vmem:[%s14601_s28 + $0x4b0] sm:$0xf] %v935_v44  ;;  %938 = vst [vmem:[%s14601_s28 + $0x4b4] sm:$0xf] %v937_v45  ;;  %v939_v46 = vld [vmem:[%s14594_s27 + $0x970] sm:$0xf] }
  0xdb   : > { %v941_v47 = vld [vmem:[%s14594_s27 + $0x978] sm:$0xf]  ;;  %v943_v48 = vld [vmem:[%s14594_s27 + $0x980] sm:$0xf]  ;;  %940 = vst [vmem:[%s14601_s28 + $0x4b8] sm:$0xf] %v939_v46 }
  0xdc   : > { %942 = vst [vmem:[%s14601_s28 + $0x4bc] sm:$0xf] %v941_v47  ;;  %944 = vst [vmem:[%s14601_s28 + $0x4c0] sm:$0xf] %v943_v48  ;;  %v945_v49 = vld [vmem:[%s14594_s27 + $0x988] sm:$0xf] }
  0xdd   : > { %v947_v50 = vld [vmem:[%s14594_s27 + $0x990] sm:$0xf]  ;;  %v949_v51 = vld [vmem:[%s14594_s27 + $0x998] sm:$0xf]  ;;  %946 = vst [vmem:[%s14601_s28 + $0x4c4] sm:$0xf] %v945_v49 }
  0xde   : > { %948 = vst [vmem:[%s14601_s28 + $0x4c8] sm:$0xf] %v947_v50  ;;  %950 = vst [vmem:[%s14601_s28 + $0x4cc] sm:$0xf] %v949_v51  ;;  %v951_v52 = vld [vmem:[%s14594_s27 + $0x9a0] sm:$0xf] }
  0xdf   : > { %v953_v53 = vld [vmem:[%s14594_s27 + $0x9a8] sm:$0xf]  ;;  %v955_v54 = vld [vmem:[%s14594_s27 + $0x9b0] sm:$0xf]  ;;  %952 = vst [vmem:[%s14601_s28 + $0x4d0] sm:$0xf] %v951_v52 }
  0xe0   : > { %954 = vst [vmem:[%s14601_s28 + $0x4d4] sm:$0xf] %v953_v53  ;;  %956 = vst [vmem:[%s14601_s28 + $0x4d8] sm:$0xf] %v955_v54  ;;  %v957_v55 = vld [vmem:[%s14594_s27 + $0x9b8] sm:$0xf] }
  0xe1   : > { %v959_v56 = vld [vmem:[%s14594_s27 + $0x9c0] sm:$0xf]  ;;  %v961_v57 = vld [vmem:[%s14594_s27 + $0x9c8] sm:$0xf]  ;;  %958 = vst [vmem:[%s14601_s28 + $0x4dc] sm:$0xf] %v957_v55 }
  0xe2   : > { %960 = vst [vmem:[%s14601_s28 + $0x4e0] sm:$0xf] %v959_v56  ;;  %962 = vst [vmem:[%s14601_s28 + $0x4e4] sm:$0xf] %v961_v57  ;;  %v963_v58 = vld [vmem:[%s14594_s27 + $0x9d0] sm:$0xf] }
  0xe3   : > { %v965_v59 = vld [vmem:[%s14594_s27 + $0x9d8] sm:$0xf]  ;;  %v967_v60 = vld [vmem:[%s14594_s27 + $0x9e0] sm:$0xf]  ;;  %964 = vst [vmem:[%s14601_s28 + $0x4e8] sm:$0xf] %v963_v58 }
  0xe4   : > { %966 = vst [vmem:[%s14601_s28 + $0x4ec] sm:$0xf] %v965_v59  ;;  %968 = vst [vmem:[%s14601_s28 + $0x4f0] sm:$0xf] %v967_v60  ;;  %v969_v61 = vld [vmem:[%s14594_s27 + $0x9e8] sm:$0xf] }
  0xe5   : > { %v971_v62 = vld [vmem:[%s14594_s27 + $0x9f0] sm:$0xf]  ;;  %v973_v63 = vld [vmem:[%s14594_s27 + $0x9f8] sm:$0xf]  ;;  %970 = vst [vmem:[%s14601_s28 + $0x4f4] sm:$0xf] %v969_v61 }
  0xe6   : > { %972 = vst [vmem:[%s14601_s28 + $0x4f8] sm:$0xf] %v971_v62  ;;  %974 = vst [vmem:[%s14601_s28 + $0x4fc] sm:$0xf] %v973_v63  ;;  %v975_v0 = vld [vmem:[%s14594_s27 + $0xa00] sm:$0xf] }
  0xe7   : > { %v977_v1 = vld [vmem:[%s14594_s27 + $0xa08] sm:$0xf]  ;;  %v979_v2 = vld [vmem:[%s14594_s27 + $0xa10] sm:$0xf]  ;;  %976 = vst [vmem:[%s14601_s28 + $0x500] sm:$0xf] %v975_v0 }
  0xe8   : > { %978 = vst [vmem:[%s14601_s28 + $0x504] sm:$0xf] %v977_v1  ;;  %980 = vst [vmem:[%s14601_s28 + $0x508] sm:$0xf] %v979_v2  ;;  %v981_v3 = vld [vmem:[%s14594_s27 + $0xa18] sm:$0xf] }
  0xe9   : > { %v983_v4 = vld [vmem:[%s14594_s27 + $0xa20] sm:$0xf]  ;;  %v985_v5 = vld [vmem:[%s14594_s27 + $0xa28] sm:$0xf]  ;;  %982 = vst [vmem:[%s14601_s28 + $0x50c] sm:$0xf] %v981_v3 }
  0xea   : > { %984 = vst [vmem:[%s14601_s28 + $0x510] sm:$0xf] %v983_v4  ;;  %986 = vst [vmem:[%s14601_s28 + $0x514] sm:$0xf] %v985_v5  ;;  %v987_v6 = vld [vmem:[%s14594_s27 + $0xa30] sm:$0xf] }
  0xeb   : > { %v989_v7 = vld [vmem:[%s14594_s27 + $0xa38] sm:$0xf]  ;;  %v991_v8 = vld [vmem:[%s14594_s27 + $0xa40] sm:$0xf]  ;;  %988 = vst [vmem:[%s14601_s28 + $0x518] sm:$0xf] %v987_v6 }
  0xec   : > { %990 = vst [vmem:[%s14601_s28 + $0x51c] sm:$0xf] %v989_v7  ;;  %992 = vst [vmem:[%s14601_s28 + $0x520] sm:$0xf] %v991_v8  ;;  %v993_v9 = vld [vmem:[%s14594_s27 + $0xa48] sm:$0xf] }
  0xed   : > { %v995_v10 = vld [vmem:[%s14594_s27 + $0xa50] sm:$0xf]  ;;  %v997_v11 = vld [vmem:[%s14594_s27 + $0xa58] sm:$0xf]  ;;  %994 = vst [vmem:[%s14601_s28 + $0x524] sm:$0xf] %v993_v9 }
  0xee   : > { %996 = vst [vmem:[%s14601_s28 + $0x528] sm:$0xf] %v995_v10  ;;  %998 = vst [vmem:[%s14601_s28 + $0x52c] sm:$0xf] %v997_v11  ;;  %v999_v12 = vld [vmem:[%s14594_s27 + $0xa60] sm:$0xf] }
  0xef   : > { %v1001_v13 = vld [vmem:[%s14594_s27 + $0xa68] sm:$0xf]  ;;  %v1003_v14 = vld [vmem:[%s14594_s27 + $0xa70] sm:$0xf]  ;;  %1000 = vst [vmem:[%s14601_s28 + $0x530] sm:$0xf] %v999_v12 }
  0xf0   : > { %1002 = vst [vmem:[%s14601_s28 + $0x534] sm:$0xf] %v1001_v13  ;;  %1004 = vst [vmem:[%s14601_s28 + $0x538] sm:$0xf] %v1003_v14  ;;  %v1005_v15 = vld [vmem:[%s14594_s27 + $0xa78] sm:$0xf] }
  0xf1   : > { %v1007_v16 = vld [vmem:[%s14594_s27 + $0xa80] sm:$0xf]  ;;  %v1009_v17 = vld [vmem:[%s14594_s27 + $0xa88] sm:$0xf]  ;;  %1006 = vst [vmem:[%s14601_s28 + $0x53c] sm:$0xf] %v1005_v15 }
  0xf2   : > { %1008 = vst [vmem:[%s14601_s28 + $0x540] sm:$0xf] %v1007_v16  ;;  %1010 = vst [vmem:[%s14601_s28 + $0x544] sm:$0xf] %v1009_v17  ;;  %v1011_v18 = vld [vmem:[%s14594_s27 + $0xa90] sm:$0xf] }
  0xf3   : > { %v1013_v19 = vld [vmem:[%s14594_s27 + $0xa98] sm:$0xf]  ;;  %v1015_v20 = vld [vmem:[%s14594_s27 + $0xaa0] sm:$0xf]  ;;  %1012 = vst [vmem:[%s14601_s28 + $0x548] sm:$0xf] %v1011_v18 }
  0xf4   : > { %1014 = vst [vmem:[%s14601_s28 + $0x54c] sm:$0xf] %v1013_v19  ;;  %1016 = vst [vmem:[%s14601_s28 + $0x550] sm:$0xf] %v1015_v20  ;;  %v1017_v21 = vld [vmem:[%s14594_s27 + $0xaa8] sm:$0xf] }
  0xf5   : > { %v1019_v22 = vld [vmem:[%s14594_s27 + $0xab0] sm:$0xf]  ;;  %v1021_v23 = vld [vmem:[%s14594_s27 + $0xab8] sm:$0xf]  ;;  %1018 = vst [vmem:[%s14601_s28 + $0x554] sm:$0xf] %v1017_v21 }
  0xf6   : > { %1020 = vst [vmem:[%s14601_s28 + $0x558] sm:$0xf] %v1019_v22  ;;  %1022 = vst [vmem:[%s14601_s28 + $0x55c] sm:$0xf] %v1021_v23  ;;  %v1023_v24 = vld [vmem:[%s14594_s27 + $0xac0] sm:$0xf] }
  0xf7   : > { %v1025_v25 = vld [vmem:[%s14594_s27 + $0xac8] sm:$0xf]  ;;  %v1027_v26 = vld [vmem:[%s14594_s27 + $0xad0] sm:$0xf]  ;;  %1024 = vst [vmem:[%s14601_s28 + $0x560] sm:$0xf] %v1023_v24 }
  0xf8   : > { %1026 = vst [vmem:[%s14601_s28 + $0x564] sm:$0xf] %v1025_v25  ;;  %1028 = vst [vmem:[%s14601_s28 + $0x568] sm:$0xf] %v1027_v26  ;;  %v1029_v27 = vld [vmem:[%s14594_s27 + $0xad8] sm:$0xf] }
  0xf9   : > { %v1031_v28 = vld [vmem:[%s14594_s27 + $0xae0] sm:$0xf]  ;;  %v1033_v29 = vld [vmem:[%s14594_s27 + $0xae8] sm:$0xf]  ;;  %1030 = vst [vmem:[%s14601_s28 + $0x56c] sm:$0xf] %v1029_v27 }
  0xfa   : > { %1032 = vst [vmem:[%s14601_s28 + $0x570] sm:$0xf] %v1031_v28  ;;  %1034 = vst [vmem:[%s14601_s28 + $0x574] sm:$0xf] %v1033_v29  ;;  %v1035_v30 = vld [vmem:[%s14594_s27 + $0xaf0] sm:$0xf] }
  0xfb   : > { %v1037_v31 = vld [vmem:[%s14594_s27 + $0xaf8] sm:$0xf]  ;;  %v1039_v32 = vld [vmem:[%s14594_s27 + $0xb00] sm:$0xf]  ;;  %1036 = vst [vmem:[%s14601_s28 + $0x578] sm:$0xf] %v1035_v30 }
  0xfc   : > { %1038 = vst [vmem:[%s14601_s28 + $0x57c] sm:$0xf] %v1037_v31  ;;  %1040 = vst [vmem:[%s14601_s28 + $0x580] sm:$0xf] %v1039_v32  ;;  %v1041_v33 = vld [vmem:[%s14594_s27 + $0xb08] sm:$0xf] }
  0xfd   : > { %v1043_v34 = vld [vmem:[%s14594_s27 + $0xb10] sm:$0xf]  ;;  %v1045_v35 = vld [vmem:[%s14594_s27 + $0xb18] sm:$0xf]  ;;  %1042 = vst [vmem:[%s14601_s28 + $0x584] sm:$0xf] %v1041_v33 }
  0xfe   : > { %1044 = vst [vmem:[%s14601_s28 + $0x588] sm:$0xf] %v1043_v34  ;;  %1046 = vst [vmem:[%s14601_s28 + $0x58c] sm:$0xf] %v1045_v35  ;;  %v1047_v36 = vld [vmem:[%s14594_s27 + $0xb20] sm:$0xf] }
  0xff   : > { %v1049_v37 = vld [vmem:[%s14594_s27 + $0xb28] sm:$0xf]  ;;  %v1051_v38 = vld [vmem:[%s14594_s27 + $0xb30] sm:$0xf]  ;;  %1048 = vst [vmem:[%s14601_s28 + $0x590] sm:$0xf] %v1047_v36 }
 0x100   : > { %1050 = vst [vmem:[%s14601_s28 + $0x594] sm:$0xf] %v1049_v37  ;;  %1052 = vst [vmem:[%s14601_s28 + $0x598] sm:$0xf] %v1051_v38  ;;  %v1053_v39 = vld [vmem:[%s14594_s27 + $0xb38] sm:$0xf] }
 0x101   : > { %v1055_v40 = vld [vmem:[%s14594_s27 + $0xb40] sm:$0xf]  ;;  %v1057_v41 = vld [vmem:[%s14594_s27 + $0xb48] sm:$0xf]  ;;  %1054 = vst [vmem:[%s14601_s28 + $0x59c] sm:$0xf] %v1053_v39 }
 0x102   : > { %1056 = vst [vmem:[%s14601_s28 + $0x5a0] sm:$0xf] %v1055_v40  ;;  %1058 = vst [vmem:[%s14601_s28 + $0x5a4] sm:$0xf] %v1057_v41  ;;  %v1059_v42 = vld [vmem:[%s14594_s27 + $0xb50] sm:$0xf] }
 0x103   : > { %v1061_v43 = vld [vmem:[%s14594_s27 + $0xb58] sm:$0xf]  ;;  %v1063_v44 = vld [vmem:[%s14594_s27 + $0xb60] sm:$0xf]  ;;  %1060 = vst [vmem:[%s14601_s28 + $0x5a8] sm:$0xf] %v1059_v42 }
 0x104   : > { %1062 = vst [vmem:[%s14601_s28 + $0x5ac] sm:$0xf] %v1061_v43  ;;  %1064 = vst [vmem:[%s14601_s28 + $0x5b0] sm:$0xf] %v1063_v44  ;;  %v1065_v45 = vld [vmem:[%s14594_s27 + $0xb68] sm:$0xf] }
 0x105   : > { %v1067_v46 = vld [vmem:[%s14594_s27 + $0xb70] sm:$0xf]  ;;  %v1069_v47 = vld [vmem:[%s14594_s27 + $0xb78] sm:$0xf]  ;;  %1066 = vst [vmem:[%s14601_s28 + $0x5b4] sm:$0xf] %v1065_v45 }
 0x106   : > { %1068 = vst [vmem:[%s14601_s28 + $0x5b8] sm:$0xf] %v1067_v46  ;;  %1070 = vst [vmem:[%s14601_s28 + $0x5bc] sm:$0xf] %v1069_v47  ;;  %v1071_v48 = vld [vmem:[%s14594_s27 + $0xb80] sm:$0xf] }
 0x107   : > { %v1073_v49 = vld [vmem:[%s14594_s27 + $0xb88] sm:$0xf]  ;;  %v1075_v50 = vld [vmem:[%s14594_s27 + $0xb90] sm:$0xf]  ;;  %1072 = vst [vmem:[%s14601_s28 + $0x5c0] sm:$0xf] %v1071_v48 }
 0x108   : > { %1074 = vst [vmem:[%s14601_s28 + $0x5c4] sm:$0xf] %v1073_v49  ;;  %1076 = vst [vmem:[%s14601_s28 + $0x5c8] sm:$0xf] %v1075_v50  ;;  %v1077_v51 = vld [vmem:[%s14594_s27 + $0xb98] sm:$0xf] }
 0x109   : > { %v1079_v52 = vld [vmem:[%s14594_s27 + $0xba0] sm:$0xf]  ;;  %v1081_v53 = vld [vmem:[%s14594_s27 + $0xba8] sm:$0xf]  ;;  %1078 = vst [vmem:[%s14601_s28 + $0x5cc] sm:$0xf] %v1077_v51 }
 0x10a   : > { %1080 = vst [vmem:[%s14601_s28 + $0x5d0] sm:$0xf] %v1079_v52  ;;  %1082 = vst [vmem:[%s14601_s28 + $0x5d4] sm:$0xf] %v1081_v53  ;;  %v1083_v54 = vld [vmem:[%s14594_s27 + $0xbb0] sm:$0xf] }
 0x10b   : > { %v1085_v55 = vld [vmem:[%s14594_s27 + $0xbb8] sm:$0xf]  ;;  %v1087_v56 = vld [vmem:[%s14594_s27 + $0xbc0] sm:$0xf]  ;;  %1084 = vst [vmem:[%s14601_s28 + $0x5d8] sm:$0xf] %v1083_v54 }
 0x10c   : > { %1086 = vst [vmem:[%s14601_s28 + $0x5dc] sm:$0xf] %v1085_v55  ;;  %1088 = vst [vmem:[%s14601_s28 + $0x5e0] sm:$0xf] %v1087_v56  ;;  %v1089_v57 = vld [vmem:[%s14594_s27 + $0xbc8] sm:$0xf] }
 0x10d   : > { %v1091_v58 = vld [vmem:[%s14594_s27 + $0xbd0] sm:$0xf]  ;;  %v1093_v59 = vld [vmem:[%s14594_s27 + $0xbd8] sm:$0xf]  ;;  %1090 = vst [vmem:[%s14601_s28 + $0x5e4] sm:$0xf] %v1089_v57 }
 0x10e   : > { %1092 = vst [vmem:[%s14601_s28 + $0x5e8] sm:$0xf] %v1091_v58  ;;  %1094 = vst [vmem:[%s14601_s28 + $0x5ec] sm:$0xf] %v1093_v59  ;;  %v1095_v60 = vld [vmem:[%s14594_s27 + $0xbe0] sm:$0xf] }
 0x10f   : > { %v1097_v61 = vld [vmem:[%s14594_s27 + $0xbe8] sm:$0xf]  ;;  %v1099_v62 = vld [vmem:[%s14594_s27 + $0xbf0] sm:$0xf]  ;;  %1096 = vst [vmem:[%s14601_s28 + $0x5f0] sm:$0xf] %v1095_v60 }
 0x110   : > { %1098 = vst [vmem:[%s14601_s28 + $0x5f4] sm:$0xf] %v1097_v61  ;;  %1100 = vst [vmem:[%s14601_s28 + $0x5f8] sm:$0xf] %v1099_v62  ;;  %v1101_v63 = vld [vmem:[%s14594_s27 + $0xbf8] sm:$0xf] }
 0x111   : > { %v1103_v0 = vld [vmem:[%s14594_s27 + $0xc00] sm:$0xf]  ;;  %v1105_v1 = vld [vmem:[%s14594_s27 + $0xc08] sm:$0xf]  ;;  %1102 = vst [vmem:[%s14601_s28 + $0x5fc] sm:$0xf] %v1101_v63 }
 0x112   : > { %1104 = vst [vmem:[%s14601_s28 + $0x600] sm:$0xf] %v1103_v0  ;;  %1106 = vst [vmem:[%s14601_s28 + $0x604] sm:$0xf] %v1105_v1  ;;  %v1107_v2 = vld [vmem:[%s14594_s27 + $0xc10] sm:$0xf] }
 0x113   : > { %v1109_v3 = vld [vmem:[%s14594_s27 + $0xc18] sm:$0xf]  ;;  %v1111_v4 = vld [vmem:[%s14594_s27 + $0xc20] sm:$0xf]  ;;  %1108 = vst [vmem:[%s14601_s28 + $0x608] sm:$0xf] %v1107_v2 }
 0x114   : > { %1110 = vst [vmem:[%s14601_s28 + $0x60c] sm:$0xf] %v1109_v3  ;;  %1112 = vst [vmem:[%s14601_s28 + $0x610] sm:$0xf] %v1111_v4  ;;  %v1113_v5 = vld [vmem:[%s14594_s27 + $0xc28] sm:$0xf] }
 0x115   : > { %v1115_v6 = vld [vmem:[%s14594_s27 + $0xc30] sm:$0xf]  ;;  %v1117_v7 = vld [vmem:[%s14594_s27 + $0xc38] sm:$0xf]  ;;  %1114 = vst [vmem:[%s14601_s28 + $0x614] sm:$0xf] %v1113_v5 }
 0x116   : > { %1116 = vst [vmem:[%s14601_s28 + $0x618] sm:$0xf] %v1115_v6  ;;  %1118 = vst [vmem:[%s14601_s28 + $0x61c] sm:$0xf] %v1117_v7  ;;  %v1119_v8 = vld [vmem:[%s14594_s27 + $0xc40] sm:$0xf] }
 0x117   : > { %v1121_v9 = vld [vmem:[%s14594_s27 + $0xc48] sm:$0xf]  ;;  %v1123_v10 = vld [vmem:[%s14594_s27 + $0xc50] sm:$0xf]  ;;  %1120 = vst [vmem:[%s14601_s28 + $0x620] sm:$0xf] %v1119_v8 }
 0x118   : > { %1122 = vst [vmem:[%s14601_s28 + $0x624] sm:$0xf] %v1121_v9  ;;  %1124 = vst [vmem:[%s14601_s28 + $0x628] sm:$0xf] %v1123_v10  ;;  %v1125_v11 = vld [vmem:[%s14594_s27 + $0xc58] sm:$0xf] }
 0x119   : > { %v1127_v12 = vld [vmem:[%s14594_s27 + $0xc60] sm:$0xf]  ;;  %v1129_v13 = vld [vmem:[%s14594_s27 + $0xc68] sm:$0xf]  ;;  %1126 = vst [vmem:[%s14601_s28 + $0x62c] sm:$0xf] %v1125_v11 }
 0x11a   : > { %1128 = vst [vmem:[%s14601_s28 + $0x630] sm:$0xf] %v1127_v12  ;;  %1130 = vst [vmem:[%s14601_s28 + $0x634] sm:$0xf] %v1129_v13  ;;  %v1131_v14 = vld [vmem:[%s14594_s27 + $0xc70] sm:$0xf] }
 0x11b   : > { %v1133_v15 = vld [vmem:[%s14594_s27 + $0xc78] sm:$0xf]  ;;  %v1135_v16 = vld [vmem:[%s14594_s27 + $0xc80] sm:$0xf]  ;;  %1132 = vst [vmem:[%s14601_s28 + $0x638] sm:$0xf] %v1131_v14 }
 0x11c   : > { %1134 = vst [vmem:[%s14601_s28 + $0x63c] sm:$0xf] %v1133_v15  ;;  %1136 = vst [vmem:[%s14601_s28 + $0x640] sm:$0xf] %v1135_v16  ;;  %v1137_v17 = vld [vmem:[%s14594_s27 + $0xc88] sm:$0xf] }
 0x11d   : > { %v1139_v18 = vld [vmem:[%s14594_s27 + $0xc90] sm:$0xf]  ;;  %v1141_v19 = vld [vmem:[%s14594_s27 + $0xc98] sm:$0xf]  ;;  %1138 = vst [vmem:[%s14601_s28 + $0x644] sm:$0xf] %v1137_v17 }
 0x11e   : > { %1140 = vst [vmem:[%s14601_s28 + $0x648] sm:$0xf] %v1139_v18  ;;  %1142 = vst [vmem:[%s14601_s28 + $0x64c] sm:$0xf] %v1141_v19  ;;  %v1143_v20 = vld [vmem:[%s14594_s27 + $0xca0] sm:$0xf] }
 0x11f   : > { %v1145_v21 = vld [vmem:[%s14594_s27 + $0xca8] sm:$0xf]  ;;  %v1147_v22 = vld [vmem:[%s14594_s27 + $0xcb0] sm:$0xf]  ;;  %1144 = vst [vmem:[%s14601_s28 + $0x650] sm:$0xf] %v1143_v20 }
 0x120   : > { %1146 = vst [vmem:[%s14601_s28 + $0x654] sm:$0xf] %v1145_v21  ;;  %1148 = vst [vmem:[%s14601_s28 + $0x658] sm:$0xf] %v1147_v22  ;;  %v1149_v23 = vld [vmem:[%s14594_s27 + $0xcb8] sm:$0xf] }
 0x121   : > { %v1151_v24 = vld [vmem:[%s14594_s27 + $0xcc0] sm:$0xf]  ;;  %v1153_v25 = vld [vmem:[%s14594_s27 + $0xcc8] sm:$0xf]  ;;  %1150 = vst [vmem:[%s14601_s28 + $0x65c] sm:$0xf] %v1149_v23 }
 0x122   : > { %1152 = vst [vmem:[%s14601_s28 + $0x660] sm:$0xf] %v1151_v24  ;;  %1154 = vst [vmem:[%s14601_s28 + $0x664] sm:$0xf] %v1153_v25  ;;  %v1155_v26 = vld [vmem:[%s14594_s27 + $0xcd0] sm:$0xf] }
 0x123   : > { %v1157_v27 = vld [vmem:[%s14594_s27 + $0xcd8] sm:$0xf]  ;;  %v1159_v28 = vld [vmem:[%s14594_s27 + $0xce0] sm:$0xf]  ;;  %1156 = vst [vmem:[%s14601_s28 + $0x668] sm:$0xf] %v1155_v26 }
 0x124   : > { %1158 = vst [vmem:[%s14601_s28 + $0x66c] sm:$0xf] %v1157_v27  ;;  %1160 = vst [vmem:[%s14601_s28 + $0x670] sm:$0xf] %v1159_v28  ;;  %v1161_v29 = vld [vmem:[%s14594_s27 + $0xce8] sm:$0xf] }
 0x125   : > { %v1163_v30 = vld [vmem:[%s14594_s27 + $0xcf0] sm:$0xf]  ;;  %v1165_v31 = vld [vmem:[%s14594_s27 + $0xcf8] sm:$0xf]  ;;  %1162 = vst [vmem:[%s14601_s28 + $0x674] sm:$0xf] %v1161_v29 }
 0x126   : > { %1164 = vst [vmem:[%s14601_s28 + $0x678] sm:$0xf] %v1163_v30  ;;  %1166 = vst [vmem:[%s14601_s28 + $0x67c] sm:$0xf] %v1165_v31  ;;  %v1167_v32 = vld [vmem:[%s14594_s27 + $0xd00] sm:$0xf] }
 0x127   : > { %v1169_v33 = vld [vmem:[%s14594_s27 + $0xd08] sm:$0xf]  ;;  %v1171_v34 = vld [vmem:[%s14594_s27 + $0xd10] sm:$0xf]  ;;  %1168 = vst [vmem:[%s14601_s28 + $0x680] sm:$0xf] %v1167_v32 }
 0x128   : > { %1170 = vst [vmem:[%s14601_s28 + $0x684] sm:$0xf] %v1169_v33  ;;  %1172 = vst [vmem:[%s14601_s28 + $0x688] sm:$0xf] %v1171_v34  ;;  %v1173_v35 = vld [vmem:[%s14594_s27 + $0xd18] sm:$0xf] }
 0x129   : > { %v1175_v36 = vld [vmem:[%s14594_s27 + $0xd20] sm:$0xf]  ;;  %v1177_v37 = vld [vmem:[%s14594_s27 + $0xd28] sm:$0xf]  ;;  %1174 = vst [vmem:[%s14601_s28 + $0x68c] sm:$0xf] %v1173_v35 }
 0x12a   : > { %1176 = vst [vmem:[%s14601_s28 + $0x690] sm:$0xf] %v1175_v36  ;;  %1178 = vst [vmem:[%s14601_s28 + $0x694] sm:$0xf] %v1177_v37  ;;  %v1179_v38 = vld [vmem:[%s14594_s27 + $0xd30] sm:$0xf] }
 0x12b   : > { %v1181_v39 = vld [vmem:[%s14594_s27 + $0xd38] sm:$0xf]  ;;  %v1183_v40 = vld [vmem:[%s14594_s27 + $0xd40] sm:$0xf]  ;;  %1180 = vst [vmem:[%s14601_s28 + $0x698] sm:$0xf] %v1179_v38 }
 0x12c   : > { %1182 = vst [vmem:[%s14601_s28 + $0x69c] sm:$0xf] %v1181_v39  ;;  %1184 = vst [vmem:[%s14601_s28 + $0x6a0] sm:$0xf] %v1183_v40  ;;  %v1185_v41 = vld [vmem:[%s14594_s27 + $0xd48] sm:$0xf] }
 0x12d   : > { %v1187_v42 = vld [vmem:[%s14594_s27 + $0xd50] sm:$0xf]  ;;  %v1189_v43 = vld [vmem:[%s14594_s27 + $0xd58] sm:$0xf]  ;;  %1186 = vst [vmem:[%s14601_s28 + $0x6a4] sm:$0xf] %v1185_v41 }
 0x12e   : > { %1188 = vst [vmem:[%s14601_s28 + $0x6a8] sm:$0xf] %v1187_v42  ;;  %1190 = vst [vmem:[%s14601_s28 + $0x6ac] sm:$0xf] %v1189_v43  ;;  %v1191_v44 = vld [vmem:[%s14594_s27 + $0xd60] sm:$0xf] }
 0x12f   : > { %v1193_v45 = vld [vmem:[%s14594_s27 + $0xd68] sm:$0xf]  ;;  %v1195_v46 = vld [vmem:[%s14594_s27 + $0xd70] sm:$0xf]  ;;  %1192 = vst [vmem:[%s14601_s28 + $0x6b0] sm:$0xf] %v1191_v44 }
 0x130   : > { %1194 = vst [vmem:[%s14601_s28 + $0x6b4] sm:$0xf] %v1193_v45  ;;  %1196 = vst [vmem:[%s14601_s28 + $0x6b8] sm:$0xf] %v1195_v46  ;;  %v1197_v47 = vld [vmem:[%s14594_s27 + $0xd78] sm:$0xf] }
 0x131   : > { %v1199_v48 = vld [vmem:[%s14594_s27 + $0xd80] sm:$0xf]  ;;  %v1201_v49 = vld [vmem:[%s14594_s27 + $0xd88] sm:$0xf]  ;;  %1198 = vst [vmem:[%s14601_s28 + $0x6bc] sm:$0xf] %v1197_v47 }
 0x132   : > { %1200 = vst [vmem:[%s14601_s28 + $0x6c0] sm:$0xf] %v1199_v48  ;;  %1202 = vst [vmem:[%s14601_s28 + $0x6c4] sm:$0xf] %v1201_v49  ;;  %v1203_v50 = vld [vmem:[%s14594_s27 + $0xd90] sm:$0xf] }
 0x133   : > { %v1205_v51 = vld [vmem:[%s14594_s27 + $0xd98] sm:$0xf]  ;;  %v1207_v52 = vld [vmem:[%s14594_s27 + $0xda0] sm:$0xf]  ;;  %1204 = vst [vmem:[%s14601_s28 + $0x6c8] sm:$0xf] %v1203_v50 }
 0x134   : > { %1206 = vst [vmem:[%s14601_s28 + $0x6cc] sm:$0xf] %v1205_v51  ;;  %1208 = vst [vmem:[%s14601_s28 + $0x6d0] sm:$0xf] %v1207_v52  ;;  %v1209_v53 = vld [vmem:[%s14594_s27 + $0xda8] sm:$0xf] }
 0x135   : > { %v1211_v54 = vld [vmem:[%s14594_s27 + $0xdb0] sm:$0xf]  ;;  %v1213_v55 = vld [vmem:[%s14594_s27 + $0xdb8] sm:$0xf]  ;;  %1210 = vst [vmem:[%s14601_s28 + $0x6d4] sm:$0xf] %v1209_v53 }
 0x136   : > { %1212 = vst [vmem:[%s14601_s28 + $0x6d8] sm:$0xf] %v1211_v54  ;;  %1214 = vst [vmem:[%s14601_s28 + $0x6dc] sm:$0xf] %v1213_v55  ;;  %v1215_v56 = vld [vmem:[%s14594_s27 + $0xdc0] sm:$0xf] }
 0x137   : > { %v1217_v57 = vld [vmem:[%s14594_s27 + $0xdc8] sm:$0xf]  ;;  %v1219_v58 = vld [vmem:[%s14594_s27 + $0xdd0] sm:$0xf]  ;;  %1216 = vst [vmem:[%s14601_s28 + $0x6e0] sm:$0xf] %v1215_v56 }
 0x138   : > { %1218 = vst [vmem:[%s14601_s28 + $0x6e4] sm:$0xf] %v1217_v57  ;;  %1220 = vst [vmem:[%s14601_s28 + $0x6e8] sm:$0xf] %v1219_v58  ;;  %v1221_v59 = vld [vmem:[%s14594_s27 + $0xdd8] sm:$0xf] }
 0x139   : > { %v1223_v60 = vld [vmem:[%s14594_s27 + $0xde0] sm:$0xf]  ;;  %v1225_v61 = vld [vmem:[%s14594_s27 + $0xde8] sm:$0xf]  ;;  %1222 = vst [vmem:[%s14601_s28 + $0x6ec] sm:$0xf] %v1221_v59 }
 0x13a   : > { %1224 = vst [vmem:[%s14601_s28 + $0x6f0] sm:$0xf] %v1223_v60  ;;  %1226 = vst [vmem:[%s14601_s28 + $0x6f4] sm:$0xf] %v1225_v61  ;;  %v1227_v62 = vld [vmem:[%s14594_s27 + $0xdf0] sm:$0xf] }
 0x13b   : > { %v1229_v63 = vld [vmem:[%s14594_s27 + $0xdf8] sm:$0xf]  ;;  %v1231_v0 = vld [vmem:[%s14594_s27 + $0xe00] sm:$0xf]  ;;  %1228 = vst [vmem:[%s14601_s28 + $0x6f8] sm:$0xf] %v1227_v62 }
 0x13c   : > { %1230 = vst [vmem:[%s14601_s28 + $0x6fc] sm:$0xf] %v1229_v63  ;;  %1232 = vst [vmem:[%s14601_s28 + $0x700] sm:$0xf] %v1231_v0  ;;  %v1233_v1 = vld [vmem:[%s14594_s27 + $0xe08] sm:$0xf] }
 0x13d   : > { %v1235_v2 = vld [vmem:[%s14594_s27 + $0xe10] sm:$0xf]  ;;  %v1237_v3 = vld [vmem:[%s14594_s27 + $0xe18] sm:$0xf]  ;;  %1234 = vst [vmem:[%s14601_s28 + $0x704] sm:$0xf] %v1233_v1 }
 0x13e   : > { %1236 = vst [vmem:[%s14601_s28 + $0x708] sm:$0xf] %v1235_v2  ;;  %1238 = vst [vmem:[%s14601_s28 + $0x70c] sm:$0xf] %v1237_v3  ;;  %v1239_v4 = vld [vmem:[%s14594_s27 + $0xe20] sm:$0xf] }
 0x13f   : > { %v1241_v5 = vld [vmem:[%s14594_s27 + $0xe28] sm:$0xf]  ;;  %v1243_v6 = vld [vmem:[%s14594_s27 + $0xe30] sm:$0xf]  ;;  %1240 = vst [vmem:[%s14601_s28 + $0x710] sm:$0xf] %v1239_v4 }
 0x140   : > { %1242 = vst [vmem:[%s14601_s28 + $0x714] sm:$0xf] %v1241_v5  ;;  %1244 = vst [vmem:[%s14601_s28 + $0x718] sm:$0xf] %v1243_v6  ;;  %v1245_v7 = vld [vmem:[%s14594_s27 + $0xe38] sm:$0xf] }
 0x141   : > { %v1247_v8 = vld [vmem:[%s14594_s27 + $0xe40] sm:$0xf]  ;;  %v1249_v9 = vld [vmem:[%s14594_s27 + $0xe48] sm:$0xf]  ;;  %1246 = vst [vmem:[%s14601_s28 + $0x71c] sm:$0xf] %v1245_v7 }
 0x142   : > { %1248 = vst [vmem:[%s14601_s28 + $0x720] sm:$0xf] %v1247_v8  ;;  %1250 = vst [vmem:[%s14601_s28 + $0x724] sm:$0xf] %v1249_v9  ;;  %v1251_v10 = vld [vmem:[%s14594_s27 + $0xe50] sm:$0xf] }
 0x143   : > { %v1253_v11 = vld [vmem:[%s14594_s27 + $0xe58] sm:$0xf]  ;;  %v1255_v12 = vld [vmem:[%s14594_s27 + $0xe60] sm:$0xf]  ;;  %1252 = vst [vmem:[%s14601_s28 + $0x728] sm:$0xf] %v1251_v10 }
 0x144   : > { %1254 = vst [vmem:[%s14601_s28 + $0x72c] sm:$0xf] %v1253_v11  ;;  %1256 = vst [vmem:[%s14601_s28 + $0x730] sm:$0xf] %v1255_v12  ;;  %v1257_v13 = vld [vmem:[%s14594_s27 + $0xe68] sm:$0xf] }
 0x145   : > { %v1259_v14 = vld [vmem:[%s14594_s27 + $0xe70] sm:$0xf]  ;;  %v1261_v15 = vld [vmem:[%s14594_s27 + $0xe78] sm:$0xf]  ;;  %1258 = vst [vmem:[%s14601_s28 + $0x734] sm:$0xf] %v1257_v13 }
 0x146   : > { %1260 = vst [vmem:[%s14601_s28 + $0x738] sm:$0xf] %v1259_v14  ;;  %1262 = vst [vmem:[%s14601_s28 + $0x73c] sm:$0xf] %v1261_v15  ;;  %v1263_v16 = vld [vmem:[%s14594_s27 + $0xe80] sm:$0xf] }
 0x147   : > { %v1265_v17 = vld [vmem:[%s14594_s27 + $0xe88] sm:$0xf]  ;;  %v1267_v18 = vld [vmem:[%s14594_s27 + $0xe90] sm:$0xf]  ;;  %1264 = vst [vmem:[%s14601_s28 + $0x740] sm:$0xf] %v1263_v16 }
 0x148   : > { %1266 = vst [vmem:[%s14601_s28 + $0x744] sm:$0xf] %v1265_v17  ;;  %1268 = vst [vmem:[%s14601_s28 + $0x748] sm:$0xf] %v1267_v18  ;;  %v1269_v19 = vld [vmem:[%s14594_s27 + $0xe98] sm:$0xf] }
 0x149   : > { %v1271_v20 = vld [vmem:[%s14594_s27 + $0xea0] sm:$0xf]  ;;  %v1273_v21 = vld [vmem:[%s14594_s27 + $0xea8] sm:$0xf]  ;;  %1270 = vst [vmem:[%s14601_s28 + $0x74c] sm:$0xf] %v1269_v19 }
 0x14a   : > { %1272 = vst [vmem:[%s14601_s28 + $0x750] sm:$0xf] %v1271_v20  ;;  %1274 = vst [vmem:[%s14601_s28 + $0x754] sm:$0xf] %v1273_v21  ;;  %v1275_v22 = vld [vmem:[%s14594_s27 + $0xeb0] sm:$0xf] }
 0x14b   : > { %v1277_v23 = vld [vmem:[%s14594_s27 + $0xeb8] sm:$0xf]  ;;  %v1279_v24 = vld [vmem:[%s14594_s27 + $0xec0] sm:$0xf]  ;;  %1276 = vst [vmem:[%s14601_s28 + $0x758] sm:$0xf] %v1275_v22 }
 0x14c   : > { %1278 = vst [vmem:[%s14601_s28 + $0x75c] sm:$0xf] %v1277_v23  ;;  %1280 = vst [vmem:[%s14601_s28 + $0x760] sm:$0xf] %v1279_v24  ;;  %v1281_v25 = vld [vmem:[%s14594_s27 + $0xec8] sm:$0xf] }
 0x14d   : > { %v1283_v26 = vld [vmem:[%s14594_s27 + $0xed0] sm:$0xf]  ;;  %v1285_v27 = vld [vmem:[%s14594_s27 + $0xed8] sm:$0xf]  ;;  %1282 = vst [vmem:[%s14601_s28 + $0x764] sm:$0xf] %v1281_v25 }
 0x14e   : > { %1284 = vst [vmem:[%s14601_s28 + $0x768] sm:$0xf] %v1283_v26  ;;  %1286 = vst [vmem:[%s14601_s28 + $0x76c] sm:$0xf] %v1285_v27  ;;  %v1287_v28 = vld [vmem:[%s14594_s27 + $0xee0] sm:$0xf] }
 0x14f   : > { %v1289_v29 = vld [vmem:[%s14594_s27 + $0xee8] sm:$0xf]  ;;  %v1291_v30 = vld [vmem:[%s14594_s27 + $0xef0] sm:$0xf]  ;;  %1288 = vst [vmem:[%s14601_s28 + $0x770] sm:$0xf] %v1287_v28 }
 0x150   : > { %1290 = vst [vmem:[%s14601_s28 + $0x774] sm:$0xf] %v1289_v29  ;;  %1292 = vst [vmem:[%s14601_s28 + $0x778] sm:$0xf] %v1291_v30  ;;  %v1293_v31 = vld [vmem:[%s14594_s27 + $0xef8] sm:$0xf] }
 0x151   : > { %v1295_v32 = vld [vmem:[%s14594_s27 + $0xf00] sm:$0xf]  ;;  %v1297_v33 = vld [vmem:[%s14594_s27 + $0xf08] sm:$0xf]  ;;  %1294 = vst [vmem:[%s14601_s28 + $0x77c] sm:$0xf] %v1293_v31 }
 0x152   : > { %1296 = vst [vmem:[%s14601_s28 + $0x780] sm:$0xf] %v1295_v32  ;;  %1298 = vst [vmem:[%s14601_s28 + $0x784] sm:$0xf] %v1297_v33  ;;  %v1299_v34 = vld [vmem:[%s14594_s27 + $0xf10] sm:$0xf] }
 0x153   : > { %v1301_v35 = vld [vmem:[%s14594_s27 + $0xf18] sm:$0xf]  ;;  %v1303_v36 = vld [vmem:[%s14594_s27 + $0xf20] sm:$0xf]  ;;  %1300 = vst [vmem:[%s14601_s28 + $0x788] sm:$0xf] %v1299_v34 }
 0x154   : > { %1302 = vst [vmem:[%s14601_s28 + $0x78c] sm:$0xf] %v1301_v35  ;;  %1304 = vst [vmem:[%s14601_s28 + $0x790] sm:$0xf] %v1303_v36  ;;  %v1305_v37 = vld [vmem:[%s14594_s27 + $0xf28] sm:$0xf] }
 0x155   : > { %v1307_v38 = vld [vmem:[%s14594_s27 + $0xf30] sm:$0xf]  ;;  %v1309_v39 = vld [vmem:[%s14594_s27 + $0xf38] sm:$0xf]  ;;  %1306 = vst [vmem:[%s14601_s28 + $0x794] sm:$0xf] %v1305_v37 }
 0x156   : > { %1308 = vst [vmem:[%s14601_s28 + $0x798] sm:$0xf] %v1307_v38  ;;  %1310 = vst [vmem:[%s14601_s28 + $0x79c] sm:$0xf] %v1309_v39  ;;  %v1311_v40 = vld [vmem:[%s14594_s27 + $0xf40] sm:$0xf] }
 0x157   : > { %v1313_v41 = vld [vmem:[%s14594_s27 + $0xf48] sm:$0xf]  ;;  %v1315_v42 = vld [vmem:[%s14594_s27 + $0xf50] sm:$0xf]  ;;  %1312 = vst [vmem:[%s14601_s28 + $0x7a0] sm:$0xf] %v1311_v40 }
 0x158   : > { %1314 = vst [vmem:[%s14601_s28 + $0x7a4] sm:$0xf] %v1313_v41  ;;  %1316 = vst [vmem:[%s14601_s28 + $0x7a8] sm:$0xf] %v1315_v42  ;;  %v1317_v43 = vld [vmem:[%s14594_s27 + $0xf58] sm:$0xf] }
 0x159   : > { %v1319_v44 = vld [vmem:[%s14594_s27 + $0xf60] sm:$0xf]  ;;  %v1321_v45 = vld [vmem:[%s14594_s27 + $0xf68] sm:$0xf]  ;;  %1318 = vst [vmem:[%s14601_s28 + $0x7ac] sm:$0xf] %v1317_v43 }
 0x15a   : > { %1320 = vst [vmem:[%s14601_s28 + $0x7b0] sm:$0xf] %v1319_v44  ;;  %1322 = vst [vmem:[%s14601_s28 + $0x7b4] sm:$0xf] %v1321_v45  ;;  %v1323_v46 = vld [vmem:[%s14594_s27 + $0xf70] sm:$0xf] }
 0x15b   : > { %v1325_v47 = vld [vmem:[%s14594_s27 + $0xf78] sm:$0xf]  ;;  %v1327_v48 = vld [vmem:[%s14594_s27 + $0xf80] sm:$0xf]  ;;  %1324 = vst [vmem:[%s14601_s28 + $0x7b8] sm:$0xf] %v1323_v46 }
 0x15c   : > { %1326 = vst [vmem:[%s14601_s28 + $0x7bc] sm:$0xf] %v1325_v47  ;;  %1328 = vst [vmem:[%s14601_s28 + $0x7c0] sm:$0xf] %v1327_v48  ;;  %v1329_v49 = vld [vmem:[%s14594_s27 + $0xf88] sm:$0xf] }
 0x15d   : > { %v1331_v50 = vld [vmem:[%s14594_s27 + $0xf90] sm:$0xf]  ;;  %v1333_v51 = vld [vmem:[%s14594_s27 + $0xf98] sm:$0xf]  ;;  %1330 = vst [vmem:[%s14601_s28 + $0x7c4] sm:$0xf] %v1329_v49 }
 0x15e   : > { %1332 = vst [vmem:[%s14601_s28 + $0x7c8] sm:$0xf] %v1331_v50  ;;  %1334 = vst [vmem:[%s14601_s28 + $0x7cc] sm:$0xf] %v1333_v51  ;;  %v1335_v52 = vld [vmem:[%s14594_s27 + $0xfa0] sm:$0xf] }
 0x15f   : > { %v1337_v53 = vld [vmem:[%s14594_s27 + $0xfa8] sm:$0xf]  ;;  %v1339_v54 = vld [vmem:[%s14594_s27 + $0xfb0] sm:$0xf]  ;;  %1336 = vst [vmem:[%s14601_s28 + $0x7d0] sm:$0xf] %v1335_v52 }
 0x160   : > { %1338 = vst [vmem:[%s14601_s28 + $0x7d4] sm:$0xf] %v1337_v53  ;;  %1340 = vst [vmem:[%s14601_s28 + $0x7d8] sm:$0xf] %v1339_v54  ;;  %v1341_v55 = vld [vmem:[%s14594_s27 + $0xfb8] sm:$0xf] }
 0x161   : > { %v1343_v56 = vld [vmem:[%s14594_s27 + $0xfc0] sm:$0xf]  ;;  %v1345_v57 = vld [vmem:[%s14594_s27 + $0xfc8] sm:$0xf]  ;;  %1342 = vst [vmem:[%s14601_s28 + $0x7dc] sm:$0xf] %v1341_v55 }
 0x162   : > { %1344 = vst [vmem:[%s14601_s28 + $0x7e0] sm:$0xf] %v1343_v56  ;;  %1346 = vst [vmem:[%s14601_s28 + $0x7e4] sm:$0xf] %v1345_v57  ;;  %v1347_v58 = vld [vmem:[%s14594_s27 + $0xfd0] sm:$0xf] }
 0x163   : > { %v1349_v59 = vld [vmem:[%s14594_s27 + $0xfd8] sm:$0xf]  ;;  %v1351_v60 = vld [vmem:[%s14594_s27 + $0xfe0] sm:$0xf]  ;;  %1348 = vst [vmem:[%s14601_s28 + $0x7e8] sm:$0xf] %v1347_v58 }
 0x164   : > { %1350 = vst [vmem:[%s14601_s28 + $0x7ec] sm:$0xf] %v1349_v59  ;;  %1352 = vst [vmem:[%s14601_s28 + $0x7f0] sm:$0xf] %v1351_v60  ;;  %v1353_v61 = vld [vmem:[%s14594_s27 + $0xfe8] sm:$0xf] }
 0x165   : > { %v1355_v62 = vld [vmem:[%s14594_s27 + $0xff0] sm:$0xf]  ;;  %v1357_v63 = vld [vmem:[%s14594_s27 + $0xff8] sm:$0xf]  ;;  %1354 = vst [vmem:[%s14601_s28 + $0x7f4] sm:$0xf] %v1353_v61 }
 0x166   : > { %1356 = vst [vmem:[%s14601_s28 + $0x7f8] sm:$0xf] %v1355_v62  ;;  %1358 = vst [vmem:[%s14601_s28 + $0x7fc] sm:$0xf] %v1357_v63  ;;  %v1359_v0 = vld [vmem:[%s14594_s27 + $0x1000] sm:$0xf] }
 0x167   : > { %v1361_v1 = vld [vmem:[%s14594_s27 + $0x1008] sm:$0xf]  ;;  %v1363_v2 = vld [vmem:[%s14594_s27 + $0x1010] sm:$0xf]  ;;  %1360 = vst [vmem:[%s14601_s28 + $0x800] sm:$0xf] %v1359_v0 }
 0x168   : > { %1362 = vst [vmem:[%s14601_s28 + $0x804] sm:$0xf] %v1361_v1  ;;  %1364 = vst [vmem:[%s14601_s28 + $0x808] sm:$0xf] %v1363_v2  ;;  %v1365_v3 = vld [vmem:[%s14594_s27 + $0x1018] sm:$0xf] }
 0x169   : > { %v1367_v4 = vld [vmem:[%s14594_s27 + $0x1020] sm:$0xf]  ;;  %v1369_v5 = vld [vmem:[%s14594_s27 + $0x1028] sm:$0xf]  ;;  %1366 = vst [vmem:[%s14601_s28 + $0x80c] sm:$0xf] %v1365_v3 }
 0x16a   : > { %1368 = vst [vmem:[%s14601_s28 + $0x810] sm:$0xf] %v1367_v4  ;;  %1370 = vst [vmem:[%s14601_s28 + $0x814] sm:$0xf] %v1369_v5  ;;  %v1371_v6 = vld [vmem:[%s14594_s27 + $0x1030] sm:$0xf] }
 0x16b   : > { %v1373_v7 = vld [vmem:[%s14594_s27 + $0x1038] sm:$0xf]  ;;  %v1375_v8 = vld [vmem:[%s14594_s27 + $0x1040] sm:$0xf]  ;;  %1372 = vst [vmem:[%s14601_s28 + $0x818] sm:$0xf] %v1371_v6 }
 0x16c   : > { %1374 = vst [vmem:[%s14601_s28 + $0x81c] sm:$0xf] %v1373_v7  ;;  %1376 = vst [vmem:[%s14601_s28 + $0x820] sm:$0xf] %v1375_v8  ;;  %v1377_v9 = vld [vmem:[%s14594_s27 + $0x1048] sm:$0xf] }
 0x16d   : > { %v1379_v10 = vld [vmem:[%s14594_s27 + $0x1050] sm:$0xf]  ;;  %v1381_v11 = vld [vmem:[%s14594_s27 + $0x1058] sm:$0xf]  ;;  %1378 = vst [vmem:[%s14601_s28 + $0x824] sm:$0xf] %v1377_v9 }
 0x16e   : > { %1380 = vst [vmem:[%s14601_s28 + $0x828] sm:$0xf] %v1379_v10  ;;  %1382 = vst [vmem:[%s14601_s28 + $0x82c] sm:$0xf] %v1381_v11  ;;  %v1383_v12 = vld [vmem:[%s14594_s27 + $0x1060] sm:$0xf] }
 0x16f   : > { %v1385_v13 = vld [vmem:[%s14594_s27 + $0x1068] sm:$0xf]  ;;  %v1387_v14 = vld [vmem:[%s14594_s27 + $0x1070] sm:$0xf]  ;;  %1384 = vst [vmem:[%s14601_s28 + $0x830] sm:$0xf] %v1383_v12 }
 0x170   : > { %1386 = vst [vmem:[%s14601_s28 + $0x834] sm:$0xf] %v1385_v13  ;;  %1388 = vst [vmem:[%s14601_s28 + $0x838] sm:$0xf] %v1387_v14  ;;  %v1389_v15 = vld [vmem:[%s14594_s27 + $0x1078] sm:$0xf] }
 0x171   : > { %v1391_v16 = vld [vmem:[%s14594_s27 + $0x1080] sm:$0xf]  ;;  %v1393_v17 = vld [vmem:[%s14594_s27 + $0x1088] sm:$0xf]  ;;  %1390 = vst [vmem:[%s14601_s28 + $0x83c] sm:$0xf] %v1389_v15 }
 0x172   : > { %1392 = vst [vmem:[%s14601_s28 + $0x840] sm:$0xf] %v1391_v16  ;;  %1394 = vst [vmem:[%s14601_s28 + $0x844] sm:$0xf] %v1393_v17  ;;  %v1395_v18 = vld [vmem:[%s14594_s27 + $0x1090] sm:$0xf] }
 0x173   : > { %v1397_v19 = vld [vmem:[%s14594_s27 + $0x1098] sm:$0xf]  ;;  %v1399_v20 = vld [vmem:[%s14594_s27 + $0x10a0] sm:$0xf]  ;;  %1396 = vst [vmem:[%s14601_s28 + $0x848] sm:$0xf] %v1395_v18 }
 0x174   : > { %1398 = vst [vmem:[%s14601_s28 + $0x84c] sm:$0xf] %v1397_v19  ;;  %1400 = vst [vmem:[%s14601_s28 + $0x850] sm:$0xf] %v1399_v20  ;;  %v1401_v21 = vld [vmem:[%s14594_s27 + $0x10a8] sm:$0xf] }
 0x175   : > { %v1403_v22 = vld [vmem:[%s14594_s27 + $0x10b0] sm:$0xf]  ;;  %v1405_v23 = vld [vmem:[%s14594_s27 + $0x10b8] sm:$0xf]  ;;  %1402 = vst [vmem:[%s14601_s28 + $0x854] sm:$0xf] %v1401_v21 }
 0x176   : > { %1404 = vst [vmem:[%s14601_s28 + $0x858] sm:$0xf] %v1403_v22  ;;  %1406 = vst [vmem:[%s14601_s28 + $0x85c] sm:$0xf] %v1405_v23  ;;  %v1407_v24 = vld [vmem:[%s14594_s27 + $0x10c0] sm:$0xf] }
 0x177   : > { %v1409_v25 = vld [vmem:[%s14594_s27 + $0x10c8] sm:$0xf]  ;;  %v1411_v26 = vld [vmem:[%s14594_s27 + $0x10d0] sm:$0xf]  ;;  %1408 = vst [vmem:[%s14601_s28 + $0x860] sm:$0xf] %v1407_v24 }
 0x178   : > { %1410 = vst [vmem:[%s14601_s28 + $0x864] sm:$0xf] %v1409_v25  ;;  %1412 = vst [vmem:[%s14601_s28 + $0x868] sm:$0xf] %v1411_v26  ;;  %v1413_v27 = vld [vmem:[%s14594_s27 + $0x10d8] sm:$0xf] }
 0x179   : > { %v1415_v28 = vld [vmem:[%s14594_s27 + $0x10e0] sm:$0xf]  ;;  %v1417_v29 = vld [vmem:[%s14594_s27 + $0x10e8] sm:$0xf]  ;;  %1414 = vst [vmem:[%s14601_s28 + $0x86c] sm:$0xf] %v1413_v27 }
 0x17a   : > { %1416 = vst [vmem:[%s14601_s28 + $0x870] sm:$0xf] %v1415_v28  ;;  %1418 = vst [vmem:[%s14601_s28 + $0x874] sm:$0xf] %v1417_v29  ;;  %v1419_v30 = vld [vmem:[%s14594_s27 + $0x10f0] sm:$0xf] }
 0x17b   : > { %v1421_v31 = vld [vmem:[%s14594_s27 + $0x10f8] sm:$0xf]  ;;  %v1423_v32 = vld [vmem:[%s14594_s27 + $0x1100] sm:$0xf]  ;;  %1420 = vst [vmem:[%s14601_s28 + $0x878] sm:$0xf] %v1419_v30 }
 0x17c   : > { %1422 = vst [vmem:[%s14601_s28 + $0x87c] sm:$0xf] %v1421_v31  ;;  %1424 = vst [vmem:[%s14601_s28 + $0x880] sm:$0xf] %v1423_v32  ;;  %v1425_v33 = vld [vmem:[%s14594_s27 + $0x1108] sm:$0xf] }
 0x17d   : > { %v1427_v34 = vld [vmem:[%s14594_s27 + $0x1110] sm:$0xf]  ;;  %v1429_v35 = vld [vmem:[%s14594_s27 + $0x1118] sm:$0xf]  ;;  %1426 = vst [vmem:[%s14601_s28 + $0x884] sm:$0xf] %v1425_v33 }
 0x17e   : > { %1428 = vst [vmem:[%s14601_s28 + $0x888] sm:$0xf] %v1427_v34  ;;  %1430 = vst [vmem:[%s14601_s28 + $0x88c] sm:$0xf] %v1429_v35  ;;  %v1431_v36 = vld [vmem:[%s14594_s27 + $0x1120] sm:$0xf] }
 0x17f   : > { %v1433_v37 = vld [vmem:[%s14594_s27 + $0x1128] sm:$0xf]  ;;  %v1435_v38 = vld [vmem:[%s14594_s27 + $0x1130] sm:$0xf]  ;;  %1432 = vst [vmem:[%s14601_s28 + $0x890] sm:$0xf] %v1431_v36 }
 0x180   : > { %1434 = vst [vmem:[%s14601_s28 + $0x894] sm:$0xf] %v1433_v37  ;;  %1436 = vst [vmem:[%s14601_s28 + $0x898] sm:$0xf] %v1435_v38  ;;  %v1437_v39 = vld [vmem:[%s14594_s27 + $0x1138] sm:$0xf] }
 0x181   : > { %v1439_v40 = vld [vmem:[%s14594_s27 + $0x1140] sm:$0xf]  ;;  %v1441_v41 = vld [vmem:[%s14594_s27 + $0x1148] sm:$0xf]  ;;  %1438 = vst [vmem:[%s14601_s28 + $0x89c] sm:$0xf] %v1437_v39 }
 0x182   : > { %1440 = vst [vmem:[%s14601_s28 + $0x8a0] sm:$0xf] %v1439_v40  ;;  %1442 = vst [vmem:[%s14601_s28 + $0x8a4] sm:$0xf] %v1441_v41  ;;  %v1443_v42 = vld [vmem:[%s14594_s27 + $0x1150] sm:$0xf] }
 0x183   : > { %v1445_v43 = vld [vmem:[%s14594_s27 + $0x1158] sm:$0xf]  ;;  %v1447_v44 = vld [vmem:[%s14594_s27 + $0x1160] sm:$0xf]  ;;  %1444 = vst [vmem:[%s14601_s28 + $0x8a8] sm:$0xf] %v1443_v42 }
 0x184   : > { %1446 = vst [vmem:[%s14601_s28 + $0x8ac] sm:$0xf] %v1445_v43  ;;  %1448 = vst [vmem:[%s14601_s28 + $0x8b0] sm:$0xf] %v1447_v44  ;;  %v1449_v45 = vld [vmem:[%s14594_s27 + $0x1168] sm:$0xf] }
 0x185   : > { %v1451_v46 = vld [vmem:[%s14594_s27 + $0x1170] sm:$0xf]  ;;  %v1453_v47 = vld [vmem:[%s14594_s27 + $0x1178] sm:$0xf]  ;;  %1450 = vst [vmem:[%s14601_s28 + $0x8b4] sm:$0xf] %v1449_v45 }
 0x186   : > { %1452 = vst [vmem:[%s14601_s28 + $0x8b8] sm:$0xf] %v1451_v46  ;;  %1454 = vst [vmem:[%s14601_s28 + $0x8bc] sm:$0xf] %v1453_v47  ;;  %v1455_v48 = vld [vmem:[%s14594_s27 + $0x1180] sm:$0xf] }
 0x187   : > { %v1457_v49 = vld [vmem:[%s14594_s27 + $0x1188] sm:$0xf]  ;;  %v1459_v50 = vld [vmem:[%s14594_s27 + $0x1190] sm:$0xf]  ;;  %1456 = vst [vmem:[%s14601_s28 + $0x8c0] sm:$0xf] %v1455_v48 }
 0x188   : > { %1458 = vst [vmem:[%s14601_s28 + $0x8c4] sm:$0xf] %v1457_v49  ;;  %1460 = vst [vmem:[%s14601_s28 + $0x8c8] sm:$0xf] %v1459_v50  ;;  %v1461_v51 = vld [vmem:[%s14594_s27 + $0x1198] sm:$0xf] }
 0x189   : > { %v1463_v52 = vld [vmem:[%s14594_s27 + $0x11a0] sm:$0xf]  ;;  %v1465_v53 = vld [vmem:[%s14594_s27 + $0x11a8] sm:$0xf]  ;;  %1462 = vst [vmem:[%s14601_s28 + $0x8cc] sm:$0xf] %v1461_v51 }
 0x18a   : > { %1464 = vst [vmem:[%s14601_s28 + $0x8d0] sm:$0xf] %v1463_v52  ;;  %1466 = vst [vmem:[%s14601_s28 + $0x8d4] sm:$0xf] %v1465_v53  ;;  %v1467_v54 = vld [vmem:[%s14594_s27 + $0x11b0] sm:$0xf] }
 0x18b   : > { %v1469_v55 = vld [vmem:[%s14594_s27 + $0x11b8] sm:$0xf]  ;;  %v1471_v56 = vld [vmem:[%s14594_s27 + $0x11c0] sm:$0xf]  ;;  %1468 = vst [vmem:[%s14601_s28 + $0x8d8] sm:$0xf] %v1467_v54 }
 0x18c   : > { %1470 = vst [vmem:[%s14601_s28 + $0x8dc] sm:$0xf] %v1469_v55  ;;  %1472 = vst [vmem:[%s14601_s28 + $0x8e0] sm:$0xf] %v1471_v56  ;;  %v1473_v57 = vld [vmem:[%s14594_s27 + $0x11c8] sm:$0xf] }
 0x18d   : > { %v1475_v58 = vld [vmem:[%s14594_s27 + $0x11d0] sm:$0xf]  ;;  %v1477_v59 = vld [vmem:[%s14594_s27 + $0x11d8] sm:$0xf]  ;;  %1474 = vst [vmem:[%s14601_s28 + $0x8e4] sm:$0xf] %v1473_v57 }
 0x18e   : > { %1476 = vst [vmem:[%s14601_s28 + $0x8e8] sm:$0xf] %v1475_v58  ;;  %1478 = vst [vmem:[%s14601_s28 + $0x8ec] sm:$0xf] %v1477_v59  ;;  %v1479_v60 = vld [vmem:[%s14594_s27 + $0x11e0] sm:$0xf] }
 0x18f   : > { %v1481_v61 = vld [vmem:[%s14594_s27 + $0x11e8] sm:$0xf]  ;;  %v1483_v62 = vld [vmem:[%s14594_s27 + $0x11f0] sm:$0xf]  ;;  %1480 = vst [vmem:[%s14601_s28 + $0x8f0] sm:$0xf] %v1479_v60 }
 0x190   : > { %1482 = vst [vmem:[%s14601_s28 + $0x8f4] sm:$0xf] %v1481_v61  ;;  %1484 = vst [vmem:[%s14601_s28 + $0x8f8] sm:$0xf] %v1483_v62  ;;  %v1485_v63 = vld [vmem:[%s14594_s27 + $0x11f8] sm:$0xf] }
 0x191   : > { %v1487_v0 = vld [vmem:[%s14594_s27 + $0x1200] sm:$0xf]  ;;  %v1489_v1 = vld [vmem:[%s14594_s27 + $0x1208] sm:$0xf]  ;;  %1486 = vst [vmem:[%s14601_s28 + $0x8fc] sm:$0xf] %v1485_v63 }
 0x192   : > { %1488 = vst [vmem:[%s14601_s28 + $0x900] sm:$0xf] %v1487_v0  ;;  %1490 = vst [vmem:[%s14601_s28 + $0x904] sm:$0xf] %v1489_v1  ;;  %v1491_v2 = vld [vmem:[%s14594_s27 + $0x1210] sm:$0xf] }
 0x193   : > { %v1493_v3 = vld [vmem:[%s14594_s27 + $0x1218] sm:$0xf]  ;;  %v1495_v4 = vld [vmem:[%s14594_s27 + $0x1220] sm:$0xf]  ;;  %1492 = vst [vmem:[%s14601_s28 + $0x908] sm:$0xf] %v1491_v2 }
 0x194   : > { %1494 = vst [vmem:[%s14601_s28 + $0x90c] sm:$0xf] %v1493_v3  ;;  %1496 = vst [vmem:[%s14601_s28 + $0x910] sm:$0xf] %v1495_v4  ;;  %v1497_v5 = vld [vmem:[%s14594_s27 + $0x1228] sm:$0xf] }
 0x195   : > { %v1499_v6 = vld [vmem:[%s14594_s27 + $0x1230] sm:$0xf]  ;;  %v1501_v7 = vld [vmem:[%s14594_s27 + $0x1238] sm:$0xf]  ;;  %1498 = vst [vmem:[%s14601_s28 + $0x914] sm:$0xf] %v1497_v5 }
 0x196   : > { %1500 = vst [vmem:[%s14601_s28 + $0x918] sm:$0xf] %v1499_v6  ;;  %1502 = vst [vmem:[%s14601_s28 + $0x91c] sm:$0xf] %v1501_v7  ;;  %v1503_v8 = vld [vmem:[%s14594_s27 + $0x1240] sm:$0xf] }
 0x197   : > { %v1505_v9 = vld [vmem:[%s14594_s27 + $0x1248] sm:$0xf]  ;;  %v1507_v10 = vld [vmem:[%s14594_s27 + $0x1250] sm:$0xf]  ;;  %1504 = vst [vmem:[%s14601_s28 + $0x920] sm:$0xf] %v1503_v8 }
 0x198   : > { %1506 = vst [vmem:[%s14601_s28 + $0x924] sm:$0xf] %v1505_v9  ;;  %1508 = vst [vmem:[%s14601_s28 + $0x928] sm:$0xf] %v1507_v10  ;;  %v1509_v11 = vld [vmem:[%s14594_s27 + $0x1258] sm:$0xf] }
 0x199   : > { %v1511_v12 = vld [vmem:[%s14594_s27 + $0x1260] sm:$0xf]  ;;  %v1513_v13 = vld [vmem:[%s14594_s27 + $0x1268] sm:$0xf]  ;;  %1510 = vst [vmem:[%s14601_s28 + $0x92c] sm:$0xf] %v1509_v11 }
 0x19a   : > { %1512 = vst [vmem:[%s14601_s28 + $0x930] sm:$0xf] %v1511_v12  ;;  %1514 = vst [vmem:[%s14601_s28 + $0x934] sm:$0xf] %v1513_v13  ;;  %v1515_v14 = vld [vmem:[%s14594_s27 + $0x1270] sm:$0xf] }
 0x19b   : > { %v1517_v15 = vld [vmem:[%s14594_s27 + $0x1278] sm:$0xf]  ;;  %v1519_v16 = vld [vmem:[%s14594_s27 + $0x1280] sm:$0xf]  ;;  %1516 = vst [vmem:[%s14601_s28 + $0x938] sm:$0xf] %v1515_v14 }
 0x19c   : > { %1518 = vst [vmem:[%s14601_s28 + $0x93c] sm:$0xf] %v1517_v15  ;;  %1520 = vst [vmem:[%s14601_s28 + $0x940] sm:$0xf] %v1519_v16  ;;  %v1521_v17 = vld [vmem:[%s14594_s27 + $0x1288] sm:$0xf] }
 0x19d   : > { %v1523_v18 = vld [vmem:[%s14594_s27 + $0x1290] sm:$0xf]  ;;  %v1525_v19 = vld [vmem:[%s14594_s27 + $0x1298] sm:$0xf]  ;;  %1522 = vst [vmem:[%s14601_s28 + $0x944] sm:$0xf] %v1521_v17 }
 0x19e   : > { %1524 = vst [vmem:[%s14601_s28 + $0x948] sm:$0xf] %v1523_v18  ;;  %1526 = vst [vmem:[%s14601_s28 + $0x94c] sm:$0xf] %v1525_v19  ;;  %v1527_v20 = vld [vmem:[%s14594_s27 + $0x12a0] sm:$0xf] }
 0x19f   : > { %v1529_v21 = vld [vmem:[%s14594_s27 + $0x12a8] sm:$0xf]  ;;  %v1531_v22 = vld [vmem:[%s14594_s27 + $0x12b0] sm:$0xf]  ;;  %1528 = vst [vmem:[%s14601_s28 + $0x950] sm:$0xf] %v1527_v20 }
 0x1a0   : > { %1530 = vst [vmem:[%s14601_s28 + $0x954] sm:$0xf] %v1529_v21  ;;  %1532 = vst [vmem:[%s14601_s28 + $0x958] sm:$0xf] %v1531_v22  ;;  %v1533_v23 = vld [vmem:[%s14594_s27 + $0x12b8] sm:$0xf] }
 0x1a1   : > { %v1535_v24 = vld [vmem:[%s14594_s27 + $0x12c0] sm:$0xf]  ;;  %v1537_v25 = vld [vmem:[%s14594_s27 + $0x12c8] sm:$0xf]  ;;  %1534 = vst [vmem:[%s14601_s28 + $0x95c] sm:$0xf] %v1533_v23 }
 0x1a2   : > { %1536 = vst [vmem:[%s14601_s28 + $0x960] sm:$0xf] %v1535_v24  ;;  %1538 = vst [vmem:[%s14601_s28 + $0x964] sm:$0xf] %v1537_v25  ;;  %v1539_v26 = vld [vmem:[%s14594_s27 + $0x12d0] sm:$0xf] }
 0x1a3   : > { %v1541_v27 = vld [vmem:[%s14594_s27 + $0x12d8] sm:$0xf]  ;;  %v1543_v28 = vld [vmem:[%s14594_s27 + $0x12e0] sm:$0xf]  ;;  %1540 = vst [vmem:[%s14601_s28 + $0x968] sm:$0xf] %v1539_v26 }
 0x1a4   : > { %1542 = vst [vmem:[%s14601_s28 + $0x96c] sm:$0xf] %v1541_v27  ;;  %1544 = vst [vmem:[%s14601_s28 + $0x970] sm:$0xf] %v1543_v28  ;;  %v1545_v29 = vld [vmem:[%s14594_s27 + $0x12e8] sm:$0xf] }
 0x1a5   : > { %v1547_v30 = vld [vmem:[%s14594_s27 + $0x12f0] sm:$0xf]  ;;  %v1549_v31 = vld [vmem:[%s14594_s27 + $0x12f8] sm:$0xf]  ;;  %1546 = vst [vmem:[%s14601_s28 + $0x974] sm:$0xf] %v1545_v29 }
 0x1a6   : > { %1548 = vst [vmem:[%s14601_s28 + $0x978] sm:$0xf] %v1547_v30  ;;  %1550 = vst [vmem:[%s14601_s28 + $0x97c] sm:$0xf] %v1549_v31  ;;  %v1551_v32 = vld [vmem:[%s14594_s27 + $0x1300] sm:$0xf] }
 0x1a7   : > { %v1553_v33 = vld [vmem:[%s14594_s27 + $0x1308] sm:$0xf]  ;;  %v1555_v34 = vld [vmem:[%s14594_s27 + $0x1310] sm:$0xf]  ;;  %1552 = vst [vmem:[%s14601_s28 + $0x980] sm:$0xf] %v1551_v32 }
 0x1a8   : > { %1554 = vst [vmem:[%s14601_s28 + $0x984] sm:$0xf] %v1553_v33  ;;  %1556 = vst [vmem:[%s14601_s28 + $0x988] sm:$0xf] %v1555_v34  ;;  %v1557_v35 = vld [vmem:[%s14594_s27 + $0x1318] sm:$0xf] }
 0x1a9   : > { %v1559_v36 = vld [vmem:[%s14594_s27 + $0x1320] sm:$0xf]  ;;  %v1561_v37 = vld [vmem:[%s14594_s27 + $0x1328] sm:$0xf]  ;;  %1558 = vst [vmem:[%s14601_s28 + $0x98c] sm:$0xf] %v1557_v35 }
 0x1aa   : > { %1560 = vst [vmem:[%s14601_s28 + $0x990] sm:$0xf] %v1559_v36  ;;  %1562 = vst [vmem:[%s14601_s28 + $0x994] sm:$0xf] %v1561_v37  ;;  %v1563_v38 = vld [vmem:[%s14594_s27 + $0x1330] sm:$0xf] }
 0x1ab   : > { %v1565_v39 = vld [vmem:[%s14594_s27 + $0x1338] sm:$0xf]  ;;  %v1567_v40 = vld [vmem:[%s14594_s27 + $0x1340] sm:$0xf]  ;;  %1564 = vst [vmem:[%s14601_s28 + $0x998] sm:$0xf] %v1563_v38 }
 0x1ac   : > { %1566 = vst [vmem:[%s14601_s28 + $0x99c] sm:$0xf] %v1565_v39  ;;  %1568 = vst [vmem:[%s14601_s28 + $0x9a0] sm:$0xf] %v1567_v40  ;;  %v1569_v41 = vld [vmem:[%s14594_s27 + $0x1348] sm:$0xf] }
 0x1ad   : > { %v1571_v42 = vld [vmem:[%s14594_s27 + $0x1350] sm:$0xf]  ;;  %v1573_v43 = vld [vmem:[%s14594_s27 + $0x1358] sm:$0xf]  ;;  %1570 = vst [vmem:[%s14601_s28 + $0x9a4] sm:$0xf] %v1569_v41 }
 0x1ae   : > { %1572 = vst [vmem:[%s14601_s28 + $0x9a8] sm:$0xf] %v1571_v42  ;;  %1574 = vst [vmem:[%s14601_s28 + $0x9ac] sm:$0xf] %v1573_v43  ;;  %v1575_v44 = vld [vmem:[%s14594_s27 + $0x1360] sm:$0xf] }
 0x1af   : > { %v1577_v45 = vld [vmem:[%s14594_s27 + $0x1368] sm:$0xf]  ;;  %v1579_v46 = vld [vmem:[%s14594_s27 + $0x1370] sm:$0xf]  ;;  %1576 = vst [vmem:[%s14601_s28 + $0x9b0] sm:$0xf] %v1575_v44 }
 0x1b0   : > { %1578 = vst [vmem:[%s14601_s28 + $0x9b4] sm:$0xf] %v1577_v45  ;;  %1580 = vst [vmem:[%s14601_s28 + $0x9b8] sm:$0xf] %v1579_v46  ;;  %v1581_v47 = vld [vmem:[%s14594_s27 + $0x1378] sm:$0xf] }
 0x1b1   : > { %v1583_v48 = vld [vmem:[%s14594_s27 + $0x1380] sm:$0xf]  ;;  %v1585_v49 = vld [vmem:[%s14594_s27 + $0x1388] sm:$0xf]  ;;  %1582 = vst [vmem:[%s14601_s28 + $0x9bc] sm:$0xf] %v1581_v47 }
 0x1b2   : > { %1584 = vst [vmem:[%s14601_s28 + $0x9c0] sm:$0xf] %v1583_v48  ;;  %1586 = vst [vmem:[%s14601_s28 + $0x9c4] sm:$0xf] %v1585_v49  ;;  %v1587_v50 = vld [vmem:[%s14594_s27 + $0x1390] sm:$0xf] }
 0x1b3   : > { %v1589_v51 = vld [vmem:[%s14594_s27 + $0x1398] sm:$0xf]  ;;  %v1591_v52 = vld [vmem:[%s14594_s27 + $0x13a0] sm:$0xf]  ;;  %1588 = vst [vmem:[%s14601_s28 + $0x9c8] sm:$0xf] %v1587_v50 }
 0x1b4   : > { %1590 = vst [vmem:[%s14601_s28 + $0x9cc] sm:$0xf] %v1589_v51  ;;  %1592 = vst [vmem:[%s14601_s28 + $0x9d0] sm:$0xf] %v1591_v52  ;;  %v1593_v53 = vld [vmem:[%s14594_s27 + $0x13a8] sm:$0xf] }
 0x1b5   : > { %v1595_v54 = vld [vmem:[%s14594_s27 + $0x13b0] sm:$0xf]  ;;  %v1597_v55 = vld [vmem:[%s14594_s27 + $0x13b8] sm:$0xf]  ;;  %1594 = vst [vmem:[%s14601_s28 + $0x9d4] sm:$0xf] %v1593_v53 }
 0x1b6   : > { %1596 = vst [vmem:[%s14601_s28 + $0x9d8] sm:$0xf] %v1595_v54  ;;  %1598 = vst [vmem:[%s14601_s28 + $0x9dc] sm:$0xf] %v1597_v55  ;;  %v1599_v56 = vld [vmem:[%s14594_s27 + $0x13c0] sm:$0xf] }
 0x1b7   : > { %v1601_v57 = vld [vmem:[%s14594_s27 + $0x13c8] sm:$0xf]  ;;  %v1603_v58 = vld [vmem:[%s14594_s27 + $0x13d0] sm:$0xf]  ;;  %1600 = vst [vmem:[%s14601_s28 + $0x9e0] sm:$0xf] %v1599_v56 }
 0x1b8   : > { %1602 = vst [vmem:[%s14601_s28 + $0x9e4] sm:$0xf] %v1601_v57  ;;  %1604 = vst [vmem:[%s14601_s28 + $0x9e8] sm:$0xf] %v1603_v58  ;;  %v1605_v59 = vld [vmem:[%s14594_s27 + $0x13d8] sm:$0xf] }
 0x1b9   : > { %v1607_v60 = vld [vmem:[%s14594_s27 + $0x13e0] sm:$0xf]  ;;  %v1609_v61 = vld [vmem:[%s14594_s27 + $0x13e8] sm:$0xf]  ;;  %1606 = vst [vmem:[%s14601_s28 + $0x9ec] sm:$0xf] %v1605_v59 }
 0x1ba   : > { %1608 = vst [vmem:[%s14601_s28 + $0x9f0] sm:$0xf] %v1607_v60  ;;  %1610 = vst [vmem:[%s14601_s28 + $0x9f4] sm:$0xf] %v1609_v61  ;;  %v1611_v62 = vld [vmem:[%s14594_s27 + $0x13f0] sm:$0xf] }
 0x1bb   : > { %v1613_v63 = vld [vmem:[%s14594_s27 + $0x13f8] sm:$0xf]  ;;  %v1615_v0 = vld [vmem:[%s14594_s27 + $0x1400] sm:$0xf]  ;;  %1612 = vst [vmem:[%s14601_s28 + $0x9f8] sm:$0xf] %v1611_v62 }
 0x1bc   : > { %1614 = vst [vmem:[%s14601_s28 + $0x9fc] sm:$0xf] %v1613_v63  ;;  %1616 = vst [vmem:[%s14601_s28 + $0xa00] sm:$0xf] %v1615_v0  ;;  %v1617_v1 = vld [vmem:[%s14594_s27 + $0x1408] sm:$0xf] }
 0x1bd   : > { %v1619_v2 = vld [vmem:[%s14594_s27 + $0x1410] sm:$0xf]  ;;  %v1621_v3 = vld [vmem:[%s14594_s27 + $0x1418] sm:$0xf]  ;;  %1618 = vst [vmem:[%s14601_s28 + $0xa04] sm:$0xf] %v1617_v1 }
 0x1be   : > { %1620 = vst [vmem:[%s14601_s28 + $0xa08] sm:$0xf] %v1619_v2  ;;  %1622 = vst [vmem:[%s14601_s28 + $0xa0c] sm:$0xf] %v1621_v3  ;;  %v1623_v4 = vld [vmem:[%s14594_s27 + $0x1420] sm:$0xf] }
 0x1bf   : > { %v1625_v5 = vld [vmem:[%s14594_s27 + $0x1428] sm:$0xf]  ;;  %v1627_v6 = vld [vmem:[%s14594_s27 + $0x1430] sm:$0xf]  ;;  %1624 = vst [vmem:[%s14601_s28 + $0xa10] sm:$0xf] %v1623_v4 }
 0x1c0   : > { %1626 = vst [vmem:[%s14601_s28 + $0xa14] sm:$0xf] %v1625_v5  ;;  %1628 = vst [vmem:[%s14601_s28 + $0xa18] sm:$0xf] %v1627_v6  ;;  %v1629_v7 = vld [vmem:[%s14594_s27 + $0x1438] sm:$0xf] }
 0x1c1   : > { %v1631_v8 = vld [vmem:[%s14594_s27 + $0x1440] sm:$0xf]  ;;  %v1633_v9 = vld [vmem:[%s14594_s27 + $0x1448] sm:$0xf]  ;;  %1630 = vst [vmem:[%s14601_s28 + $0xa1c] sm:$0xf] %v1629_v7 }
 0x1c2   : > { %1632 = vst [vmem:[%s14601_s28 + $0xa20] sm:$0xf] %v1631_v8  ;;  %1634 = vst [vmem:[%s14601_s28 + $0xa24] sm:$0xf] %v1633_v9  ;;  %v1635_v10 = vld [vmem:[%s14594_s27 + $0x1450] sm:$0xf] }
 0x1c3   : > { %v1637_v11 = vld [vmem:[%s14594_s27 + $0x1458] sm:$0xf]  ;;  %v1639_v12 = vld [vmem:[%s14594_s27 + $0x1460] sm:$0xf]  ;;  %1636 = vst [vmem:[%s14601_s28 + $0xa28] sm:$0xf] %v1635_v10 }
 0x1c4   : > { %1638 = vst [vmem:[%s14601_s28 + $0xa2c] sm:$0xf] %v1637_v11  ;;  %1640 = vst [vmem:[%s14601_s28 + $0xa30] sm:$0xf] %v1639_v12  ;;  %v1641_v13 = vld [vmem:[%s14594_s27 + $0x1468] sm:$0xf] }
 0x1c5   : > { %v1643_v14 = vld [vmem:[%s14594_s27 + $0x1470] sm:$0xf]  ;;  %v1645_v15 = vld [vmem:[%s14594_s27 + $0x1478] sm:$0xf]  ;;  %1642 = vst [vmem:[%s14601_s28 + $0xa34] sm:$0xf] %v1641_v13 }
 0x1c6   : > { %1644 = vst [vmem:[%s14601_s28 + $0xa38] sm:$0xf] %v1643_v14  ;;  %1646 = vst [vmem:[%s14601_s28 + $0xa3c] sm:$0xf] %v1645_v15  ;;  %v1647_v16 = vld [vmem:[%s14594_s27 + $0x1480] sm:$0xf] }
 0x1c7   : > { %v1649_v17 = vld [vmem:[%s14594_s27 + $0x1488] sm:$0xf]  ;;  %v1651_v18 = vld [vmem:[%s14594_s27 + $0x1490] sm:$0xf]  ;;  %1648 = vst [vmem:[%s14601_s28 + $0xa40] sm:$0xf] %v1647_v16 }
 0x1c8   : > { %1650 = vst [vmem:[%s14601_s28 + $0xa44] sm:$0xf] %v1649_v17  ;;  %1652 = vst [vmem:[%s14601_s28 + $0xa48] sm:$0xf] %v1651_v18  ;;  %v1653_v19 = vld [vmem:[%s14594_s27 + $0x1498] sm:$0xf] }
 0x1c9   : > { %v1655_v20 = vld [vmem:[%s14594_s27 + $0x14a0] sm:$0xf]  ;;  %v1657_v21 = vld [vmem:[%s14594_s27 + $0x14a8] sm:$0xf]  ;;  %1654 = vst [vmem:[%s14601_s28 + $0xa4c] sm:$0xf] %v1653_v19 }
 0x1ca   : > { %1656 = vst [vmem:[%s14601_s28 + $0xa50] sm:$0xf] %v1655_v20  ;;  %1658 = vst [vmem:[%s14601_s28 + $0xa54] sm:$0xf] %v1657_v21  ;;  %v1659_v22 = vld [vmem:[%s14594_s27 + $0x14b0] sm:$0xf] }
 0x1cb   : > { %v1661_v23 = vld [vmem:[%s14594_s27 + $0x14b8] sm:$0xf]  ;;  %v1663_v24 = vld [vmem:[%s14594_s27 + $0x14c0] sm:$0xf]  ;;  %1660 = vst [vmem:[%s14601_s28 + $0xa58] sm:$0xf] %v1659_v22 }
 0x1cc   : > { %1662 = vst [vmem:[%s14601_s28 + $0xa5c] sm:$0xf] %v1661_v23  ;;  %1664 = vst [vmem:[%s14601_s28 + $0xa60] sm:$0xf] %v1663_v24  ;;  %v1665_v25 = vld [vmem:[%s14594_s27 + $0x14c8] sm:$0xf] }
 0x1cd   : > { %v1667_v26 = vld [vmem:[%s14594_s27 + $0x14d0] sm:$0xf]  ;;  %v1669_v27 = vld [vmem:[%s14594_s27 + $0x14d8] sm:$0xf]  ;;  %1666 = vst [vmem:[%s14601_s28 + $0xa64] sm:$0xf] %v1665_v25 }
 0x1ce   : > { %1668 = vst [vmem:[%s14601_s28 + $0xa68] sm:$0xf] %v1667_v26  ;;  %1670 = vst [vmem:[%s14601_s28 + $0xa6c] sm:$0xf] %v1669_v27  ;;  %v1671_v28 = vld [vmem:[%s14594_s27 + $0x14e0] sm:$0xf] }
 0x1cf   : > { %v1673_v29 = vld [vmem:[%s14594_s27 + $0x14e8] sm:$0xf]  ;;  %v1675_v30 = vld [vmem:[%s14594_s27 + $0x14f0] sm:$0xf]  ;;  %1672 = vst [vmem:[%s14601_s28 + $0xa70] sm:$0xf] %v1671_v28 }
 0x1d0   : > { %1674 = vst [vmem:[%s14601_s28 + $0xa74] sm:$0xf] %v1673_v29  ;;  %1676 = vst [vmem:[%s14601_s28 + $0xa78] sm:$0xf] %v1675_v30  ;;  %v1677_v31 = vld [vmem:[%s14594_s27 + $0x14f8] sm:$0xf] }
 0x1d1   : > { %v1679_v32 = vld [vmem:[%s14594_s27 + $0x1500] sm:$0xf]  ;;  %v1681_v33 = vld [vmem:[%s14594_s27 + $0x1508] sm:$0xf]  ;;  %1678 = vst [vmem:[%s14601_s28 + $0xa7c] sm:$0xf] %v1677_v31 }
 0x1d2   : > { %1680 = vst [vmem:[%s14601_s28 + $0xa80] sm:$0xf] %v1679_v32  ;;  %1682 = vst [vmem:[%s14601_s28 + $0xa84] sm:$0xf] %v1681_v33  ;;  %v1683_v34 = vld [vmem:[%s14594_s27 + $0x1510] sm:$0xf] }
 0x1d3   : > { %v1685_v35 = vld [vmem:[%s14594_s27 + $0x1518] sm:$0xf]  ;;  %v1687_v36 = vld [vmem:[%s14594_s27 + $0x1520] sm:$0xf]  ;;  %1684 = vst [vmem:[%s14601_s28 + $0xa88] sm:$0xf] %v1683_v34 }
 0x1d4   : > { %1686 = vst [vmem:[%s14601_s28 + $0xa8c] sm:$0xf] %v1685_v35  ;;  %1688 = vst [vmem:[%s14601_s28 + $0xa90] sm:$0xf] %v1687_v36  ;;  %v1689_v37 = vld [vmem:[%s14594_s27 + $0x1528] sm:$0xf] }
 0x1d5   : > { %v1691_v38 = vld [vmem:[%s14594_s27 + $0x1530] sm:$0xf]  ;;  %v1693_v39 = vld [vmem:[%s14594_s27 + $0x1538] sm:$0xf]  ;;  %1690 = vst [vmem:[%s14601_s28 + $0xa94] sm:$0xf] %v1689_v37 }
 0x1d6   : > { %1692 = vst [vmem:[%s14601_s28 + $0xa98] sm:$0xf] %v1691_v38  ;;  %1694 = vst [vmem:[%s14601_s28 + $0xa9c] sm:$0xf] %v1693_v39  ;;  %v1695_v40 = vld [vmem:[%s14594_s27 + $0x1540] sm:$0xf] }
 0x1d7   : > { %v1697_v41 = vld [vmem:[%s14594_s27 + $0x1548] sm:$0xf]  ;;  %v1699_v42 = vld [vmem:[%s14594_s27 + $0x1550] sm:$0xf]  ;;  %1696 = vst [vmem:[%s14601_s28 + $0xaa0] sm:$0xf] %v1695_v40 }
 0x1d8   : > { %1698 = vst [vmem:[%s14601_s28 + $0xaa4] sm:$0xf] %v1697_v41  ;;  %1700 = vst [vmem:[%s14601_s28 + $0xaa8] sm:$0xf] %v1699_v42  ;;  %v1701_v43 = vld [vmem:[%s14594_s27 + $0x1558] sm:$0xf] }
 0x1d9   : > { %v1703_v44 = vld [vmem:[%s14594_s27 + $0x1560] sm:$0xf]  ;;  %v1705_v45 = vld [vmem:[%s14594_s27 + $0x1568] sm:$0xf]  ;;  %1702 = vst [vmem:[%s14601_s28 + $0xaac] sm:$0xf] %v1701_v43 }
 0x1da   : > { %1704 = vst [vmem:[%s14601_s28 + $0xab0] sm:$0xf] %v1703_v44  ;;  %1706 = vst [vmem:[%s14601_s28 + $0xab4] sm:$0xf] %v1705_v45  ;;  %v1707_v46 = vld [vmem:[%s14594_s27 + $0x1570] sm:$0xf] }
 0x1db   : > { %v1709_v47 = vld [vmem:[%s14594_s27 + $0x1578] sm:$0xf]  ;;  %v1711_v48 = vld [vmem:[%s14594_s27 + $0x1580] sm:$0xf]  ;;  %1708 = vst [vmem:[%s14601_s28 + $0xab8] sm:$0xf] %v1707_v46 }
 0x1dc   : > { %1710 = vst [vmem:[%s14601_s28 + $0xabc] sm:$0xf] %v1709_v47  ;;  %1712 = vst [vmem:[%s14601_s28 + $0xac0] sm:$0xf] %v1711_v48  ;;  %v1713_v49 = vld [vmem:[%s14594_s27 + $0x1588] sm:$0xf] }
 0x1dd   : > { %v1715_v50 = vld [vmem:[%s14594_s27 + $0x1590] sm:$0xf]  ;;  %v1717_v51 = vld [vmem:[%s14594_s27 + $0x1598] sm:$0xf]  ;;  %1714 = vst [vmem:[%s14601_s28 + $0xac4] sm:$0xf] %v1713_v49 }
 0x1de   : > { %1716 = vst [vmem:[%s14601_s28 + $0xac8] sm:$0xf] %v1715_v50  ;;  %1718 = vst [vmem:[%s14601_s28 + $0xacc] sm:$0xf] %v1717_v51  ;;  %v1719_v52 = vld [vmem:[%s14594_s27 + $0x15a0] sm:$0xf] }
 0x1df   : > { %v1721_v53 = vld [vmem:[%s14594_s27 + $0x15a8] sm:$0xf]  ;;  %v1723_v54 = vld [vmem:[%s14594_s27 + $0x15b0] sm:$0xf]  ;;  %1720 = vst [vmem:[%s14601_s28 + $0xad0] sm:$0xf] %v1719_v52 }
 0x1e0   : > { %1722 = vst [vmem:[%s14601_s28 + $0xad4] sm:$0xf] %v1721_v53  ;;  %1724 = vst [vmem:[%s14601_s28 + $0xad8] sm:$0xf] %v1723_v54  ;;  %v1725_v55 = vld [vmem:[%s14594_s27 + $0x15b8] sm:$0xf] }
 0x1e1   : > { %v1727_v56 = vld [vmem:[%s14594_s27 + $0x15c0] sm:$0xf]  ;;  %v1729_v57 = vld [vmem:[%s14594_s27 + $0x15c8] sm:$0xf]  ;;  %1726 = vst [vmem:[%s14601_s28 + $0xadc] sm:$0xf] %v1725_v55 }
 0x1e2   : > { %1728 = vst [vmem:[%s14601_s28 + $0xae0] sm:$0xf] %v1727_v56  ;;  %1730 = vst [vmem:[%s14601_s28 + $0xae4] sm:$0xf] %v1729_v57  ;;  %v1731_v58 = vld [vmem:[%s14594_s27 + $0x15d0] sm:$0xf] }
 0x1e3   : > { %v1733_v59 = vld [vmem:[%s14594_s27 + $0x15d8] sm:$0xf]  ;;  %v1735_v60 = vld [vmem:[%s14594_s27 + $0x15e0] sm:$0xf]  ;;  %1732 = vst [vmem:[%s14601_s28 + $0xae8] sm:$0xf] %v1731_v58 }
 0x1e4   : > { %1734 = vst [vmem:[%s14601_s28 + $0xaec] sm:$0xf] %v1733_v59  ;;  %1736 = vst [vmem:[%s14601_s28 + $0xaf0] sm:$0xf] %v1735_v60  ;;  %v1737_v61 = vld [vmem:[%s14594_s27 + $0x15e8] sm:$0xf] }
 0x1e5   : > { %v1739_v62 = vld [vmem:[%s14594_s27 + $0x15f0] sm:$0xf]  ;;  %v1741_v63 = vld [vmem:[%s14594_s27 + $0x15f8] sm:$0xf]  ;;  %1738 = vst [vmem:[%s14601_s28 + $0xaf4] sm:$0xf] %v1737_v61 }
 0x1e6   : > { %1740 = vst [vmem:[%s14601_s28 + $0xaf8] sm:$0xf] %v1739_v62  ;;  %1742 = vst [vmem:[%s14601_s28 + $0xafc] sm:$0xf] %v1741_v63  ;;  %v1743_v0 = vld [vmem:[%s14594_s27 + $0x1600] sm:$0xf] }
 0x1e7   : > { %v1745_v1 = vld [vmem:[%s14594_s27 + $0x1608] sm:$0xf]  ;;  %v1747_v2 = vld [vmem:[%s14594_s27 + $0x1610] sm:$0xf]  ;;  %1744 = vst [vmem:[%s14601_s28 + $0xb00] sm:$0xf] %v1743_v0 }
 0x1e8   : > { %1746 = vst [vmem:[%s14601_s28 + $0xb04] sm:$0xf] %v1745_v1  ;;  %1748 = vst [vmem:[%s14601_s28 + $0xb08] sm:$0xf] %v1747_v2  ;;  %v1749_v3 = vld [vmem:[%s14594_s27 + $0x1618] sm:$0xf] }
 0x1e9   : > { %v1751_v4 = vld [vmem:[%s14594_s27 + $0x1620] sm:$0xf]  ;;  %v1753_v5 = vld [vmem:[%s14594_s27 + $0x1628] sm:$0xf]  ;;  %1750 = vst [vmem:[%s14601_s28 + $0xb0c] sm:$0xf] %v1749_v3 }
 0x1ea   : > { %1752 = vst [vmem:[%s14601_s28 + $0xb10] sm:$0xf] %v1751_v4  ;;  %1754 = vst [vmem:[%s14601_s28 + $0xb14] sm:$0xf] %v1753_v5  ;;  %v1755_v6 = vld [vmem:[%s14594_s27 + $0x1630] sm:$0xf] }
 0x1eb   : > { %v1757_v7 = vld [vmem:[%s14594_s27 + $0x1638] sm:$0xf]  ;;  %v1759_v8 = vld [vmem:[%s14594_s27 + $0x1640] sm:$0xf]  ;;  %1756 = vst [vmem:[%s14601_s28 + $0xb18] sm:$0xf] %v1755_v6 }
 0x1ec   : > { %1758 = vst [vmem:[%s14601_s28 + $0xb1c] sm:$0xf] %v1757_v7  ;;  %1760 = vst [vmem:[%s14601_s28 + $0xb20] sm:$0xf] %v1759_v8  ;;  %v1761_v9 = vld [vmem:[%s14594_s27 + $0x1648] sm:$0xf] }
 0x1ed   : > { %v1763_v10 = vld [vmem:[%s14594_s27 + $0x1650] sm:$0xf]  ;;  %v1765_v11 = vld [vmem:[%s14594_s27 + $0x1658] sm:$0xf]  ;;  %1762 = vst [vmem:[%s14601_s28 + $0xb24] sm:$0xf] %v1761_v9 }
 0x1ee   : > { %1764 = vst [vmem:[%s14601_s28 + $0xb28] sm:$0xf] %v1763_v10  ;;  %1766 = vst [vmem:[%s14601_s28 + $0xb2c] sm:$0xf] %v1765_v11  ;;  %v1767_v12 = vld [vmem:[%s14594_s27 + $0x1660] sm:$0xf] }
 0x1ef   : > { %v1769_v13 = vld [vmem:[%s14594_s27 + $0x1668] sm:$0xf]  ;;  %v1771_v14 = vld [vmem:[%s14594_s27 + $0x1670] sm:$0xf]  ;;  %1768 = vst [vmem:[%s14601_s28 + $0xb30] sm:$0xf] %v1767_v12 }
 0x1f0   : > { %1770 = vst [vmem:[%s14601_s28 + $0xb34] sm:$0xf] %v1769_v13  ;;  %1772 = vst [vmem:[%s14601_s28 + $0xb38] sm:$0xf] %v1771_v14  ;;  %v1773_v15 = vld [vmem:[%s14594_s27 + $0x1678] sm:$0xf] }
 0x1f1   : > { %v1775_v16 = vld [vmem:[%s14594_s27 + $0x1680] sm:$0xf]  ;;  %v1777_v17 = vld [vmem:[%s14594_s27 + $0x1688] sm:$0xf]  ;;  %1774 = vst [vmem:[%s14601_s28 + $0xb3c] sm:$0xf] %v1773_v15 }
 0x1f2   : > { %1776 = vst [vmem:[%s14601_s28 + $0xb40] sm:$0xf] %v1775_v16  ;;  %1778 = vst [vmem:[%s14601_s28 + $0xb44] sm:$0xf] %v1777_v17  ;;  %v1779_v18 = vld [vmem:[%s14594_s27 + $0x1690] sm:$0xf] }
 0x1f3   : > { %v1781_v19 = vld [vmem:[%s14594_s27 + $0x1698] sm:$0xf]  ;;  %v1783_v20 = vld [vmem:[%s14594_s27 + $0x16a0] sm:$0xf]  ;;  %1780 = vst [vmem:[%s14601_s28 + $0xb48] sm:$0xf] %v1779_v18 }
 0x1f4   : > { %1782 = vst [vmem:[%s14601_s28 + $0xb4c] sm:$0xf] %v1781_v19  ;;  %1784 = vst [vmem:[%s14601_s28 + $0xb50] sm:$0xf] %v1783_v20  ;;  %v1785_v21 = vld [vmem:[%s14594_s27 + $0x16a8] sm:$0xf] }
 0x1f5   : > { %v1787_v22 = vld [vmem:[%s14594_s27 + $0x16b0] sm:$0xf]  ;;  %v1789_v23 = vld [vmem:[%s14594_s27 + $0x16b8] sm:$0xf]  ;;  %1786 = vst [vmem:[%s14601_s28 + $0xb54] sm:$0xf] %v1785_v21 }
 0x1f6   : > { %1788 = vst [vmem:[%s14601_s28 + $0xb58] sm:$0xf] %v1787_v22  ;;  %1790 = vst [vmem:[%s14601_s28 + $0xb5c] sm:$0xf] %v1789_v23  ;;  %v1791_v24 = vld [vmem:[%s14594_s27 + $0x16c0] sm:$0xf] }
 0x1f7   : > { %v1793_v25 = vld [vmem:[%s14594_s27 + $0x16c8] sm:$0xf]  ;;  %v1795_v26 = vld [vmem:[%s14594_s27 + $0x16d0] sm:$0xf]  ;;  %1792 = vst [vmem:[%s14601_s28 + $0xb60] sm:$0xf] %v1791_v24 }
 0x1f8   : > { %1794 = vst [vmem:[%s14601_s28 + $0xb64] sm:$0xf] %v1793_v25  ;;  %1796 = vst [vmem:[%s14601_s28 + $0xb68] sm:$0xf] %v1795_v26  ;;  %v1797_v27 = vld [vmem:[%s14594_s27 + $0x16d8] sm:$0xf] }
 0x1f9   : > { %v1799_v28 = vld [vmem:[%s14594_s27 + $0x16e0] sm:$0xf]  ;;  %v1801_v29 = vld [vmem:[%s14594_s27 + $0x16e8] sm:$0xf]  ;;  %1798 = vst [vmem:[%s14601_s28 + $0xb6c] sm:$0xf] %v1797_v27 }
 0x1fa   : > { %1800 = vst [vmem:[%s14601_s28 + $0xb70] sm:$0xf] %v1799_v28  ;;  %1802 = vst [vmem:[%s14601_s28 + $0xb74] sm:$0xf] %v1801_v29  ;;  %v1803_v30 = vld [vmem:[%s14594_s27 + $0x16f0] sm:$0xf] }
 0x1fb   : > { %v1805_v31 = vld [vmem:[%s14594_s27 + $0x16f8] sm:$0xf]  ;;  %v1807_v32 = vld [vmem:[%s14594_s27 + $0x1700] sm:$0xf]  ;;  %1804 = vst [vmem:[%s14601_s28 + $0xb78] sm:$0xf] %v1803_v30 }
 0x1fc   : > { %1806 = vst [vmem:[%s14601_s28 + $0xb7c] sm:$0xf] %v1805_v31  ;;  %1808 = vst [vmem:[%s14601_s28 + $0xb80] sm:$0xf] %v1807_v32  ;;  %v1809_v33 = vld [vmem:[%s14594_s27 + $0x1708] sm:$0xf] }
 0x1fd   : > { %v1811_v34 = vld [vmem:[%s14594_s27 + $0x1710] sm:$0xf]  ;;  %v1813_v35 = vld [vmem:[%s14594_s27 + $0x1718] sm:$0xf]  ;;  %1810 = vst [vmem:[%s14601_s28 + $0xb84] sm:$0xf] %v1809_v33 }
 0x1fe   : > { %1812 = vst [vmem:[%s14601_s28 + $0xb88] sm:$0xf] %v1811_v34  ;;  %1814 = vst [vmem:[%s14601_s28 + $0xb8c] sm:$0xf] %v1813_v35  ;;  %v1815_v36 = vld [vmem:[%s14594_s27 + $0x1720] sm:$0xf] }
 0x1ff   : > { %v1817_v37 = vld [vmem:[%s14594_s27 + $0x1728] sm:$0xf]  ;;  %v1819_v38 = vld [vmem:[%s14594_s27 + $0x1730] sm:$0xf]  ;;  %1816 = vst [vmem:[%s14601_s28 + $0xb90] sm:$0xf] %v1815_v36 }
 0x200   : > { %1818 = vst [vmem:[%s14601_s28 + $0xb94] sm:$0xf] %v1817_v37  ;;  %1820 = vst [vmem:[%s14601_s28 + $0xb98] sm:$0xf] %v1819_v38  ;;  %v1821_v39 = vld [vmem:[%s14594_s27 + $0x1738] sm:$0xf] }
 0x201   : > { %v1823_v40 = vld [vmem:[%s14594_s27 + $0x1740] sm:$0xf]  ;;  %v1825_v41 = vld [vmem:[%s14594_s27 + $0x1748] sm:$0xf]  ;;  %1822 = vst [vmem:[%s14601_s28 + $0xb9c] sm:$0xf] %v1821_v39 }
 0x202   : > { %1824 = vst [vmem:[%s14601_s28 + $0xba0] sm:$0xf] %v1823_v40  ;;  %1826 = vst [vmem:[%s14601_s28 + $0xba4] sm:$0xf] %v1825_v41  ;;  %v1827_v42 = vld [vmem:[%s14594_s27 + $0x1750] sm:$0xf] }
 0x203   : > { %v1829_v43 = vld [vmem:[%s14594_s27 + $0x1758] sm:$0xf]  ;;  %v1831_v44 = vld [vmem:[%s14594_s27 + $0x1760] sm:$0xf]  ;;  %1828 = vst [vmem:[%s14601_s28 + $0xba8] sm:$0xf] %v1827_v42 }
 0x204   : > { %1830 = vst [vmem:[%s14601_s28 + $0xbac] sm:$0xf] %v1829_v43  ;;  %1832 = vst [vmem:[%s14601_s28 + $0xbb0] sm:$0xf] %v1831_v44  ;;  %v1833_v45 = vld [vmem:[%s14594_s27 + $0x1768] sm:$0xf] }
 0x205   : > { %v1835_v46 = vld [vmem:[%s14594_s27 + $0x1770] sm:$0xf]  ;;  %v1837_v47 = vld [vmem:[%s14594_s27 + $0x1778] sm:$0xf]  ;;  %1834 = vst [vmem:[%s14601_s28 + $0xbb4] sm:$0xf] %v1833_v45 }
 0x206   : > { %1836 = vst [vmem:[%s14601_s28 + $0xbb8] sm:$0xf] %v1835_v46  ;;  %1838 = vst [vmem:[%s14601_s28 + $0xbbc] sm:$0xf] %v1837_v47  ;;  %v1839_v48 = vld [vmem:[%s14594_s27 + $0x1780] sm:$0xf] }
 0x207   : > { %v1841_v49 = vld [vmem:[%s14594_s27 + $0x1788] sm:$0xf]  ;;  %v1843_v50 = vld [vmem:[%s14594_s27 + $0x1790] sm:$0xf]  ;;  %1840 = vst [vmem:[%s14601_s28 + $0xbc0] sm:$0xf] %v1839_v48 }
 0x208   : > { %1842 = vst [vmem:[%s14601_s28 + $0xbc4] sm:$0xf] %v1841_v49  ;;  %1844 = vst [vmem:[%s14601_s28 + $0xbc8] sm:$0xf] %v1843_v50  ;;  %v1845_v51 = vld [vmem:[%s14594_s27 + $0x1798] sm:$0xf] }
 0x209   : > { %v1847_v52 = vld [vmem:[%s14594_s27 + $0x17a0] sm:$0xf]  ;;  %v1849_v53 = vld [vmem:[%s14594_s27 + $0x17a8] sm:$0xf]  ;;  %1846 = vst [vmem:[%s14601_s28 + $0xbcc] sm:$0xf] %v1845_v51 }
 0x20a   : > { %1848 = vst [vmem:[%s14601_s28 + $0xbd0] sm:$0xf] %v1847_v52  ;;  %1850 = vst [vmem:[%s14601_s28 + $0xbd4] sm:$0xf] %v1849_v53  ;;  %v1851_v54 = vld [vmem:[%s14594_s27 + $0x17b0] sm:$0xf] }
 0x20b   : > { %v1853_v55 = vld [vmem:[%s14594_s27 + $0x17b8] sm:$0xf]  ;;  %v1855_v56 = vld [vmem:[%s14594_s27 + $0x17c0] sm:$0xf]  ;;  %1852 = vst [vmem:[%s14601_s28 + $0xbd8] sm:$0xf] %v1851_v54 }
 0x20c   : > { %1854 = vst [vmem:[%s14601_s28 + $0xbdc] sm:$0xf] %v1853_v55  ;;  %1856 = vst [vmem:[%s14601_s28 + $0xbe0] sm:$0xf] %v1855_v56  ;;  %v1857_v57 = vld [vmem:[%s14594_s27 + $0x17c8] sm:$0xf] }
 0x20d   : > { %v1859_v58 = vld [vmem:[%s14594_s27 + $0x17d0] sm:$0xf]  ;;  %v1861_v59 = vld [vmem:[%s14594_s27 + $0x17d8] sm:$0xf]  ;;  %1858 = vst [vmem:[%s14601_s28 + $0xbe4] sm:$0xf] %v1857_v57 }
 0x20e   : > { %1860 = vst [vmem:[%s14601_s28 + $0xbe8] sm:$0xf] %v1859_v58  ;;  %1862 = vst [vmem:[%s14601_s28 + $0xbec] sm:$0xf] %v1861_v59  ;;  %v1863_v60 = vld [vmem:[%s14594_s27 + $0x17e0] sm:$0xf] }
 0x20f   : > { %v1865_v61 = vld [vmem:[%s14594_s27 + $0x17e8] sm:$0xf]  ;;  %v1867_v62 = vld [vmem:[%s14594_s27 + $0x17f0] sm:$0xf]  ;;  %1864 = vst [vmem:[%s14601_s28 + $0xbf0] sm:$0xf] %v1863_v60 }
 0x210   : > { %1866 = vst [vmem:[%s14601_s28 + $0xbf4] sm:$0xf] %v1865_v61  ;;  %1868 = vst [vmem:[%s14601_s28 + $0xbf8] sm:$0xf] %v1867_v62  ;;  %v1869_v63 = vld [vmem:[%s14594_s27 + $0x17f8] sm:$0xf] }
 0x211   : > { %1870 = vst [vmem:[%s14601_s28 + $0xbfc] sm:$0xf] %v1869_v63 }
 0x212 PF: > { %6531 = sbr.rel (!%p14582_p3) target bundleno = 538 (0x21a), region = 92  ;;  %s6533_s29 = sand.u32 (%p14582_p3), 1, %s14491_s14  }
 0x213   : > { %s12302_s30 = sshll.u32 (%p14582_p3), %s14495_s15, 3  ;;  %s12301_s11 = sshll.u32 (%p14582_p3), %s6533_s29, 6 }
 0x214   : > { %s6537_s19 = scalar_lea.vmem (%p14582_p3), %s17237_s6, %s12302_s30  ;;  %s6535_s22 = scalar_lea.vmem (%p14582_p3), [#allocation3], %s12301_s11 }
 0x215   : > { %v6579_v0 = vld [vmem:[%s6537_s19] sm:$0xff] (%p14582_p3)  ;;  %v6581_v1 = vld [vmem:[%s6537_s19 + $0x10] sm:$0xff] (%p14582_p3) }
 0x216   : > { %v6583_v2 = vld [vmem:[%s6537_s19 + $0x20] sm:$0xff] (%p14582_p3)  ;;  %6580 = vst [vmem:[%s6535_s22] sm:$0xff] (%p14582_p3), %v6579_v0  ;;  %6582 = vst [vmem:[%s6535_s22 + $0x8] sm:$0xff] (%p14582_p3), %v6581_v1  ;;  %v6585_v3 = vld [vmem:[%s6537_s19 + $0x30] sm:$0xff] (%p14582_p3) }
 0x217   : > { %6584 = vst [vmem:[%s6535_s22 + $0x10] sm:$0xff] (%p14582_p3), %v6583_v2  ;;  %v6587_v4 = vld [vmem:[%s6537_s19 + $0x40] sm:$0xff] (%p14582_p3)  ;;  %v6589_v5 = vld [vmem:[%s6537_s19 + $0x50] sm:$0xff] (%p14582_p3)  ;;  %6586 = vst [vmem:[%s6535_s22 + $0x18] sm:$0xff] (%p14582_p3), %v6585_v3 }
 0x218   : > { %6588 = vst [vmem:[%s6535_s22 + $0x20] sm:$0xff] (%p14582_p3), %v6587_v4  ;;  %6590 = vst [vmem:[%s6535_s22 + $0x28] sm:$0xff] (%p14582_p3), %v6589_v5  ;;  %v6591_v6 = vld [vmem:[%s6537_s19 + $0x60] sm:$0xff] (%p14582_p3)  ;;  %v6593_v7 = vld [vmem:[%s6537_s19 + $0x70] sm:$0xff] (%p14582_p3) }
 0x219   : > { %6592 = vst [vmem:[%s6535_s22 + $0x30] sm:$0xff] %v6591_v6  ;;  %6594 = vst [vmem:[%s6535_s22 + $0x38] sm:$0xff] %v6593_v7 }
 0x21a PF: > { %6600 = sbr.rel (!%p14582_p3) target bundleno = 546 (0x222), region = 130  ;;  %s6602_s23 = sand.u32 (%p14582_p3), 1, %s14491_s14  }
 0x21b   : > { %s6605_s26 = scalar_lea.vmem (%p14582_p3), %s17238_s7, %s14495_s15  ;;  %s12303_s27 = sshll.u32 (%p14582_p3), %s6602_s23, 3 }
 0x21c   : > { %v6621_v8 = vld [vmem:[%s6605_s26] sm:$0x1] (%p14582_p3)  ;;  %v6623_v9 = vld [vmem:[%s6605_s26 + $0x2] sm:$0x1] (%p14582_p3)  ;;  %v6625_v10 = vld [vmem:[%s6605_s26 + $0x4] sm:$0x1] (%p14582_p3) }
 0x21d   : > { %v6627_v11 = vld [vmem:[%s6605_s26 + $0x6] sm:$0x1] (%p14582_p3)  ;;  %s6604_s28 = scalar_lea.vmem (%p14582_p3), [#allocation4], %s12303_s27  ;;  %v6629_v12 = vld [vmem:[%s6605_s26 + $0x8] sm:$0x1] (%p14582_p3) }
 0x21e   : > { %6622 = vst [vmem:[%s6604_s28] sm:$0x1] (%p14582_p3), %v6621_v8  ;;  %6624 = vst [vmem:[%s6604_s28 + $0x1] sm:$0x1] (%p14582_p3), %v6623_v9  ;;  %v6631_v13 = vld [vmem:[%s6605_s26 + $0xa] sm:$0x1] (%p14582_p3) }
 0x21f   : > { %6626 = vst [vmem:[%s6604_s28 + $0x2] sm:$0x1] (%p14582_p3), %v6625_v10  ;;  %6628 = vst [vmem:[%s6604_s28 + $0x3] sm:$0x1] (%p14582_p3), %v6627_v11  ;;  %v6633_v14 = vld [vmem:[%s6605_s26 + $0xc] sm:$0x1] (%p14582_p3) }
 0x220   : > { %6630 = vst [vmem:[%s6604_s28 + $0x4] sm:$0x1] (%p14582_p3), %v6629_v12  ;;  %6632 = vst [vmem:[%s6604_s28 + $0x5] sm:$0x1] (%p14582_p3), %v6631_v13  ;;  %v6635_v15 = vld [vmem:[%s6605_s26 + $0xe] sm:$0x1] (%p14582_p3) }
 0x221   : > { %6634 = vst [vmem:[%s6604_s28 + $0x6] sm:$0x1] %v6633_v14  ;;  %6636 = vst [vmem:[%s6604_s28 + $0x7] sm:$0x1] %v6635_v15 }
 0x222 PF: > { %6675 = sbr.rel (!%p14582_p3) target bundleno = 554 (0x22a), region = 171  ;;  %s6677_s29 = sand.u32 (%p14582_p3), 1, %s14491_s14  }
 0x223   : > { %s6680_s12 = scalar_lea.vmem (%p14582_p3), %s17239_s8, %s14495_s15  ;;  %s12304_s18 = sshll.u32 (%p14582_p3), %s6677_s29, 3 }
 0x224   : > { %v6696_v16 = vld [vmem:[%s6680_s12] sm:$0x1] (%p14582_p3)  ;;  %v6698_v17 = vld [vmem:[%s6680_s12 + $0x2] sm:$0x1] (%p14582_p3)  ;;  %v6700_v18 = vld [vmem:[%s6680_s12 + $0x4] sm:$0x1] (%p14582_p3) }
 0x225   : > { %v6702_v19 = vld [vmem:[%s6680_s12 + $0x6] sm:$0x1] (%p14582_p3)  ;;  %s6679_s19 = scalar_lea.vmem (%p14582_p3), [#allocation5], %s12304_s18  ;;  %v6704_v20 = vld [vmem:[%s6680_s12 + $0x8] sm:$0x1] (%p14582_p3) }
 0x226   : > { %6697 = vst [vmem:[%s6679_s19] sm:$0x1] (%p14582_p3), %v6696_v16  ;;  %6699 = vst [vmem:[%s6679_s19 + $0x1] sm:$0x1] (%p14582_p3), %v6698_v17  ;;  %v6706_v21 = vld [vmem:[%s6680_s12 + $0xa] sm:$0x1] (%p14582_p3) }
 0x227   : > { %6701 = vst [vmem:[%s6679_s19 + $0x2] sm:$0x1] (%p14582_p3), %v6700_v18  ;;  %6703 = vst [vmem:[%s6679_s19 + $0x3] sm:$0x1] (%p14582_p3), %v6702_v19  ;;  %v6708_v22 = vld [vmem:[%s6680_s12 + $0xc] sm:$0x1] (%p14582_p3) }
 0x228   : > { %6705 = vst [vmem:[%s6679_s19 + $0x4] sm:$0x1] (%p14582_p3), %v6704_v20  ;;  %6707 = vst [vmem:[%s6679_s19 + $0x5] sm:$0x1] (%p14582_p3), %v6706_v21  ;;  %v6710_v23 = vld [vmem:[%s6680_s12 + $0xe] sm:$0x1] (%p14582_p3) }
 0x229   : > { %6709 = vst [vmem:[%s6679_s19 + $0x6] sm:$0x1] %v6708_v22  ;;  %6711 = vst [vmem:[%s6679_s19 + $0x7] sm:$0x1] %v6710_v23 }
 0x22a PF: > { %p12305_p5 = scmp.ge.s32.totalorder %s14495_s15, 1  ;;  %p6755_p6 = scmp.lt.s32.totalorder %s14495_s15, 3 }
 0x22c   : > { %p6756_p7 = pnand %p12305_p5, %p6755_p6 }
 0x22d   : > { %s16158_s21 = sand.u32 (!%p6756_p7), 1, %s14487_s13   ;;  %v16163_v24 = vld [vmem:[%s17231_s0] sm:$0xff] (!%p6756_p7)  ;;  %v16168_v25 = vld [vmem:[%s17231_s0 + $0x8] sm:$0xff] (!%p6756_p7)  ;;  %v14497_v28 = vmov (!%p6756_p7), 0   ;;  %v16222_v60 = vld [vmem:[%s17231_s0 + $0x10] sm:$0xff] (!%p6756_p7)  ;;  %p6833_p8 = scmp.lt.s32.totalorder (!%p6756_p7), %s12296_s16, 1 }
 0x22e   : > { %6759 = sbr.rel (%p6756_p7) target bundleno = 1390 (0x56e), region = 216  ;;  %v16173_v26 = vcombine.high (!%p6756_p7), %v16163_v24, %v16163_v24  ;;  %v16177_v27 = vcombine.high (!%p6756_p7), %v16168_v25, %v16168_v25  ;;  %13950 = vset.pattern.permute.xlu0 (!%p6756_p7), %v14497_v28  ;;  %v6843_v29 = vld [vmem:[%s17232_s1] sm:$0xff] (!%p6756_p7)  ;;  %v16229_v0 = vcombine.low (!%p6756_p7), %v16163_v24, %v16163_v24  ;;  %v16234_v2 = vcombine.low (!%p6756_p7), %v16168_v25, %v16168_v25  ;;  %s12306_s24 = sshll.u32 (!%p6756_p7), %s16158_s21, 6 }
 0x22f   : > { %s13923_s26 = smul.u32 (!%p6756_p7), 3072, %s16158_s21  ;;  %6945 = vperm.xlu0 (!%p6756_p7), %13950, %v6843_v29   ;;  %v6844_v30 = vld [vmem:[%s17233_s2] sm:$0xff] (!%p6756_p7)  ;;  %v16239_v4 = vcombine.high (!%p6756_p7), %v16222_v60, %v16222_v60  ;;  %s16654_s25 = scalar_lea.vmem (!%p6756_p7), [#allocation3], %s12306_s24 }
 0x230   : > { %7289 = vmatprep.mubr.bf16.mxu0 (!%p6756_p7), %v16173_v26  ;;  %7329 = vmatprep.mubr.bf16.mxu1 (!%p6756_p7), %v16177_v27 }
 0x231   : > { %s16188_s30 = scalar_lea.vmem (!%p6756_p7), [#allocation2], %s13923_s26  ;;  %s12307_s26 = sshll.u32 (!%p6756_p7), %s16158_s21, 3 }
 0x232   : > { %v13951_v31 = vld [vmem:[%s16188_s30 + $0x40] sm:$0xff] (!%p6756_p7)   ;;  %v13955_v35 = vld [vmem:[%s16188_s30 + $0x48] sm:$0xff] (!%p6756_p7)   ;;  %v13959_v39 = vld [vmem:[%s16188_s30 + $0x50] sm:$0xff] (!%p6756_p7)   ;;  %s16685_s13 = scalar_lea.vmem (!%p6756_p7), [#allocation4], %s12307_s26  ;;  %s16722_s27 = scalar_lea.vmem (!%p6756_p7), [#allocation5], %s12307_s26 }
 0x233   : > { %v13952_v32 = vld [vmem:[%s16188_s30 + $0xc0] sm:$0xff] (!%p6756_p7)   ;;  %13394 = vmatprep.subr.bf16.mxu0 (!%p6756_p7), %v13951_v31  ;;  %7380 = vperm.xlu0 (!%p6756_p7), %13950, %v6844_v30   ;;  %v13956_v36 = vld [vmem:[%s16188_s30 + $0xc8] sm:$0xff] (!%p6756_p7)   ;;  %v13960_v40 = vld [vmem:[%s16188_s30 + $0xd0] sm:$0xff] (!%p6756_p7)  }
 0x234   : > { %v13953_v33 = vld [vmem:[%s16188_s30] sm:$0xff] (!%p6756_p7)   ;;  %13416 = vmatprep.subr.bf16.mxu1 (!%p6756_p7), %v13952_v32  ;;  %v13957_v37 = vld [vmem:[%s16188_s30 + $0x8] sm:$0xff] (!%p6756_p7)   ;;  %v13961_v41 = vld [vmem:[%s16188_s30 + $0x10] sm:$0xff] (!%p6756_p7)  }
 0x235   : > { %v13954_v34 = vld [vmem:[%s16188_s30 + $0x80] sm:$0xff]   ;;  %13395 = vmatpush3.bf16.msra.mxu0 %v13953_v33  ;;  %v13958_v38 = vld [vmem:[%s16188_s30 + $0x88] sm:$0xff]   ;;  %v13962_v42 = vld [vmem:[%s16188_s30 + $0x90] sm:$0xff]   ;;  %s17261_s16 = smov (!%p6833_p8, %s12296_s16), 1 }
 0x236   : > { %13417 = vmatpush3.bf16.msra.mxu1 %v13954_v34  ;;  %13396 = vmatprep.subr.bf16.mxu0 %v13955_v35  ;;  %v13963_v43 = vld [vmem:[%s16188_s30 + $0x58] sm:$0xff]   ;;  %v13967_v47 = vld [vmem:[%s16188_s30 + $0x60] sm:$0xff]   ;;  %v13971_v51 = vld [vmem:[%s16188_s30 + $0x68] sm:$0xff]   ;;  %s6835_s29 = scalar_lea.vmem %s17240_s9, %s17261_s16  ;;  %s6838_s12 = scalar_lea.vmem %s17241_s10, %s17261_s16 }
 0x237   : > { %13418 = vmatprep.subr.bf16.mxu1 %v13956_v36  ;;  %v13964_v44 = vld [vmem:[%s16188_s30 + $0xd8] sm:$0xff]   ;;  %v13968_v48 = vld [vmem:[%s16188_s30 + $0xe0] sm:$0xff]   ;;  %v13972_v52 = vld [vmem:[%s16188_s30 + $0xe8] sm:$0xff]  }
 0x238   : > { %v13965_v45 = vld [vmem:[%s16188_s30 + $0x18] sm:$0xff]   ;;  %v13969_v49 = vld [vmem:[%s16188_s30 + $0x20] sm:$0xff]   ;;  %v13973_v53 = vld [vmem:[%s16188_s30 + $0x28] sm:$0xff]  }
 0x239   : > { %13397 = vmatpush3.bf16.msra.mxu0 %v13957_v37  ;;  %v13966_v46 = vld [vmem:[%s16188_s30 + $0x98] sm:$0xff]   ;;  %v13970_v50 = vld [vmem:[%s16188_s30 + $0xa0] sm:$0xff]   ;;  %v13974_v54 = vld [vmem:[%s16188_s30 + $0xa8] sm:$0xff]  }
 0x23a   : > { %13419 = vmatpush3.bf16.msra.mxu1 %v13958_v38  ;;  %13398 = vmatprep.subr.bf16.mxu0 %v13959_v39  ;;  %v13975_v55 = vld [vmem:[%s16188_s30 + $0x70] sm:$0xff]   ;;  %v13979_v59 = vld [vmem:[%s16188_s30 + $0x78] sm:$0xff]   ;;  %v13986_v1 = vld [vmem:[%s16188_s30 + $0x140] sm:$0xff]   ;;  %v16277_v38 = vcombine.low %v16222_v60, %v16222_v60 }
 0x23b   : > { %13420 = vmatprep.subr.bf16.mxu1 %v13960_v40  ;;  %v13976_v56 = vld [vmem:[%s16188_s30 + $0xf0] sm:$0xff]   ;;  %v13980_v61 = vld [vmem:[%s16188_s30 + $0xf8] sm:$0xff]   ;;  %v13987_v3 = vld [vmem:[%s16188_s30 + $0x1c0] sm:$0xff]  }
 0x23c   : > { %v13977_v57 = vld [vmem:[%s16188_s30 + $0x30] sm:$0xff]   ;;  %v13981_v62 = vld [vmem:[%s16188_s30 + $0x38] sm:$0xff]   ;;  %v13989_v5 = vld [vmem:[%s16188_s30 + $0x100] sm:$0xff]  }
 0x23d   : > { %13399 = vmatpush3.bf16.msra.mxu0 %v13961_v41  ;;  %v13978_v58 = vld [vmem:[%s16188_s30 + $0xb0] sm:$0xff]   ;;  %v13982_v63 = vld [vmem:[%s16188_s30 + $0xb8] sm:$0xff]   ;;  %v13990_v6 = vld [vmem:[%s16188_s30 + $0x180] sm:$0xff]  }
 0x23e   : > { %13421 = vmatpush3.bf16.msra.mxu1 %v13962_v42  ;;  %13400 = vmatprep.subr.bf16.mxu0 %v13963_v43  ;;  %v13991_v7 = vld [vmem:[%s16188_s30 + $0x148] sm:$0xff]   ;;  %v13995_v11 = vld [vmem:[%s16188_s30 + $0x150] sm:$0xff]   ;;  %v13999_v15 = vld [vmem:[%s16188_s30 + $0x158] sm:$0xff]  }
 0x23f   : > { %13422 = vmatprep.subr.bf16.mxu1 %v13964_v44  ;;  %v13992_v8 = vld [vmem:[%s16188_s30 + $0x1c8] sm:$0xff]   ;;  %v13996_v12 = vld [vmem:[%s16188_s30 + $0x1d0] sm:$0xff]   ;;  %v14000_v16 = vld [vmem:[%s16188_s30 + $0x1d8] sm:$0xff]  }
 0x240   : > { %v13993_v9 = vld [vmem:[%s16188_s30 + $0x108] sm:$0xff]   ;;  %v13997_v13 = vld [vmem:[%s16188_s30 + $0x110] sm:$0xff]   ;;  %v14001_v17 = vld [vmem:[%s16188_s30 + $0x118] sm:$0xff]  }
 0x241   : > { %13401 = vmatpush3.bf16.msra.mxu0 %v13965_v45  ;;  %v13994_v10 = vld [vmem:[%s16188_s30 + $0x188] sm:$0xff]   ;;  %v13998_v14 = vld [vmem:[%s16188_s30 + $0x190] sm:$0xff]   ;;  %v14002_v18 = vld [vmem:[%s16188_s30 + $0x198] sm:$0xff]  }
 0x242   : > { %13423 = vmatpush3.bf16.msra.mxu1 %v13966_v46  ;;  %13402 = vmatprep.subr.bf16.mxu0 %v13967_v47  ;;  %v14003_v19 = vld [vmem:[%s16188_s30 + $0x160] sm:$0xff]   ;;  %v14007_v23 = vld [vmem:[%s16188_s30 + $0x168] sm:$0xff]   ;;  %v14011_v30 = vld [vmem:[%s16188_s30 + $0x170] sm:$0xff]  }
 0x243   : > { %13424 = vmatprep.subr.bf16.mxu1 %v13968_v48  ;;  %v14004_v20 = vld [vmem:[%s16188_s30 + $0x1e0] sm:$0xff]   ;;  %v14008_v24 = vld [vmem:[%s16188_s30 + $0x1e8] sm:$0xff]   ;;  %v14012_v31 = vld [vmem:[%s16188_s30 + $0x1f0] sm:$0xff]  }
 0x244   : > { %v14005_v21 = vld [vmem:[%s16188_s30 + $0x120] sm:$0xff]   ;;  %v14009_v25 = vld [vmem:[%s16188_s30 + $0x128] sm:$0xff]   ;;  %v14013_v32 = vld [vmem:[%s16188_s30 + $0x130] sm:$0xff]  }
 0x245   : > { %13403 = vmatpush3.bf16.msra.mxu0 %v13969_v49  ;;  %v14006_v22 = vld [vmem:[%s16188_s30 + $0x1a0] sm:$0xff]   ;;  %v14010_v29 = vld [vmem:[%s16188_s30 + $0x1a8] sm:$0xff]   ;;  %v14014_v33 = vld [vmem:[%s16188_s30 + $0x1b0] sm:$0xff]  }
 0x246   : > { %13425 = vmatpush3.bf16.msra.mxu1 %v13970_v50  ;;  %13404 = vmatprep.subr.bf16.mxu0 %v13971_v51  ;;  %v14015_v34 = vld [vmem:[%s16188_s30 + $0x178] sm:$0xff]   ;;  %v14021_v39 = vld [vmem:[%s16188_s30 + $0x240] sm:$0xff]   ;;  %v14025_v43 = vld [vmem:[%s16188_s30 + $0x248] sm:$0xff]  }
 0x247   : > { %13426 = vmatprep.subr.bf16.mxu1 %v13972_v52  ;;  %v14016_v35 = vld [vmem:[%s16188_s30 + $0x1f8] sm:$0xff]   ;;  %v14022_v40 = vld [vmem:[%s16188_s30 + $0x2c0] sm:$0xff]   ;;  %v14026_v44 = vld [vmem:[%s16188_s30 + $0x2c8] sm:$0xff]  }
 0x248   : > { %v14017_v36 = vld [vmem:[%s16188_s30 + $0x138] sm:$0xff]   ;;  %v14023_v41 = vld [vmem:[%s16188_s30 + $0x200] sm:$0xff]   ;;  %v14027_v45 = vld [vmem:[%s16188_s30 + $0x208] sm:$0xff]  }
 0x249   : > { %13405 = vmatpush3.bf16.msra.mxu0 %v13973_v53  ;;  %v14018_v37 = vld [vmem:[%s16188_s30 + $0x1b8] sm:$0xff]   ;;  %v14024_v42 = vld [vmem:[%s16188_s30 + $0x280] sm:$0xff]   ;;  %v14028_v46 = vld [vmem:[%s16188_s30 + $0x288] sm:$0xff]  }
 0x24a   : > { %13427 = vmatpush3.bf16.msra.mxu1 %v13974_v54  ;;  %13406 = vmatprep.subr.bf16.mxu0 %v13975_v55  ;;  %v14029_v47 = vld [vmem:[%s16188_s30 + $0x250] sm:$0xff]   ;;  %v14033_v51 = vld [vmem:[%s16188_s30 + $0x258] sm:$0xff]   ;;  %v14037_v55 = vld [vmem:[%s16188_s30 + $0x260] sm:$0xff]  }
 0x24b   : > { %13428 = vmatprep.subr.bf16.mxu1 %v13976_v56  ;;  %v14030_v48 = vld [vmem:[%s16188_s30 + $0x2d0] sm:$0xff]   ;;  %v14034_v52 = vld [vmem:[%s16188_s30 + $0x2d8] sm:$0xff]   ;;  %v14038_v56 = vld [vmem:[%s16188_s30 + $0x2e0] sm:$0xff]  }
 0x24c   : > { %v14031_v49 = vld [vmem:[%s16188_s30 + $0x210] sm:$0xff]   ;;  %v14035_v53 = vld [vmem:[%s16188_s30 + $0x218] sm:$0xff]   ;;  %v14042_v60 = vld [vmem:[%s16188_s30 + $0x2e8] sm:$0xff]  }
 0x24d   : > { %13407 = vmatpush3.bf16.msra.mxu0 %v13977_v57  ;;  %v14032_v50 = vld [vmem:[%s16188_s30 + $0x290] sm:$0xff]   ;;  %v14036_v54 = vld [vmem:[%s16188_s30 + $0x298] sm:$0xff]   ;;  %v14039_v57 = vld [vmem:[%s16188_s30 + $0x220] sm:$0xff]  }
 0x24e   : > { %13429 = vmatpush3.bf16.msra.mxu1 %v13978_v58  ;;  %13408 = vmatprep.subr.bf16.mxu0 %v13979_v59  ;;  %v14040_v58 = vld [vmem:[%s16188_s30 + $0x2a0] sm:$0xff]   ;;  %v14041_v59 = vld [vmem:[%s16188_s30 + $0x268] sm:$0xff]  }
 0x24f   : > { %13430 = vmatprep.subr.bf16.mxu1 %v13980_v61  ;;  %v14043_v61 = vld [vmem:[%s16188_s30 + $0x228] sm:$0xff]  }
 0x251   : > { %13409 = vmatpush3.bf16.msra.mxu0 %v13981_v62  ;;  %v14044_v62 = vld [vmem:[%s16188_s30 + $0x2a8] sm:$0xff]  }
 0x252   : > { %13431 = vmatpush3.bf16.msra.mxu1 %v13982_v63  ;;  %13438 = vmatprep.subr.bf16.mxu0 %v13986_v1  ;;  %v14045_v63 = vld [vmem:[%s16188_s30 + $0x270] sm:$0xff]  }
 0x253   : > { %13460 = vmatprep.subr.bf16.mxu1 %v13987_v3  ;;  %v14046_v1 = vld [vmem:[%s16188_s30 + $0x2f0] sm:$0xff]  }
 0x254   : > { %7290 = vmatmul.mubr.bf16.vlgmr.msra.gmra.mrb[0].mxu0 %v16229_v0  ;;  %v14047_v3 = vld [vmem:[%s16188_s30 + $0x230] sm:$0xff]  }
 0x255   : > { %7330 = vmatmul.mubr.bf16.vlgmr.msra.gmra.mrb[0].mxu1 %v16234_v2  ;;  %13439 = vmatpush3.bf16.msra.mxu0 %v13989_v5  ;;  %v14048_v5 = vld [vmem:[%s16188_s30 + $0x2b0] sm:$0xff]  }
 0x256   : > { %13461 = vmatpush3.bf16.msra.mxu1 %v13990_v6  ;;  %7369 = vmatprep.mubr.bf16.mxu0 %v16239_v4  ;;  %v14049_v6 = vld [vmem:[%s16188_s30 + $0x278] sm:$0xff]  }
 0x257   : > { %13440 = vmatprep.subr.bf16.mxu0 %v13991_v7  ;;  %7808 = vmatprep.mubr.bf16.mxu1 %v16173_v26  ;;  %v14050_v7 = vld [vmem:[%s16188_s30 + $0x2f8] sm:$0xff]  }
 0x258   : > { %13462 = vmatprep.subr.bf16.mxu1 %v13992_v8  ;;  %v14051_v8 = vld [vmem:[%s16188_s30 + $0x238] sm:$0xff]  }
 0x259   : > { %13441 = vmatpush3.bf16.msra.mxu0 %v13993_v9  ;;  %v14052_v9 = vld [vmem:[%s16188_s30 + $0x2b8] sm:$0xff]  }
 0x25a   : > { %13463 = vmatpush3.bf16.msra.mxu1 %v13994_v10  ;;  %13442 = vmatprep.subr.bf16.mxu0 %v13995_v11  ;;  %v14053_v10 = vld [vmem:[%s16188_s30 + $0x340] sm:$0xff]  }
 0x25b   : > { %13464 = vmatprep.subr.bf16.mxu1 %v13996_v12  ;;  %v14054_v11 = vld [vmem:[%s16188_s30 + $0x3c0] sm:$0xff]  }
 0x25c   : > { %v14055_v12 = vld [vmem:[%s16188_s30 + $0x300] sm:$0xff]  }
 0x25d   : > { %13443 = vmatpush3.bf16.msra.mxu0 %v13997_v13  ;;  %v14056_v13 = vld [vmem:[%s16188_s30 + $0x380] sm:$0xff]  }
 0x25e   : > { %13465 = vmatpush3.bf16.msra.mxu1 %v13998_v14  ;;  %13444 = vmatprep.subr.bf16.mxu0 %v13999_v15  ;;  %v14057_v14 = vld [vmem:[%s16188_s30 + $0x348] sm:$0xff]  }
 0x25f   : > { %13466 = vmatprep.subr.bf16.mxu1 %v14000_v16  ;;  %v14058_v15 = vld [vmem:[%s16188_s30 + $0x3c8] sm:$0xff]  }
 0x260   : > { %v14059_v16 = vld [vmem:[%s16188_s30 + $0x308] sm:$0xff]  }
 0x261   : > { %13445 = vmatpush3.bf16.msra.mxu0 %v14001_v17  ;;  %v14060_v17 = vld [vmem:[%s16188_s30 + $0x388] sm:$0xff]  }
 0x262   : > { %13467 = vmatpush3.bf16.msra.mxu1 %v14002_v18  ;;  %13446 = vmatprep.subr.bf16.mxu0 %v14003_v19  ;;  %v14061_v18 = vld [vmem:[%s16188_s30 + $0x350] sm:$0xff]  }
 0x263   : > { %13468 = vmatprep.subr.bf16.mxu1 %v14004_v20  ;;  %v14062_v19 = vld [vmem:[%s16188_s30 + $0x3d0] sm:$0xff]  }
 0x264   : > { %v14063_v20 = vld [vmem:[%s16188_s30 + $0x310] sm:$0xff]  }
 0x265   : > { %13447 = vmatpush3.bf16.msra.mxu0 %v14005_v21  ;;  %v14064_v21 = vld [vmem:[%s16188_s30 + $0x390] sm:$0xff]  }
 0x266   : > { %13469 = vmatpush3.bf16.msra.mxu1 %v14006_v22  ;;  %13448 = vmatprep.subr.bf16.mxu0 %v14007_v23  ;;  %v14065_v22 = vld [vmem:[%s16188_s30 + $0x358] sm:$0xff]  }
 0x267   : > { %13470 = vmatprep.subr.bf16.mxu1 %v14008_v24  ;;  %v14066_v23 = vld [vmem:[%s16188_s30 + $0x3d8] sm:$0xff]  }
 0x268   : > { %v14067_v24 = vld [vmem:[%s16188_s30 + $0x318] sm:$0xff]  }
 0x269   : > { %13449 = vmatpush3.bf16.msra.mxu0 %v14009_v25  ;;  %v14068_v25 = vld [vmem:[%s16188_s30 + $0x398] sm:$0xff]  }
 0x26a   : > { %13471 = vmatpush3.bf16.msra.mxu1 %v14010_v29  ;;  %13450 = vmatprep.subr.bf16.mxu0 %v14011_v30  ;;  %v14069_v29 = vld [vmem:[%s16188_s30 + $0x360] sm:$0xff]  }
 0x26b   : > { %13472 = vmatprep.subr.bf16.mxu1 %v14012_v31  ;;  %v14070_v30 = vld [vmem:[%s16188_s30 + $0x3e0] sm:$0xff]  }
 0x26c   : > { %v14071_v31 = vld [vmem:[%s16188_s30 + $0x320] sm:$0xff]  }
 0x26d   : > { %13451 = vmatpush3.bf16.msra.mxu0 %v14013_v32  ;;  %v14072_v32 = vld [vmem:[%s16188_s30 + $0x3a0] sm:$0xff]  }
 0x26e   : > { %13473 = vmatpush3.bf16.msra.mxu1 %v14014_v33  ;;  %13452 = vmatprep.subr.bf16.mxu0 %v14015_v34  ;;  %v14073_v33 = vld [vmem:[%s16188_s30 + $0x368] sm:$0xff]  }
 0x26f   : > { %13474 = vmatprep.subr.bf16.mxu1 %v14016_v35  ;;  %v14074_v34 = vld [vmem:[%s16188_s30 + $0x3e8] sm:$0xff]  }
 0x270   : > { %v14075_v35 = vld [vmem:[%s16188_s30 + $0x328] sm:$0xff]  }
 0x271   : > { %13453 = vmatpush3.bf16.msra.mxu0 %v14017_v36  ;;  %v14076_v36 = vld [vmem:[%s16188_s30 + $0x3a8] sm:$0xff]  }
 0x272   : > { %13475 = vmatpush3.bf16.msra.mxu1 %v14018_v37  ;;  %13482 = vmatprep.subr.bf16.mxu0 %v14021_v39  ;;  %v7917_v37 = vlaneseq  ;;  %v14077_v39 = vld [vmem:[%s16188_s30 + $0x370] sm:$0xff]  }
 0x273   : > { %13504 = vmatprep.subr.bf16.mxu1 %v14022_v40  ;;  %v14078_v40 = vld [vmem:[%s16188_s30 + $0x3f0] sm:$0xff]  }
 0x274   : > { %7370 = vmatmul.mubr.bf16.vlgmr.msra.gmra.mrb[4].mxu0 %v16277_v38 }
 0x275   : > { %7809 = vmatmul.mubr.bf16.vlgmr.msra.gmra.mrb[4].mxu1 %v16229_v0  ;;  %13483 = vmatpush3.bf16.msra.mxu0 %v14023_v41  ;;  %v14079_v41 = vld [vmem:[%s16188_s30 + $0x330] sm:$0xff]  }
 0x276   : > { %13505 = vmatpush3.bf16.msra.mxu1 %v14024_v42  ;;  %7848 = vmatprep.mubr.bf16.mxu0 %v16177_v27  ;;  %v14080_v42 = vld [vmem:[%s16188_s30 + $0x3b0] sm:$0xff]  }
 0x277   : > { %13484 = vmatprep.subr.bf16.mxu0 %v14025_v43  ;;  %7888 = vmatprep.mubr.bf16.mxu1 %v16239_v4  ;;  %v16347_v43 = vshrl.u32 %v7917_v37, 7  ;;  %v14114_v37 = vld [vmem:[%s16188_s30 + $0x4f8] sm:$0xff]  }
 0x278   : > { %13506 = vmatprep.subr.bf16.mxu1 %v14026_v44  ;;  %v14081_v44 = vld [vmem:[%s16188_s30 + $0x378] sm:$0xff]  }
 0x279   : > { %13485 = vmatpush3.bf16.msra.mxu0 %v14027_v45  ;;  %v14082_v45 = vld [vmem:[%s16188_s30 + $0x3f8] sm:$0xff]  }
 0x27a   : > { %13507 = vmatpush3.bf16.msra.mxu1 %v14028_v46  ;;  %13486 = vmatprep.subr.bf16.mxu0 %v14029_v47  ;;  %v14083_v46 = vld [vmem:[%s16188_s30 + $0x338] sm:$0xff]  }
 0x27b   : > { %13508 = vmatprep.subr.bf16.mxu1 %v14030_v48  ;;  %v14084_v47 = vld [vmem:[%s16188_s30 + $0x3b8] sm:$0xff]   ;;  %v7978_v48 = vsub.s32 2, %v16347_v43 }
 0x27d   : > { %13487 = vmatpush3.bf16.msra.mxu0 %v14031_v49  ;;  %v14085_v49 = vld [vmem:[%s16188_s30 + $0x440] sm:$0xff]  }
 0x27e   : > { %13509 = vmatpush3.bf16.msra.mxu1 %v14032_v50  ;;  %13488 = vmatprep.subr.bf16.mxu0 %v14033_v51  ;;  %v16356_v50 = vsub.s32 0, %v16347_v43  ;;  %v14086_v51 = vld [vmem:[%s16188_s30 + $0x4c0] sm:$0xff]  }
 0x27f   : > { %13510 = vmatprep.subr.bf16.mxu1 %v14034_v52  ;;  %v7992_v52 = vsub.s32 4, %v16347_v43 }
 0x281   : > { %13489 = vmatpush3.bf16.msra.mxu0 %v14035_v53  ;;  %v6846_v53 = vld [vmem:[%s17235_s4] sm:$0xff] }
 0x282   : > { %13511 = vmatpush3.bf16.msra.mxu1 %v14036_v54  ;;  %13490 = vmatprep.subr.bf16.mxu0 %v14037_v55  ;;  %v14087_v54 = vld [vmem:[%s16188_s30 + $0x400] sm:$0xff]   ;;  %v7971_v55 = vsub.s32 1, %v16347_v43 }
 0x283   : > { %13512 = vmatprep.subr.bf16.mxu1 %v14038_v56  ;;  %v7979_v56 = vrot.slane %v6846_v53, %v7978_v48  ;;  %v14123_v48 = vld [vmem:[%s16188_s30 + $0x508] sm:$0xff]  }
 0x285   : > { %13491 = vmatpush3.bf16.msra.mxu0 %v14039_v57  ;;  %v14088_v57 = vld [vmem:[%s16188_s30 + $0x480] sm:$0xff]   ;;  %7981 = vbcast.lane.b32.xlu0 %v7979_v56, 256  ;;  %v14130_v56 = vld [vmem:[%s16188_s30 + $0x5d8] sm:$0xff]  }
 0x286   : > { %13513 = vmatpush3.bf16.msra.mxu1 %v14040_v58  ;;  %13492 = vmatprep.subr.bf16.mxu0 %v14041_v59  ;;  %v8006_v58 = vsub.s32 6, %v16347_v43  ;;  %v7965_v59 = vrot.slane %v6846_v53, %v16356_v50 }
 0x287   : > { %13514 = vmatprep.subr.bf16.mxu1 %v14042_v60  ;;  %v14089_v60 = vld [vmem:[%s16188_s30 + $0x448] sm:$0xff]  }
 0x288   : > { %7967 = vbcast.lane.b32.xlu1 %v7965_v59, 256  ;;  %v14133_v59 = vld [vmem:[%s16188_s30 + $0x560] sm:$0xff]  }
 0x289   : > { %13493 = vmatpush3.bf16.msra.mxu0 %v14043_v61  ;;  %v7993_v61 = vrot.slane %v6846_v53, %v7992_v52  ;;  %v14126_v52 = vld [vmem:[%s16188_s30 + $0x5d0] sm:$0xff]  }
 0x28a   : > { %13515 = vmatpush3.bf16.msra.mxu1 %v14044_v62  ;;  %13494 = vmatprep.subr.bf16.mxu0 %v14045_v63  ;;  %v14090_v62 = vld [vmem:[%s16188_s30 + $0x4c8] sm:$0xff]   ;;  %v7985_v63 = vsub.s32 3, %v16347_v43 }
 0x28b   : > { %13516 = vmatprep.subr.bf16.mxu1 %v14046_v1  ;;  %v14091_v1 = vld [vmem:[%s16188_s30 + $0x408] sm:$0xff]   ;;  %7995 = vbcast.lane.b32.xlu0 %v7993_v61, 256  ;;  %v14135_v61 = vld [vmem:[%s16188_s30 + $0x520] sm:$0xff]  }
 0x28d   : > { %13495 = vmatpush3.bf16.msra.mxu0 %v14047_v3  ;;  %v7972_v3 = vrot.slane %v6846_v53, %v7971_v55  ;;  %v14129_v55 = vld [vmem:[%s16188_s30 + $0x558] sm:$0xff]  }
 0x28e   : > { %13517 = vmatpush3.bf16.msra.mxu1 %v14048_v5  ;;  %13496 = vmatprep.subr.bf16.mxu0 %v14049_v6  ;;  %v14092_v5 = vld [vmem:[%s16188_s30 + $0x488] sm:$0xff]   ;;  %v14093_v6 = vld [vmem:[%s16188_s30 + $0x450] sm:$0xff]  }
 0x28f   : > { %13518 = vmatprep.subr.bf16.mxu1 %v14050_v7  ;;  %v8007_v7 = vrot.slane %v6846_v53, %v8006_v58  ;;  %7974 = vbcast.lane.b32.xlu1 %v7972_v3, 256  ;;  %v14132_v58 = vld [vmem:[%s16188_s30 + $0x598] sm:$0xff]   ;;  %v14139_v3 = vld [vmem:[%s16188_s30 + $0x528] sm:$0xff]  }
 0x291   : > { %13497 = vmatpush3.bf16.msra.mxu0 %v14051_v8  ;;  %v14094_v8 = vld [vmem:[%s16188_s30 + $0x4d0] sm:$0xff]   ;;  %8009 = vbcast.lane.b32.xlu0 %v8007_v7, 256 }
 0x292   : > { %13519 = vmatpush3.bf16.msra.mxu1 %v14052_v9  ;;  %13526 = vmatprep.subr.bf16.mxu0 %v14053_v10  ;;  %v7999_v9 = vsub.s32 5, %v16347_v43  ;;  %v14095_v10 = vld [vmem:[%s16188_s30 + $0x410] sm:$0xff]  }
 0x293   : > { %13548 = vmatprep.subr.bf16.mxu1 %v14054_v11  ;;  %v7986_v11 = vrot.slane %v6846_v53, %v7985_v63  ;;  %v14137_v63 = vld [vmem:[%s16188_s30 + $0x568] sm:$0xff]   ;;  %v14142_v7 = vld [vmem:[%s16188_s30 + $0x5f0] sm:$0xff]  }
 0x294   : > { %7849 = vmatmul.mubr.bf16.vlgmr.msra.gmra.mrb[8].mxu0 %v16234_v2 }
 0x295   : > { %7889 = vmatmul.mubr.bf16.vlgmr.msra.gmra.mrb[8].mxu1 %v16277_v38  ;;  %13527 = vmatpush3.bf16.msra.mxu0 %v14055_v12  ;;  %v14096_v12 = vld [vmem:[%s16188_s30 + $0x490] sm:$0xff]  }
 0x296   : > { %13549 = vmatpush3.bf16.msra.mxu1 %v14056_v13  ;;  %8534 = vmatprep.mubr.bf16.mxu0 %v16173_v26  ;;  %v14097_v13 = vld [vmem:[%s16188_s30 + $0x458] sm:$0xff]  }
 0x297   : > { %13528 = vmatprep.subr.bf16.mxu0 %v14057_v14  ;;  %8574 = vmatprep.mubr.bf16.mxu1 %v16177_v27  ;;  %v14098_v14 = vld [vmem:[%s16188_s30 + $0x4d8] sm:$0xff]  }
 0x298   : > { %13550 = vmatprep.subr.bf16.mxu1 %v14058_v15  ;;  %v6845_v15 = vld [vmem:[%s17234_s3] sm:$0xff]  ;;  %7988 = vbcast.lane.b32.xlu1 %v7986_v11, 256  ;;  %v14146_v11 = vld [vmem:[%s16188_s30 + $0x5f8] sm:$0xff]  }
 0x299   : > { %13529 = vmatpush3.bf16.msra.mxu0 %v14059_v16  ;;  %v8013_v16 = vsub.s32 7, %v16347_v43  ;;  %12139 = vperm.xlu0 %13950, %v6845_v15   ;;  %v14150_v15 = vld [vmem:[%s16188_s30 + $0x6c0] sm:$0xff]  }
 0x29a   : > { %13551 = vmatpush3.bf16.msra.mxu1 %v14060_v17  ;;  %13530 = vmatprep.subr.bf16.mxu0 %v14061_v18  ;;  %v14099_v17 = vld [vmem:[%s16188_s30 + $0x418] sm:$0xff]   ;;  %v8000_v18 = vrot.slane %v6846_v53, %v7999_v9  ;;  %v14144_v9 = vld [vmem:[%s16188_s30 + $0x5b0] sm:$0xff]  }
 0x29b   : > { %13552 = vmatprep.subr.bf16.mxu1 %v14062_v19  ;;  %v14100_v19 = vld [vmem:[%s16188_s30 + $0x498] sm:$0xff]  }
 0x29c   : > { %8002 = vbcast.lane.b32.xlu1 %v8000_v18, 256  ;;  %v14153_v18 = vld [vmem:[%s16188_s30 + $0x648] sm:$0xff]  }
 0x29d   : > { %13531 = vmatpush3.bf16.msra.mxu0 %v14063_v20  ;;  %v14101_v20 = vld [vmem:[%s16188_s30 + $0x460] sm:$0xff]  }
 0x29e   : > { %13553 = vmatpush3.bf16.msra.mxu1 %v14064_v21  ;;  %13532 = vmatprep.subr.bf16.mxu0 %v14065_v22  ;;  %v14102_v21 = vld [vmem:[%s16188_s30 + $0x4e0] sm:$0xff]  }
 0x29f   : > { %13554 = vmatprep.subr.bf16.mxu1 %v14066_v23  ;;  %v14103_v22 = vld [vmem:[%s16188_s30 + $0x420] sm:$0xff]   ;;  %v8014_v23 = vrot.slane %v6846_v53, %v8013_v16  ;;  %v14127_v53 = vld [vmem:[%s16188_s30 + $0x510] sm:$0xff]  }
 0x2a0   : > { %v14151_v16 = vld [vmem:[%s16188_s30 + $0x600] sm:$0xff]  }
 0x2a1   : > { %13533 = vmatpush3.bf16.msra.mxu0 %v14067_v24  ;;  %v14104_v24 = vld [vmem:[%s16188_s30 + $0x4a0] sm:$0xff]   ;;  %8016 = vbcast.lane.b32.xlu1 %v8014_v23, 256  ;;  %v14158_v23 = vld [vmem:[%s16188_s30 + $0x6d0] sm:$0xff]  }
 0x2a2   : > { %13555 = vmatpush3.bf16.msra.mxu1 %v14068_v25  ;;  %13534 = vmatprep.subr.bf16.mxu0 %v14069_v29  ;;  %v14105_v25 = vld [vmem:[%s16188_s30 + $0x468] sm:$0xff]  }
 0x2a3   : > { %13556 = vmatprep.subr.bf16.mxu1 %v14070_v30  ;;  %v14106_v29 = vld [vmem:[%s16188_s30 + $0x4e8] sm:$0xff]  }
 0x2a4   : > { %v14107_v30 = vld [vmem:[%s16188_s30 + $0x428] sm:$0xff]  }
 0x2a5   : > { %13535 = vmatpush3.bf16.msra.mxu0 %v14071_v31  ;;  %v14108_v31 = vld [vmem:[%s16188_s30 + $0x4a8] sm:$0xff]  }
 0x2a6   : > { %13557 = vmatpush3.bf16.msra.mxu1 %v14072_v32  ;;  %13536 = vmatprep.subr.bf16.mxu0 %v14073_v33  ;;  %v14109_v32 = vld [vmem:[%s16188_s30 + $0x470] sm:$0xff]  }
 0x2a7   : > { %13558 = vmatprep.subr.bf16.mxu1 %v14074_v34  ;;  %v14110_v33 = vld [vmem:[%s16188_s30 + $0x4f0] sm:$0xff]  }
 0x2a8   : > { %v14111_v34 = vld [vmem:[%s16188_s30 + $0x430] sm:$0xff]  }
 0x2a9   : > { %13537 = vmatpush3.bf16.msra.mxu0 %v14075_v35  ;;  %v14112_v35 = vld [vmem:[%s16188_s30 + $0x4b0] sm:$0xff]  }
 0x2aa   : > { %13559 = vmatpush3.bf16.msra.mxu1 %v14076_v36  ;;  %13538 = vmatprep.subr.bf16.mxu0 %v14077_v39  ;;  %v14113_v36 = vld [vmem:[%s16188_s30 + $0x478] sm:$0xff]  }
 0x2ab   : > { %13560 = vmatprep.subr.bf16.mxu1 %v14078_v40  ;;  %v14115_v39 = vld [vmem:[%s16188_s30 + $0x438] sm:$0xff]  }
 0x2ac   : > { %v14116_v40 = vld [vmem:[%s16188_s30 + $0x4b8] sm:$0xff]  }
 0x2ad   : > { %13539 = vmatpush3.bf16.msra.mxu0 %v14079_v41  ;;  %v14117_v41 = vld [vmem:[%s16188_s30 + $0x540] sm:$0xff]  }
 0x2ae   : > { %13561 = vmatpush3.bf16.msra.mxu1 %v14080_v42  ;;  %13540 = vmatprep.subr.bf16.mxu0 %v14081_v44  ;;  %v14118_v42 = vld [vmem:[%s16188_s30 + $0x5c0] sm:$0xff]  }
 0x2af   : > { %13562 = vmatprep.subr.bf16.mxu1 %v14082_v45  ;;  %v14119_v44 = vld [vmem:[%s16188_s30 + $0x500] sm:$0xff]  }
 0x2b0   : > { %v14120_v45 = vld [vmem:[%s16188_s30 + $0x580] sm:$0xff]  }
 0x2b1   : > { %13541 = vmatpush3.bf16.msra.mxu0 %v14083_v46  ;;  %v14121_v46 = vld [vmem:[%s16188_s30 + $0x548] sm:$0xff]  }
 0x2b2   : > { %13563 = vmatpush3.bf16.msra.mxu1 %v14084_v47  ;;  %13570 = vmatprep.subr.bf16.mxu0 %v14085_v49  ;;  %v14122_v47 = vld [vmem:[%s16188_s30 + $0x5c8] sm:$0xff]  }
 0x2b3   : > { %13592 = vmatprep.subr.bf16.mxu1 %v14086_v51  ;;  %v14124_v49 = vld [vmem:[%s16188_s30 + $0x588] sm:$0xff]   ;;  %v14125_v51 = vld [vmem:[%s16188_s30 + $0x550] sm:$0xff]  }
 0x2b4   : > { %8535 = vmatmul.mubr.bf16.vlgmr.msra.gmra.mrb[12].mxu0 %v16229_v0 }
 0x2b5   : > { %8575 = vmatmul.mubr.bf16.vlgmr.msra.gmra.mrb[12].mxu1 %v16234_v2  ;;  %13571 = vmatpush3.bf16.msra.mxu0 %v14087_v54  ;;  %v14128_v54 = vld [vmem:[%s16188_s30 + $0x590] sm:$0xff]  }
 0x2b6   : > { %8614 = vmatprep.mubr.bf16.mxu0 %v16239_v4  ;;  %13593 = vmatpush3.bf16.msra.mxu1 %v14088_v57  ;;  %v14131_v57 = vld [vmem:[%s16188_s30 + $0x518] sm:$0xff]  }
 0x2b7   : > { %9204 = vmatprep.mubr.bf16.mxu1 %v16173_v26  ;;  %13572 = vmatprep.subr.bf16.mxu0 %v14089_v60  ;;  %v14134_v60 = vld [vmem:[%s16188_s30 + $0x5e0] sm:$0xff]  }
 0x2b8   : > { %13594 = vmatprep.subr.bf16.mxu1 %v14090_v62  ;;  %v14136_v62 = vld [vmem:[%s16188_s30 + $0x5a0] sm:$0xff]  }
 0x2b9   : > { %13573 = vmatpush3.bf16.msra.mxu0 %v14091_v1  ;;  %v14138_v1 = vld [vmem:[%s16188_s30 + $0x5e8] sm:$0xff]  }
 0x2ba   : > { %13595 = vmatpush3.bf16.msra.mxu1 %v14092_v5  ;;  %13574 = vmatprep.subr.bf16.mxu0 %v14093_v6  ;;  %v14140_v5 = vld [vmem:[%s16188_s30 + $0x5a8] sm:$0xff]   ;;  %v14141_v6 = vld [vmem:[%s16188_s30 + $0x570] sm:$0xff]  }
 0x2bb   : > { %13596 = vmatprep.subr.bf16.mxu1 %v14094_v8  ;;  %v14143_v8 = vld [vmem:[%s16188_s30 + $0x530] sm:$0xff]  }
 0x2bd   : > { %13575 = vmatpush3.bf16.msra.mxu0 %v14095_v10  ;;  %v14145_v10 = vld [vmem:[%s16188_s30 + $0x578] sm:$0xff]  }
 0x2be   : > { %13597 = vmatpush3.bf16.msra.mxu1 %v14096_v12  ;;  %13576 = vmatprep.subr.bf16.mxu0 %v14097_v13  ;;  %v14147_v12 = vld [vmem:[%s16188_s30 + $0x538] sm:$0xff]  }
 0x2bf   : > { %13598 = vmatprep.subr.bf16.mxu1 %v14098_v14  ;;  %v14148_v13 = vld [vmem:[%s16188_s30 + $0x5b8] sm:$0xff]   ;;  %v14149_v14 = vld [vmem:[%s16188_s30 + $0x640] sm:$0xff]  }
 0x2c1   : > { %13577 = vmatpush3.bf16.msra.mxu0 %v14099_v17  ;;  %v14152_v17 = vld [vmem:[%s16188_s30 + $0x680] sm:$0xff]  }
 0x2c2   : > { %13599 = vmatpush3.bf16.msra.mxu1 %v14100_v19  ;;  %13578 = vmatprep.subr.bf16.mxu0 %v14101_v20  ;;  %v14154_v19 = vld [vmem:[%s16188_s30 + $0x6c8] sm:$0xff]  }
 0x2c3   : > { %13600 = vmatprep.subr.bf16.mxu1 %v14102_v21  ;;  %v14155_v20 = vld [vmem:[%s16188_s30 + $0x608] sm:$0xff]  }
 0x2c4   : > { %v14156_v21 = vld [vmem:[%s16188_s30 + $0x688] sm:$0xff]  }
 0x2c5   : > { %13579 = vmatpush3.bf16.msra.mxu0 %v14103_v22  ;;  %v14157_v22 = vld [vmem:[%s16188_s30 + $0x650] sm:$0xff]  }
 0x2c6   : > { %13601 = vmatpush3.bf16.msra.mxu1 %v14104_v24  ;;  %13580 = vmatprep.subr.bf16.mxu0 %v14105_v25  ;;  %v14159_v24 = vld [vmem:[%s16188_s30 + $0x610] sm:$0xff]  }
 0x2c7   : > { %13602 = vmatprep.subr.bf16.mxu1 %v14106_v29  ;;  %v14160_v25 = vld [vmem:[%s16188_s30 + $0x690] sm:$0xff]   ;;  %v14161_v29 = vld [vmem:[%s16188_s30 + $0x658] sm:$0xff]  }
 0x2c9   : > { %13581 = vmatpush3.bf16.msra.mxu0 %v14107_v30  ;;  %v14162_v30 = vld [vmem:[%s16188_s30 + $0x6d8] sm:$0xff]  }
 0x2ca   : > { %13603 = vmatpush3.bf16.msra.mxu1 %v14108_v31  ;;  %13582 = vmatprep.subr.bf16.mxu0 %v14109_v32  ;;  %v14163_v31 = vld [vmem:[%s16188_s30 + $0x618] sm:$0xff]  }
 0x2cb   : > { %13604 = vmatprep.subr.bf16.mxu1 %v14110_v33  ;;  %v14164_v32 = vld [vmem:[%s16188_s30 + $0x698] sm:$0xff]   ;;  %v14165_v33 = vld [vmem:[%s16188_s30 + $0x660] sm:$0xff]  }
 0x2cd   : > { %13583 = vmatpush3.bf16.msra.mxu0 %v14111_v34  ;;  %v14166_v34 = vld [vmem:[%s16188_s30 + $0x6e0] sm:$0xff]  }
 0x2ce   : > { %13605 = vmatpush3.bf16.msra.mxu1 %v14112_v35  ;;  %13584 = vmatprep.subr.bf16.mxu0 %v14113_v36  ;;  %v14167_v35 = vld [vmem:[%s16188_s30 + $0x620] sm:$0xff]  }
 0x2cf   : > { %13606 = vmatprep.subr.bf16.mxu1 %v14114_v37  ;;  %v14168_v36 = vld [vmem:[%s16188_s30 + $0x6a0] sm:$0xff]   ;;  %v14169_v37 = vld [vmem:[%s16188_s30 + $0x668] sm:$0xff]  }
 0x2d1   : > { %13585 = vmatpush3.bf16.msra.mxu0 %v14115_v39  ;;  %v14170_v39 = vld [vmem:[%s16188_s30 + $0x6e8] sm:$0xff]  }
 0x2d2   : > { %13607 = vmatpush3.bf16.msra.mxu1 %v14116_v40  ;;  %13614 = vmatprep.subr.bf16.mxu0 %v14117_v41  ;;  %v14171_v40 = vld [vmem:[%s16188_s30 + $0x628] sm:$0xff]  }
 0x2d3   : > { %13636 = vmatprep.subr.bf16.mxu1 %v14118_v42  ;;  %v14172_v41 = vld [vmem:[%s16188_s30 + $0x6a8] sm:$0xff]   ;;  %v14173_v42 = vld [vmem:[%s16188_s30 + $0x670] sm:$0xff]  }
 0x2d4   : > { %8615 = vmatmul.mubr.bf16.vlgmr.msra.gmra.mrb[16].mxu0 %v16277_v38 }
 0x2d5   : > { %9205 = vmatmul.mubr.bf16.vlgmr.msra.gmra.mrb[16].mxu1 %v16229_v0  ;;  %13615 = vmatpush3.bf16.msra.mxu0 %v14119_v44  ;;  %v14174_v44 = vld [vmem:[%s16188_s30 + $0x6f0] sm:$0xff]  }
 0x2d6   : > { %13637 = vmatpush3.bf16.msra.mxu1 %v14120_v45  ;;  %9244 = vmatprep.mubr.bf16.mxu0 %v16177_v27  ;;  %v14175_v45 = vld [vmem:[%s16188_s30 + $0x630] sm:$0xff]  }
 0x2d7   : > { %13616 = vmatprep.subr.bf16.mxu0 %v14121_v46  ;;  %9284 = vmatprep.mubr.bf16.mxu1 %v16239_v4  ;;  %v14176_v46 = vld [vmem:[%s16188_s30 + $0x6b0] sm:$0xff]  }
 0x2d8   : > { %13638 = vmatprep.subr.bf16.mxu1 %v14122_v47  ;;  %v14177_v47 = vld [vmem:[%s16188_s30 + $0x678] sm:$0xff]  }
 0x2d9   : > { %13617 = vmatpush3.bf16.msra.mxu0 %v14123_v48  ;;  %v14178_v48 = vld [vmem:[%s16188_s30 + $0x6f8] sm:$0xff]  }
 0x2da   : > { %13639 = vmatpush3.bf16.msra.mxu1 %v14124_v49  ;;  %13618 = vmatprep.subr.bf16.mxu0 %v14125_v51  ;;  %v14179_v49 = vld [vmem:[%s16188_s30 + $0x638] sm:$0xff]  }
 0x2db   : > { %13640 = vmatprep.subr.bf16.mxu1 %v14126_v52  ;;  %v14180_v51 = vld [vmem:[%s16188_s30 + $0x6b8] sm:$0xff]   ;;  %v14181_v52 = vld [vmem:[%s16188_s30 + $0x740] sm:$0xff]  }
 0x2dd   : > { %13619 = vmatpush3.bf16.msra.mxu0 %v14127_v53  ;;  %v14182_v53 = vld [vmem:[%s16188_s30 + $0x7c0] sm:$0xff]  }
 0x2de   : > { %13641 = vmatpush3.bf16.msra.mxu1 %v14128_v54  ;;  %13620 = vmatprep.subr.bf16.mxu0 %v14129_v55  ;;  %v14183_v54 = vld [vmem:[%s16188_s30 + $0x700] sm:$0xff]  }
 0x2df   : > { %13642 = vmatprep.subr.bf16.mxu1 %v14130_v56  ;;  %v14184_v55 = vld [vmem:[%s16188_s30 + $0x780] sm:$0xff]   ;;  %v14185_v56 = vld [vmem:[%s16188_s30 + $0x748] sm:$0xff]  }
 0x2e1   : > { %13621 = vmatpush3.bf16.msra.mxu0 %v14131_v57  ;;  %v14186_v57 = vld [vmem:[%s16188_s30 + $0x7c8] sm:$0xff]  }
 0x2e2   : > { %13643 = vmatpush3.bf16.msra.mxu1 %v14132_v58  ;;  %13622 = vmatprep.subr.bf16.mxu0 %v14133_v59  ;;  %v14187_v58 = vld [vmem:[%s16188_s30 + $0x708] sm:$0xff]  }
 0x2e3   : > { %13644 = vmatprep.subr.bf16.mxu1 %v14134_v60  ;;  %v14188_v59 = vld [vmem:[%s16188_s30 + $0x788] sm:$0xff]   ;;  %v14189_v60 = vld [vmem:[%s16188_s30 + $0x750] sm:$0xff]  }
 0x2e5   : > { %13623 = vmatpush3.bf16.msra.mxu0 %v14135_v61  ;;  %v14190_v61 = vld [vmem:[%s16188_s30 + $0x7d0] sm:$0xff]  }
 0x2e6   : > { %13645 = vmatpush3.bf16.msra.mxu1 %v14136_v62  ;;  %13624 = vmatprep.subr.bf16.mxu0 %v14137_v63  ;;  %v14191_v62 = vld [vmem:[%s16188_s30 + $0x710] sm:$0xff]  }
 0x2e7   : > { %13646 = vmatprep.subr.bf16.mxu1 %v14138_v1  ;;  %v14192_v63 = vld [vmem:[%s16188_s30 + $0x790] sm:$0xff]   ;;  %v14193_v1 = vld [vmem:[%s16188_s30 + $0x758] sm:$0xff]  }
 0x2e9   : > { %13625 = vmatpush3.bf16.msra.mxu0 %v14139_v3  ;;  %v14194_v3 = vld [vmem:[%s16188_s30 + $0x7d8] sm:$0xff]  }
 0x2ea   : > { %13647 = vmatpush3.bf16.msra.mxu1 %v14140_v5  ;;  %13626 = vmatprep.subr.bf16.mxu0 %v14141_v6  ;;  %v14195_v5 = vld [vmem:[%s16188_s30 + $0x718] sm:$0xff]  }
 0x2eb   : > { %13648 = vmatprep.subr.bf16.mxu1 %v14142_v7  ;;  %v14196_v6 = vld [vmem:[%s16188_s30 + $0x798] sm:$0xff]   ;;  %v14197_v7 = vld [vmem:[%s16188_s30 + $0x760] sm:$0xff]  }
 0x2ed   : > { %13627 = vmatpush3.bf16.msra.mxu0 %v14143_v8  ;;  %v14198_v8 = vld [vmem:[%s16188_s30 + $0x7e0] sm:$0xff]  }
 0x2ee   : > { %13649 = vmatpush3.bf16.msra.mxu1 %v14144_v9  ;;  %13628 = vmatprep.subr.bf16.mxu0 %v14145_v10  ;;  %v14199_v9 = vld [vmem:[%s16188_s30 + $0x720] sm:$0xff]  }
 0x2ef   : > { %13650 = vmatprep.subr.bf16.mxu1 %v14146_v11  ;;  %v14200_v10 = vld [vmem:[%s16188_s30 + $0x7a0] sm:$0xff]   ;;  %v14201_v11 = vld [vmem:[%s16188_s30 + $0x768] sm:$0xff]  }
 0x2f1   : > { %13629 = vmatpush3.bf16.msra.mxu0 %v14147_v12 }
 0x2f2   : > { %13651 = vmatpush3.bf16.msra.mxu1 %v14148_v13  ;;  %13658 = vmatprep.subr.bf16.mxu0 %v14149_v14  ;;  %v14202_v13 = vld [vmem:[%s16188_s30 + $0x7e8] sm:$0xff]   ;;  %v16504_v14 = vpop.permute.xlu0 %6945 }
 0x2f3   : > { %13680 = vmatprep.subr.bf16.mxu1 %v14150_v15 }
 0x2f4   : > { %9245 = vmatmul.mubr.bf16.vlgmr.msra.gmra.mrb[20].mxu0 %v16234_v2 }
 0x2f5   : > { %9285 = vmatmul.mubr.bf16.vlgmr.msra.gmra.mrb[20].mxu1 %v16277_v38  ;;  %13659 = vmatpush3.bf16.msra.mxu0 %v14151_v16 }
 0x2f6   : > { %13681 = vmatpush3.bf16.msra.mxu1 %v14152_v17  ;;  %9874 = vmatprep.mubr.bf16.mxu0 %v16173_v26  ;;  %v14203_v17 = vld [vmem:[%s16188_s30 + $0x728] sm:$0xff]  }
 0x2f7   : > { %13660 = vmatprep.subr.bf16.mxu0 %v14153_v18  ;;  %9914 = vmatprep.mubr.bf16.mxu1 %v16177_v27  ;;  %v14204_v18 = vld [vmem:[%s16188_s30 + $0x7a8] sm:$0xff]  }
 0x2f8   : > { %13682 = vmatprep.subr.bf16.mxu1 %v14154_v19 }
 0x2f9   : > { %13661 = vmatpush3.bf16.msra.mxu0 %v14155_v20 }
 0x2fa   : > { %13683 = vmatpush3.bf16.msra.mxu1 %v14156_v21  ;;  %13662 = vmatprep.subr.bf16.mxu0 %v14157_v22 }
 0x2fb   : > { %13684 = vmatprep.subr.bf16.mxu1 %v14158_v23 }
 0x2fd   : > { %13663 = vmatpush3.bf16.msra.mxu0 %v14159_v24  ;;  %v14205_v24 = vld [vmem:[%s16188_s30 + $0x770] sm:$0xff]  }
 0x2fe   : > { %13685 = vmatpush3.bf16.msra.mxu1 %v14160_v25  ;;  %13664 = vmatprep.subr.bf16.mxu0 %v14161_v29  ;;  %v14206_v29 = vld [vmem:[%s16188_s30 + $0x7f0] sm:$0xff]  }
 0x2ff   : > { %13686 = vmatprep.subr.bf16.mxu1 %v14162_v30 }
 0x301   : > { %13665 = vmatpush3.bf16.msra.mxu0 %v14163_v31  ;;  %v14207_v31 = vld [vmem:[%s16188_s30 + $0x730] sm:$0xff]  }
 0x302   : > { %13687 = vmatpush3.bf16.msra.mxu1 %v14164_v32  ;;  %13666 = vmatprep.subr.bf16.mxu0 %v14165_v33 }
 0x303   : > { %13688 = vmatprep.subr.bf16.mxu1 %v14166_v34  ;;  %v14208_v34 = vld [vmem:[%s16188_s30 + $0x7b0] sm:$0xff]  }
 0x305   : > { %13667 = vmatpush3.bf16.msra.mxu0 %v14167_v35  ;;  %v14209_v35 = vld [vmem:[%s16188_s30 + $0x778] sm:$0xff]  }
 0x306   : > { %13689 = vmatpush3.bf16.msra.mxu1 %v14168_v36  ;;  %13668 = vmatprep.subr.bf16.mxu0 %v14169_v37  ;;  %v14210_v36 = vld [vmem:[%s16188_s30 + $0x7f8] sm:$0xff]  }
 0x307   : > { %13690 = vmatprep.subr.bf16.mxu1 %v14170_v39  ;;  %v14211_v37 = vld [vmem:[%s16188_s30 + $0x738] sm:$0xff]  }
 0x308   : > { %v14212_v39 = vld [vmem:[%s16188_s30 + $0x7b8] sm:$0xff]  }
 0x309   : > { %13669 = vmatpush3.bf16.msra.mxu0 %v14171_v40  ;;  %v14213_v40 = vld [vmem:[%s16188_s30 + $0x840] sm:$0xff]  }
 0x30a   : > { %13691 = vmatpush3.bf16.msra.mxu1 %v14172_v41  ;;  %13670 = vmatprep.subr.bf16.mxu0 %v14173_v42  ;;  %v14214_v41 = vld [vmem:[%s16188_s30 + $0x8c0] sm:$0xff]  }
 0x30b   : > { %13692 = vmatprep.subr.bf16.mxu1 %v14174_v44  ;;  %v14215_v42 = vld [vmem:[%s16188_s30 + $0x800] sm:$0xff]  }
 0x30c   : > { %v14216_v44 = vld [vmem:[%s16188_s30 + $0x880] sm:$0xff]  }
 0x30d   : > { %13671 = vmatpush3.bf16.msra.mxu0 %v14175_v45  ;;  %v14217_v45 = vld [vmem:[%s16188_s30 + $0x848] sm:$0xff]  }
 0x30e   : > { %13693 = vmatpush3.bf16.msra.mxu1 %v14176_v46  ;;  %13672 = vmatprep.subr.bf16.mxu0 %v14177_v47  ;;  %v14218_v46 = vld [vmem:[%s16188_s30 + $0x8c8] sm:$0xff]  }
 0x30f   : > { %13694 = vmatprep.subr.bf16.mxu1 %v14178_v48  ;;  %v14219_v47 = vld [vmem:[%s16188_s30 + $0x808] sm:$0xff]  }
 0x310   : > { %v14220_v48 = vld [vmem:[%s16188_s30 + $0x888] sm:$0xff]  }
 0x311   : > { %13673 = vmatpush3.bf16.msra.mxu0 %v14179_v49  ;;  %v14221_v49 = vld [vmem:[%s16188_s30 + $0x850] sm:$0xff]  }
 0x312   : > { %13695 = vmatpush3.bf16.msra.mxu1 %v14180_v51  ;;  %13702 = vmatprep.subr.bf16.mxu0 %v14181_v52  ;;  %v14222_v51 = vld [vmem:[%s16188_s30 + $0x8d0] sm:$0xff]  }
 0x313   : > { %13724 = vmatprep.subr.bf16.mxu1 %v14182_v53  ;;  %v14223_v52 = vld [vmem:[%s16188_s30 + $0x810] sm:$0xff]  }
 0x314   : > { %9875 = vmatmul.mubr.bf16.vlgmr.msra.gmra.mrb[24].mxu0 %v16229_v0  ;;  %v14224_v53 = vld [vmem:[%s16188_s30 + $0x890] sm:$0xff]  }
 0x315   : > { %9915 = vmatmul.mubr.bf16.vlgmr.msra.gmra.mrb[24].mxu1 %v16234_v2  ;;  %13703 = vmatpush3.bf16.msra.mxu0 %v14183_v54  ;;  %v14225_v54 = vld [vmem:[%s16188_s30 + $0x858] sm:$0xff]  }
 0x316   : > { %13725 = vmatpush3.bf16.msra.mxu1 %v14184_v55  ;;  %9954 = vmatprep.mubr.bf16.mxu0 %v16239_v4  ;;  %v14226_v55 = vld [vmem:[%s16188_s30 + $0x8d8] sm:$0xff]  }
 0x317   : > { %13704 = vmatprep.subr.bf16.mxu0 %v14185_v56  ;;  %10544 = vmatprep.mubr.bf16.mxu1 %v16173_v26  ;;  %v16537_v56 = vpop.permute.xlu1 %7967 }
 0x318   : > { %13726 = vmatprep.subr.bf16.mxu1 %v14186_v57  ;;  %v14227_v57 = vld [vmem:[%s16188_s30 + $0x818] sm:$0xff]  }
 0x319   : > { %13705 = vmatpush3.bf16.msra.mxu0 %v14187_v58  ;;  %v14498_v58 = vmov 1966171168  }
 0x31a   : > { %13727 = vmatpush3.bf16.msra.mxu1 %v14188_v59  ;;  %13706 = vmatprep.subr.bf16.mxu0 %v14189_v60  ;;  %v7915_v59 = vunpack.c.l.s4 %v14498_v58  ;;  %v14228_v60 = vld [vmem:[%s16188_s30 + $0x898] sm:$0xff]   ;;  %v14246_v58 = vld [vmem:[%s16188_s30 + $0x9c0] sm:$0xff]  }
 0x31b   : > { %13728 = vmatprep.subr.bf16.mxu1 %v14190_v61  ;;  %v14229_v61 = vld [vmem:[%s16188_s30 + $0x860] sm:$0xff]  }
 0x31d   : > { %13707 = vmatpush3.bf16.msra.mxu0 %v14191_v62  ;;  %v7381_v62 = vpop.permute.xlu0 %7380 }
 0x31e   : > { %13729 = vmatpush3.bf16.msra.mxu1 %v14192_v63  ;;  %13708 = vmatprep.subr.bf16.mxu0 %v14193_v1  ;;  %v14230_v63 = vld [vmem:[%s16188_s30 + $0x8e0] sm:$0xff]   ;;  %v7916_v1 = vunpack.c.0.s8 %v7915_v59 }
 0x31f   : > { %13730 = vmatprep.subr.bf16.mxu1 %v14194_v3  ;;  %v14231_v3 = vld [vmem:[%s16188_s30 + $0x820] sm:$0xff]  }
 0x321   : > { %13709 = vmatpush3.bf16.msra.mxu0 %v14195_v5 }
 0x322   : > { %13731 = vmatpush3.bf16.msra.mxu1 %v14196_v6  ;;  %13710 = vmatprep.subr.bf16.mxu0 %v14197_v7  ;;  %v16544_v6 = vpop.permute.xlu1 %7974  ;;  %v14232_v7 = vld [vmem:[%s16188_s30 + $0x8a0] sm:$0xff]  }
 0x323   : > { %13732 = vmatprep.subr.bf16.mxu1 %v14198_v8 }
 0x325   : > { %13711 = vmatpush3.bf16.msra.mxu0 %v14199_v9 }
 0x326   : > { %13733 = vmatpush3.bf16.msra.mxu1 %v14200_v10  ;;  %13712 = vmatprep.subr.bf16.mxu0 %v14201_v11  ;;  %v14233_v10 = vld [vmem:[%s16188_s30 + $0x868] sm:$0xff]  }
 0x327   : > { %v13410_v12 = vpop.f32.mrb[0].mxu0  ;;  %13734 = vmatprep.subr.bf16.mxu1 %v14202_v13  ;;  %v14234_v13 = vld [vmem:[%s16188_s30 + $0x8e8] sm:$0xff]  }
 0x328   : > { %v13411_v15 = vpop.f32.mrb[1].mxu0  ;;  %v13432_v16 = vpop.f32.mrb[0].mxu1 }
 0x329   : > { %v13412_v19 = vadd.f32 %v13411_v15, %v13410_v12  ;;  %v13413_v20 = vpop.f32.mrb[2].mxu0  ;;  %v13433_v21 = vpop.f32.mrb[1].mxu1  ;;  %13713 = vmatpush3.bf16.msra.mxu0 %v14203_v17  ;;  %v16552_v17 = vsub.s32 %v7916_v1, %v16347_v43 }
 0x32a   : > { %v13414_v22 = vpop.f32.mrb[3].mxu0  ;;  %v13434_v23 = vadd.f32 %v13433_v21, %v13432_v16  ;;  %13735 = vmatpush3.bf16.msra.mxu1 %v14204_v18  ;;  %v13435_v30 = vpop.f32.mrb[2].mxu1  ;;  %13714 = vmatprep.subr.bf16.mxu0 %v14205_v24 }
 0x32b   : > { %v7292_v25 = vadd.f32 %v13412_v19, %v16504_v14  ;;  %v13436_v32 = vpop.f32.mrb[3].mxu1  ;;  %13736 = vmatprep.subr.bf16.mxu1 %v14206_v29  ;;  %v14235_v19 = vld [vmem:[%s16188_s30 + $0x828] sm:$0xff]   ;;  %v16556_v21 = vpop.permute.xlu0 %7981  ;;  %v14238_v30 = vld [vmem:[%s16188_s30 + $0x8f0] sm:$0xff]  }
 0x32c   : > { %v14236_v22 = vld [vmem:[%s16188_s30 + $0x8a8] sm:$0xff]   ;;  %v16562_v29 = vpop.permute.xlu1 %7988 }
 0x32d   : > { %v16512_v33 = vadd.f32 %v13434_v23, %v7292_v25  ;;  %13715 = vmatpush3.bf16.msra.mxu0 %v14207_v31  ;;  %v14237_v25 = vld [vmem:[%s16188_s30 + $0x870] sm:$0xff]  }
 0x32e   : > { %13737 = vmatpush3.bf16.msra.mxu1 %v14208_v34  ;;  %13716 = vmatprep.subr.bf16.mxu0 %v14209_v35  ;;  %v14240_v34 = vld [vmem:[%s16188_s30 + $0x8b0] sm:$0xff]  }
 0x32f   : > { %13738 = vmatprep.subr.bf16.mxu1 %v14210_v36 }
 0x331   : > { %13717 = vmatpush3.bf16.msra.mxu0 %v14211_v37 }
 0x332   : > { %13739 = vmatpush3.bf16.msra.mxu1 %v14212_v39  ;;  %13746 = vmatprep.subr.bf16.mxu0 %v14213_v40  ;;  %v14241_v39 = vld [vmem:[%s16188_s30 + $0x878] sm:$0xff]  }
 0x333   : > { %13768 = vmatprep.subr.bf16.mxu1 %v14214_v41  ;;  %v14242_v40 = vld [vmem:[%s16188_s30 + $0x8f8] sm:$0xff]   ;;  %v16575_v41 = vpop.permute.xlu0 %7995 }
 0x334   : > { %9955 = vmatmul.mubr.bf16.vlgmr.msra.gmra.mrb[28].mxu0 %v16277_v38 }
 0x335   : > { %10545 = vmatmul.mubr.bf16.vlgmr.msra.gmra.mrb[28].mxu1 %v16229_v0  ;;  %13747 = vmatpush3.bf16.msra.mxu0 %v14215_v42 }
 0x336   : > { %13769 = vmatpush3.bf16.msra.mxu1 %v14216_v44  ;;  %10584 = vmatprep.mubr.bf16.mxu0 %v16177_v27 }
 0x337   : > { %13748 = vmatprep.subr.bf16.mxu0 %v14217_v45  ;;  %10624 = vmatprep.mubr.bf16.mxu1 %v16239_v4 }
 0x338   : > { %13770 = vmatprep.subr.bf16.mxu1 %v14218_v46  ;;  %v14243_v46 = vld [vmem:[%s16188_s30 + $0x838] sm:$0xff]  }
 0x339   : > { %13749 = vmatpush3.bf16.msra.mxu0 %v14219_v47  ;;  %v16580_v47 = vpop.permute.xlu1 %8002 }
 0x33a   : > { %13771 = vmatpush3.bf16.msra.mxu1 %v14220_v48  ;;  %13750 = vmatprep.subr.bf16.mxu0 %v14221_v49  ;;  %v14244_v49 = vld [vmem:[%s16188_s30 + $0x8b8] sm:$0xff]  }
 0x33b   : > { %13772 = vmatprep.subr.bf16.mxu1 %v14222_v51 }
 0x33d   : > { %13751 = vmatpush3.bf16.msra.mxu0 %v14223_v52 }
 0x33e   : > { %13773 = vmatpush3.bf16.msra.mxu1 %v14224_v53  ;;  %13752 = vmatprep.subr.bf16.mxu0 %v14225_v54  ;;  %v14245_v54 = vld [vmem:[%s16188_s30 + $0x940] sm:$0xff]  }
 0x33f   : > { %13774 = vmatprep.subr.bf16.mxu1 %v14226_v55 }
 0x341   : > { %13753 = vmatpush3.bf16.msra.mxu0 %v14227_v57 }
 0x342   : > { %13775 = vmatpush3.bf16.msra.mxu1 %v14228_v60  ;;  %13754 = vmatprep.subr.bf16.mxu0 %v14229_v61  ;;  %v14247_v61 = vld [vmem:[%s16188_s30 + $0x900] sm:$0xff]  }
 0x343   : > { %13776 = vmatprep.subr.bf16.mxu1 %v14230_v63 }
 0x345   : > { %13755 = vmatpush3.bf16.msra.mxu0 %v14231_v3  ;;  %v14248_v3 = vld [vmem:[%s16188_s30 + $0x980] sm:$0xff]  }
 0x346   : > { %13777 = vmatpush3.bf16.msra.mxu1 %v14232_v7  ;;  %13756 = vmatprep.subr.bf16.mxu0 %v14233_v10  ;;  %v16596_v7 = vpop.permute.xlu0 %8009  ;;  %v14249_v10 = vld [vmem:[%s16188_s30 + $0x948] sm:$0xff]  }
 0x347   : > { %v13454_v5 = vpop.f32.mrb[4].mxu0  ;;  %13778 = vmatprep.subr.bf16.mxu1 %v14234_v13  ;;  %v14250_v13 = vld [vmem:[%s16188_s30 + $0x9c8] sm:$0xff]  }
 0x348   : > { %v13476_v8 = vpop.f32.mrb[4].mxu1  ;;  %v13455_v9 = vpop.f32.mrb[5].mxu0 }
 0x349   : > { %v13456_v11 = vadd.f32 %v13455_v9, %v13454_v5  ;;  %v13477_v12 = vpop.f32.mrb[5].mxu1  ;;  %v13457_v16 = vpop.f32.mrb[6].mxu0  ;;  %13757 = vmatpush3.bf16.msra.mxu0 %v14235_v19 }
 0x34a   : > { %v16549_v15 = vadd.f32 %v13477_v12, %v13476_v8  ;;  %v13458_v20 = vpop.f32.mrb[7].mxu0  ;;  %v13479_v23 = vpop.f32.mrb[6].mxu1  ;;  %13779 = vmatpush3.bf16.msra.mxu1 %v14236_v22  ;;  %13758 = vmatprep.subr.bf16.mxu0 %v14237_v25  ;;  %v14252_v25 = vld [vmem:[%s16188_s30 + $0x988] sm:$0xff]  }
 0x34b   : > { %v7372_v18 = vadd.f32 %v13456_v11, %v16512_v33  ;;  %v13480_v43 = vpop.f32.mrb[7].mxu1  ;;  %v14239_v33 = vld [vmem:[%s16188_s30 + $0x830] sm:$0xff]   ;;  %13780 = vmatprep.subr.bf16.mxu1 %v14238_v30  ;;  %v16606_v11 = vpop.permute.xlu1 %8016  ;;  %v14251_v20 = vld [vmem:[%s16188_s30 + $0x908] sm:$0xff]  }
 0x34d   : > { %v16559_v24 = vadd.f32 %v7381_v62, %v7372_v18  ;;  %13759 = vmatpush3.bf16.msra.mxu0 %v14239_v33 }
 0x34e   : > { %13781 = vmatpush3.bf16.msra.mxu1 %v14240_v34  ;;  %13760 = vmatprep.subr.bf16.mxu0 %v14241_v39 }
 0x34f   : > { %v7913_v31 = vcombine.high %v16559_v24, %v16559_v24  ;;  %v7920_v32 = vrot.slane %v16559_v24, %v16552_v17  ;;  %13782 = vmatprep.subr.bf16.mxu1 %v14242_v40  ;;  %v14256_v40 = vld [vmem:[%s16188_s30 + $0x990] sm:$0xff]  }
 0x351   : > { %v7927_v35 = vrot.slane %v7913_v31, %v16552_v17  ;;  %v7928_v36 = vcombine.high %v7920_v32, %v7920_v32  ;;  %v7936_v37 = vrot.slane %v7920_v32, %v16552_v17  ;;  %13761 = vmatpush3.bf16.msra.mxu0 %v14243_v46  ;;  %v14253_v31 = vld [vmem:[%s16188_s30 + $0x950] sm:$0xff]   ;;  %v14259_v46 = vld [vmem:[%s16188_s30 + $0x918] sm:$0xff]  }
 0x352   : > { %13783 = vmatpush3.bf16.msra.mxu1 %v14244_v49  ;;  %13790 = vmatprep.subr.bf16.mxu0 %v14245_v54  ;;  %v7811_v54 = vadd.f32 %v16549_v15, %v16504_v14  ;;  %v12507_v15 = vld [vmem:[%s16654_s25 + $0x8] sm:$0xff] }
 0x353   : > { %v7929_v42 = vcombine.high %v7927_v35, %v7927_v35  ;;  %v7943_v44 = vrot.slane %v7927_v35, %v16552_v17  ;;  %v7950_v45 = vrot.slane %v7928_v36, %v16552_v17  ;;  %v7958_v48 = vcombine.high %v7936_v37, %v7936_v37  ;;  %13812 = vmatprep.subr.bf16.mxu1 %v14246_v58  ;;  %v14254_v35 = vld [vmem:[%s16188_s30 + $0x9d0] sm:$0xff]  }
 0x354   : > { %v8021_v59 = vrot.slane %v7936_v37, %v16356_v50  ;;  %10585 = vmatmul.mubr.bf16.vlgmr.msra.gmra.mrb[32].mxu0 %v16234_v2  ;;  %v14255_v36 = vld [vmem:[%s16188_s30 + $0x910] sm:$0xff]  }
 0x355   : > { %v7957_v51 = vrot.slane %v7929_v42, %v16552_v17  ;;  %v7959_v52 = vcombine.high %v7943_v44, %v7943_v44  ;;  %v7960_v53 = vcombine.high %v7950_v45, %v7950_v45  ;;  %v8037_v55 = vrot.slane %v7943_v44, %v16356_v50  ;;  %10625 = vmatmul.mubr.bf16.vlgmr.msra.gmra.mrb[32].mxu1 %v16277_v38  ;;  %v14257_v42 = vld [vmem:[%s16188_s30 + $0x958] sm:$0xff]  }
 0x356   : > { %v8025_v57 = vrot.slane %v7950_v45, %v16356_v50  ;;  %v8029_v63 = vrot.slane %v7958_v48, %v16356_v50  ;;  %13791 = vmatpush3.bf16.msra.mxu0 %v14247_v61  ;;  %13813 = vmatpush3.bf16.msra.mxu1 %v14248_v3  ;;  %v16616_v19 = vadd.f32 %v8021_v59, %v16537_v56  ;;  %v14258_v45 = vld [vmem:[%s16188_s30 + $0x9d8] sm:$0xff]   ;;  %v14262_v61 = vld [vmem:[%s16188_s30 + $0x9e0] sm:$0xff]  }
 0x357   : > { %v8045_v60 = vrot.slane %v7959_v52, %v16356_v50  ;;  %v8041_v62 = vrot.slane %v7957_v51, %v16356_v50  ;;  %v8033_v1 = vrot.slane %v7960_v53, %v16356_v50  ;;  %v7961_v5 = vcombine.high %v7957_v51, %v7957_v51  ;;  %11214 = vmatprep.mubr.bf16.mxu0 %v16173_v26  ;;  %v14260_v52 = vld [vmem:[%s16188_s30 + $0x998] sm:$0xff]  }
 0x358   : > { %v16599_v8 = vadd.f32 %v8037_v55, %v16575_v41  ;;  %v16609_v12 = vadd.f32 %v8025_v57, %v16544_v6  ;;  %13792 = vmatprep.subr.bf16.mxu0 %v14249_v10  ;;  %11254 = vmatprep.mubr.bf16.mxu1 %v16177_v27  ;;  %v8060_v43 = vadd.f32 %v8029_v63, %v16556_v21  ;;  %v14261_v55 = vld [vmem:[%s16188_s30 + $0x960] sm:$0xff]  }
 0x359   : > { %v16603_v9 = vadd.f32 %v8041_v62, %v16580_v47  ;;  %v8049_v16 = vrot.slane %v7961_v5, %v16356_v50  ;;  %v8064_v18 = vadd.f32 %v8045_v60, %v16596_v7  ;;  %v16621_v22 = vadd.f32 %v8033_v1, %v16562_v29  ;;  %13814 = vmatprep.subr.bf16.mxu1 %v14250_v13  ;;  %v14263_v1 = vld [vmem:[%s16188_s30 + $0x920] sm:$0xff]  }
 0x35a   : > { %13793 = vmatpush3.bf16.msra.mxu0 %v14251_v20  ;;  %v8066_v32 = vmax.f32 %v16616_v19, %v16599_v8  ;;  %13815 = vmatpush3.bf16.msra.mxu1 %v14252_v25  ;;  %v14264_v10 = vld [vmem:[%s16188_s30 + $0x9a0] sm:$0xff]  }
 0x35b   : > { %v8067_v23 = vmax.f32 %v16609_v12, %v16603_v9  ;;  %v16628_v30 = vadd.f32 %v8049_v16, %v16606_v11  ;;  %v8068_v33 = vmax.f32 %v8060_v43, %v8064_v18  ;;  %13794 = vmatprep.subr.bf16.mxu0 %v14253_v31  ;;  %13816 = vmatprep.subr.bf16.mxu1 %v14254_v35 }
 0x35d   : > { %v8069_v34 = vmax.f32 %v16621_v22, %v16628_v30  ;;  %v8070_v37 = vmax.f32 %v8066_v32, %v8067_v23 }
 0x35e   : > { %13795 = vmatpush3.bf16.msra.mxu0 %v14255_v36  ;;  %13817 = vmatpush3.bf16.msra.mxu1 %v14256_v40  ;;  %v14268_v36 = vld [vmem:[%s16188_s30 + $0x9a8] sm:$0xff]  }
 0x35f   : > { %v8071_v39 = vmax.f32 %v8068_v33, %v8069_v34  ;;  %13796 = vmatprep.subr.bf16.mxu0 %v14257_v42  ;;  %13818 = vmatprep.subr.bf16.mxu1 %v14258_v45  ;;  %v14267_v34 = vld [vmem:[%s16188_s30 + $0x928] sm:$0xff]  }
 0x361   : > { %v16640_v44 = vmax.f32 %v8070_v37, %v8071_v39  ;;  %v14269_v39 = vld [vmem:[%s16188_s30 + $0x970] sm:$0xff]  }
 0x362   : > { %13797 = vmatpush3.bf16.msra.mxu0 %v14259_v46  ;;  %13819 = vmatpush3.bf16.msra.mxu1 %v14260_v52  ;;  %v14270_v46 = vld [vmem:[%s16188_s30 + $0x9f0] sm:$0xff]  }
 0x363   : > { %v8075_v49 = vsub.f32 %v8060_v43, %v16640_v44  ;;  %v8079_v51 = vsub.f32 %v8064_v18, %v16640_v44  ;;  %13798 = vmatprep.subr.bf16.mxu0 %v14261_v55  ;;  %13820 = vmatprep.subr.bf16.mxu1 %v14262_v61  ;;  %v8080_v16 = vsub.f32 %v16628_v30, %v16640_v44  ;;  %v14265_v18 = vld [vmem:[%s16188_s30 + $0x968] sm:$0xff]   ;;  %v14274_v55 = vld [vmem:[%s16188_s30 + $0x9f8] sm:$0xff]  }
 0x364   : > { %v8073_v23 = vsub.f32 %v16616_v19, %v16640_v44  ;;  %v14266_v43 = vld [vmem:[%s16188_s30 + $0x9e8] sm:$0xff]   ;;  %v8074_v31 = vsub.f32 %v16609_v12, %v16640_v44  ;;  %v8076_v32 = vsub.f32 %v16621_v22, %v16640_v44  ;;  %v8077_v30 = vsub.f32 %v16599_v8, %v16640_v44 }
 0x365   : > { %v8085_v59 = vmul.f32 1.442695, %v8075_v49  ;;  %v16650_v60 = vmul.f32 1.442695, %v8079_v51  ;;  %v8078_v19 = vsub.f32 %v16603_v9, %v16640_v44  ;;  %v8095_v37 = vmul.f32 1.442695, %v8080_v16 }
 0x366   : > { %13799 = vmatpush3.bf16.msra.mxu0 %v14263_v1  ;;  %13821 = vmatpush3.bf16.msra.mxu1 %v14264_v10  ;;  %v8081_v22 = vmul.f32 1.442695, %v8073_v23  ;;  %v8083_v8 = vmul.f32 1.442695, %v8074_v31  ;;  %v8087_v40 = vmul.f32 1.442695, %v8076_v32 }
 0x367   : > { %v13498_v48 = vpop.f32.mrb[8].mxu0  ;;  %13800 = vmatprep.subr.bf16.mxu0 %v14265_v18  ;;  %13822 = vmatprep.subr.bf16.mxu1 %v14266_v43  ;;  %v8089_v42 = vmul.f32 1.442695, %v8077_v30  ;;  %v8091_v9 = vmul.f32 1.442695, %v8078_v19  ;;  %v14271_v49 = vld [vmem:[%s16188_s30 + $0x930] sm:$0xff]  }
 0x368   : > { %v13499_v53 = vpop.f32.mrb[9].mxu0  ;;  %v13520_v58 = vpop.f32.mrb[8].mxu1  ;;  %14341 = vpow2.f32 %v8081_v22  ;;  %v14272_v51 = vld [vmem:[%s16188_s30 + $0x9b0] sm:$0xff]   ;;  %v14280_v10 = vld [vmem:[%s16188_s30 + $0xa80] sm:$0xff]   ;;  %v14281_v16 = vld [vmem:[%s16188_s30 + $0xa48] sm:$0xff]  }
 0x369   : > { %v13500_v57 = vadd.f32 %v13499_v53, %v13498_v48  ;;  %v13521_v63 = vpop.f32.mrb[9].mxu1  ;;  %v13501_v5 = vpop.f32.mrb[10].mxu0  ;;  %14343 = vpow2.f32 %v8083_v8  ;;  %v14273_v53 = vld [vmem:[%s16188_s30 + $0x978] sm:$0xff]   ;;  %v14282_v23 = vld [vmem:[%s16188_s30 + $0xac8] sm:$0xff]   ;;  %v14285_v30 = vld [vmem:[%s16188_s30 + $0xa50] sm:$0xff]  }
 0x36a   : > { %v13522_v3 = vadd.f32 %v13521_v63, %v13520_v58  ;;  %v13502_v13 = vpop.f32.mrb[11].mxu0  ;;  %v13523_v25 = vpop.f32.mrb[10].mxu1  ;;  %13801 = vmatpush3.bf16.msra.mxu0 %v14267_v34  ;;  %13823 = vmatpush3.bf16.msra.mxu1 %v14268_v36  ;;  %14345 = vpow2.f32 %v8085_v59  ;;  %v14275_v58 = vld [vmem:[%s16188_s30 + $0x938] sm:$0xff]   ;;  %v14278_v63 = vld [vmem:[%s16188_s30 + $0xac0] sm:$0xff]   ;;  %v14284_v31 = vld [vmem:[%s16188_s30 + $0xa88] sm:$0xff]  }
 0x36b   : > { %v7851_v62 = vadd.f32 %v13500_v57, %v7811_v54  ;;  %v13524_v33 = vpop.f32.mrb[11].mxu1  ;;  %13802 = vmatprep.subr.bf16.mxu0 %v14269_v39  ;;  %13824 = vmatprep.subr.bf16.mxu1 %v14270_v46  ;;  %v12509_v54 = vld [vmem:[%s16685_s13 + $0x1] sm:$0x1]  ;;  %14347 = vpow2.f32 %v8087_v40  ;;  %v14276_v59 = vld [vmem:[%s16188_s30 + $0x9b8] sm:$0xff]   ;;  %v14286_v34 = vld [vmem:[%s16188_s30 + $0xad0] sm:$0xff]  }
 0x36c   : > { %14349 = vpow2.f32 %v8089_v42  ;;  %v14279_v5 = vld [vmem:[%s16188_s30 + $0xa00] sm:$0xff]   ;;  %v14283_v25 = vld [vmem:[%s16188_s30 + $0xa08] sm:$0xff]   ;;  %v14287_v19 = vld [vmem:[%s16188_s30 + $0xa10] sm:$0xff]  }
 0x36d   : > { %v16661_v20 = vadd.f32 %v13522_v3, %v7851_v62  ;;  %v14277_v62 = vld [vmem:[%s16188_s30 + $0xa40] sm:$0xff]   ;;  %14351 = vpow2.f32 %v8091_v9  ;;  %v14289_v22 = vld [vmem:[%s16188_s30 + $0xa58] sm:$0xff]  }
 0x36e   : > { %13803 = vmatpush3.bf16.msra.mxu0 %v14271_v49  ;;  %13825 = vmatpush3.bf16.msra.mxu1 %v14272_v51  ;;  %14353 = vpow2.f32 %v16650_v60  ;;  %v14290_v40 = vld [vmem:[%s16188_s30 + $0xad8] sm:$0xff]  }
 0x36f   : > { %v7902_v35 = vmul.f32 %v12507_v15, %v16661_v20  ;;  %13804 = vmatprep.subr.bf16.mxu0 %v14273_v53  ;;  %13826 = vmatprep.subr.bf16.mxu1 %v14274_v55  ;;  %14355 = vpow2.f32 %v8095_v37  ;;  %v14288_v37 = vld [vmem:[%s16188_s30 + $0xa90] sm:$0xff]   ;;  %v14291_v46 = vld [vmem:[%s16188_s30 + $0xa18] sm:$0xff]  }
 0x370   : > { %v14292_v51 = vld [vmem:[%s16188_s30 + $0xa98] sm:$0xff]  }
 0x371   : > { %v7903_v12 = vrot.slane %v7902_v35, 4 }
 0x372   : > { %13805 = vmatpush3.bf16.msra.mxu0 %v14275_v58  ;;  %13827 = vmatpush3.bf16.msra.mxu1 %v14276_v59  ;;  %v14342_v1 = vpop.eup %14341  ;;  %v14294_v59 = vld [vmem:[%s16188_s30 + $0xae0] sm:$0xff]  }
 0x373   : > { %v7904_v45 = vadd.f32 %v7903_v12, %v7902_v35  ;;  %13834 = vmatprep.subr.bf16.mxu0 %v14277_v62  ;;  %v14344_v15 = vpop.eup %14343  ;;  %13856 = vmatprep.subr.bf16.mxu1 %v14278_v63  ;;  %v14295_v63 = vld [vmem:[%s16188_s30 + $0xa20] sm:$0xff]  }
 0x374   : > { %v8097_v13 = vadd.f32 %v14344_v15, %v14342_v1  ;;  %v14346_v18 = vpop.eup %14345  ;;  %v14296_v15 = vld [vmem:[%s16188_s30 + $0xaa0] sm:$0xff]  }
 0x375   : > { %v7905_v48 = vrot.slane %v7904_v45, 2  ;;  %11215 = vmatmul.mubr.bf16.vlgmr.msra.gmra.mrb[36].mxu0 %v16229_v0  ;;  %11255 = vmatmul.mubr.bf16.vlgmr.msra.gmra.mrb[36].mxu1 %v16234_v2  ;;  %v14348_v43 = vpop.eup %14347 }
 0x376   : > { %13835 = vmatpush3.bf16.msra.mxu0 %v14279_v5  ;;  %13857 = vmatpush3.bf16.msra.mxu1 %v14280_v10  ;;  %v8098_v60 = vadd.f32 %v14346_v18, %v8097_v13  ;;  %v14350_v33 = vpop.eup %14349  ;;  %v16725_v5 = vld [vmem:[%s16722_s27 + $0x1] sm:$0x1]  ;;  %v14297_v10 = vld [vmem:[%s16188_s30 + $0xa68] sm:$0xff]  }
 0x377   : > { %v7906_v52 = vadd.f32 %v7905_v48, %v7904_v45  ;;  %11294 = vmatprep.mubr.bf16.mxu0 %v16239_v4  ;;  %13836 = vmatprep.subr.bf16.mxu0 %v14281_v16  ;;  %v14352_v36 = vpop.eup %14351  ;;  %v14298_v13 = vld [vmem:[%s16188_s30 + $0xae8] sm:$0xff]   ;;  %vm8108_vm0 = vcmp.gt.f32.partialorder %v16725_v5, 0.0 }
 0x378   : > { %11884 = vmatprep.mubr.bf16.mxu1 %v16173_v26  ;;  %13858 = vmatprep.subr.bf16.mxu1 %v14282_v23  ;;  %v8099_v32 = vadd.f32 %v14348_v43, %v8098_v60  ;;  %v14354_v8 = vpop.eup %14353  ;;  %v14299_v16 = vld [vmem:[%s16188_s30 + $0xa28] sm:$0xff]   ;;  %v14301_v23 = vld [vmem:[%s16188_s30 + $0xa70] sm:$0xff]   ;;  %v8109_v43 = vsel %vm8108_vm0, 1, %v14497_v28 }
 0x379   : > { %v7907_v57 = vrot.slane %v7906_v52, 1  ;;  %v14356_v49 = vpop.eup %14355  ;;  %v14300_v18 = vld [vmem:[%s16188_s30 + $0xaa8] sm:$0xff]   ;;  %v14302_v60 = vld [vmem:[%s16188_s30 + $0xaf0] sm:$0xff]  }
 0x37a   : > { %13837 = vmatpush3.bf16.msra.mxu0 %v14283_v25  ;;  %13859 = vmatpush3.bf16.msra.mxu1 %v14284_v31  ;;  %v8100_v35 = vadd.f32 %v14350_v33, %v8099_v32  ;;  %v14303_v25 = vld [vmem:[%s16188_s30 + $0xa30] sm:$0xff]   ;;  %v14305_v33 = vld [vmem:[%s16188_s30 + $0xa78] sm:$0xff]  }
 0x37b   : > { %v7908_v61 = vadd.f32 %v7907_v57, %v7906_v52  ;;  %13838 = vmatprep.subr.bf16.mxu0 %v14285_v30  ;;  %13860 = vmatprep.subr.bf16.mxu1 %v14286_v34  ;;  %v14293_v57 = vld [vmem:[%s16188_s30 + $0xa60] sm:$0xff]   ;;  %v14304_v31 = vld [vmem:[%s16188_s30 + $0xab0] sm:$0xff]  }
 0x37c   : > { %v8101_v26 = vadd.f32 %v14352_v36, %v8100_v35  ;;  %v7377_v30 = vld [vmem:[%s16654_s25] sm:$0xff]  ;;  %v8113_v35 = vrot.slane %v8109_v43, %v16356_v50 }
 0x37d   : > { %v16693_v3 = vadd.f32 %v12509_v54, %v7908_v61  ;;  %v7384_v36 = vmul.f32 %v16559_v24, %v7377_v30 }
 0x37e   : > { %13839 = vmatpush3.bf16.msra.mxu0 %v14287_v19  ;;  %13861 = vmatpush3.bf16.msra.mxu1 %v14288_v37  ;;  %v8102_v9 = vadd.f32 %v14354_v8, %v8101_v26  ;;  %v14306_v19 = vld [vmem:[%s16188_s30 + $0xaf8] sm:$0xff]   ;;  %vm16748_vm1 = vcmp.eq.s32.totalorder %v8113_v35, 1 }
 0x37f   : > { %13840 = vmatprep.subr.bf16.mxu0 %v14289_v22  ;;  %13862 = vmatprep.subr.bf16.mxu1 %v14290_v40  ;;  %v14308_v26 = vld [vmem:[%s16188_s30 + $0xab8] sm:$0xff]   ;;  %v14310_v40 = vld [vmem:[%s16188_s30 + $0xb00] sm:$0xff]  }
 0x380   : > { %v8103_v55 = vadd.f32 %v14356_v49, %v8102_v9 }
 0x382   : > { %13841 = vmatpush3.bf16.msra.mxu0 %v14291_v46  ;;  %13863 = vmatpush3.bf16.msra.mxu1 %v14292_v51  ;;  %14357 = vlog2.f32 %v8103_v55  ;;  %v14312_v46 = vld [vmem:[%s16188_s30 + $0xb80] sm:$0xff]  }
 0x383   : > { %13842 = vmatprep.subr.bf16.mxu0 %v14293_v57  ;;  %13864 = vmatprep.subr.bf16.mxu1 %v14294_v59  ;;  %v14316_v59 = vld [vmem:[%s16188_s30 + $0xb88] sm:$0xff]  }
 0x386   : > { %13843 = vmatpush3.bf16.msra.mxu0 %v14295_v63  ;;  %13865 = vmatpush3.bf16.msra.mxu1 %v14296_v15 }
 0x387   : > { %v13542_v12 = vpop.f32.mrb[12].mxu0  ;;  %13844 = vmatprep.subr.bf16.mxu0 %v14297_v10  ;;  %13866 = vmatprep.subr.bf16.mxu1 %v14298_v13  ;;  %v14318_v10 = vld [vmem:[%s16188_s30 + $0xb10] sm:$0xff]  }
 0x388   : > { %v13543_v39 = vpop.f32.mrb[13].mxu0  ;;  %v13564_v45 = vpop.f32.mrb[12].mxu1 }
 0x389   : > { %v13544_v42 = vadd.f32 %v13543_v39, %v13542_v12  ;;  %v13565_v48 = vpop.f32.mrb[13].mxu1  ;;  %v13545_v54 = vpop.f32.mrb[14].mxu0  ;;  %v14307_v12 = vld [vmem:[%s16188_s30 + $0xa38] sm:$0xff]   ;;  %v14309_v39 = vld [vmem:[%s16188_s30 + $0xb40] sm:$0xff]  }
 0x38a   : > { %v13566_v53 = vadd.f32 %v13565_v48, %v13564_v45  ;;  %v13567_v58 = vpop.f32.mrb[14].mxu1  ;;  %v13546_v62 = vpop.f32.mrb[15].mxu0  ;;  %13845 = vmatpush3.bf16.msra.mxu0 %v14299_v16  ;;  %13867 = vmatpush3.bf16.msra.mxu1 %v14300_v18  ;;  %v14311_v45 = vld [vmem:[%s16188_s30 + $0xbc0] sm:$0xff]   ;;  %v14313_v48 = vld [vmem:[%s16188_s30 + $0xb48] sm:$0xff]  }
 0x38b   : > { %v8537_v52 = vadd.f32 %v13544_v42, %v16504_v14  ;;  %v13568_v1 = vpop.f32.mrb[15].mxu1  ;;  %13846 = vmatprep.subr.bf16.mxu0 %v14301_v23  ;;  %13868 = vmatprep.subr.bf16.mxu1 %v14302_v60  ;;  %v7385_v42 = vrot.slane %v7384_v36, 4  ;;  %v14315_v54 = vld [vmem:[%s16188_s30 + $0xbc8] sm:$0xff]   ;;  %v14317_v62 = vld [vmem:[%s16188_s30 + $0xb50] sm:$0xff]  }
 0x38c   : > { %v14358_v32 = vpop.eup %14357  ;;  %v14319_v23 = vld [vmem:[%s16188_s30 + $0xbd0] sm:$0xff]  }
 0x38d   : > { %v16717_v61 = vadd.f32 %v13566_v53, %v8537_v52  ;;  %v8105_v34 = vmul.f32 0.6931472, %v14358_v32  ;;  %v14314_v52 = vld [vmem:[%s16188_s30 + $0xb08] sm:$0xff]   ;;  %v16771_v53 = vadd.f32 %v7385_v42, %v7384_v36  ;;  %v14320_v32 = vld [vmem:[%s16188_s30 + $0xb90] sm:$0xff]   ;;  %v14323_v42 = vld [vmem:[%s16188_s30 + $0xbd8] sm:$0xff]  }
 0x38e   : > { %13847 = vmatpush3.bf16.msra.mxu0 %v14303_v25  ;;  %13869 = vmatpush3.bf16.msra.mxu1 %v14304_v31 }
 0x38f   : > { %13848 = vmatprep.subr.bf16.mxu0 %v14305_v33  ;;  %v8106_v37 = vadd.f32 %v8105_v34, %v16640_v44  ;;  %13870 = vmatprep.subr.bf16.mxu1 %v14306_v19  ;;  %v7387_v13 = vrot.slane %v16771_v53, 2  ;;  %v14321_v34 = vld [vmem:[%s16188_s30 + $0xb58] sm:$0xff]  }
 0x391   : > { %v8107_v22 = vadd.f32 %v8106_v37, %v16661_v20 }
 0x392   : > { %13849 = vmatpush3.bf16.msra.mxu0 %v14307_v12  ;;  %13871 = vmatpush3.bf16.msra.mxu1 %v14308_v26  ;;  %v14322_v26 = vld [vmem:[%s16188_s30 + $0xb18] sm:$0xff]  }
 0x393   : > { %v16756_v44 = vsel %vm16748_vm1, %v8107_v22, %v16559_v24  ;;  %13878 = vmatprep.subr.bf16.mxu0 %v14309_v39  ;;  %13900 = vmatprep.subr.bf16.mxu1 %v14311_v45 }
 0x394   : > { %v8639_v20 = vcombine.high %v16756_v44, %v16756_v44  ;;  %v8646_v9 = vrot.slane %v16756_v44, %v16552_v17 }
 0x395   : > { %11295 = vmatmul.mubr.bf16.vlgmr.msra.gmra.mrb[40].mxu0 %v16277_v38  ;;  %11885 = vmatmul.mubr.bf16.vlgmr.msra.gmra.mrb[40].mxu1 %v16229_v0 }
 0x396   : > { %13879 = vmatpush3.bf16.msra.mxu0 %v14310_v40  ;;  %v8653_v24 = vrot.slane %v8639_v20, %v16552_v17  ;;  %v8654_v49 = vcombine.high %v8646_v9, %v8646_v9  ;;  %v8662_v51 = vrot.slane %v8646_v9, %v16552_v17  ;;  %11924 = vmatprep.mubr.bf16.mxu0 %v16177_v27  ;;  %v16810_v9 = vld [vmem:[%s16654_s25 + $0x10] sm:$0xff] }
 0x397   : > { %13901 = vmatpush3.bf16.msra.mxu1 %v14312_v46  ;;  %13880 = vmatprep.subr.bf16.mxu0 %v14313_v48 }
 0x398   : > { %v8655_v0 = vcombine.high %v8653_v24, %v8653_v24  ;;  %v8669_v55 = vrot.slane %v8653_v24, %v16552_v17  ;;  %v8676_v57 = vrot.slane %v8654_v49, %v16552_v17  ;;  %v8684_v58 = vcombine.high %v8662_v51, %v8662_v51  ;;  %11964 = vmatprep.mubr.bf16.mxu1 %v16239_v4  ;;  %v14324_v49 = vld [vmem:[%s16188_s30 + $0xb98] sm:$0xff]  }
 0x399   : > { %13902 = vmatprep.subr.bf16.mxu1 %v14315_v54  ;;  %v8691_v16 = vrot.slane %v8662_v51, %v16356_v50  ;;  %v14325_v54 = vld [vmem:[%s16188_s30 + $0xb60] sm:$0xff]  }
 0x39a   : > { %13881 = vmatpush3.bf16.msra.mxu0 %v14314_v52  ;;  %v8683_v27 = vrot.slane %v8655_v0, %v16552_v17  ;;  %v8685_v63 = vcombine.high %v8669_v55, %v8669_v55  ;;  %v8686_v1 = vcombine.high %v8676_v57, %v8676_v57  ;;  %v8695_v15 = vrot.slane %v8676_v57, %v16356_v50 }
 0x39b   : > { %v8699_v18 = vrot.slane %v8684_v58, %v16356_v50  ;;  %v8707_v4 = vrot.slane %v8669_v55, %v16356_v50  ;;  %13903 = vmatpush3.bf16.msra.mxu1 %v14316_v59  ;;  %13882 = vmatprep.subr.bf16.mxu0 %v14317_v62  ;;  %v8728_v39 = vadd.f32 %v8691_v16, %v16537_v56  ;;  %v14326_v62 = vld [vmem:[%s16188_s30 + $0xb20] sm:$0xff]  }
 0x39c   : > { %v8687_v60 = vcombine.high %v8683_v27, %v8683_v27  ;;  %v8703_v25 = vrot.slane %v8686_v1, %v16356_v50  ;;  %v8711_v43 = vrot.slane %v8683_v27, %v16356_v50  ;;  %v8715_v31 = vrot.slane %v8685_v63, %v16356_v50  ;;  %13904 = vmatprep.subr.bf16.mxu1 %v14319_v23  ;;  %v14327_v63 = vld [vmem:[%s16188_s30 + $0xbe0] sm:$0xff]  }
 0x39d   : > { %v16792_v33 = vadd.f32 %v8695_v15, %v16544_v6  ;;  %v16797_v36 = vadd.f32 %v8707_v4, %v16575_v41  ;;  %v8730_v40 = vadd.f32 %v8699_v18, %v16556_v21  ;;  %v14328_v16 = vld [vmem:[%s16188_s30 + $0xba0] sm:$0xff]   ;;  %v14329_v4 = vld [vmem:[%s16188_s30 + $0xb68] sm:$0xff]  }
 0x39e   : > { %13883 = vmatpush3.bf16.msra.mxu0 %v14318_v10  ;;  %v8719_v19 = vrot.slane %v8687_v60, %v16356_v50  ;;  %v16800_v37 = vadd.f32 %v8711_v43, %v16580_v47  ;;  %v16803_v12 = vadd.f32 %v8715_v31, %v16596_v7  ;;  %v8731_v46 = vadd.f32 %v8703_v25, %v16562_v29  ;;  %v14330_v60 = vld [vmem:[%s16188_s30 + $0xb28] sm:$0xff]  }
 0x39f   : > { %13905 = vmatpush3.bf16.msra.mxu1 %v14320_v32  ;;  %13884 = vmatprep.subr.bf16.mxu0 %v14321_v34  ;;  %v8736_v57 = vmax.f32 %v8728_v39, %v16797_v36  ;;  %v7388_v25 = vadd.f32 %v7387_v13, %v16771_v53  ;;  %v14331_v31 = vld [vmem:[%s16188_s30 + $0xbe8] sm:$0xff]  }
 0x3a0   : > { %v16814_v48 = vadd.f32 %v8719_v19, %v16606_v11  ;;  %v8737_v24 = vmax.f32 %v16792_v33, %v16800_v37  ;;  %13906 = vmatprep.subr.bf16.mxu1 %v14323_v42  ;;  %v8738_v58 = vmax.f32 %v8730_v40, %v16803_v12  ;;  %v14332_v19 = vld [vmem:[%s16188_s30 + $0xba8] sm:$0xff]  }
 0x3a1   : > { %v7389_v42 = vrot.slane %v7388_v25, 1 }
 0x3a2   : > { %13885 = vmatpush3.bf16.msra.mxu0 %v14322_v26  ;;  %v8739_v59 = vmax.f32 %v8731_v46, %v16814_v48  ;;  %v8740_v15 = vmax.f32 %v8736_v57, %v8737_v24 }
 0x3a3   : > { %13907 = vmatpush3.bf16.msra.mxu1 %v14324_v49  ;;  %13886 = vmatprep.subr.bf16.mxu0 %v14325_v54  ;;  %v14334_v49 = vld [vmem:[%s16188_s30 + $0xb30] sm:$0xff]   ;;  %v7910_v54 = vmul.f32 %v16725_v5, %v16693_v3  ;;  %v14338_v3 = vld [vmem:[%s16188_s30 + $0xb38] sm:$0xff]  }
 0x3a4   : > { %v8741_v10 = vmax.f32 %v8738_v58, %v8739_v59  ;;  %13908 = vmatprep.subr.bf16.mxu1 %v14327_v63  ;;  %v14336_v58 = vld [vmem:[%s16188_s30 + $0xbb0] sm:$0xff]   ;;  %v14339_v5 = vld [vmem:[%s16188_s30 + $0xbf8] sm:$0xff]  }
 0x3a5   : > { %v16859_v59 = vld [vmem:[%s16722_s27 + $0x2] sm:$0x1] }
 0x3a6   : > { %13887 = vmatpush3.bf16.msra.mxu0 %v14326_v62  ;;  %v16834_v23 = vmax.f32 %v8740_v15, %v8741_v10  ;;  %v14337_v62 = vld [vmem:[%s16188_s30 + $0xb78] sm:$0xff]   ;;  %vm8778_vm2 = vcmp.gt.f32.partialorder %v16859_v59, 0.0 }
 0x3a7   : > { %v13586_v30 = vpop.f32.mrb[16].mxu0  ;;  %13909 = vmatpush3.bf16.msra.mxu1 %v14328_v16  ;;  %13888 = vmatprep.subr.bf16.mxu0 %v14329_v4  ;;  %v14340_v10 = vld [vmem:[%s16188_s30 + $0xbb8] sm:$0xff]  }
 0x3a8   : > { %v13608_v35 = vpop.f32.mrb[16].mxu1  ;;  %v13587_v22 = vpop.f32.mrb[17].mxu0  ;;  %v8743_v32 = vsub.f32 %v8728_v39, %v16834_v23  ;;  %v8745_v34 = vsub.f32 %v8730_v40, %v16834_v23  ;;  %v8747_v26 = vsub.f32 %v16797_v36, %v16834_v23  ;;  %v8748_v53 = vsub.f32 %v16800_v37, %v16834_v23  ;;  %13910 = vmatprep.subr.bf16.mxu1 %v14331_v31 }
 0x3a9   : > { %v13588_v45 = vadd.f32 %v13587_v22, %v13586_v30  ;;  %v13609_v20 = vpop.f32.mrb[17].mxu1  ;;  %v13589_v52 = vpop.f32.mrb[18].mxu0  ;;  %v8744_v30 = vsub.f32 %v16792_v33, %v16834_v23  ;;  %v14333_v22 = vld [vmem:[%s16188_s30 + $0xb70] sm:$0xff]  }
 0x3aa   : > { %v16819_v51 = vadd.f32 %v13609_v20, %v13608_v35  ;;  %v13590_v55 = vpop.f32.mrb[19].mxu0  ;;  %v13611_v27 = vpop.f32.mrb[18].mxu1  ;;  %v8746_v35 = vsub.f32 %v8731_v46, %v16834_v23  ;;  %13889 = vmatpush3.bf16.msra.mxu0 %v14330_v60  ;;  %v8751_v39 = vmul.f32 1.442695, %v8743_v32  ;;  %v8755_v40 = vmul.f32 1.442695, %v8745_v34 }
 0x3ab   : > { %v16823_v0 = vadd.f32 %v13588_v45, %v16717_v61  ;;  %v13612_v61 = vpop.f32.mrb[19].mxu1  ;;  %v8753_v33 = vmul.f32 1.442695, %v8744_v30  ;;  %13911 = vmatpush3.bf16.msra.mxu1 %v14332_v19  ;;  %13890 = vmatprep.subr.bf16.mxu0 %v14333_v22  ;;  %v8759_v36 = vmul.f32 1.442695, %v8747_v26  ;;  %v14335_v52 = vld [vmem:[%s16188_s30 + $0xbf0] sm:$0xff]   ;;  %v8749_v55 = vsub.f32 %v16803_v12, %v16834_v23 }
 0x3ac   : > { %v8757_v45 = vmul.f32 1.442695, %v8746_v35  ;;  %14359 = vpow2.f32 %v8751_v39  ;;  %v8761_v37 = vmul.f32 1.442695, %v8748_v53  ;;  %v12656_v46 = vld [vmem:[%s16685_s13 + $0x2] sm:$0x1]  ;;  %13912 = vmatprep.subr.bf16.mxu1 %v14335_v52  ;;  %v7390_v27 = vadd.f32 %v7389_v42, %v7388_v25 }
 0x3ad   : > { %v8628_v1 = vmul.f32 %v16810_v9, %v16823_v0  ;;  %14361 = vpow2.f32 %v8753_v33  ;;  %v8763_v61 = vmul.f32 1.442695, %v8749_v55  ;;  %v9207_v53 = vadd.f32 %v16819_v51, %v16504_v14 }
 0x3ae   : > { %14363 = vpow2.f32 %v8755_v40  ;;  %13891 = vmatpush3.bf16.msra.mxu0 %v14334_v49  ;;  %v7911_v12 = vadd.f32 %v7910_v54, %v7390_v27  ;;  %v16875_v49 = vld [vmem:[%s16654_s25 + $0x18] sm:$0xff]  ;;  %v8779_v27 = vsel %vm8778_vm2, 1, %v14497_v28 }
 0x3af   : > { %v8629_v18 = vrot.slane %v8628_v1, 4  ;;  %14365 = vpow2.f32 %v8757_v45  ;;  %13913 = vmatpush3.bf16.msra.mxu1 %v14336_v58  ;;  %13892 = vmatprep.subr.bf16.mxu0 %v14337_v62 }
 0x3b0   : > { %14367 = vpow2.f32 %v8759_v36  ;;  %13914 = vmatprep.subr.bf16.mxu1 %v14339_v5 }
 0x3b1   : > { %v8630_v43 = vadd.f32 %v8629_v18, %v8628_v1  ;;  %v8750_v1 = vsub.f32 %v16814_v48, %v16834_v23  ;;  %14369 = vpow2.f32 %v8761_v37 }
 0x3b2   : > { %13893 = vmatpush3.bf16.msra.mxu0 %v14338_v3  ;;  %14371 = vpow2.f32 %v8763_v61 }
 0x3b3   : > { %v8631_v13 = vrot.slane %v8630_v43, 2  ;;  %v8765_v18 = vmul.f32 1.442695, %v8750_v1  ;;  %13915 = vmatpush3.bf16.msra.mxu1 %v14340_v10 }
 0x3b5   : > { %v8632_v20 = vadd.f32 %v8631_v13, %v8630_v43  ;;  %11925 = vmatmul.mubr.bf16.vlgmr.msra.gmra.mrb[44].mxu0 %v16234_v2  ;;  %14373 = vpow2.f32 %v8765_v18 }
 0x3b6   : > { %v14360_v4 = vpop.eup %14359  ;;  %11965 = vmatmul.mubr.bf16.vlgmr.msra.gmra.mrb[44].mxu1 %v16277_v38 }
 0x3b7   : > { %v8633_v24 = vrot.slane %v8632_v20, 1  ;;  %v14362_v48 = vpop.eup %14361 }
 0x3b8   : > { %v8767_v60 = vadd.f32 %v14362_v48, %v14360_v4  ;;  %v14364_v25 = vpop.eup %14363 }
 0x3b9   : > { %v8634_v57 = vadd.f32 %v8633_v24, %v8632_v20  ;;  %v14366_v31 = vpop.eup %14365 }
 0x3ba   : > { %v8768_v43 = vadd.f32 %v14364_v25, %v8767_v60  ;;  %v14368_v34 = vpop.eup %14367 }
 0x3bb   : > { %v8635_v63 = vadd.f32 %v12656_v46, %v8634_v57  ;;  %v14370_v39 = vpop.eup %14369 }
 0x3bc   : > { %v8769_v32 = vadd.f32 %v14366_v31, %v8768_v43  ;;  %v14372_v36 = vpop.eup %14371 }
 0x3bd   : > { %v8636_v15 = vmul.f32 %v16859_v59, %v8635_v63  ;;  %v12803_v63 = vld [vmem:[%s16685_s13 + $0x3] sm:$0x1] }
 0x3be   : > { %v8770_v26 = vadd.f32 %v14368_v34, %v8769_v32 }
 0x3bf   : > { %v8637_v16 = vadd.f32 %v8636_v15, %v7911_v12  ;;  %v14374_v24 = vpop.eup %14373  ;;  %v8783_v12 = vrot.slane %v8779_v27, %v16356_v50  ;;  %v16884_v15 = vld [vmem:[%s16722_s27 + $0x3] sm:$0x1] }
 0x3c0   : > { %v8771_v40 = vadd.f32 %v14370_v39, %v8770_v26  ;;  %vm9448_vm4 = vcmp.gt.f32.partialorder %v16884_v15, 0.0 }
 0x3c1   : > { %vm16889_vm3 = vcmp.eq.s32.totalorder %v8783_v12, 1 }
 0x3c2   : > { %v8772_v37 = vadd.f32 %v14372_v36, %v8771_v40 }
 0x3c4   : > { %v8773_v52 = vadd.f32 %v14374_v24, %v8772_v37 }
 0x3c6   : > { %14375 = vlog2.f32 %v8773_v52 }
 0x3c7   : > { %v13630_v30 = vpop.f32.mrb[20].mxu0 }
 0x3c8   : > { %v13631_v35 = vpop.f32.mrb[21].mxu0  ;;  %v13652_v19 = vpop.f32.mrb[20].mxu1 }
 0x3c9   : > { %v13632_v2 = vadd.f32 %v13631_v35, %v13630_v30  ;;  %v13653_v13 = vpop.f32.mrb[21].mxu1  ;;  %v13633_v22 = vpop.f32.mrb[22].mxu0 }
 0x3ca   : > { %v13654_v33 = vadd.f32 %v13653_v13, %v13652_v19  ;;  %v13634_v38 = vpop.f32.mrb[23].mxu0  ;;  %v13655_v42 = vpop.f32.mrb[22].mxu1 }
 0x3cb   : > { %v9247_v45 = vadd.f32 %v13632_v2, %v9207_v53  ;;  %v13656_v20 = vpop.f32.mrb[23].mxu1 }
 0x3cd   : > { %v16872_v46 = vadd.f32 %v13654_v33, %v9247_v45 }
 0x3cf   : > { %v9298_v51 = vmul.f32 %v16875_v49, %v16872_v46 }
 0x3d0   : > { %v14376_v1 = vpop.eup %14375 }
 0x3d1   : > { %v9299_v54 = vrot.slane %v9298_v51, 4  ;;  %v8775_v5 = vmul.f32 0.6931472, %v14376_v1 }
 0x3d3   : > { %v9300_v55 = vadd.f32 %v9299_v54, %v9298_v51  ;;  %v8776_v10 = vadd.f32 %v8775_v5, %v16834_v23 }
 0x3d5   : > { %v9301_v57 = vrot.slane %v9300_v55, 2  ;;  %v8777_v4 = vadd.f32 %v8776_v10, %v16823_v0 }
 0x3d7   : > { %v9302_v58 = vadd.f32 %v9301_v57, %v9300_v55  ;;  %v16898_v60 = vsel %vm16889_vm3, %v8777_v4, %v16756_v44 }
 0x3d8   : > { %v9309_v25 = vcombine.high %v16898_v60, %v16898_v60  ;;  %v9316_v23 = vrot.slane %v16898_v60, %v16552_v17 }
 0x3d9   : > { %v9303_v62 = vrot.slane %v9302_v58, 1 }
 0x3da   : > { %v9323_v43 = vrot.slane %v9309_v25, %v16552_v17  ;;  %v9324_v0 = vcombine.high %v9316_v23, %v9316_v23  ;;  %v9332_v31 = vrot.slane %v9316_v23, %v16552_v17 }
 0x3db   : > { %v9304_v3 = vadd.f32 %v9303_v62, %v9302_v58 }
 0x3dc   : > { %v9325_v32 = vcombine.high %v9323_v43, %v9323_v43  ;;  %v9346_v30 = vrot.slane %v9324_v0, %v16552_v17  ;;  %v9354_v34 = vcombine.high %v9332_v31, %v9332_v31  ;;  %v9361_v33 = vrot.slane %v9332_v31, %v16356_v50 }
 0x3dd   : > { %v9305_v61 = vadd.f32 %v12803_v63, %v9304_v3 }
 0x3de   : > { %v9353_v26 = vrot.slane %v9325_v32, %v16552_v17  ;;  %v9356_v2 = vcombine.high %v9346_v30, %v9346_v30  ;;  %v9365_v13 = vrot.slane %v9346_v30, %v16356_v50  ;;  %v9369_v38 = vrot.slane %v9354_v34, %v16356_v50 }
 0x3df   : > { %v9306_v18 = vmul.f32 %v16884_v15, %v9305_v61  ;;  %v9398_v63 = vadd.f32 %v9361_v33, %v16537_v56 }
 0x3e0   : > { %v9357_v36 = vcombine.high %v9353_v26, %v9353_v26  ;;  %v9373_v37 = vrot.slane %v9356_v2, %v16356_v50  ;;  %v9381_v24 = vrot.slane %v9353_v26, %v16356_v50  ;;  %v9399_v54 = vadd.f32 %v9365_v13, %v16544_v6 }
 0x3e1   : > { %v16893_v48 = vadd.f32 %v9306_v18, %v8637_v16  ;;  %v9339_v16 = vrot.slane %v9323_v43, %v16552_v17  ;;  %v9400_v3 = vadd.f32 %v9369_v38, %v16556_v21 }
 0x3e2   : > { %v9389_v57 = vrot.slane %v9357_v36, %v16356_v50  ;;  %v9403_v62 = vadd.f32 %v9381_v24, %v16580_v47  ;;  %v9401_v5 = vadd.f32 %v9373_v37, %v16562_v29 }
 0x3e3   : > { %v9355_v53 = vcombine.high %v9339_v16, %v9339_v16  ;;  %v9377_v42 = vrot.slane %v9339_v16, %v16356_v50 }
 0x3e4   : > { %v9405_v12 = vadd.f32 %v9389_v57, %v16606_v11  ;;  %v9407_v61 = vmax.f32 %v9399_v54, %v9403_v62 }
 0x3e5   : > { %v9385_v52 = vrot.slane %v9355_v53, %v16356_v50  ;;  %v9402_v58 = vadd.f32 %v9377_v42, %v16575_v41 }
 0x3e6   : > { %v9409_v25 = vmax.f32 %v9401_v5, %v9405_v12 }
 0x3e7   : > { %v13674_v35 = vpop.f32.mrb[24].mxu0  ;;  %v9404_v27 = vadd.f32 %v9385_v52, %v16596_v7  ;;  %v9406_v18 = vmax.f32 %v9398_v63, %v9402_v58 }
 0x3e8   : > { %v13675_v44 = vpop.f32.mrb[25].mxu0  ;;  %v13696_v19 = vpop.f32.mrb[24].mxu1 }
 0x3e9   : > { %v13697_v22 = vpop.f32.mrb[25].mxu1  ;;  %v13677_v39 = vpop.f32.mrb[26].mxu0  ;;  %v13676_v40 = vadd.f32 %v13675_v44, %v13674_v35  ;;  %v9408_v4 = vmax.f32 %v9400_v3, %v9404_v27  ;;  %v9410_v23 = vmax.f32 %v9406_v18, %v9407_v61 }
 0x3ea   : > { %v13699_v45 = vpop.f32.mrb[26].mxu1  ;;  %v13678_v20 = vpop.f32.mrb[27].mxu0  ;;  %v13698_v1 = vadd.f32 %v13697_v22, %v13696_v19 }
 0x3eb   : > { %v13700_v51 = vpop.f32.mrb[27].mxu1  ;;  %v9877_v55 = vadd.f32 %v13676_v40, %v16504_v14  ;;  %v9411_v43 = vmax.f32 %v9408_v4, %v9409_v25 }
 0x3ed   : > { %v9917_v10 = vadd.f32 %v13698_v1, %v9877_v55  ;;  %v16926_v0 = vmax.f32 %v9410_v23, %v9411_v43 }
 0x3ef   : > { %v9413_v31 = vsub.f32 %v9398_v63, %v16926_v0  ;;  %v9414_v32 = vsub.f32 %v9399_v54, %v16926_v0  ;;  %v9415_v16 = vsub.f32 %v9400_v3, %v16926_v0  ;;  %v9416_v30 = vsub.f32 %v9401_v5, %v16926_v0 }
 0x3f0   : > { %v9417_v44 = vsub.f32 %v9402_v58, %v16926_v0  ;;  %v9418_v26 = vsub.f32 %v9403_v62, %v16926_v0  ;;  %v9419_v2 = vsub.f32 %v9404_v27, %v16926_v0  ;;  %v9420_v39 = vsub.f32 %v9405_v12, %v16926_v0  ;;  %v16939_v12 = vld [vmem:[%s16654_s25 + $0x20] sm:$0xff] }
 0x3f1   : > { %v9421_v34 = vmul.f32 1.442695, %v9413_v31  ;;  %v9423_v35 = vmul.f32 1.442695, %v9414_v32  ;;  %v9425_v19 = vmul.f32 1.442695, %v9415_v16 }
 0x3f2   : > { %v9427_v53 = vmul.f32 1.442695, %v9416_v30  ;;  %v9429_v13 = vmul.f32 1.442695, %v9417_v44  ;;  %v9431_v22 = vmul.f32 1.442695, %v9418_v26 }
 0x3f3   : > { %14377 = vpow2.f32 %v9421_v34  ;;  %v9433_v33 = vmul.f32 1.442695, %v9419_v2  ;;  %v9435_v38 = vmul.f32 1.442695, %v9420_v39  ;;  %v12950_v44 = vld [vmem:[%s16685_s13 + $0x4] sm:$0x1] }
 0x3f4   : > { %14379 = vpow2.f32 %v9423_v35 }
 0x3f5   : > { %14381 = vpow2.f32 %v9425_v19 }
 0x3f6   : > { %14383 = vpow2.f32 %v9427_v53  ;;  %v16946_v53 = vld [vmem:[%s16722_s27 + $0x4] sm:$0x1] }
 0x3f7   : > { %14385 = vpow2.f32 %v9429_v13  ;;  %v9449_v13 = vsel %vm9448_vm4, 1, %v14497_v28  ;;  %vm10118_vm6 = vcmp.gt.f32.partialorder %v16946_v53, 0.0 }
 0x3f8   : > { %14387 = vpow2.f32 %v9431_v22 }
 0x3f9   : > { %14389 = vpow2.f32 %v9433_v33 }
 0x3fa   : > { %14391 = vpow2.f32 %v9435_v38  ;;  %v9453_v38 = vrot.slane %v9449_v13, %v16356_v50 }
 0x3fc   : > { %vm16956_vm5 = vcmp.eq.s32.totalorder %v9453_v38, 1 }
 0x3fd   : > { %v14378_v42 = vpop.eup %14377 }
 0x3fe   : > { %v14380_v40 = vpop.eup %14379 }
 0x3ff   : > { %v9437_v45 = vadd.f32 %v14380_v40, %v14378_v42  ;;  %v14382_v36 = vpop.eup %14381 }
 0x400   : > { %v14384_v57 = vpop.eup %14383 }
 0x401   : > { %v9438_v52 = vadd.f32 %v14382_v36, %v9437_v45  ;;  %v14386_v5 = vpop.eup %14385 }
 0x402   : > { %v14388_v4 = vpop.eup %14387 }
 0x403   : > { %v9439_v63 = vadd.f32 %v14384_v57, %v9438_v52  ;;  %v14390_v43 = vpop.eup %14389 }
 0x404   : > { %v14392_v16 = vpop.eup %14391 }
 0x405   : > { %v9440_v61 = vadd.f32 %v14386_v5, %v9439_v63 }
 0x407   : > { %v13718_v20 = vpop.f32.mrb[28].mxu0  ;;  %v9441_v25 = vadd.f32 %v14388_v4, %v9440_v61 }
 0x408   : > { %v13740_v37 = vpop.f32.mrb[28].mxu1  ;;  %v13719_v24 = vpop.f32.mrb[29].mxu0 }
 0x409   : > { %v13720_v51 = vadd.f32 %v13719_v24, %v13718_v20  ;;  %v13741_v54 = vpop.f32.mrb[29].mxu1  ;;  %v13721_v55 = vpop.f32.mrb[30].mxu0  ;;  %v9442_v31 = vadd.f32 %v14390_v43, %v9441_v25 }
 0x40a   : > { %v13742_v58 = vadd.f32 %v13741_v54, %v13740_v37  ;;  %v13722_v62 = vpop.f32.mrb[31].mxu0  ;;  %v13743_v27 = vpop.f32.mrb[30].mxu1 }
 0x40b   : > { %v16936_v1 = vadd.f32 %v13720_v51, %v9917_v10  ;;  %v13744_v3 = vpop.f32.mrb[31].mxu1  ;;  %v9443_v30 = vadd.f32 %v14392_v16, %v9442_v31 }
 0x40c   : > { %v10547_v31 = vadd.f32 %v13742_v58, %v16504_v14 }
 0x40d   : > { %v9968_v18 = vmul.f32 %v16939_v12, %v16936_v1  ;;  %14393 = vlog2.f32 %v9443_v30 }
 0x40f   : > { %v9969_v23 = vrot.slane %v9968_v18, 4 }
 0x411   : > { %v9970_v32 = vadd.f32 %v9969_v23, %v9968_v18 }
 0x413   : > { %v9971_v10 = vrot.slane %v9970_v32, 2 }
 0x415   : > { %v9972_v34 = vadd.f32 %v9971_v10, %v9970_v32 }
 0x417   : > { %v9973_v35 = vrot.slane %v9972_v34, 1  ;;  %v14394_v22 = vpop.eup %14393 }
 0x418   : > { %v9445_v33 = vmul.f32 0.6931472, %v14394_v22 }
 0x419   : > { %v9974_v19 = vadd.f32 %v9973_v35, %v9972_v34 }
 0x41a   : > { %v9446_v42 = vadd.f32 %v9445_v33, %v16926_v0 }
 0x41b   : > { %v9975_v26 = vadd.f32 %v12950_v44, %v9974_v19 }
 0x41c   : > { %v9447_v40 = vadd.f32 %v9446_v42, %v16872_v46 }
 0x41d   : > { %v9976_v2 = vmul.f32 %v16946_v53, %v9975_v26 }
 0x41e   : > { %v16963_v45 = vsel %vm16956_vm5, %v9447_v40, %v16898_v60 }
 0x41f   : > { %v16951_v39 = vadd.f32 %v9976_v2, %v16893_v48  ;;  %v9979_v48 = vcombine.high %v16963_v45, %v16963_v45  ;;  %v9986_v20 = vrot.slane %v16963_v45, %v16552_v17 }
 0x421   : > { %v9993_v36 = vrot.slane %v9979_v48, %v16552_v17  ;;  %v9994_v0 = vcombine.high %v9986_v20, %v9986_v20  ;;  %v10002_v46 = vrot.slane %v9986_v20, %v16552_v17  ;;  %v16994_v20 = vld [vmem:[%s16654_s25 + $0x28] sm:$0xff] }
 0x423   : > { %v9995_v37 = vcombine.high %v9993_v36, %v9993_v36  ;;  %v10009_v24 = vrot.slane %v9993_v36, %v16552_v17  ;;  %v10016_v52 = vrot.slane %v9994_v0, %v16552_v17  ;;  %v10024_v51 = vcombine.high %v10002_v46, %v10002_v46 }
 0x424   : > { %v10031_v62 = vrot.slane %v10002_v46, %v16356_v50 }
 0x425   : > { %v10023_v60 = vrot.slane %v9995_v37, %v16552_v17  ;;  %v10025_v54 = vcombine.high %v10009_v24, %v10009_v24  ;;  %v10026_v55 = vcombine.high %v10016_v52, %v10016_v52  ;;  %v10035_v57 = vrot.slane %v10016_v52, %v16356_v50 }
 0x426   : > { %v10039_v27 = vrot.slane %v10024_v51, %v16356_v50  ;;  %v10047_v63 = vrot.slane %v10009_v24, %v16356_v50  ;;  %v10068_v2 = vadd.f32 %v10031_v62, %v16537_v56 }
 0x427   : > { %v13762_v3 = vpop.f32.mrb[32].mxu0  ;;  %v10027_v5 = vcombine.high %v10023_v60, %v10023_v60  ;;  %v10043_v61 = vrot.slane %v10026_v55, %v16356_v50  ;;  %v10051_v18 = vrot.slane %v10023_v60, %v16356_v50  ;;  %v10055_v4 = vrot.slane %v10025_v54, %v16356_v50 }
 0x428   : > { %v13763_v25 = vpop.f32.mrb[33].mxu0  ;;  %v13784_v23 = vpop.f32.mrb[32].mxu1  ;;  %v10069_v43 = vadd.f32 %v10035_v57, %v16544_v6  ;;  %v10072_v34 = vadd.f32 %v10047_v63, %v16575_v41  ;;  %v10070_v58 = vadd.f32 %v10039_v27, %v16556_v21 }
 0x429   : > { %v13764_v32 = vadd.f32 %v13763_v25, %v13762_v3  ;;  %v13785_v16 = vpop.f32.mrb[33].mxu1  ;;  %v13765_v30 = vpop.f32.mrb[34].mxu0  ;;  %v10059_v10 = vrot.slane %v10027_v5, %v16356_v50  ;;  %v10073_v35 = vadd.f32 %v10051_v18, %v16580_v47  ;;  %v10074_v44 = vadd.f32 %v10055_v4, %v16596_v7 }
 0x42a   : > { %v13766_v19 = vpop.f32.mrb[35].mxu0  ;;  %v13787_v26 = vpop.f32.mrb[34].mxu1  ;;  %v13786_v22 = vadd.f32 %v13785_v16, %v13784_v23  ;;  %v10071_v38 = vadd.f32 %v10043_v61, %v16562_v29  ;;  %v10076_v36 = vmax.f32 %v10068_v2, %v10072_v34 }
 0x42b   : > { %v10587_v13 = vadd.f32 %v13764_v32, %v10547_v31  ;;  %v13788_v33 = vpop.f32.mrb[35].mxu1  ;;  %v10075_v42 = vadd.f32 %v10059_v10, %v16606_v11  ;;  %v10077_v40 = vmax.f32 %v10069_v43, %v10073_v35  ;;  %v10078_v0 = vmax.f32 %v10070_v58, %v10074_v44  ;;  %v13097_v10 = vld [vmem:[%s16685_s13 + $0x5] sm:$0x1] }
 0x42d   : > { %v16991_v48 = vadd.f32 %v13786_v22, %v10587_v13  ;;  %v10079_v46 = vmax.f32 %v10071_v38, %v10075_v42  ;;  %v10080_v24 = vmax.f32 %v10076_v36, %v10077_v40 }
 0x42f   : > { %v10638_v37 = vmul.f32 %v16994_v20, %v16991_v48  ;;  %v10081_v52 = vmax.f32 %v10078_v0, %v10079_v46 }
 0x431   : > { %v10639_v51 = vrot.slane %v10638_v37, 4  ;;  %v16998_v60 = vmax.f32 %v10080_v24, %v10081_v52 }
 0x433   : > { %v10083_v54 = vsub.f32 %v10068_v2, %v16998_v60  ;;  %v10084_v55 = vsub.f32 %v10069_v43, %v16998_v60  ;;  %v10085_v57 = vsub.f32 %v10070_v58, %v16998_v60  ;;  %v10640_v62 = vadd.f32 %v10639_v51, %v10638_v37  ;;  %v17010_v2 = vld [vmem:[%s16722_s27 + $0x5] sm:$0x1] }
 0x434   : > { %v10086_v27 = vsub.f32 %v10071_v38, %v16998_v60  ;;  %v10087_v5 = vsub.f32 %v10072_v34, %v16998_v60  ;;  %v10088_v4 = vsub.f32 %v10073_v35, %v16998_v60  ;;  %v10089_v43 = vsub.f32 %v10074_v44, %v16998_v60 }
 0x435   : > { %v10091_v63 = vmul.f32 1.442695, %v10083_v54  ;;  %v10093_v3 = vmul.f32 1.442695, %v10084_v55  ;;  %v10095_v61 = vmul.f32 1.442695, %v10085_v57  ;;  %v10090_v30 = vsub.f32 %v10075_v42, %v16998_v60 }
 0x436   : > { %v10641_v18 = vrot.slane %v10640_v62, 2  ;;  %v10097_v25 = vmul.f32 1.442695, %v10086_v27  ;;  %v10099_v31 = vmul.f32 1.442695, %v10087_v5  ;;  %vm10788_vm8 = vcmp.gt.f32.partialorder %v17010_v2, 0.0 }
 0x437   : > { %14395 = vpow2.f32 %v10091_v63  ;;  %v10101_v16 = vmul.f32 1.442695, %v10088_v4  ;;  %v10103_v19 = vmul.f32 1.442695, %v10089_v43  ;;  %v10105_v35 = vmul.f32 1.442695, %v10090_v30 }
 0x438   : > { %14397 = vpow2.f32 %v10093_v3  ;;  %v10642_v23 = vadd.f32 %v10641_v18, %v10640_v62  ;;  %v10119_v43 = vsel %vm10118_vm6, 1, %v14497_v28 }
 0x439   : > { %14399 = vpow2.f32 %v10095_v61 }
 0x43a   : > { %v10643_v32 = vrot.slane %v10642_v23, 1  ;;  %14401 = vpow2.f32 %v10097_v25 }
 0x43b   : > { %14403 = vpow2.f32 %v10099_v31 }
 0x43c   : > { %v10644_v34 = vadd.f32 %v10643_v32, %v10642_v23  ;;  %14405 = vpow2.f32 %v10101_v16  ;;  %v10123_v16 = vrot.slane %v10119_v43, %v16356_v50 }
 0x43d   : > { %14407 = vpow2.f32 %v10103_v19 }
 0x43e   : > { %v10645_v26 = vadd.f32 %v13097_v10, %v10644_v34  ;;  %14409 = vpow2.f32 %v10105_v35  ;;  %vm17022_vm7 = vcmp.eq.s32.totalorder %v10123_v16, 1 }
 0x440   : > { %v10646_v22 = vmul.f32 %v17010_v2, %v10645_v26  ;;  %v10789_v2 = vsel %vm10788_vm8, 1, %v14497_v28 }
 0x441   : > { %v14396_v13 = vpop.eup %14395 }
 0x442   : > { %v14398_v44 = vpop.eup %14397  ;;  %v17014_v58 = vadd.f32 %v10646_v22, %v16951_v39 }
 0x443   : > { %v10107_v33 = vadd.f32 %v14398_v44, %v14396_v13  ;;  %v14400_v38 = vpop.eup %14399 }
 0x444   : > { %v14402_v40 = vpop.eup %14401 }
 0x445   : > { %v10108_v42 = vadd.f32 %v14400_v38, %v10107_v33  ;;  %v14404_v0 = vpop.eup %14403 }
 0x446   : > { %v14406_v24 = vpop.eup %14405 }
 0x447   : > { %v10109_v36 = vadd.f32 %v14402_v40, %v10108_v42  ;;  %v14408_v27 = vpop.eup %14407 }
 0x448   : > { %v13806_v37 = vpop.f32.mrb[36].mxu0  ;;  %v13828_v51 = vpop.f32.mrb[36].mxu1 }
 0x449   : > { %v10110_v46 = vadd.f32 %v14404_v0, %v10109_v36  ;;  %v13807_v52 = vpop.f32.mrb[37].mxu0  ;;  %v13829_v57 = vpop.f32.mrb[37].mxu1 }
 0x44a   : > { %v13808_v55 = vadd.f32 %v13807_v52, %v13806_v37  ;;  %v13809_v62 = vpop.f32.mrb[38].mxu0  ;;  %v13830_v63 = vadd.f32 %v13829_v57, %v13828_v51  ;;  %v13831_v3 = vpop.f32.mrb[38].mxu1 }
 0x44b   : > { %v10111_v54 = vadd.f32 %v14406_v24, %v10110_v46  ;;  %v13810_v39 = vpop.f32.mrb[39].mxu0  ;;  %v13832_v18 = vpop.f32.mrb[39].mxu1 }
 0x44c   : > { %v11217_v61 = vadd.f32 %v13808_v55, %v16504_v14  ;;  %v14410_v4 = vpop.eup %14409 }
 0x44d   : > { %v10112_v5 = vadd.f32 %v14408_v27, %v10111_v54 }
 0x44e   : > { %v11257_v23 = vadd.f32 %v13830_v63, %v11217_v61 }
 0x44f   : > { %v10113_v25 = vadd.f32 %v14410_v4, %v10112_v5 }
 0x451   : > { %14411 = vlog2.f32 %v10113_v25 }
 0x45b   : > { %v14412_v31 = vpop.eup %14411 }
 0x45c   : > { %v10115_v32 = vmul.f32 0.6931472, %v14412_v31 }
 0x45e   : > { %v10116_v30 = vadd.f32 %v10115_v32, %v16998_v60 }
 0x460   : > { %v10117_v10 = vadd.f32 %v10116_v30, %v16936_v1  ;;  %v17060_v30 = vld [vmem:[%s16654_s25 + $0x30] sm:$0xff] }
 0x462   : > { %v17029_v19 = vsel %vm17022_vm7, %v10117_v10, %v16963_v45 }
 0x463   : > { %v10649_v53 = vcombine.high %v17029_v19, %v17029_v19  ;;  %v10656_v26 = vrot.slane %v17029_v19, %v16552_v17 }
 0x465   : > { %v10663_v35 = vrot.slane %v10649_v53, %v16552_v17  ;;  %v10664_v60 = vcombine.high %v10656_v26, %v10656_v26  ;;  %v10672_v1 = vrot.slane %v10656_v26, %v16552_v17 }
 0x467   : > { %v10665_v13 = vcombine.high %v10663_v35, %v10663_v35  ;;  %v10679_v22 = vrot.slane %v10663_v35, %v16552_v17  ;;  %v10686_v44 = vrot.slane %v10664_v60, %v16552_v17  ;;  %v10694_v33 = vcombine.high %v10672_v1, %v10672_v1 }
 0x468   : > { %v10701_v36 = vrot.slane %v10672_v1, %v16356_v50  ;;  %v13850_v37 = vpop.f32.mrb[40].mxu0  ;;  %v13872_v55 = vpop.f32.mrb[40].mxu1 }
 0x469   : > { %v10693_v45 = vrot.slane %v10665_v13, %v16552_v17  ;;  %v10695_v38 = vcombine.high %v10679_v22, %v10679_v22  ;;  %v10696_v42 = vcombine.high %v10686_v44, %v10686_v44  ;;  %v10705_v40 = vrot.slane %v10686_v44, %v16356_v50  ;;  %v13851_v57 = vpop.f32.mrb[41].mxu0  ;;  %v13873_v63 = vpop.f32.mrb[41].mxu1 }
 0x46a   : > { %v10709_v0 = vrot.slane %v10694_v33, %v16356_v50  ;;  %v10717_v46 = vrot.slane %v10679_v22, %v16356_v50  ;;  %v13852_v27 = vadd.f32 %v13851_v57, %v13850_v37  ;;  %v13853_v3 = vpop.f32.mrb[42].mxu0  ;;  %v13875_v25 = vpop.f32.mrb[42].mxu1  ;;  %v10738_v43 = vadd.f32 %v10701_v36, %v16537_v56 }
 0x46b   : > { %v10697_v24 = vcombine.high %v10693_v45, %v10693_v45  ;;  %v10713_v52 = vrot.slane %v10696_v42, %v16356_v50  ;;  %v10721_v51 = vrot.slane %v10693_v45, %v16356_v50  ;;  %v10725_v54 = vrot.slane %v10695_v38, %v16356_v50  ;;  %v13854_v4 = vpop.f32.mrb[43].mxu0  ;;  %v13876_v16 = vpop.f32.mrb[43].mxu1  ;;  %v13244_v25 = vld [vmem:[%s16685_s13 + $0x6] sm:$0x1] }
 0x46c   : > { %v10739_v62 = vadd.f32 %v10705_v40, %v16544_v6  ;;  %v10742_v5 = vadd.f32 %v10717_v46, %v16575_v41  ;;  %v17055_v31 = vadd.f32 %v13852_v27, %v11257_v23  ;;  %v17057_v32 = vadd.f32 %v13873_v63, %v13872_v55  ;;  %v13243_v46 = vld [vmem:[%s16722_s27 + $0x6] sm:$0x1]  ;;  %v17082_v27 = vld [vmem:[%s16722_s27 + $0x7] sm:$0x1] }
 0x46d   : > { %v10729_v39 = vrot.slane %v10697_v24, %v16356_v50  ;;  %v10743_v61 = vadd.f32 %v10721_v51, %v16580_v47  ;;  %v17052_v18 = vadd.f32 %v10725_v54, %v16596_v7  ;;  %v10740_v10 = vadd.f32 %v10709_v0, %v16556_v21  ;;  %v14471_v24 = vld [vmem:[%s16654_s25 + $0x8] sm:$0xff] }
 0x46e   : > { %v10741_v53 = vadd.f32 %v10713_v52, %v16562_v29  ;;  %v11308_v60 = vmul.f32 %v17060_v30, %v17055_v31  ;;  %v10746_v1 = vmax.f32 %v10738_v43, %v10742_v5  ;;  %v14472_v52 = vld [vmem:[%s16654_s25] sm:$0xff]  ;;  %vm11458_vm9 = vcmp.gt.f32.partialorder %v13243_v46, 0.0 }
 0x46f   : > { %v10745_v26 = vadd.f32 %v10729_v39, %v16606_v11  ;;  %v10747_v35 = vmax.f32 %v10739_v62, %v10743_v61  ;;  %v10748_v23 = vmax.f32 %v10740_v10, %v17052_v18  ;;  %v8116_v51 = vsel %vm16748_vm1, %v14471_v24, %v14472_v52 }
 0x470   : > { %v11309_v22 = vrot.slane %v11308_v60, 4  ;;  %v8786_v39 = vsel %vm16889_vm3, %v16810_v9, %v8116_v51  ;;  %vm12128_vm10 = vcmp.gt.f32.partialorder %v17082_v27, 0.0 }
 0x471   : > { %v10749_v13 = vmax.f32 %v10741_v53, %v10745_v26  ;;  %v10750_v44 = vmax.f32 %v10746_v1, %v10747_v35  ;;  %v9456_v9 = vsel %vm16956_vm5, %v16875_v49, %v8786_v39  ;;  %v12129_v1 = vsel %vm12128_vm10, 1, %v14497_v28 }
 0x472   : > { %v11310_v45 = vadd.f32 %v11309_v22, %v11308_v60 }
 0x473   : > { %v10751_v33 = vmax.f32 %v10748_v23, %v10749_v13 }
 0x474   : > { %v11311_v42 = vrot.slane %v11310_v45, 2 }
 0x475   : > { %v17068_v38 = vmax.f32 %v10750_v44, %v10751_v33 }
 0x476   : > { %v11312_v57 = vadd.f32 %v11311_v42, %v11310_v45  ;;  %v13389_v42 = vld [vmem:[%s16654_s25 + $0x38] sm:$0xff] }
 0x477   : > { %v10753_v40 = vsub.f32 %v10738_v43, %v17068_v38  ;;  %v10754_v36 = vsub.f32 %v10739_v62, %v17068_v38  ;;  %v10755_v0 = vsub.f32 %v10740_v10, %v17068_v38  ;;  %v10756_v37 = vsub.f32 %v10741_v53, %v17068_v38 }
 0x478   : > { %v10757_v62 = vsub.f32 %v10742_v5, %v17068_v38  ;;  %v11313_v3 = vrot.slane %v11312_v57, 1  ;;  %v10758_v8 = vsub.f32 %v10743_v61, %v17068_v38  ;;  %v10793_v43 = vrot.slane %v10789_v2, %v16356_v50 }
 0x479   : > { %v10761_v54 = vmul.f32 1.442695, %v10753_v40  ;;  %v10763_v55 = vmul.f32 1.442695, %v10754_v36  ;;  %v10765_v63 = vmul.f32 1.442695, %v10755_v0  ;;  %v10759_v10 = vsub.f32 %v17052_v18, %v17068_v38  ;;  %v17127_v0 = vpop.permute.xlu0 %12139 }
 0x47a   : > { %v10767_v4 = vmul.f32 1.442695, %v10756_v37  ;;  %v11314_v16 = vadd.f32 %v11313_v3, %v11312_v57  ;;  %v11459_v5 = vsel %vm11458_vm9, 1, %v14497_v28  ;;  %v10769_v53 = vmul.f32 1.442695, %v10757_v62 }
 0x47b   : > { %14413 = vpow2.f32 %v10761_v54  ;;  %v10771_v61 = vmul.f32 1.442695, %v10758_v8  ;;  %v10760_v35 = vsub.f32 %v10745_v26, %v17068_v38  ;;  %v11463_v60 = vrot.slane %v11459_v5, %v16356_v50 }
 0x47c   : > { %14415 = vpow2.f32 %v10763_v55  ;;  %v11315_v59 = vadd.f32 %v13244_v25, %v11314_v16  ;;  %v10126_v18 = vsel %vm17022_vm7, %v16939_v12, %v9456_v9  ;;  %vm17104_vm11 = vcmp.eq.s32.totalorder %v10793_v43, 1 }
 0x47d   : > { %14417 = vpow2.f32 %v10765_v63  ;;  %v10773_v49 = vmul.f32 1.442695, %v10759_v10  ;;  %v12133_v26 = vrot.slane %v12129_v1, %v16356_v50  ;;  %v10775_v22 = vmul.f32 1.442695, %v10760_v35 }
 0x47e   : > { %14419 = vpow2.f32 %v10767_v4  ;;  %v11316_v23 = vmul.f32 %v13243_v46, %v11315_v59  ;;  %v10796_v34 = vsel %vm17104_vm11, %v16994_v20, %v10126_v18  ;;  %vm17115_vm12 = vcmp.eq.s32.totalorder %v11463_v60, 1 }
 0x47f   : > { %14421 = vpow2.f32 %v10769_v53  ;;  %vm17123_vm13 = vcmp.eq.s32.totalorder %v12133_v26, 1  ;;  %v11887_v57 = vadd.f32 %v17057_v32, %v16504_v14 }
 0x480   : > { %v17109_v15 = vadd.f32 %v11316_v23, %v17014_v58  ;;  %14423 = vpow2.f32 %v10771_v61  ;;  %v11466_v58 = vsel %vm17115_vm12, %v17060_v30, %v10796_v34 }
 0x481   : > { %14425 = vpow2.f32 %v10773_v49  ;;  %v12136_v46 = vsel %vm17123_vm13, %v13389_v42, %v11466_v58 }
 0x482   : > { %14427 = vpow2.f32 %v10775_v22  ;;  %v12142_v30 = vmul.f32 %v17127_v0, %v12136_v46 }
 0x484   : > { %v12143_v9 = vrot.slane %v12142_v30, 4 }
 0x485   : > { %v14414_v28 = vpop.eup %14413 }
 0x486   : > { %v14416_v44 = vpop.eup %14415  ;;  %v12144_v32 = vadd.f32 %v12143_v9, %v12142_v30 }
 0x487   : > { %v10777_v33 = vadd.f32 %v14416_v44, %v14414_v28  ;;  %v14418_v45 = vpop.eup %14417  ;;  %v13391_v28 = vld [vmem:[%s16685_s13 + $0x7] sm:$0x1] }
 0x488   : > { %v14420_v20 = vpop.eup %14419  ;;  %v13894_v52 = vpop.f32.mrb[44].mxu0  ;;  %v12145_v1 = vrot.slane %v12144_v32, 2 }
 0x489   : > { %v10778_v36 = vadd.f32 %v14418_v45, %v10777_v33  ;;  %v14422_v24 = vpop.eup %14421  ;;  %v13895_v54 = vpop.f32.mrb[45].mxu0 }
 0x48a   : > { %v14424_v55 = vpop.eup %14423  ;;  %v13896_v2 = vadd.f32 %v13895_v54, %v13894_v52  ;;  %v13916_v62 = vpop.f32.mrb[44].mxu1  ;;  %v12146_v49 = vadd.f32 %v12145_v1, %v12144_v32 }
 0x48b   : > { %v10779_v37 = vadd.f32 %v14420_v20, %v10778_v36  ;;  %v13897_v63 = vpop.f32.mrb[46].mxu0  ;;  %v13917_v39 = vpop.f32.mrb[45].mxu1 }
 0x48c   : > { %v13898_v8 = vpop.f32.mrb[47].mxu0  ;;  %v14426_v4 = vpop.eup %14425  ;;  %v11927_v25 = vadd.f32 %v13896_v2, %v11887_v57  ;;  %v13918_v43 = vadd.f32 %v13917_v39, %v13916_v62  ;;  %v12147_v33 = vrot.slane %v12146_v49, 1 }
 0x48d   : > { %v10780_v51 = vadd.f32 %v14422_v24, %v10779_v37  ;;  %v13919_v16 = vpop.f32.mrb[46].mxu1  ;;  %v14428_v53 = vpop.eup %14427 }
 0x48e   : > { %v13920_v10 = vpop.f32.mrb[47].mxu1  ;;  %v17134_v59 = vadd.f32 %v13918_v43, %v11927_v25  ;;  %v12148_v20 = vadd.f32 %v12147_v33, %v12146_v49 }
 0x48f   : > { %v10781_v3 = vadd.f32 %v14424_v55, %v10780_v51 }
 0x490   : > { %v11978_v14 = vmul.f32 %v13389_v42, %v17134_v59 }
 0x491   : > { %v10782_v5 = vadd.f32 %v14426_v4, %v10781_v3 }
 0x492   : > { %v11979_v35 = vrot.slane %v11978_v14, 4 }
 0x493   : > { %v10783_v61 = vadd.f32 %v14428_v53, %v10782_v5 }
 0x494   : > { %v11980_v60 = vadd.f32 %v11979_v35, %v11978_v14 }
 0x495   : > { %14429 = vlog2.f32 %v10783_v61 }
 0x496   : > { %v11981_v23 = vrot.slane %v11980_v60, 2 }
 0x498   : > { %v11982_v18 = vadd.f32 %v11981_v23, %v11980_v60 }
 0x49a   : > { %v11983_v26 = vrot.slane %v11982_v18, 1 }
 0x49c   : > { %v11984_v44 = vadd.f32 %v11983_v26, %v11982_v18 }
 0x49e   : > { %v11985_v58 = vadd.f32 %v13391_v28, %v11984_v44 }
 0x49f   : > { %v14430_v22 = vpop.eup %14429 }
 0x4a0   : > { %v10785_v34 = vmul.f32 0.6931472, %v14430_v22  ;;  %v11986_v42 = vmul.f32 %v17082_v27, %v11985_v58 }
 0x4a2   : > { %v10786_v45 = vadd.f32 %v10785_v34, %v17068_v38  ;;  %v11987_v37 = vadd.f32 %v11986_v42, %v17109_v15 }
 0x4a4   : > { %v10787_v36 = vadd.f32 %v10786_v45, %v16991_v48  ;;  %v17151_v38 = vadd.f32 %v12148_v20, %v11987_v37 }
 0x4a6   : > { %v17144_v46 = vsel %vm17104_vm11, %v10787_v36, %v17029_v19 }
 0x4a7   : > { %v11319_v24 = vcombine.high %v17144_v46, %v17144_v46  ;;  %v11326_v52 = vrot.slane %v17144_v46, %v16552_v17 }
 0x4a9   : > { %v11333_v48 = vrot.slane %v11319_v24, %v16552_v17  ;;  %v11334_v51 = vcombine.high %v11326_v52, %v11326_v52  ;;  %v11342_v27 = vrot.slane %v11326_v52, %v16552_v17 }
 0x4ab   : > { %v11335_v54 = vcombine.high %v11333_v48, %v11333_v48  ;;  %v11349_v13 = vrot.slane %v11333_v48, %v16552_v17  ;;  %v11356_v19 = vrot.slane %v11334_v51, %v16552_v17  ;;  %v11364_v55 = vcombine.high %v11342_v27, %v11342_v27 }
 0x4ac   : > { %v11371_v62 = vrot.slane %v11342_v27, %v16356_v50 }
 0x4ad   : > { %v11363_v15 = vrot.slane %v11335_v54, %v16552_v17  ;;  %v11365_v30 = vcombine.high %v11349_v13, %v11349_v13  ;;  %v11366_v57 = vcombine.high %v11356_v19, %v11356_v19  ;;  %v11375_v2 = vrot.slane %v11356_v19, %v16356_v50 }
 0x4ae   : > { %v11379_v63 = vrot.slane %v11364_v55, %v16356_v50  ;;  %v11387_v3 = vrot.slane %v11349_v13, %v16356_v50  ;;  %v11408_v9 = vadd.f32 %v11371_v62, %v16537_v56 }
 0x4af   : > { %v11367_v39 = vcombine.high %v11363_v15, %v11363_v15  ;;  %v11383_v8 = vrot.slane %v11366_v57, %v16356_v50  ;;  %v11391_v4 = vrot.slane %v11363_v15, %v16356_v50  ;;  %v11395_v25 = vrot.slane %v11365_v30, %v16356_v50 }
 0x4b0   : > { %v11409_v43 = vadd.f32 %v11375_v2, %v16544_v6  ;;  %v11412_v5 = vadd.f32 %v11387_v3, %v16575_v41  ;;  %v11410_v61 = vadd.f32 %v11379_v63, %v16556_v21 }
 0x4b1   : > { %v11399_v16 = vrot.slane %v11367_v39, %v16356_v50  ;;  %v11413_v10 = vadd.f32 %v11391_v4, %v16580_v47  ;;  %v11414_v53 = vadd.f32 %v11395_v25, %v16596_v7  ;;  %v11411_v14 = vadd.f32 %v11383_v8, %v16562_v29 }
 0x4b2   : > { %v11416_v60 = vmax.f32 %v11408_v9, %v11412_v5 }
 0x4b3   : > { %v11415_v32 = vadd.f32 %v11399_v16, %v16606_v11  ;;  %v11417_v35 = vmax.f32 %v11409_v43, %v11413_v10  ;;  %v11418_v1 = vmax.f32 %v11410_v61, %v11414_v53 }
 0x4b5   : > { %v11419_v23 = vmax.f32 %v11411_v14, %v11415_v32  ;;  %v11420_v18 = vmax.f32 %v11416_v60, %v11417_v35 }
 0x4b7   : > { %v11421_v49 = vmax.f32 %v11418_v1, %v11419_v23 }
 0x4b9   : > { %v11422_v26 = vmax.f32 %v11420_v18, %v11421_v49 }
 0x4bb   : > { %v11423_v22 = vsub.f32 %v11408_v9, %v11422_v26  ;;  %v11424_v28 = vsub.f32 %v11409_v43, %v11422_v26  ;;  %v11425_v34 = vsub.f32 %v11410_v61, %v11422_v26  ;;  %v11426_v44 = vsub.f32 %v11411_v14, %v11422_v26 }
 0x4bc   : > { %v11427_v58 = vsub.f32 %v11412_v5, %v11422_v26  ;;  %v11428_v42 = vsub.f32 %v11413_v10, %v11422_v26  ;;  %v11429_v37 = vsub.f32 %v11414_v53, %v11422_v26  ;;  %v11430_v48 = vsub.f32 %v11415_v32, %v11422_v26 }
 0x4bd   : > { %v11431_v33 = vmul.f32 1.442695, %v11423_v22  ;;  %v11433_v45 = vmul.f32 1.442695, %v11424_v28  ;;  %v11435_v36 = vmul.f32 1.442695, %v11425_v34 }
 0x4be   : > { %v11437_v20 = vmul.f32 1.442695, %v11426_v44  ;;  %v11439_v24 = vmul.f32 1.442695, %v11427_v58  ;;  %v11441_v52 = vmul.f32 1.442695, %v11428_v42 }
 0x4bf   : > { %14431 = vpow2.f32 %v11431_v33  ;;  %v11443_v51 = vmul.f32 1.442695, %v11429_v37  ;;  %v11445_v27 = vmul.f32 1.442695, %v11430_v48 }
 0x4c0   : > { %14433 = vpow2.f32 %v11433_v45 }
 0x4c1   : > { %14435 = vpow2.f32 %v11435_v36 }
 0x4c2   : > { %14437 = vpow2.f32 %v11437_v20 }
 0x4c3   : > { %14439 = vpow2.f32 %v11439_v24 }
 0x4c4   : > { %14441 = vpow2.f32 %v11441_v52 }
 0x4c5   : > { %14443 = vpow2.f32 %v11443_v51 }
 0x4c6   : > { %14445 = vpow2.f32 %v11445_v27 }
 0x4c9   : > { %v14432_v54 = vpop.eup %14431 }
 0x4ca   : > { %v14434_v13 = vpop.eup %14433 }
 0x4cb   : > { %v11447_v19 = vadd.f32 %v14434_v13, %v14432_v54  ;;  %v14436_v55 = vpop.eup %14435 }
 0x4cc   : > { %v14438_v30 = vpop.eup %14437 }
 0x4cd   : > { %v11448_v15 = vadd.f32 %v14436_v55, %v11447_v19  ;;  %v14440_v2 = vpop.eup %14439 }
 0x4ce   : > { %v14442_v63 = vpop.eup %14441 }
 0x4cf   : > { %v11449_v57 = vadd.f32 %v14438_v30, %v11448_v15  ;;  %v14444_v39 = vpop.eup %14443 }
 0x4d0   : > { %v14446_v4 = vpop.eup %14445 }
 0x4d1   : > { %v11450_v62 = vadd.f32 %v14440_v2, %v11449_v57 }
 0x4d3   : > { %v11451_v3 = vadd.f32 %v14442_v63, %v11450_v62 }
 0x4d5   : > { %v11452_v8 = vadd.f32 %v14444_v39, %v11451_v3 }
 0x4d7   : > { %v11453_v25 = vadd.f32 %v14446_v4, %v11452_v8 }
 0x4d9   : > { %14447 = vlog2.f32 %v11453_v25 }
 0x4e3   : > { %v14448_v43 = vpop.eup %14447 }
 0x4e4   : > { %v11455_v16 = vmul.f32 0.6931472, %v14448_v43 }
 0x4e6   : > { %v11456_v5 = vadd.f32 %v11455_v16, %v11422_v26 }
 0x4e8   : > { %v11457_v10 = vadd.f32 %v11456_v5, %v17055_v31 }
 0x4ea   : > { %v17178_v53 = vsel %vm17115_vm12, %v11457_v10, %v17144_v46 }
 0x4eb   : > { %v11989_v9 = vcombine.high %v17178_v53, %v17178_v53  ;;  %v11996_v61 = vrot.slane %v17178_v53, %v16552_v17 }
 0x4ed   : > { %v12003_v14 = vrot.slane %v11989_v9, %v16552_v17  ;;  %v12004_v32 = vcombine.high %v11996_v61, %v11996_v61  ;;  %v12012_v35 = vrot.slane %v11996_v61, %v16552_v17 }
 0x4ef   : > { %v12005_v60 = vcombine.high %v12003_v14, %v12003_v14  ;;  %v12019_v1 = vrot.slane %v12003_v14, %v16552_v17  ;;  %v12026_v31 = vrot.slane %v12004_v32, %v16552_v17  ;;  %v12034_v23 = vcombine.high %v12012_v35, %v12012_v35 }
 0x4f0   : > { %v12041_v26 = vrot.slane %v12012_v35, %v16356_v50 }
 0x4f1   : > { %v12033_v12 = vrot.slane %v12005_v60, %v16552_v17  ;;  %v12035_v46 = vcombine.high %v12019_v1, %v12019_v1  ;;  %v12036_v18 = vcombine.high %v12026_v31, %v12026_v31  ;;  %v12045_v49 = vrot.slane %v12026_v31, %v16356_v50 }
 0x4f2   : > { %v12049_v22 = vrot.slane %v12034_v23, %v16356_v50  ;;  %v12057_v28 = vrot.slane %v12019_v1, %v16356_v50  ;;  %v12078_v37 = vadd.f32 %v12041_v26, %v16537_v56 }
 0x4f3   : > { %v12037_v34 = vcombine.high %v12033_v12, %v12033_v12  ;;  %v12053_v44 = vrot.slane %v12036_v18, %v16356_v50  ;;  %v12061_v33 = vrot.slane %v12033_v12, %v16356_v50  ;;  %v12065_v45 = vrot.slane %v12035_v46, %v16356_v50 }
 0x4f4   : > { %v12079_v58 = vadd.f32 %v12045_v49, %v16544_v6  ;;  %v12082_v36 = vadd.f32 %v12057_v28, %v16575_v41  ;;  %v12080_v24 = vadd.f32 %v12049_v22, %v16556_v21 }
 0x4f5   : > { %v12069_v17 = vrot.slane %v12037_v34, %v16356_v50  ;;  %v12083_v42 = vadd.f32 %v12061_v33, %v16580_v47  ;;  %v12084_v20 = vadd.f32 %v12065_v45, %v16596_v7  ;;  %v12081_v52 = vadd.f32 %v12053_v44, %v16562_v29 }
 0x4f6   : > { %v12086_v27 = vmax.f32 %v12078_v37, %v12082_v36 }
 0x4f7   : > { %v12085_v48 = vadd.f32 %v12069_v17, %v16606_v11  ;;  %v12087_v51 = vmax.f32 %v12079_v58, %v12083_v42  ;;  %v12088_v54 = vmax.f32 %v12080_v24, %v12084_v20 }
 0x4f9   : > { %v12089_v6 = vmax.f32 %v12081_v52, %v12085_v48  ;;  %v12090_v13 = vmax.f32 %v12086_v27, %v12087_v51 }
 0x4fb   : > { %v12091_v50 = vmax.f32 %v12088_v54, %v12089_v6 }
 0x4fd   : > { %v12092_v19 = vmax.f32 %v12090_v13, %v12091_v50 }
 0x4ff   : > { %v12093_v41 = vsub.f32 %v12078_v37, %v12092_v19  ;;  %v12094_v55 = vsub.f32 %v12079_v58, %v12092_v19  ;;  %v12095_v47 = vsub.f32 %v12080_v24, %v12092_v19  ;;  %v12096_v15 = vsub.f32 %v12081_v52, %v12092_v19 }
 0x500   : > { %v12097_v56 = vsub.f32 %v12082_v36, %v12092_v19  ;;  %v12098_v21 = vsub.f32 %v12083_v42, %v12092_v19  ;;  %v12099_v11 = vsub.f32 %v12084_v20, %v12092_v19  ;;  %v12100_v63 = vsub.f32 %v12085_v48, %v12092_v19  ;;  %v12170_v48 = vld [vmem:[%s6835_s29] sm:$0x1] }
 0x501   : > { %v12101_v7 = vmul.f32 1.442695, %v12093_v41  ;;  %v12103_v30 = vmul.f32 1.442695, %v12094_v55  ;;  %v12105_v57 = vmul.f32 1.442695, %v12095_v47 }
 0x502   : > { %v12107_v29 = vmul.f32 1.442695, %v12096_v15  ;;  %v12109_v2 = vmul.f32 1.442695, %v12097_v56  ;;  %v12111_v62 = vmul.f32 1.442695, %v12098_v21 }
 0x503   : > { %14449 = vpow2.f32 %v12101_v7  ;;  %v12113_v3 = vmul.f32 1.442695, %v12099_v11  ;;  %v12115_v39 = vmul.f32 1.442695, %v12100_v63 }
 0x504   : > { %14451 = vpow2.f32 %v12103_v30 }
 0x505   : > { %14453 = vpow2.f32 %v12105_v57 }
 0x506   : > { %14455 = vpow2.f32 %v12107_v29 }
 0x507   : > { %14457 = vpow2.f32 %v12109_v2 }
 0x508   : > { %14459 = vpow2.f32 %v12111_v62 }
 0x509   : > { %14461 = vpow2.f32 %v12113_v3 }
 0x50a   : > { %14463 = vpow2.f32 %v12115_v39 }
 0x50d   : > { %v14450_v8 = vpop.eup %14449 }
 0x50e   : > { %v14452_v4 = vpop.eup %14451 }
 0x50f   : > { %v12117_v25 = vadd.f32 %v14452_v4, %v14450_v8  ;;  %v14454_v43 = vpop.eup %14453 }
 0x510   : > { %v14456_v5 = vpop.eup %14455 }
 0x511   : > { %v12118_v16 = vadd.f32 %v14454_v43, %v12117_v25  ;;  %v14458_v9 = vpop.eup %14457 }
 0x512   : > { %v14460_v14 = vpop.eup %14459 }
 0x513   : > { %v12119_v10 = vadd.f32 %v14456_v5, %v12118_v16  ;;  %v14462_v35 = vpop.eup %14461 }
 0x514   : > { %v14464_v1 = vpop.eup %14463 }
 0x515   : > { %v12120_v61 = vadd.f32 %v14458_v9, %v12119_v10 }
 0x517   : > { %v12121_v32 = vadd.f32 %v14460_v14, %v12120_v61 }
 0x519   : > { %v12122_v60 = vadd.f32 %v14462_v35, %v12121_v32 }
 0x51b   : > { %v12123_v31 = vadd.f32 %v14464_v1, %v12122_v60 }
 0x51d   : > { %14465 = vlog2.f32 %v12123_v31 }
 0x527   : > { %v14466_v23 = vpop.eup %14465 }
 0x528   : > { %v12125_v12 = vmul.f32 0.6931472, %v14466_v23 }
 0x52a   : > { %v12126_v46 = vadd.f32 %v12125_v12, %v12092_v19 }
 0x52c   : > { %v12127_v18 = vadd.f32 %v12126_v46, %v17134_v59 }
 0x52e   : > { %v12135_v49 = vsel %vm17123_vm13, %v12127_v18, %v17178_v53 }
 0x52f   : > { %v12150_v26 = vadd.f32 %v17127_v0, %v12135_v49 }
 0x531   : > { %v12151_v22 = vrot.slane %v12150_v26, 4 }
 0x533   : > { %v12152_v28 = vmax.f32 %v12150_v26, %v12151_v22 }
 0x535   : > { %v12153_v34 = vrot.slane %v12152_v28, 2 }
 0x537   : > { %v12154_v44 = vmax.f32 %v12152_v28, %v12153_v34 }
 0x539   : > { %v12155_v33 = vrot.slane %v12154_v44, 1 }
 0x53b   : > { %v12156_v45 = vmax.f32 %v12154_v44, %v12155_v33 }
 0x53d   : > { %v12157_v58 = vsub.f32 %v12150_v26, %v12156_v45 }
 0x53f   : > { %v12158_v17 = vmul.f32 1.442695, %v12157_v58 }
 0x541   : > { %14467 = vpow2.f32 %v12158_v17 }
 0x54b   : > { %v14468_v36 = vpop.eup %14467 }
 0x54c   : > { %v12160_v42 = vrot.slane %v14468_v36, 4 }
 0x54e   : > { %v12161_v59 = vadd.f32 %v14468_v36, %v12160_v42 }
 0x550   : > { %v12162_v20 = vrot.slane %v12161_v59, 2 }
 0x552   : > { %v12163_v37 = vadd.f32 %v12162_v20, %v12161_v59 }
 0x554   : > { %v12164_v40 = vrot.slane %v12163_v37, 1 }
 0x556   : > { %v12165_v53 = vadd.f32 %v12164_v40, %v12163_v37 }
 0x558   : > { %14469 = vlog2.f32 %v12165_v53 }
 0x562   : > { %v14470_v0 = vpop.eup %14469 }
 0x563   : > { %v12167_v24 = vmul.f32 0.6931472, %v14470_v0 }
 0x565   : > { %v12168_v52 = vadd.f32 %v12167_v24, %v12156_v45 }
 0x567   : > { %v12169_v51 = vsub.f32 %v17151_v38, %v12168_v52 }
 0x569   : > { %v12171_v27 = vmul.f32 %v12170_v48, %v12169_v51 }
 0x56b   : > { %v12172_v54 = vsub.f32 0.0, %v12171_v27 }
 0x56d   : > { %12173 = vst [vmem:[%s6838_s12] sm:$0x1] %v12172_v54 }
 0x56e PF: > { %p17_p9 = scmp.ge.s32.totalorder %s14571_s17, 4   ;;  %s17257_s13 = smov %s14491_s14 }
 0x56f   : > { %s17258_s14 = smov %s14580_s20  ;;  %s17259_s15 = smov %s14571_s17 }
 0x570   :  { %19 = sbr.rel (!%p17_p9) target bundleno = 2 (0x2), region = 326 }

</bundles_post_ra>
